<compile_context>
chip_gen: v5e
topology: v5e:2x2
jax: 0.10.0
libtpu: 0.0.40
codegen_flags: <defaults>
</compile_context>

<pallas_src>
import math

import jax
import jax.numpy as jnp
from jax.experimental import pallas as pl
from jax.experimental.pallas import tpu as pltpu


_STATIC_UNROLL_MAX_T = 16   # fully unroll the recurrence below this many steps


def _generator_kernel(x_ref,                       # (T, Bp, D_in)  f32
                      wih0_ref, whh0_ref, b0_ref,  # (D_in,4H) (H,4H) bf16, (1,4H) f32
                      wih1_ref, whh1_ref, b1_ref,  # (H,4H)   (H,4H) bf16, (1,4H) f32
                      w1_ref, bl1_ref,             # (H,H) bf16, (1,H) f32
                      w2_ref, bl2_ref,             # (H,OUT) bf16, (1,OUT) f32
                      out_ref,                     # (T*Bp, OUT) f32
                      pre_ref,                     # scratch (T, Bp, 4H) f32
                      hall_ref,                    # scratch (T, Bp, H)  f32
                      h_ref, c_ref):               # scratch (Bp, H)     f32
    T, Bp, D_in = x_ref.shape
    H = h_ref.shape[1]
    bf16 = jnp.bfloat16

    def recurrence(whh_ref):
        """One LSTM layer over time.  pre_ref[t] holds x_t @ W_ih + (b_ih+b_hh);
        writes hall_ref[t] = h_t.  Only the (Bp,H)@(H,4H) matmul and the gate
        elementwise math sit on the sequential dependency chain."""
        h_ref[...] = jnp.zeros_like(h_ref)   # PyTorch zero initial state
        c_ref[...] = jnp.zeros_like(c_ref)

        def step(t):
            gates = pre_ref[t] + jnp.dot(
                h_ref[...].astype(bf16), whh_ref[...],
                preferred_element_type=jnp.float32)
            # PyTorch gate order: input, forget, cell(g), output
            i_g = jax.nn.sigmoid(gates[:, 0 * H:1 * H])
            f_g = jax.nn.sigmoid(gates[:, 1 * H:2 * H])
            g_g = jnp.tanh(gates[:, 2 * H:3 * H])
            o_g = jax.nn.sigmoid(gates[:, 3 * H:4 * H])
            c_new = f_g * c_ref[...] + i_g * g_g
            h_new = o_g * jnp.tanh(c_new)
            c_ref[...] = c_new
            h_ref[...] = h_new
            hall_ref[t] = h_new

        if T <= _STATIC_UNROLL_MAX_T:
            for t in range(T):            # static unroll: best scheduling
                step(t)
        else:
            pl.loop(0, T)(step)           # bounded code size for long sequences

    # ---- layer 0: batched input projection (off the sequential path) -------
    x_flat = x_ref[...].reshape(T * Bp, D_in).astype(bf16)
    pre0 = jnp.dot(x_flat, wih0_ref[...],
                   preferred_element_type=jnp.float32) + b0_ref[...]
    pre_ref[...] = pre0.reshape(T, Bp, 4 * H)
    recurrence(whh0_ref)

    # ---- layer 1: batched input projection from layer-0 hidden states ------
    h0_flat = hall_ref[...].reshape(T * Bp, H).astype(bf16)
    pre1 = jnp.dot(h0_flat, wih1_ref[...],
                   preferred_element_type=jnp.float32) + b1_ref[...]
    pre_ref[...] = pre1.reshape(T, Bp, 4 * H)
    recurrence(whh1_ref)

    # ---- feed-forward head, hoisted out of the time loop --------------------
    h1_flat = hall_ref[...].reshape(T * Bp, H).astype(bf16)
    y = jnp.dot(h1_flat, w1_ref[...],
                preferred_element_type=jnp.float32) + bl1_ref[...]
    y = jnp.maximum(y, 0.0)                           # ReLU (dropout = identity)
    z = jnp.dot(y.astype(bf16), w2_ref[...],
                preferred_element_type=jnp.float32) + bl2_ref[...]
    out_ref[...] = jax.nn.sigmoid(z)                  # single bulk store


def _nbytes(shape, dtype):
    return math.prod(shape) * jnp.dtype(dtype).itemsize


@jax.jit
def generator_forward(x_btd, params):
    """x_btd: (B, T, D_in) float32 -> (B, T, output_dim) float32."""
    B, T, D_in = x_btd.shape
    H = params["w_hh0"].shape[0]
    OUT = params["w_lin2"].shape[1]

    # pad batch up to a multiple of 8 sublanes, work time-major
    Bp = ((B + 7) // 8) * 8
    x_tbd = jnp.transpose(x_btd, (1, 0, 2))           # (T, B, D_in)
    if Bp != B:
        x_tbd = jnp.pad(x_tbd, ((0, 0), (0, Bp - B), (0, 0)))

    bf16 = jnp.bfloat16
    vmem = pl.BlockSpec(memory_space=pltpu.MemorySpace.VMEM)

    # Everything (operands + scratch + output) lives in VMEM for the single
    # kernel invocation; size the scoped-VMEM limit from the real footprint
    # (with headroom) so spec-scale shapes (seq_length=120) also compile.
    footprint = (
        _nbytes((T, Bp, D_in), jnp.float32)               # x
        + _nbytes((D_in, 4 * H), bf16)                    # w_ih0
        + 3 * _nbytes((H, 4 * H), bf16)                   # w_hh0, w_ih1, w_hh1
        + 2 * _nbytes((1, 4 * H), jnp.float32)            # b0, b1
        + _nbytes((H, H), bf16) + _nbytes((1, H), jnp.float32)
        + _nbytes((H, OUT), bf16) + _nbytes((1, OUT), jnp.float32)
        + _nbytes((T * Bp, OUT), jnp.float32)             # out
        + _nbytes((T, Bp, 4 * H), jnp.float32)            # pre scratch
        + _nbytes((T, Bp, H), jnp.float32)                # hall scratch
        + 2 * _nbytes((Bp, H), jnp.float32)               # h, c
    )
    vmem_limit = max(32 * 1024 * 1024,
                     min(int(footprint * 1.5), 64 * 1024 * 1024))

    out_flat = pl.pallas_call(
        _generator_kernel,
        out_shape=jax.ShapeDtypeStruct((T * Bp, OUT), jnp.float32),
        in_specs=[vmem] * 11,
        out_specs=vmem,
        scratch_shapes=[
            pltpu.VMEM((T, Bp, 4 * H), jnp.float32),  # pre-activations
            pltpu.VMEM((T, Bp, H), jnp.float32),      # per-step hidden states
            pltpu.VMEM((Bp, H), jnp.float32),         # h
            pltpu.VMEM((Bp, H), jnp.float32),         # c
        ],
        compiler_params=pltpu.CompilerParams(vmem_limit_bytes=vmem_limit),
    )(
        x_tbd,
        params["w_ih0"].astype(bf16), params["w_hh0"].astype(bf16), params["b0"],
        params["w_ih1"].astype(bf16), params["w_hh1"].astype(bf16), params["b1"],
        params["w_lin1"].astype(bf16), params["b_lin1"],
        params["w_lin2"].astype(bf16), params["b_lin2"],
    )

    out_tbo = out_flat.reshape(T, Bp, OUT)[:, :B, :]  # drop batch padding
    return jnp.transpose(out_tbo, (1, 0, 2))          # (B, T, OUT)


def init_params(key, input_dim, hidden_dim, output_dim):
    """Same shapes / uniform(+-1/sqrt(H)) scale as PyTorch defaults.

    Weights are stored transposed (in_features, out_features) so the kernel
    does `act @ W`.  LSTM biases b_ih and b_hh are pre-summed.
    """
    H = hidden_dim
    bound = 1.0 / jnp.sqrt(jnp.float32(H))
    keys = jax.random.split(key, 12)

    def u(k, shape):
        return jax.random.uniform(k, shape, jnp.float32, -bound, bound)

    return {
        # LSTM layer 0: W_ih (4H, D_in) -> stored (D_in, 4H)
        "w_ih0": u(keys[0], (input_dim, 4 * H)),
        "w_hh0": u(keys[1], (H, 4 * H)),
        "b0": u(keys[2], (1, 4 * H)) + u(keys[3], (1, 4 * H)),  # b_ih + b_hh
        # LSTM layer 1: input is h of layer 0 (size H)
        "w_ih1": u(keys[4], (H, 4 * H)),
        "w_hh1": u(keys[5], (H, 4 * H)),
        "b1": u(keys[6], (1, 4 * H)) + u(keys[7], (1, 4 * H)),
        # linear1: (H, H)
        "w_lin1": u(keys[8], (H, H)),
        "b_lin1": u(keys[9], (1, H)),
        # linear2: (H, output_dim)
        "w_lin2": u(keys[10], (H, output_dim)),
        "b_lin2": u(keys[11], (1, output_dim)),
    }


if __name__ == "__main__":
    # Small shapes consistent with the module: batch=4, seq=8, input_dim=32,
    # hidden_dim=128 (module default), output_dim=1, num_layers=2.
    B, T, D_IN, H, OUT = 4, 8, 32, 128, 1

    key = jax.random.PRNGKey(0)
    k_x, k_p = jax.random.split(key)
    x = jax.random.normal(k_x, (B, T, D_IN), jnp.float32)
    params = init_params(k_p, D_IN, H, OUT)

    out = generator_forward(x, params)
    out = jax.block_until_ready(out)

    assert out.shape == (B, T, OUT), out.shape
    assert bool(jnp.all(jnp.isfinite(out)))
    assert bool(jnp.all((out >= 0.0) & (out <= 1.0)))  # sigmoid range
    print("KERNEL_OK")
</pallas_src>

<mosaic_0001>
module attributes {stable_mosaic.version = 11 : i64} {
  func.func @_generator_kernel(%arg0: memref<8x8x32xf32, #tpu.memory_space<vmem>>, %arg1: memref<32x512xbf16, #tpu.memory_space<vmem>>, %arg2: memref<128x512xbf16, #tpu.memory_space<vmem>>, %arg3: memref<1x512xf32, #tpu.memory_space<vmem>>, %arg4: memref<128x512xbf16, #tpu.memory_space<vmem>>, %arg5: memref<128x512xbf16, #tpu.memory_space<vmem>>, %arg6: memref<1x512xf32, #tpu.memory_space<vmem>>, %arg7: memref<128x128xbf16, #tpu.memory_space<vmem>>, %arg8: memref<1x128xf32, #tpu.memory_space<vmem>>, %arg9: memref<128x1xbf16, #tpu.memory_space<vmem>>, %arg10: memref<1x1xf32, #tpu.memory_space<vmem>>, %arg11: memref<64x1xf32, #tpu.memory_space<vmem>>, %arg12: memref<8x8x512xf32, #tpu.memory_space<vmem>>, %arg13: memref<8x8x128xf32, #tpu.memory_space<vmem>>, %arg14: memref<8x128xf32, #tpu.memory_space<vmem>>, %arg15: memref<8x128xf32, #tpu.memory_space<vmem>>) attributes {dimension_semantics = [], scalar_prefetch = 0 : i64, scratch_operands = 4 : i64, tpu.core_type = #tpu.core_type<tc>} {
    %c0 = arith.constant 0 : index
    %c0_0 = arith.constant 0 : index
    %c0_1 = arith.constant 0 : index
    %0 = vector.load %arg0[%c0, %c0_0, %c0_1] : memref<8x8x32xf32, #tpu.memory_space<vmem>>, vector<8x8x32xf32>
    %1 = vector.shape_cast %0 : vector<8x8x32xf32> to vector<64x32xf32>
    %2 = arith.truncf %1 : vector<64x32xf32> to vector<64x32xbf16>
    %c0_2 = arith.constant 0 : index
    %c0_3 = arith.constant 0 : index
    %3 = vector.load %arg1[%c0_2, %c0_3] : memref<32x512xbf16, #tpu.memory_space<vmem>>, vector<32x512xbf16>
    %cst = arith.constant dense<0.000000e+00> : vector<64x512xf32>
    %4 = tpu.matmul %2, %3, %cst {dimension_numbers = #tpu.dot_dimension_numbers<[1], [0], [0], [1], [0, 0, 1, 1], [], []>} : vector<64x32xbf16>, vector<32x512xbf16>, vector<64x512xf32> -> vector<64x512xf32>
    %c0_4 = arith.constant 0 : index
    %c0_5 = arith.constant 0 : index
    %5 = vector.load %arg3[%c0_4, %c0_5] : memref<1x512xf32, #tpu.memory_space<vmem>>, vector<1x512xf32>
    %6 = vector.broadcast %5 : vector<1x512xf32> to vector<64x512xf32>
    %7 = arith.addf %4, %6 : vector<64x512xf32>
    %8 = vector.shape_cast %7 : vector<64x512xf32> to vector<8x8x512xf32>
    %c0_6 = arith.constant 0 : index
    %c0_7 = arith.constant 0 : index
    %c0_8 = arith.constant 0 : index
    %9 = vector.load %arg12[%c0_6, %c0_7, %c0_8] : memref<8x8x512xf32, #tpu.memory_space<vmem>>, vector<8x8x512xf32>
    tpu.vector_store %arg12[%c0_6, %c0_7, %c0_8], %8 {strides = array<i32>} : memref<8x8x512xf32, #tpu.memory_space<vmem>>, vector<8x8x512xf32>,
    %cst_9 = arith.constant 0.000000e+00 : f32
    %10 = vector.broadcast %cst_9 : f32 to vector<8x128xf32>
    %c0_10 = arith.constant 0 : index
    %c0_11 = arith.constant 0 : index
    %11 = vector.load %arg14[%c0_10, %c0_11] : memref<8x128xf32, #tpu.memory_space<vmem>>, vector<8x128xf32>
    tpu.vector_store %arg14[%c0_10, %c0_11], %10 {strides = array<i32>} : memref<8x128xf32, #tpu.memory_space<vmem>>, vector<8x128xf32>,
    %cst_12 = arith.constant 0.000000e+00 : f32
    %12 = vector.broadcast %cst_12 : f32 to vector<8x128xf32>
    %c0_13 = arith.constant 0 : index
    %c0_14 = arith.constant 0 : index
    %13 = vector.load %arg15[%c0_13, %c0_14] : memref<8x128xf32, #tpu.memory_space<vmem>>, vector<8x128xf32>
    tpu.vector_store %arg15[%c0_13, %c0_14], %12 {strides = array<i32>} : memref<8x128xf32, #tpu.memory_space<vmem>>, vector<8x128xf32>,
    %c0_15 = arith.constant 0 : index
    %c0_16 = arith.constant 0 : index
    %c0_17 = arith.constant 0 : index
    %14 = vector.load %arg12[%c0_15, %c0_16, %c0_17] : memref<8x8x512xf32, #tpu.memory_space<vmem>>, vector<1x8x512xf32>
    %15 = vector.shape_cast %14 : vector<1x8x512xf32> to vector<8x512xf32>
    %c0_18 = arith.constant 0 : index
    %c0_19 = arith.constant 0 : index
    %16 = vector.load %arg14[%c0_18, %c0_19] : memref<8x128xf32, #tpu.memory_space<vmem>>, vector<8x128xf32>
    %17 = arith.truncf %16 : vector<8x128xf32> to vector<8x128xbf16>
    %c0_20 = arith.constant 0 : index
    %c0_21 = arith.constant 0 : index
    %18 = vector.load %arg2[%c0_20, %c0_21] : memref<128x512xbf16, #tpu.memory_space<vmem>>, vector<128x512xbf16>
    %cst_22 = arith.constant dense<0.000000e+00> : vector<8x512xf32>
    %19 = tpu.matmul %17, %18, %cst_22 {dimension_numbers = #tpu.dot_dimension_numbers<[1], [0], [0], [1], [0, 0, 1, 1], [], []>} : vector<8x128xbf16>, vector<128x512xbf16>, vector<8x512xf32> -> vector<8x512xf32>
    %20 = arith.addf %15, %19 : vector<8x512xf32>
    %21 = vector.extract_strided_slice %20 {offsets = [0, 0], sizes = [8, 128], strides = [1, 1]} : vector<8x512xf32> to vector<8x128xf32>
    %22 = arith.negf %21 : vector<8x128xf32>
    %23 = math.exp %22 : vector<8x128xf32>
    %cst_23 = arith.constant 1.000000e+00 : f32
    %24 = vector.broadcast %cst_23 : f32 to vector<8x128xf32>
    %25 = arith.addf %24, %23 : vector<8x128xf32>
    %26 = arith.divf %24, %25 : vector<8x128xf32>
    %27 = vector.extract_strided_slice %20 {offsets = [0, 128], sizes = [8, 128], strides = [1, 1]} : vector<8x512xf32> to vector<8x128xf32>
    %28 = arith.negf %27 : vector<8x128xf32>
    %29 = math.exp %28 : vector<8x128xf32>
    %cst_24 = arith.constant 1.000000e+00 : f32
    %30 = vector.broadcast %cst_24 : f32 to vector<8x128xf32>
    %31 = arith.addf %30, %29 : vector<8x128xf32>
    %32 = arith.divf %30, %31 : vector<8x128xf32>
    %33 = vector.extract_strided_slice %20 {offsets = [0, 256], sizes = [8, 128], strides = [1, 1]} : vector<8x512xf32> to vector<8x128xf32>
    %34 = math.tanh %33 : vector<8x128xf32>
    %35 = vector.extract_strided_slice %20 {offsets = [0, 384], sizes = [8, 128], strides = [1, 1]} : vector<8x512xf32> to vector<8x128xf32>
    %36 = arith.negf %35 : vector<8x128xf32>
    %37 = math.exp %36 : vector<8x128xf32>
    %cst_25 = arith.constant 1.000000e+00 : f32
    %38 = vector.broadcast %cst_25 : f32 to vector<8x128xf32>
    %39 = arith.addf %38, %37 : vector<8x128xf32>
    %40 = arith.divf %38, %39 : vector<8x128xf32>
    %c0_26 = arith.constant 0 : index
    %c0_27 = arith.constant 0 : index
    %41 = vector.load %arg15[%c0_26, %c0_27] : memref<8x128xf32, #tpu.memory_space<vmem>>, vector<8x128xf32>
    %42 = arith.mulf %32, %41 : vector<8x128xf32>
    %43 = arith.mulf %26, %34 : vector<8x128xf32>
    %44 = arith.addf %42, %43 : vector<8x128xf32>
    %45 = math.tanh %44 : vector<8x128xf32>
    %46 = arith.mulf %40, %45 : vector<8x128xf32>
    %c0_28 = arith.constant 0 : index
    %c0_29 = arith.constant 0 : index
    %47 = vector.load %arg15[%c0_28, %c0_29] : memref<8x128xf32, #tpu.memory_space<vmem>>, vector<8x128xf32>
    tpu.vector_store %arg15[%c0_28, %c0_29], %44 {strides = array<i32>} : memref<8x128xf32, #tpu.memory_space<vmem>>, vector<8x128xf32>,
    %c0_30 = arith.constant 0 : index
    %c0_31 = arith.constant 0 : index
    %48 = vector.load %arg14[%c0_30, %c0_31] : memref<8x128xf32, #tpu.memory_space<vmem>>, vector<8x128xf32>
    tpu.vector_store %arg14[%c0_30, %c0_31], %46 {strides = array<i32>} : memref<8x128xf32, #tpu.memory_space<vmem>>, vector<8x128xf32>,
    %c0_32 = arith.constant 0 : index
    %c0_33 = arith.constant 0 : index
    %c0_34 = arith.constant 0 : index
    %49 = vector.load %arg13[%c0_32, %c0_33, %c0_34] : memref<8x8x128xf32, #tpu.memory_space<vmem>>, vector<1x8x128xf32>
    %50 = vector.shape_cast %49 : vector<1x8x128xf32> to vector<8x128xf32>
    %51 = vector.shape_cast %46 : vector<8x128xf32> to vector<1x8x128xf32>
    tpu.vector_store %arg13[%c0_32, %c0_33, %c0_34], %51 {strides = array<i32>} : memref<8x8x128xf32, #tpu.memory_space<vmem>>, vector<1x8x128xf32>,
    %c1 = arith.constant 1 : index
    %c0_35 = arith.constant 0 : index
    %c0_36 = arith.constant 0 : index
    %52 = vector.load %arg12[%c1, %c0_35, %c0_36] : memref<8x8x512xf32, #tpu.memory_space<vmem>>, vector<1x8x512xf32>
    %53 = vector.shape_cast %52 : vector<1x8x512xf32> to vector<8x512xf32>
    %c0_37 = arith.constant 0 : index
    %c0_38 = arith.constant 0 : index
    %54 = vector.load %arg14[%c0_37, %c0_38] : memref<8x128xf32, #tpu.memory_space<vmem>>, vector<8x128xf32>
    %55 = arith.truncf %54 : vector<8x128xf32> to vector<8x128xbf16>
    %c0_39 = arith.constant 0 : index
    %c0_40 = arith.constant 0 : index
    %56 = vector.load %arg2[%c0_39, %c0_40] : memref<128x512xbf16, #tpu.memory_space<vmem>>, vector<128x512xbf16>
    %cst_41 = arith.constant dense<0.000000e+00> : vector<8x512xf32>
    %57 = tpu.matmul %55, %56, %cst_41 {dimension_numbers = #tpu.dot_dimension_numbers<[1], [0], [0], [1], [0, 0, 1, 1], [], []>} : vector<8x128xbf16>, vector<128x512xbf16>, vector<8x512xf32> -> vector<8x512xf32>
    %58 = arith.addf %53, %57 : vector<8x512xf32>
    %59 = vector.extract_strided_slice %58 {offsets = [0, 0], sizes = [8, 128], strides = [1, 1]} : vector<8x512xf32> to vector<8x128xf32>
    %60 = arith.negf %59 : vector<8x128xf32>
    %61 = math.exp %60 : vector<8x128xf32>
    %cst_42 = arith.constant 1.000000e+00 : f32
    %62 = vector.broadcast %cst_42 : f32 to vector<8x128xf32>
    %63 = arith.addf %62, %61 : vector<8x128xf32>
    %64 = arith.divf %62, %63 : vector<8x128xf32>
    %65 = vector.extract_strided_slice %58 {offsets = [0, 128], sizes = [8, 128], strides = [1, 1]} : vector<8x512xf32> to vector<8x128xf32>
    %66 = arith.negf %65 : vector<8x128xf32>
    %67 = math.exp %66 : vector<8x128xf32>
    %cst_43 = arith.constant 1.000000e+00 : f32
    %68 = vector.broadcast %cst_43 : f32 to vector<8x128xf32>
    %69 = arith.addf %68, %67 : vector<8x128xf32>
    %70 = arith.divf %68, %69 : vector<8x128xf32>
    %71 = vector.extract_strided_slice %58 {offsets = [0, 256], sizes = [8, 128], strides = [1, 1]} : vector<8x512xf32> to vector<8x128xf32>
    %72 = math.tanh %71 : vector<8x128xf32>
    %73 = vector.extract_strided_slice %58 {offsets = [0, 384], sizes = [8, 128], strides = [1, 1]} : vector<8x512xf32> to vector<8x128xf32>
    %74 = arith.negf %73 : vector<8x128xf32>
    %75 = math.exp %74 : vector<8x128xf32>
    %cst_44 = arith.constant 1.000000e+00 : f32
    %76 = vector.broadcast %cst_44 : f32 to vector<8x128xf32>
    %77 = arith.addf %76, %75 : vector<8x128xf32>
    %78 = arith.divf %76, %77 : vector<8x128xf32>
    %c0_45 = arith.constant 0 : index
    %c0_46 = arith.constant 0 : index
    %79 = vector.load %arg15[%c0_45, %c0_46] : memref<8x128xf32, #tpu.memory_space<vmem>>, vector<8x128xf32>
    %80 = arith.mulf %70, %79 : vector<8x128xf32>
    %81 = arith.mulf %64, %72 : vector<8x128xf32>
    %82 = arith.addf %80, %81 : vector<8x128xf32>
    %83 = math.tanh %82 : vector<8x128xf32>
    %84 = arith.mulf %78, %83 : vector<8x128xf32>
    %c0_47 = arith.constant 0 : index
    %c0_48 = arith.constant 0 : index
    %85 = vector.load %arg15[%c0_47, %c0_48] : memref<8x128xf32, #tpu.memory_space<vmem>>, vector<8x128xf32>
    tpu.vector_store %arg15[%c0_47, %c0_48], %82 {strides = array<i32>} : memref<8x128xf32, #tpu.memory_space<vmem>>, vector<8x128xf32>,
    %c0_49 = arith.constant 0 : index
    %c0_50 = arith.constant 0 : index
    %86 = vector.load %arg14[%c0_49, %c0_50] : memref<8x128xf32, #tpu.memory_space<vmem>>, vector<8x128xf32>
    tpu.vector_store %arg14[%c0_49, %c0_50], %84 {strides = array<i32>} : memref<8x128xf32, #tpu.memory_space<vmem>>, vector<8x128xf32>,
    %c1_51 = arith.constant 1 : index
    %c0_52 = arith.constant 0 : index
    %c0_53 = arith.constant 0 : index
    %87 = vector.load %arg13[%c1_51, %c0_52, %c0_53] : memref<8x8x128xf32, #tpu.memory_space<vmem>>, vector<1x8x128xf32>
    %88 = vector.shape_cast %87 : vector<1x8x128xf32> to vector<8x128xf32>
    %89 = vector.shape_cast %84 : vector<8x128xf32> to vector<1x8x128xf32>
    tpu.vector_store %arg13[%c1_51, %c0_52, %c0_53], %89 {strides = array<i32>} : memref<8x8x128xf32, #tpu.memory_space<vmem>>, vector<1x8x128xf32>,
    %c2 = arith.constant 2 : index
    %c0_54 = arith.constant 0 : index
    %c0_55 = arith.constant 0 : index
    %90 = vector.load %arg12[%c2, %c0_54, %c0_55] : memref<8x8x512xf32, #tpu.memory_space<vmem>>, vector<1x8x512xf32>
    %91 = vector.shape_cast %90 : vector<1x8x512xf32> to vector<8x512xf32>
    %c0_56 = arith.constant 0 : index
    %c0_57 = arith.constant 0 : index
    %92 = vector.load %arg14[%c0_56, %c0_57] : memref<8x128xf32, #tpu.memory_space<vmem>>, vector<8x128xf32>
    %93 = arith.truncf %92 : vector<8x128xf32> to vector<8x128xbf16>
    %c0_58 = arith.constant 0 : index
    %c0_59 = arith.constant 0 : index
    %94 = vector.load %arg2[%c0_58, %c0_59] : memref<128x512xbf16, #tpu.memory_space<vmem>>, vector<128x512xbf16>
    %cst_60 = arith.constant dense<0.000000e+00> : vector<8x512xf32>
    %95 = tpu.matmul %93, %94, %cst_60 {dimension_numbers = #tpu.dot_dimension_numbers<[1], [0], [0], [1], [0, 0, 1, 1], [], []>} : vector<8x128xbf16>, vector<128x512xbf16>, vector<8x512xf32> -> vector<8x512xf32>
    %96 = arith.addf %91, %95 : vector<8x512xf32>
    %97 = vector.extract_strided_slice %96 {offsets = [0, 0], sizes = [8, 128], strides = [1, 1]} : vector<8x512xf32> to vector<8x128xf32>
    %98 = arith.negf %97 : vector<8x128xf32>
    %99 = math.exp %98 : vector<8x128xf32>
    %cst_61 = arith.constant 1.000000e+00 : f32
    %100 = vector.broadcast %cst_61 : f32 to vector<8x128xf32>
    %101 = arith.addf %100, %99 : vector<8x128xf32>
    %102 = arith.divf %100, %101 : vector<8x128xf32>
    %103 = vector.extract_strided_slice %96 {offsets = [0, 128], sizes = [8, 128], strides = [1, 1]} : vector<8x512xf32> to vector<8x128xf32>
    %104 = arith.negf %103 : vector<8x128xf32>
    %105 = math.exp %104 : vector<8x128xf32>
    %cst_62 = arith.constant 1.000000e+00 : f32
    %106 = vector.broadcast %cst_62 : f32 to vector<8x128xf32>
    %107 = arith.addf %106, %105 : vector<8x128xf32>
    %108 = arith.divf %106, %107 : vector<8x128xf32>
    %109 = vector.extract_strided_slice %96 {offsets = [0, 256], sizes = [8, 128], strides = [1, 1]} : vector<8x512xf32> to vector<8x128xf32>
    %110 = math.tanh %109 : vector<8x128xf32>
    %111 = vector.extract_strided_slice %96 {offsets = [0, 384], sizes = [8, 128], strides = [1, 1]} : vector<8x512xf32> to vector<8x128xf32>
    %112 = arith.negf %111 : vector<8x128xf32>
    %113 = math.exp %112 : vector<8x128xf32>
    %cst_63 = arith.constant 1.000000e+00 : f32
    %114 = vector.broadcast %cst_63 : f32 to vector<8x128xf32>
    %115 = arith.addf %114, %113 : vector<8x128xf32>
    %116 = arith.divf %114, %115 : vector<8x128xf32>
    %c0_64 = arith.constant 0 : index
    %c0_65 = arith.constant 0 : index
    %117 = vector.load %arg15[%c0_64, %c0_65] : memref<8x128xf32, #tpu.memory_space<vmem>>, vector<8x128xf32>
    %118 = arith.mulf %108, %117 : vector<8x128xf32>
    %119 = arith.mulf %102, %110 : vector<8x128xf32>
    %120 = arith.addf %118, %119 : vector<8x128xf32>
    %121 = math.tanh %120 : vector<8x128xf32>
    %122 = arith.mulf %116, %121 : vector<8x128xf32>
    %c0_66 = arith.constant 0 : index
    %c0_67 = arith.constant 0 : index
    %123 = vector.load %arg15[%c0_66, %c0_67] : memref<8x128xf32, #tpu.memory_space<vmem>>, vector<8x128xf32>
    tpu.vector_store %arg15[%c0_66, %c0_67], %120 {strides = array<i32>} : memref<8x128xf32, #tpu.memory_space<vmem>>, vector<8x128xf32>,
    %c0_68 = arith.constant 0 : index
    %c0_69 = arith.constant 0 : index
    %124 = vector.load %arg14[%c0_68, %c0_69] : memref<8x128xf32, #tpu.memory_space<vmem>>, vector<8x128xf32>
    tpu.vector_store %arg14[%c0_68, %c0_69], %122 {strides = array<i32>} : memref<8x128xf32, #tpu.memory_space<vmem>>, vector<8x128xf32>,
    %c2_70 = arith.constant 2 : index
    %c0_71 = arith.constant 0 : index
    %c0_72 = arith.constant 0 : index
    %125 = vector.load %arg13[%c2_70, %c0_71, %c0_72] : memref<8x8x128xf32, #tpu.memory_space<vmem>>, vector<1x8x128xf32>
    %126 = vector.shape_cast %125 : vector<1x8x128xf32> to vector<8x128xf32>
    %127 = vector.shape_cast %122 : vector<8x128xf32> to vector<1x8x128xf32>
    tpu.vector_store %arg13[%c2_70, %c0_71, %c0_72], %127 {strides = array<i32>} : memref<8x8x128xf32, #tpu.memory_space<vmem>>, vector<1x8x128xf32>,
    %c3 = arith.constant 3 : index
    %c0_73 = arith.constant 0 : index
    %c0_74 = arith.constant 0 : index
    %128 = vector.load %arg12[%c3, %c0_73, %c0_74] : memref<8x8x512xf32, #tpu.memory_space<vmem>>, vector<1x8x512xf32>
    %129 = vector.shape_cast %128 : vector<1x8x512xf32> to vector<8x512xf32>
    %c0_75 = arith.constant 0 : index
    %c0_76 = arith.constant 0 : index
    %130 = vector.load %arg14[%c0_75, %c0_76] : memref<8x128xf32, #tpu.memory_space<vmem>>, vector<8x128xf32>
    %131 = arith.truncf %130 : vector<8x128xf32> to vector<8x128xbf16>
    %c0_77 = arith.constant 0 : index
    %c0_78 = arith.constant 0 : index
    %132 = vector.load %arg2[%c0_77, %c0_78] : memref<128x512xbf16, #tpu.memory_space<vmem>>, vector<128x512xbf16>
    %cst_79 = arith.constant dense<0.000000e+00> : vector<8x512xf32>
    %133 = tpu.matmul %131, %132, %cst_79 {dimension_numbers = #tpu.dot_dimension_numbers<[1], [0], [0], [1], [0, 0, 1, 1], [], []>} : vector<8x128xbf16>, vector<128x512xbf16>, vector<8x512xf32> -> vector<8x512xf32>
    %134 = arith.addf %129, %133 : vector<8x512xf32>
    %135 = vector.extract_strided_slice %134 {offsets = [0, 0], sizes = [8, 128], strides = [1, 1]} : vector<8x512xf32> to vector<8x128xf32>
    %136 = arith.negf %135 : vector<8x128xf32>
    %137 = math.exp %136 : vector<8x128xf32>
    %cst_80 = arith.constant 1.000000e+00 : f32
    %138 = vector.broadcast %cst_80 : f32 to vector<8x128xf32>
    %139 = arith.addf %138, %137 : vector<8x128xf32>
    %140 = arith.divf %138, %139 : vector<8x128xf32>
    %141 = vector.extract_strided_slice %134 {offsets = [0, 128], sizes = [8, 128], strides = [1, 1]} : vector<8x512xf32> to vector<8x128xf32>
    %142 = arith.negf %141 : vector<8x128xf32>
    %143 = math.exp %142 : vector<8x128xf32>
    %cst_81 = arith.constant 1.000000e+00 : f32
    %144 = vector.broadcast %cst_81 : f32 to vector<8x128xf32>
    %145 = arith.addf %144, %143 : vector<8x128xf32>
    %146 = arith.divf %144, %145 : vector<8x128xf32>
    %147 = vector.extract_strided_slice %134 {offsets = [0, 256], sizes = [8, 128], strides = [1, 1]} : vector<8x512xf32> to vector<8x128xf32>
    %148 = math.tanh %147 : vector<8x128xf32>
    %149 = vector.extract_strided_slice %134 {offsets = [0, 384], sizes = [8, 128], strides = [1, 1]} : vector<8x512xf32> to vector<8x128xf32>
    %150 = arith.negf %149 : vector<8x128xf32>
    %151 = math.exp %150 : vector<8x128xf32>
    %cst_82 = arith.constant 1.000000e+00 : f32
    %152 = vector.broadcast %cst_82 : f32 to vector<8x128xf32>
    %153 = arith.addf %152, %151 : vector<8x128xf32>
    %154 = arith.divf %152, %153 : vector<8x128xf32>
    %c0_83 = arith.constant 0 : index
    %c0_84 = arith.constant 0 : index
    %155 = vector.load %arg15[%c0_83, %c0_84] : memref<8x128xf32, #tpu.memory_space<vmem>>, vector<8x128xf32>
    %156 = arith.mulf %146, %155 : vector<8x128xf32>
    %157 = arith.mulf %140, %148 : vector<8x128xf32>
    %158 = arith.addf %156, %157 : vector<8x128xf32>
    %159 = math.tanh %158 : vector<8x128xf32>
    %160 = arith.mulf %154, %159 : vector<8x128xf32>
    %c0_85 = arith.constant 0 : index
    %c0_86 = arith.constant 0 : index
    %161 = vector.load %arg15[%c0_85, %c0_86] : memref<8x128xf32, #tpu.memory_space<vmem>>, vector<8x128xf32>
    tpu.vector_store %arg15[%c0_85, %c0_86], %158 {strides = array<i32>} : memref<8x128xf32, #tpu.memory_space<vmem>>, vector<8x128xf32>,
    %c0_87 = arith.constant 0 : index
    %c0_88 = arith.constant 0 : index
    %162 = vector.load %arg14[%c0_87, %c0_88] : memref<8x128xf32, #tpu.memory_space<vmem>>, vector<8x128xf32>
    tpu.vector_store %arg14[%c0_87, %c0_88], %160 {strides = array<i32>} : memref<8x128xf32, #tpu.memory_space<vmem>>, vector<8x128xf32>,
    %c3_89 = arith.constant 3 : index
    %c0_90 = arith.constant 0 : index
    %c0_91 = arith.constant 0 : index
    %163 = vector.load %arg13[%c3_89, %c0_90, %c0_91] : memref<8x8x128xf32, #tpu.memory_space<vmem>>, vector<1x8x128xf32>
    %164 = vector.shape_cast %163 : vector<1x8x128xf32> to vector<8x128xf32>
    %165 = vector.shape_cast %160 : vector<8x128xf32> to vector<1x8x128xf32>
    tpu.vector_store %arg13[%c3_89, %c0_90, %c0_91], %165 {strides = array<i32>} : memref<8x8x128xf32, #tpu.memory_space<vmem>>, vector<1x8x128xf32>,
    %c4 = arith.constant 4 : index
    %c0_92 = arith.constant 0 : index
    %c0_93 = arith.constant 0 : index
    %166 = vector.load %arg12[%c4, %c0_92, %c0_93] : memref<8x8x512xf32, #tpu.memory_space<vmem>>, vector<1x8x512xf32>
    %167 = vector.shape_cast %166 : vector<1x8x512xf32> to vector<8x512xf32>
    %c0_94 = arith.constant 0 : index
    %c0_95 = arith.constant 0 : index
    %168 = vector.load %arg14[%c0_94, %c0_95] : memref<8x128xf32, #tpu.memory_space<vmem>>, vector<8x128xf32>
    %169 = arith.truncf %168 : vector<8x128xf32> to vector<8x128xbf16>
    %c0_96 = arith.constant 0 : index
    %c0_97 = arith.constant 0 : index
    %170 = vector.load %arg2[%c0_96, %c0_97] : memref<128x512xbf16, #tpu.memory_space<vmem>>, vector<128x512xbf16>
    %cst_98 = arith.constant dense<0.000000e+00> : vector<8x512xf32>
    %171 = tpu.matmul %169, %170, %cst_98 {dimension_numbers = #tpu.dot_dimension_numbers<[1], [0], [0], [1], [0, 0, 1, 1], [], []>} : vector<8x128xbf16>, vector<128x512xbf16>, vector<8x512xf32> -> vector<8x512xf32>
    %172 = arith.addf %167, %171 : vector<8x512xf32>
    %173 = vector.extract_strided_slice %172 {offsets = [0, 0], sizes = [8, 128], strides = [1, 1]} : vector<8x512xf32> to vector<8x128xf32>
    %174 = arith.negf %173 : vector<8x128xf32>
    %175 = math.exp %174 : vector<8x128xf32>
    %cst_99 = arith.constant 1.000000e+00 : f32
    %176 = vector.broadcast %cst_99 : f32 to vector<8x128xf32>
    %177 = arith.addf %176, %175 : vector<8x128xf32>
    %178 = arith.divf %176, %177 : vector<8x128xf32>
    %179 = vector.extract_strided_slice %172 {offsets = [0, 128], sizes = [8, 128], strides = [1, 1]} : vector<8x512xf32> to vector<8x128xf32>
    %180 = arith.negf %179 : vector<8x128xf32>
    %181 = math.exp %180 : vector<8x128xf32>
    %cst_100 = arith.constant 1.000000e+00 : f32
    %182 = vector.broadcast %cst_100 : f32 to vector<8x128xf32>
    %183 = arith.addf %182, %181 : vector<8x128xf32>
    %184 = arith.divf %182, %183 : vector<8x128xf32>
    %185 = vector.extract_strided_slice %172 {offsets = [0, 256], sizes = [8, 128], strides = [1, 1]} : vector<8x512xf32> to vector<8x128xf32>
    %186 = math.tanh %185 : vector<8x128xf32>
    %187 = vector.extract_strided_slice %172 {offsets = [0, 384], sizes = [8, 128], strides = [1, 1]} : vector<8x512xf32> to vector<8x128xf32>
    %188 = arith.negf %187 : vector<8x128xf32>
    %189 = math.exp %188 : vector<8x128xf32>
    %cst_101 = arith.constant 1.000000e+00 : f32
    %190 = vector.broadcast %cst_101 : f32 to vector<8x128xf32>
    %191 = arith.addf %190, %189 : vector<8x128xf32>
    %192 = arith.divf %190, %191 : vector<8x128xf32>
    %c0_102 = arith.constant 0 : index
    %c0_103 = arith.constant 0 : index
    %193 = vector.load %arg15[%c0_102, %c0_103] : memref<8x128xf32, #tpu.memory_space<vmem>>, vector<8x128xf32>
    %194 = arith.mulf %184, %193 : vector<8x128xf32>
    %195 = arith.mulf %178, %186 : vector<8x128xf32>
    %196 = arith.addf %194, %195 : vector<8x128xf32>
    %197 = math.tanh %196 : vector<8x128xf32>
    %198 = arith.mulf %192, %197 : vector<8x128xf32>
    %c0_104 = arith.constant 0 : index
    %c0_105 = arith.constant 0 : index
    %199 = vector.load %arg15[%c0_104, %c0_105] : memref<8x128xf32, #tpu.memory_space<vmem>>, vector<8x128xf32>
    tpu.vector_store %arg15[%c0_104, %c0_105], %196 {strides = array<i32>} : memref<8x128xf32, #tpu.memory_space<vmem>>, vector<8x128xf32>,
    %c0_106 = arith.constant 0 : index
    %c0_107 = arith.constant 0 : index
    %200 = vector.load %arg14[%c0_106, %c0_107] : memref<8x128xf32, #tpu.memory_space<vmem>>, vector<8x128xf32>
    tpu.vector_store %arg14[%c0_106, %c0_107], %198 {strides = array<i32>} : memref<8x128xf32, #tpu.memory_space<vmem>>, vector<8x128xf32>,
    %c4_108 = arith.constant 4 : index
    %c0_109 = arith.constant 0 : index
    %c0_110 = arith.constant 0 : index
    %201 = vector.load %arg13[%c4_108, %c0_109, %c0_110] : memref<8x8x128xf32, #tpu.memory_space<vmem>>, vector<1x8x128xf32>
    %202 = vector.shape_cast %201 : vector<1x8x128xf32> to vector<8x128xf32>
    %203 = vector.shape_cast %198 : vector<8x128xf32> to vector<1x8x128xf32>
    tpu.vector_store %arg13[%c4_108, %c0_109, %c0_110], %203 {strides = array<i32>} : memref<8x8x128xf32, #tpu.memory_space<vmem>>, vector<1x8x128xf32>,
    %c5 = arith.constant 5 : index
    %c0_111 = arith.constant 0 : index
    %c0_112 = arith.constant 0 : index
    %204 = vector.load %arg12[%c5, %c0_111, %c0_112] : memref<8x8x512xf32, #tpu.memory_space<vmem>>, vector<1x8x512xf32>
    %205 = vector.shape_cast %204 : vector<1x8x512xf32> to vector<8x512xf32>
    %c0_113 = arith.constant 0 : index
    %c0_114 = arith.constant 0 : index
    %206 = vector.load %arg14[%c0_113, %c0_114] : memref<8x128xf32, #tpu.memory_space<vmem>>, vector<8x128xf32>
    %207 = arith.truncf %206 : vector<8x128xf32> to vector<8x128xbf16>
    %c0_115 = arith.constant 0 : index
    %c0_116 = arith.constant 0 : index
    %208 = vector.load %arg2[%c0_115, %c0_116] : memref<128x512xbf16, #tpu.memory_space<vmem>>, vector<128x512xbf16>
    %cst_117 = arith.constant dense<0.000000e+00> : vector<8x512xf32>
    %209 = tpu.matmul %207, %208, %cst_117 {dimension_numbers = #tpu.dot_dimension_numbers<[1], [0], [0], [1], [0, 0, 1, 1], [], []>} : vector<8x128xbf16>, vector<128x512xbf16>, vector<8x512xf32> -> vector<8x512xf32>
    %210 = arith.addf %205, %209 : vector<8x512xf32>
    %211 = vector.extract_strided_slice %210 {offsets = [0, 0], sizes = [8, 128], strides = [1, 1]} : vector<8x512xf32> to vector<8x128xf32>
    %212 = arith.negf %211 : vector<8x128xf32>
    %213 = math.exp %212 : vector<8x128xf32>
    %cst_118 = arith.constant 1.000000e+00 : f32
    %214 = vector.broadcast %cst_118 : f32 to vector<8x128xf32>
    %215 = arith.addf %214, %213 : vector<8x128xf32>
    %216 = arith.divf %214, %215 : vector<8x128xf32>
    %217 = vector.extract_strided_slice %210 {offsets = [0, 128], sizes = [8, 128], strides = [1, 1]} : vector<8x512xf32> to vector<8x128xf32>
    %218 = arith.negf %217 : vector<8x128xf32>
    %219 = math.exp %218 : vector<8x128xf32>
    %cst_119 = arith.constant 1.000000e+00 : f32
    %220 = vector.broadcast %cst_119 : f32 to vector<8x128xf32>
    %221 = arith.addf %220, %219 : vector<8x128xf32>
    %222 = arith.divf %220, %221 : vector<8x128xf32>
    %223 = vector.extract_strided_slice %210 {offsets = [0, 256], sizes = [8, 128], strides = [1, 1]} : vector<8x512xf32> to vector<8x128xf32>
    %224 = math.tanh %223 : vector<8x128xf32>
    %225 = vector.extract_strided_slice %210 {offsets = [0, 384], sizes = [8, 128], strides = [1, 1]} : vector<8x512xf32> to vector<8x128xf32>
    %226 = arith.negf %225 : vector<8x128xf32>
    %227 = math.exp %226 : vector<8x128xf32>
    %cst_120 = arith.constant 1.000000e+00 : f32
    %228 = vector.broadcast %cst_120 : f32 to vector<8x128xf32>
    %229 = arith.addf %228, %227 : vector<8x128xf32>
    %230 = arith.divf %228, %229 : vector<8x128xf32>
    %c0_121 = arith.constant 0 : index
    %c0_122 = arith.constant 0 : index
    %231 = vector.load %arg15[%c0_121, %c0_122] : memref<8x128xf32, #tpu.memory_space<vmem>>, vector<8x128xf32>
    %232 = arith.mulf %222, %231 : vector<8x128xf32>
    %233 = arith.mulf %216, %224 : vector<8x128xf32>
    %234 = arith.addf %232, %233 : vector<8x128xf32>
    %235 = math.tanh %234 : vector<8x128xf32>
    %236 = arith.mulf %230, %235 : vector<8x128xf32>
    %c0_123 = arith.constant 0 : index
    %c0_124 = arith.constant 0 : index
    %237 = vector.load %arg15[%c0_123, %c0_124] : memref<8x128xf32, #tpu.memory_space<vmem>>, vector<8x128xf32>
    tpu.vector_store %arg15[%c0_123, %c0_124], %234 {strides = array<i32>} : memref<8x128xf32, #tpu.memory_space<vmem>>, vector<8x128xf32>,
    %c0_125 = arith.constant 0 : index
    %c0_126 = arith.constant 0 : index
    %238 = vector.load %arg14[%c0_125, %c0_126] : memref<8x128xf32, #tpu.memory_space<vmem>>, vector<8x128xf32>
    tpu.vector_store %arg14[%c0_125, %c0_126], %236 {strides = array<i32>} : memref<8x128xf32, #tpu.memory_space<vmem>>, vector<8x128xf32>,
    %c5_127 = arith.constant 5 : index
    %c0_128 = arith.constant 0 : index
    %c0_129 = arith.constant 0 : index
    %239 = vector.load %arg13[%c5_127, %c0_128, %c0_129] : memref<8x8x128xf32, #tpu.memory_space<vmem>>, vector<1x8x128xf32>
    %240 = vector.shape_cast %239 : vector<1x8x128xf32> to vector<8x128xf32>
    %241 = vector.shape_cast %236 : vector<8x128xf32> to vector<1x8x128xf32>
    tpu.vector_store %arg13[%c5_127, %c0_128, %c0_129], %241 {strides = array<i32>} : memref<8x8x128xf32, #tpu.memory_space<vmem>>, vector<1x8x128xf32>,
    %c6 = arith.constant 6 : index
    %c0_130 = arith.constant 0 : index
    %c0_131 = arith.constant 0 : index
    %242 = vector.load %arg12[%c6, %c0_130, %c0_131] : memref<8x8x512xf32, #tpu.memory_space<vmem>>, vector<1x8x512xf32>
    %243 = vector.shape_cast %242 : vector<1x8x512xf32> to vector<8x512xf32>
    %c0_132 = arith.constant 0 : index
    %c0_133 = arith.constant 0 : index
    %244 = vector.load %arg14[%c0_132, %c0_133] : memref<8x128xf32, #tpu.memory_space<vmem>>, vector<8x128xf32>
    %245 = arith.truncf %244 : vector<8x128xf32> to vector<8x128xbf16>
    %c0_134 = arith.constant 0 : index
    %c0_135 = arith.constant 0 : index
    %246 = vector.load %arg2[%c0_134, %c0_135] : memref<128x512xbf16, #tpu.memory_space<vmem>>, vector<128x512xbf16>
    %cst_136 = arith.constant dense<0.000000e+00> : vector<8x512xf32>
    %247 = tpu.matmul %245, %246, %cst_136 {dimension_numbers = #tpu.dot_dimension_numbers<[1], [0], [0], [1], [0, 0, 1, 1], [], []>} : vector<8x128xbf16>, vector<128x512xbf16>, vector<8x512xf32> -> vector<8x512xf32>
    %248 = arith.addf %243, %247 : vector<8x512xf32>
    %249 = vector.extract_strided_slice %248 {offsets = [0, 0], sizes = [8, 128], strides = [1, 1]} : vector<8x512xf32> to vector<8x128xf32>
    %250 = arith.negf %249 : vector<8x128xf32>
    %251 = math.exp %250 : vector<8x128xf32>
    %cst_137 = arith.constant 1.000000e+00 : f32
    %252 = vector.broadcast %cst_137 : f32 to vector<8x128xf32>
    %253 = arith.addf %252, %251 : vector<8x128xf32>
    %254 = arith.divf %252, %253 : vector<8x128xf32>
    %255 = vector.extract_strided_slice %248 {offsets = [0, 128], sizes = [8, 128], strides = [1, 1]} : vector<8x512xf32> to vector<8x128xf32>
    %256 = arith.negf %255 : vector<8x128xf32>
    %257 = math.exp %256 : vector<8x128xf32>
    %cst_138 = arith.constant 1.000000e+00 : f32
    %258 = vector.broadcast %cst_138 : f32 to vector<8x128xf32>
    %259 = arith.addf %258, %257 : vector<8x128xf32>
    %260 = arith.divf %258, %259 : vector<8x128xf32>
    %261 = vector.extract_strided_slice %248 {offsets = [0, 256], sizes = [8, 128], strides = [1, 1]} : vector<8x512xf32> to vector<8x128xf32>
    %262 = math.tanh %261 : vector<8x128xf32>
    %263 = vector.extract_strided_slice %248 {offsets = [0, 384], sizes = [8, 128], strides = [1, 1]} : vector<8x512xf32> to vector<8x128xf32>
    %264 = arith.negf %263 : vector<8x128xf32>
    %265 = math.exp %264 : vector<8x128xf32>
    %cst_139 = arith.constant 1.000000e+00 : f32
    %266 = vector.broadcast %cst_139 : f32 to vector<8x128xf32>
    %267 = arith.addf %266, %265 : vector<8x128xf32>
    %268 = arith.divf %266, %267 : vector<8x128xf32>
    %c0_140 = arith.constant 0 : index
    %c0_141 = arith.constant 0 : index
    %269 = vector.load %arg15[%c0_140, %c0_141] : memref<8x128xf32, #tpu.memory_space<vmem>>, vector<8x128xf32>
    %270 = arith.mulf %260, %269 : vector<8x128xf32>
    %271 = arith.mulf %254, %262 : vector<8x128xf32>
    %272 = arith.addf %270, %271 : vector<8x128xf32>
    %273 = math.tanh %272 : vector<8x128xf32>
    %274 = arith.mulf %268, %273 : vector<8x128xf32>
    %c0_142 = arith.constant 0 : index
    %c0_143 = arith.constant 0 : index
    %275 = vector.load %arg15[%c0_142, %c0_143] : memref<8x128xf32, #tpu.memory_space<vmem>>, vector<8x128xf32>
    tpu.vector_store %arg15[%c0_142, %c0_143], %272 {strides = array<i32>} : memref<8x128xf32, #tpu.memory_space<vmem>>, vector<8x128xf32>,
    %c0_144 = arith.constant 0 : index
    %c0_145 = arith.constant 0 : index
    %276 = vector.load %arg14[%c0_144, %c0_145] : memref<8x128xf32, #tpu.memory_space<vmem>>, vector<8x128xf32>
    tpu.vector_store %arg14[%c0_144, %c0_145], %274 {strides = array<i32>} : memref<8x128xf32, #tpu.memory_space<vmem>>, vector<8x128xf32>,
    %c6_146 = arith.constant 6 : index
    %c0_147 = arith.constant 0 : index
    %c0_148 = arith.constant 0 : index
    %277 = vector.load %arg13[%c6_146, %c0_147, %c0_148] : memref<8x8x128xf32, #tpu.memory_space<vmem>>, vector<1x8x128xf32>
    %278 = vector.shape_cast %277 : vector<1x8x128xf32> to vector<8x128xf32>
    %279 = vector.shape_cast %274 : vector<8x128xf32> to vector<1x8x128xf32>
    tpu.vector_store %arg13[%c6_146, %c0_147, %c0_148], %279 {strides = array<i32>} : memref<8x8x128xf32, #tpu.memory_space<vmem>>, vector<1x8x128xf32>,
    %c7 = arith.constant 7 : index
    %c0_149 = arith.constant 0 : index
    %c0_150 = arith.constant 0 : index
    %280 = vector.load %arg12[%c7, %c0_149, %c0_150] : memref<8x8x512xf32, #tpu.memory_space<vmem>>, vector<1x8x512xf32>
    %281 = vector.shape_cast %280 : vector<1x8x512xf32> to vector<8x512xf32>
    %c0_151 = arith.constant 0 : index
    %c0_152 = arith.constant 0 : index
    %282 = vector.load %arg14[%c0_151, %c0_152] : memref<8x128xf32, #tpu.memory_space<vmem>>, vector<8x128xf32>
    %283 = arith.truncf %282 : vector<8x128xf32> to vector<8x128xbf16>
    %c0_153 = arith.constant 0 : index
    %c0_154 = arith.constant 0 : index
    %284 = vector.load %arg2[%c0_153, %c0_154] : memref<128x512xbf16, #tpu.memory_space<vmem>>, vector<128x512xbf16>
    %cst_155 = arith.constant dense<0.000000e+00> : vector<8x512xf32>
    %285 = tpu.matmul %283, %284, %cst_155 {dimension_numbers = #tpu.dot_dimension_numbers<[1], [0], [0], [1], [0, 0, 1, 1], [], []>} : vector<8x128xbf16>, vector<128x512xbf16>, vector<8x512xf32> -> vector<8x512xf32>
    %286 = arith.addf %281, %285 : vector<8x512xf32>
    %287 = vector.extract_strided_slice %286 {offsets = [0, 0], sizes = [8, 128], strides = [1, 1]} : vector<8x512xf32> to vector<8x128xf32>
    %288 = arith.negf %287 : vector<8x128xf32>
    %289 = math.exp %288 : vector<8x128xf32>
    %cst_156 = arith.constant 1.000000e+00 : f32
    %290 = vector.broadcast %cst_156 : f32 to vector<8x128xf32>
    %291 = arith.addf %290, %289 : vector<8x128xf32>
    %292 = arith.divf %290, %291 : vector<8x128xf32>
    %293 = vector.extract_strided_slice %286 {offsets = [0, 128], sizes = [8, 128], strides = [1, 1]} : vector<8x512xf32> to vector<8x128xf32>
    %294 = arith.negf %293 : vector<8x128xf32>
    %295 = math.exp %294 : vector<8x128xf32>
    %cst_157 = arith.constant 1.000000e+00 : f32
    %296 = vector.broadcast %cst_157 : f32 to vector<8x128xf32>
    %297 = arith.addf %296, %295 : vector<8x128xf32>
    %298 = arith.divf %296, %297 : vector<8x128xf32>
    %299 = vector.extract_strided_slice %286 {offsets = [0, 256], sizes = [8, 128], strides = [1, 1]} : vector<8x512xf32> to vector<8x128xf32>
    %300 = math.tanh %299 : vector<8x128xf32>
    %301 = vector.extract_strided_slice %286 {offsets = [0, 384], sizes = [8, 128], strides = [1, 1]} : vector<8x512xf32> to vector<8x128xf32>
    %302 = arith.negf %301 : vector<8x128xf32>
    %303 = math.exp %302 : vector<8x128xf32>
    %cst_158 = arith.constant 1.000000e+00 : f32
    %304 = vector.broadcast %cst_158 : f32 to vector<8x128xf32>
    %305 = arith.addf %304, %303 : vector<8x128xf32>
    %306 = arith.divf %304, %305 : vector<8x128xf32>
    %c0_159 = arith.constant 0 : index
    %c0_160 = arith.constant 0 : index
    %307 = vector.load %arg15[%c0_159, %c0_160] : memref<8x128xf32, #tpu.memory_space<vmem>>, vector<8x128xf32>
    %308 = arith.mulf %298, %307 : vector<8x128xf32>
    %309 = arith.mulf %292, %300 : vector<8x128xf32>
    %310 = arith.addf %308, %309 : vector<8x128xf32>
    %311 = math.tanh %310 : vector<8x128xf32>
    %312 = arith.mulf %306, %311 : vector<8x128xf32>
    %c0_161 = arith.constant 0 : index
    %c0_162 = arith.constant 0 : index
    %313 = vector.load %arg15[%c0_161, %c0_162] : memref<8x128xf32, #tpu.memory_space<vmem>>, vector<8x128xf32>
    tpu.vector_store %arg15[%c0_161, %c0_162], %310 {strides = array<i32>} : memref<8x128xf32, #tpu.memory_space<vmem>>, vector<8x128xf32>,
    %c0_163 = arith.constant 0 : index
    %c0_164 = arith.constant 0 : index
    %314 = vector.load %arg14[%c0_163, %c0_164] : memref<8x128xf32, #tpu.memory_space<vmem>>, vector<8x128xf32>
    tpu.vector_store %arg14[%c0_163, %c0_164], %312 {strides = array<i32>} : memref<8x128xf32, #tpu.memory_space<vmem>>, vector<8x128xf32>,
    %c7_165 = arith.constant 7 : index
    %c0_166 = arith.constant 0 : index
    %c0_167 = arith.constant 0 : index
    %315 = vector.load %arg13[%c7_165, %c0_166, %c0_167] : memref<8x8x128xf32, #tpu.memory_space<vmem>>, vector<1x8x128xf32>
    %316 = vector.shape_cast %315 : vector<1x8x128xf32> to vector<8x128xf32>
    %317 = vector.shape_cast %312 : vector<8x128xf32> to vector<1x8x128xf32>
    tpu.vector_store %arg13[%c7_165, %c0_166, %c0_167], %317 {strides = array<i32>} : memref<8x8x128xf32, #tpu.memory_space<vmem>>, vector<1x8x128xf32>,
    %c0_168 = arith.constant 0 : index
    %c0_169 = arith.constant 0 : index
    %c0_170 = arith.constant 0 : index
    %318 = vector.load %arg13[%c0_168, %c0_169, %c0_170] : memref<8x8x128xf32, #tpu.memory_space<vmem>>, vector<8x8x128xf32>
    %319 = vector.shape_cast %318 : vector<8x8x128xf32> to vector<64x128xf32>
    %320 = arith.truncf %319 : vector<64x128xf32> to vector<64x128xbf16>
    %c0_171 = arith.constant 0 : index
    %c0_172 = arith.constant 0 : index
    %321 = vector.load %arg4[%c0_171, %c0_172] : memref<128x512xbf16, #tpu.memory_space<vmem>>, vector<128x512xbf16>
    %cst_173 = arith.constant dense<0.000000e+00> : vector<64x512xf32>
    %322 = tpu.matmul %320, %321, %cst_173 {dimension_numbers = #tpu.dot_dimension_numbers<[1], [0], [0], [1], [0, 0, 1, 1], [], []>} : vector<64x128xbf16>, vector<128x512xbf16>, vector<64x512xf32> -> vector<64x512xf32>
    %c0_174 = arith.constant 0 : index
    %c0_175 = arith.constant 0 : index
    %323 = vector.load %arg6[%c0_174, %c0_175] : memref<1x512xf32, #tpu.memory_space<vmem>>, vector<1x512xf32>
    %324 = vector.broadcast %323 : vector<1x512xf32> to vector<64x512xf32>
    %325 = arith.addf %322, %324 : vector<64x512xf32>
    %326 = vector.shape_cast %325 : vector<64x512xf32> to vector<8x8x512xf32>
    %c0_176 = arith.constant 0 : index
    %c0_177 = arith.constant 0 : index
    %c0_178 = arith.constant 0 : index
    %327 = vector.load %arg12[%c0_176, %c0_177, %c0_178] : memref<8x8x512xf32, #tpu.memory_space<vmem>>, vector<8x8x512xf32>
    tpu.vector_store %arg12[%c0_176, %c0_177, %c0_178], %326 {strides = array<i32>} : memref<8x8x512xf32, #tpu.memory_space<vmem>>, vector<8x8x512xf32>,
    %cst_179 = arith.constant 0.000000e+00 : f32
    %328 = vector.broadcast %cst_179 : f32 to vector<8x128xf32>
    %c0_180 = arith.constant 0 : index
    %c0_181 = arith.constant 0 : index
    %329 = vector.load %arg14[%c0_180, %c0_181] : memref<8x128xf32, #tpu.memory_space<vmem>>, vector<8x128xf32>
    tpu.vector_store %arg14[%c0_180, %c0_181], %328 {strides = array<i32>} : memref<8x128xf32, #tpu.memory_space<vmem>>, vector<8x128xf32>,
    %cst_182 = arith.constant 0.000000e+00 : f32
    %330 = vector.broadcast %cst_182 : f32 to vector<8x128xf32>
    %c0_183 = arith.constant 0 : index
    %c0_184 = arith.constant 0 : index
    %331 = vector.load %arg15[%c0_183, %c0_184] : memref<8x128xf32, #tpu.memory_space<vmem>>, vector<8x128xf32>
    tpu.vector_store %arg15[%c0_183, %c0_184], %330 {strides = array<i32>} : memref<8x128xf32, #tpu.memory_space<vmem>>, vector<8x128xf32>,
    %c0_185 = arith.constant 0 : index
    %c0_186 = arith.constant 0 : index
    %c0_187 = arith.constant 0 : index
    %332 = vector.load %arg12[%c0_185, %c0_186, %c0_187] : memref<8x8x512xf32, #tpu.memory_space<vmem>>, vector<1x8x512xf32>
    %333 = vector.shape_cast %332 : vector<1x8x512xf32> to vector<8x512xf32>
    %c0_188 = arith.constant 0 : index
    %c0_189 = arith.constant 0 : index
    %334 = vector.load %arg14[%c0_188, %c0_189] : memref<8x128xf32, #tpu.memory_space<vmem>>, vector<8x128xf32>
    %335 = arith.truncf %334 : vector<8x128xf32> to vector<8x128xbf16>
    %c0_190 = arith.constant 0 : index
    %c0_191 = arith.constant 0 : index
    %336 = vector.load %arg5[%c0_190, %c0_191] : memref<128x512xbf16, #tpu.memory_space<vmem>>, vector<128x512xbf16>
    %cst_192 = arith.constant dense<0.000000e+00> : vector<8x512xf32>
    %337 = tpu.matmul %335, %336, %cst_192 {dimension_numbers = #tpu.dot_dimension_numbers<[1], [0], [0], [1], [0, 0, 1, 1], [], []>} : vector<8x128xbf16>, vector<128x512xbf16>, vector<8x512xf32> -> vector<8x512xf32>
    %338 = arith.addf %333, %337 : vector<8x512xf32>
    %339 = vector.extract_strided_slice %338 {offsets = [0, 0], sizes = [8, 128], strides = [1, 1]} : vector<8x512xf32> to vector<8x128xf32>
    %340 = arith.negf %339 : vector<8x128xf32>
    %341 = math.exp %340 : vector<8x128xf32>
    %cst_193 = arith.constant 1.000000e+00 : f32
    %342 = vector.broadcast %cst_193 : f32 to vector<8x128xf32>
    %343 = arith.addf %342, %341 : vector<8x128xf32>
    %344 = arith.divf %342, %343 : vector<8x128xf32>
    %345 = vector.extract_strided_slice %338 {offsets = [0, 128], sizes = [8, 128], strides = [1, 1]} : vector<8x512xf32> to vector<8x128xf32>
    %346 = arith.negf %345 : vector<8x128xf32>
    %347 = math.exp %346 : vector<8x128xf32>
    %cst_194 = arith.constant 1.000000e+00 : f32
    %348 = vector.broadcast %cst_194 : f32 to vector<8x128xf32>
    %349 = arith.addf %348, %347 : vector<8x128xf32>
    %350 = arith.divf %348, %349 : vector<8x128xf32>
    %351 = vector.extract_strided_slice %338 {offsets = [0, 256], sizes = [8, 128], strides = [1, 1]} : vector<8x512xf32> to vector<8x128xf32>
    %352 = math.tanh %351 : vector<8x128xf32>
    %353 = vector.extract_strided_slice %338 {offsets = [0, 384], sizes = [8, 128], strides = [1, 1]} : vector<8x512xf32> to vector<8x128xf32>
    %354 = arith.negf %353 : vector<8x128xf32>
    %355 = math.exp %354 : vector<8x128xf32>
    %cst_195 = arith.constant 1.000000e+00 : f32
    %356 = vector.broadcast %cst_195 : f32 to vector<8x128xf32>
    %357 = arith.addf %356, %355 : vector<8x128xf32>
    %358 = arith.divf %356, %357 : vector<8x128xf32>
    %c0_196 = arith.constant 0 : index
    %c0_197 = arith.constant 0 : index
    %359 = vector.load %arg15[%c0_196, %c0_197] : memref<8x128xf32, #tpu.memory_space<vmem>>, vector<8x128xf32>
    %360 = arith.mulf %350, %359 : vector<8x128xf32>
    %361 = arith.mulf %344, %352 : vector<8x128xf32>
    %362 = arith.addf %360, %361 : vector<8x128xf32>
    %363 = math.tanh %362 : vector<8x128xf32>
    %364 = arith.mulf %358, %363 : vector<8x128xf32>
    %c0_198 = arith.constant 0 : index
    %c0_199 = arith.constant 0 : index
    %365 = vector.load %arg15[%c0_198, %c0_199] : memref<8x128xf32, #tpu.memory_space<vmem>>, vector<8x128xf32>
    tpu.vector_store %arg15[%c0_198, %c0_199], %362 {strides = array<i32>} : memref<8x128xf32, #tpu.memory_space<vmem>>, vector<8x128xf32>,
    %c0_200 = arith.constant 0 : index
    %c0_201 = arith.constant 0 : index
    %366 = vector.load %arg14[%c0_200, %c0_201] : memref<8x128xf32, #tpu.memory_space<vmem>>, vector<8x128xf32>
    tpu.vector_store %arg14[%c0_200, %c0_201], %364 {strides = array<i32>} : memref<8x128xf32, #tpu.memory_space<vmem>>, vector<8x128xf32>,
    %c0_202 = arith.constant 0 : index
    %c0_203 = arith.constant 0 : index
    %c0_204 = arith.constant 0 : index
    %367 = vector.load %arg13[%c0_202, %c0_203, %c0_204] : memref<8x8x128xf32, #tpu.memory_space<vmem>>, vector<1x8x128xf32>
    %368 = vector.shape_cast %367 : vector<1x8x128xf32> to vector<8x128xf32>
    %369 = vector.shape_cast %364 : vector<8x128xf32> to vector<1x8x128xf32>
    tpu.vector_store %arg13[%c0_202, %c0_203, %c0_204], %369 {strides = array<i32>} : memref<8x8x128xf32, #tpu.memory_space<vmem>>, vector<1x8x128xf32>,
    %c1_205 = arith.constant 1 : index
    %c0_206 = arith.constant 0 : index
    %c0_207 = arith.constant 0 : index
    %370 = vector.load %arg12[%c1_205, %c0_206, %c0_207] : memref<8x8x512xf32, #tpu.memory_space<vmem>>, vector<1x8x512xf32>
    %371 = vector.shape_cast %370 : vector<1x8x512xf32> to vector<8x512xf32>
    %c0_208 = arith.constant 0 : index
    %c0_209 = arith.constant 0 : index
    %372 = vector.load %arg14[%c0_208, %c0_209] : memref<8x128xf32, #tpu.memory_space<vmem>>, vector<8x128xf32>
    %373 = arith.truncf %372 : vector<8x128xf32> to vector<8x128xbf16>
    %c0_210 = arith.constant 0 : index
    %c0_211 = arith.constant 0 : index
    %374 = vector.load %arg5[%c0_210, %c0_211] : memref<128x512xbf16, #tpu.memory_space<vmem>>, vector<128x512xbf16>
    %cst_212 = arith.constant dense<0.000000e+00> : vector<8x512xf32>
    %375 = tpu.matmul %373, %374, %cst_212 {dimension_numbers = #tpu.dot_dimension_numbers<[1], [0], [0], [1], [0, 0, 1, 1], [], []>} : vector<8x128xbf16>, vector<128x512xbf16>, vector<8x512xf32> -> vector<8x512xf32>
    %376 = arith.addf %371, %375 : vector<8x512xf32>
    %377 = vector.extract_strided_slice %376 {offsets = [0, 0], sizes = [8, 128], strides = [1, 1]} : vector<8x512xf32> to vector<8x128xf32>
    %378 = arith.negf %377 : vector<8x128xf32>
    %379 = math.exp %378 : vector<8x128xf32>
    %cst_213 = arith.constant 1.000000e+00 : f32
    %380 = vector.broadcast %cst_213 : f32 to vector<8x128xf32>
    %381 = arith.addf %380, %379 : vector<8x128xf32>
    %382 = arith.divf %380, %381 : vector<8x128xf32>
    %383 = vector.extract_strided_slice %376 {offsets = [0, 128], sizes = [8, 128], strides = [1, 1]} : vector<8x512xf32> to vector<8x128xf32>
    %384 = arith.negf %383 : vector<8x128xf32>
    %385 = math.exp %384 : vector<8x128xf32>
    %cst_214 = arith.constant 1.000000e+00 : f32
    %386 = vector.broadcast %cst_214 : f32 to vector<8x128xf32>
    %387 = arith.addf %386, %385 : vector<8x128xf32>
    %388 = arith.divf %386, %387 : vector<8x128xf32>
    %389 = vector.extract_strided_slice %376 {offsets = [0, 256], sizes = [8, 128], strides = [1, 1]} : vector<8x512xf32> to vector<8x128xf32>
    %390 = math.tanh %389 : vector<8x128xf32>
    %391 = vector.extract_strided_slice %376 {offsets = [0, 384], sizes = [8, 128], strides = [1, 1]} : vector<8x512xf32> to vector<8x128xf32>
    %392 = arith.negf %391 : vector<8x128xf32>
    %393 = math.exp %392 : vector<8x128xf32>
    %cst_215 = arith.constant 1.000000e+00 : f32
    %394 = vector.broadcast %cst_215 : f32 to vector<8x128xf32>
    %395 = arith.addf %394, %393 : vector<8x128xf32>
    %396 = arith.divf %394, %395 : vector<8x128xf32>
    %c0_216 = arith.constant 0 : index
    %c0_217 = arith.constant 0 : index
    %397 = vector.load %arg15[%c0_216, %c0_217] : memref<8x128xf32, #tpu.memory_space<vmem>>, vector<8x128xf32>
    %398 = arith.mulf %388, %397 : vector<8x128xf32>
    %399 = arith.mulf %382, %390 : vector<8x128xf32>
    %400 = arith.addf %398, %399 : vector<8x128xf32>
    %401 = math.tanh %400 : vector<8x128xf32>
    %402 = arith.mulf %396, %401 : vector<8x128xf32>
    %c0_218 = arith.constant 0 : index
    %c0_219 = arith.constant 0 : index
    %403 = vector.load %arg15[%c0_218, %c0_219] : memref<8x128xf32, #tpu.memory_space<vmem>>, vector<8x128xf32>
    tpu.vector_store %arg15[%c0_218, %c0_219], %400 {strides = array<i32>} : memref<8x128xf32, #tpu.memory_space<vmem>>, vector<8x128xf32>,
    %c0_220 = arith.constant 0 : index
    %c0_221 = arith.constant 0 : index
    %404 = vector.load %arg14[%c0_220, %c0_221] : memref<8x128xf32, #tpu.memory_space<vmem>>, vector<8x128xf32>
    tpu.vector_store %arg14[%c0_220, %c0_221], %402 {strides = array<i32>} : memref<8x128xf32, #tpu.memory_space<vmem>>, vector<8x128xf32>,
    %c1_222 = arith.constant 1 : index
    %c0_223 = arith.constant 0 : index
    %c0_224 = arith.constant 0 : index
    %405 = vector.load %arg13[%c1_222, %c0_223, %c0_224] : memref<8x8x128xf32, #tpu.memory_space<vmem>>, vector<1x8x128xf32>
    %406 = vector.shape_cast %405 : vector<1x8x128xf32> to vector<8x128xf32>
    %407 = vector.shape_cast %402 : vector<8x128xf32> to vector<1x8x128xf32>
    tpu.vector_store %arg13[%c1_222, %c0_223, %c0_224], %407 {strides = array<i32>} : memref<8x8x128xf32, #tpu.memory_space<vmem>>, vector<1x8x128xf32>,
    %c2_225 = arith.constant 2 : index
    %c0_226 = arith.constant 0 : index
    %c0_227 = arith.constant 0 : index
    %408 = vector.load %arg12[%c2_225, %c0_226, %c0_227] : memref<8x8x512xf32, #tpu.memory_space<vmem>>, vector<1x8x512xf32>
    %409 = vector.shape_cast %408 : vector<1x8x512xf32> to vector<8x512xf32>
    %c0_228 = arith.constant 0 : index
    %c0_229 = arith.constant 0 : index
    %410 = vector.load %arg14[%c0_228, %c0_229] : memref<8x128xf32, #tpu.memory_space<vmem>>, vector<8x128xf32>
    %411 = arith.truncf %410 : vector<8x128xf32> to vector<8x128xbf16>
    %c0_230 = arith.constant 0 : index
    %c0_231 = arith.constant 0 : index
    %412 = vector.load %arg5[%c0_230, %c0_231] : memref<128x512xbf16, #tpu.memory_space<vmem>>, vector<128x512xbf16>
    %cst_232 = arith.constant dense<0.000000e+00> : vector<8x512xf32>
    %413 = tpu.matmul %411, %412, %cst_232 {dimension_numbers = #tpu.dot_dimension_numbers<[1], [0], [0], [1], [0, 0, 1, 1], [], []>} : vector<8x128xbf16>, vector<128x512xbf16>, vector<8x512xf32> -> vector<8x512xf32>
    %414 = arith.addf %409, %413 : vector<8x512xf32>
    %415 = vector.extract_strided_slice %414 {offsets = [0, 0], sizes = [8, 128], strides = [1, 1]} : vector<8x512xf32> to vector<8x128xf32>
    %416 = arith.negf %415 : vector<8x128xf32>
    %417 = math.exp %416 : vector<8x128xf32>
    %cst_233 = arith.constant 1.000000e+00 : f32
    %418 = vector.broadcast %cst_233 : f32 to vector<8x128xf32>
    %419 = arith.addf %418, %417 : vector<8x128xf32>
    %420 = arith.divf %418, %419 : vector<8x128xf32>
    %421 = vector.extract_strided_slice %414 {offsets = [0, 128], sizes = [8, 128], strides = [1, 1]} : vector<8x512xf32> to vector<8x128xf32>
    %422 = arith.negf %421 : vector<8x128xf32>
    %423 = math.exp %422 : vector<8x128xf32>
    %cst_234 = arith.constant 1.000000e+00 : f32
    %424 = vector.broadcast %cst_234 : f32 to vector<8x128xf32>
    %425 = arith.addf %424, %423 : vector<8x128xf32>
    %426 = arith.divf %424, %425 : vector<8x128xf32>
    %427 = vector.extract_strided_slice %414 {offsets = [0, 256], sizes = [8, 128], strides = [1, 1]} : vector<8x512xf32> to vector<8x128xf32>
    %428 = math.tanh %427 : vector<8x128xf32>
    %429 = vector.extract_strided_slice %414 {offsets = [0, 384], sizes = [8, 128], strides = [1, 1]} : vector<8x512xf32> to vector<8x128xf32>
    %430 = arith.negf %429 : vector<8x128xf32>
    %431 = math.exp %430 : vector<8x128xf32>
    %cst_235 = arith.constant 1.000000e+00 : f32
    %432 = vector.broadcast %cst_235 : f32 to vector<8x128xf32>
    %433 = arith.addf %432, %431 : vector<8x128xf32>
    %434 = arith.divf %432, %433 : vector<8x128xf32>
    %c0_236 = arith.constant 0 : index
    %c0_237 = arith.constant 0 : index
    %435 = vector.load %arg15[%c0_236, %c0_237] : memref<8x128xf32, #tpu.memory_space<vmem>>, vector<8x128xf32>
    %436 = arith.mulf %426, %435 : vector<8x128xf32>
    %437 = arith.mulf %420, %428 : vector<8x128xf32>
    %438 = arith.addf %436, %437 : vector<8x128xf32>
    %439 = math.tanh %438 : vector<8x128xf32>
    %440 = arith.mulf %434, %439 : vector<8x128xf32>
    %c0_238 = arith.constant 0 : index
    %c0_239 = arith.constant 0 : index
    %441 = vector.load %arg15[%c0_238, %c0_239] : memref<8x128xf32, #tpu.memory_space<vmem>>, vector<8x128xf32>
    tpu.vector_store %arg15[%c0_238, %c0_239], %438 {strides = array<i32>} : memref<8x128xf32, #tpu.memory_space<vmem>>, vector<8x128xf32>,
    %c0_240 = arith.constant 0 : index
    %c0_241 = arith.constant 0 : index
    %442 = vector.load %arg14[%c0_240, %c0_241] : memref<8x128xf32, #tpu.memory_space<vmem>>, vector<8x128xf32>
    tpu.vector_store %arg14[%c0_240, %c0_241], %440 {strides = array<i32>} : memref<8x128xf32, #tpu.memory_space<vmem>>, vector<8x128xf32>,
    %c2_242 = arith.constant 2 : index
    %c0_243 = arith.constant 0 : index
    %c0_244 = arith.constant 0 : index
    %443 = vector.load %arg13[%c2_242, %c0_243, %c0_244] : memref<8x8x128xf32, #tpu.memory_space<vmem>>, vector<1x8x128xf32>
    %444 = vector.shape_cast %443 : vector<1x8x128xf32> to vector<8x128xf32>
    %445 = vector.shape_cast %440 : vector<8x128xf32> to vector<1x8x128xf32>
    tpu.vector_store %arg13[%c2_242, %c0_243, %c0_244], %445 {strides = array<i32>} : memref<8x8x128xf32, #tpu.memory_space<vmem>>, vector<1x8x128xf32>,
    %c3_245 = arith.constant 3 : index
    %c0_246 = arith.constant 0 : index
    %c0_247 = arith.constant 0 : index
    %446 = vector.load %arg12[%c3_245, %c0_246, %c0_247] : memref<8x8x512xf32, #tpu.memory_space<vmem>>, vector<1x8x512xf32>
    %447 = vector.shape_cast %446 : vector<1x8x512xf32> to vector<8x512xf32>
    %c0_248 = arith.constant 0 : index
    %c0_249 = arith.constant 0 : index
    %448 = vector.load %arg14[%c0_248, %c0_249] : memref<8x128xf32, #tpu.memory_space<vmem>>, vector<8x128xf32>
    %449 = arith.truncf %448 : vector<8x128xf32> to vector<8x128xbf16>
    %c0_250 = arith.constant 0 : index
    %c0_251 = arith.constant 0 : index
    %450 = vector.load %arg5[%c0_250, %c0_251] : memref<128x512xbf16, #tpu.memory_space<vmem>>, vector<128x512xbf16>
    %cst_252 = arith.constant dense<0.000000e+00> : vector<8x512xf32>
    %451 = tpu.matmul %449, %450, %cst_252 {dimension_numbers = #tpu.dot_dimension_numbers<[1], [0], [0], [1], [0, 0, 1, 1], [], []>} : vector<8x128xbf16>, vector<128x512xbf16>, vector<8x512xf32> -> vector<8x512xf32>
    %452 = arith.addf %447, %451 : vector<8x512xf32>
    %453 = vector.extract_strided_slice %452 {offsets = [0, 0], sizes = [8, 128], strides = [1, 1]} : vector<8x512xf32> to vector<8x128xf32>
    %454 = arith.negf %453 : vector<8x128xf32>
    %455 = math.exp %454 : vector<8x128xf32>
    %cst_253 = arith.constant 1.000000e+00 : f32
    %456 = vector.broadcast %cst_253 : f32 to vector<8x128xf32>
    %457 = arith.addf %456, %455 : vector<8x128xf32>
    %458 = arith.divf %456, %457 : vector<8x128xf32>
    %459 = vector.extract_strided_slice %452 {offsets = [0, 128], sizes = [8, 128], strides = [1, 1]} : vector<8x512xf32> to vector<8x128xf32>
    %460 = arith.negf %459 : vector<8x128xf32>
    %461 = math.exp %460 : vector<8x128xf32>
    %cst_254 = arith.constant 1.000000e+00 : f32
    %462 = vector.broadcast %cst_254 : f32 to vector<8x128xf32>
    %463 = arith.addf %462, %461 : vector<8x128xf32>
    %464 = arith.divf %462, %463 : vector<8x128xf32>
    %465 = vector.extract_strided_slice %452 {offsets = [0, 256], sizes = [8, 128], strides = [1, 1]} : vector<8x512xf32> to vector<8x128xf32>
    %466 = math.tanh %465 : vector<8x128xf32>
    %467 = vector.extract_strided_slice %452 {offsets = [0, 384], sizes = [8, 128], strides = [1, 1]} : vector<8x512xf32> to vector<8x128xf32>
    %468 = arith.negf %467 : vector<8x128xf32>
    %469 = math.exp %468 : vector<8x128xf32>
    %cst_255 = arith.constant 1.000000e+00 : f32
    %470 = vector.broadcast %cst_255 : f32 to vector<8x128xf32>
    %471 = arith.addf %470, %469 : vector<8x128xf32>
    %472 = arith.divf %470, %471 : vector<8x128xf32>
    %c0_256 = arith.constant 0 : index
    %c0_257 = arith.constant 0 : index
    %473 = vector.load %arg15[%c0_256, %c0_257] : memref<8x128xf32, #tpu.memory_space<vmem>>, vector<8x128xf32>
    %474 = arith.mulf %464, %473 : vector<8x128xf32>
    %475 = arith.mulf %458, %466 : vector<8x128xf32>
    %476 = arith.addf %474, %475 : vector<8x128xf32>
    %477 = math.tanh %476 : vector<8x128xf32>
    %478 = arith.mulf %472, %477 : vector<8x128xf32>
    %c0_258 = arith.constant 0 : index
    %c0_259 = arith.constant 0 : index
    %479 = vector.load %arg15[%c0_258, %c0_259] : memref<8x128xf32, #tpu.memory_space<vmem>>, vector<8x128xf32>
    tpu.vector_store %arg15[%c0_258, %c0_259], %476 {strides = array<i32>} : memref<8x128xf32, #tpu.memory_space<vmem>>, vector<8x128xf32>,
    %c0_260 = arith.constant 0 : index
    %c0_261 = arith.constant 0 : index
    %480 = vector.load %arg14[%c0_260, %c0_261] : memref<8x128xf32, #tpu.memory_space<vmem>>, vector<8x128xf32>
    tpu.vector_store %arg14[%c0_260, %c0_261], %478 {strides = array<i32>} : memref<8x128xf32, #tpu.memory_space<vmem>>, vector<8x128xf32>,
    %c3_262 = arith.constant 3 : index
    %c0_263 = arith.constant 0 : index
    %c0_264 = arith.constant 0 : index
    %481 = vector.load %arg13[%c3_262, %c0_263, %c0_264] : memref<8x8x128xf32, #tpu.memory_space<vmem>>, vector<1x8x128xf32>
    %482 = vector.shape_cast %481 : vector<1x8x128xf32> to vector<8x128xf32>
    %483 = vector.shape_cast %478 : vector<8x128xf32> to vector<1x8x128xf32>
    tpu.vector_store %arg13[%c3_262, %c0_263, %c0_264], %483 {strides = array<i32>} : memref<8x8x128xf32, #tpu.memory_space<vmem>>, vector<1x8x128xf32>,
    %c4_265 = arith.constant 4 : index
    %c0_266 = arith.constant 0 : index
    %c0_267 = arith.constant 0 : index
    %484 = vector.load %arg12[%c4_265, %c0_266, %c0_267] : memref<8x8x512xf32, #tpu.memory_space<vmem>>, vector<1x8x512xf32>
    %485 = vector.shape_cast %484 : vector<1x8x512xf32> to vector<8x512xf32>
    %c0_268 = arith.constant 0 : index
    %c0_269 = arith.constant 0 : index
    %486 = vector.load %arg14[%c0_268, %c0_269] : memref<8x128xf32, #tpu.memory_space<vmem>>, vector<8x128xf32>
    %487 = arith.truncf %486 : vector<8x128xf32> to vector<8x128xbf16>
    %c0_270 = arith.constant 0 : index
    %c0_271 = arith.constant 0 : index
    %488 = vector.load %arg5[%c0_270, %c0_271] : memref<128x512xbf16, #tpu.memory_space<vmem>>, vector<128x512xbf16>
    %cst_272 = arith.constant dense<0.000000e+00> : vector<8x512xf32>
    %489 = tpu.matmul %487, %488, %cst_272 {dimension_numbers = #tpu.dot_dimension_numbers<[1], [0], [0], [1], [0, 0, 1, 1], [], []>} : vector<8x128xbf16>, vector<128x512xbf16>, vector<8x512xf32> -> vector<8x512xf32>
    %490 = arith.addf %485, %489 : vector<8x512xf32>
    %491 = vector.extract_strided_slice %490 {offsets = [0, 0], sizes = [8, 128], strides = [1, 1]} : vector<8x512xf32> to vector<8x128xf32>
    %492 = arith.negf %491 : vector<8x128xf32>
    %493 = math.exp %492 : vector<8x128xf32>
    %cst_273 = arith.constant 1.000000e+00 : f32
    %494 = vector.broadcast %cst_273 : f32 to vector<8x128xf32>
    %495 = arith.addf %494, %493 : vector<8x128xf32>
    %496 = arith.divf %494, %495 : vector<8x128xf32>
    %497 = vector.extract_strided_slice %490 {offsets = [0, 128], sizes = [8, 128], strides = [1, 1]} : vector<8x512xf32> to vector<8x128xf32>
    %498 = arith.negf %497 : vector<8x128xf32>
    %499 = math.exp %498 : vector<8x128xf32>
    %cst_274 = arith.constant 1.000000e+00 : f32
    %500 = vector.broadcast %cst_274 : f32 to vector<8x128xf32>
    %501 = arith.addf %500, %499 : vector<8x128xf32>
    %502 = arith.divf %500, %501 : vector<8x128xf32>
    %503 = vector.extract_strided_slice %490 {offsets = [0, 256], sizes = [8, 128], strides = [1, 1]} : vector<8x512xf32> to vector<8x128xf32>
    %504 = math.tanh %503 : vector<8x128xf32>
    %505 = vector.extract_strided_slice %490 {offsets = [0, 384], sizes = [8, 128], strides = [1, 1]} : vector<8x512xf32> to vector<8x128xf32>
    %506 = arith.negf %505 : vector<8x128xf32>
    %507 = math.exp %506 : vector<8x128xf32>
    %cst_275 = arith.constant 1.000000e+00 : f32
    %508 = vector.broadcast %cst_275 : f32 to vector<8x128xf32>
    %509 = arith.addf %508, %507 : vector<8x128xf32>
    %510 = arith.divf %508, %509 : vector<8x128xf32>
    %c0_276 = arith.constant 0 : index
    %c0_277 = arith.constant 0 : index
    %511 = vector.load %arg15[%c0_276, %c0_277] : memref<8x128xf32, #tpu.memory_space<vmem>>, vector<8x128xf32>
    %512 = arith.mulf %502, %511 : vector<8x128xf32>
    %513 = arith.mulf %496, %504 : vector<8x128xf32>
    %514 = arith.addf %512, %513 : vector<8x128xf32>
    %515 = math.tanh %514 : vector<8x128xf32>
    %516 = arith.mulf %510, %515 : vector<8x128xf32>
    %c0_278 = arith.constant 0 : index
    %c0_279 = arith.constant 0 : index
    %517 = vector.load %arg15[%c0_278, %c0_279] : memref<8x128xf32, #tpu.memory_space<vmem>>, vector<8x128xf32>
    tpu.vector_store %arg15[%c0_278, %c0_279], %514 {strides = array<i32>} : memref<8x128xf32, #tpu.memory_space<vmem>>, vector<8x128xf32>,
    %c0_280 = arith.constant 0 : index
    %c0_281 = arith.constant 0 : index
    %518 = vector.load %arg14[%c0_280, %c0_281] : memref<8x128xf32, #tpu.memory_space<vmem>>, vector<8x128xf32>
    tpu.vector_store %arg14[%c0_280, %c0_281], %516 {strides = array<i32>} : memref<8x128xf32, #tpu.memory_space<vmem>>, vector<8x128xf32>,
    %c4_282 = arith.constant 4 : index
    %c0_283 = arith.constant 0 : index
    %c0_284 = arith.constant 0 : index
    %519 = vector.load %arg13[%c4_282, %c0_283, %c0_284] : memref<8x8x128xf32, #tpu.memory_space<vmem>>, vector<1x8x128xf32>
    %520 = vector.shape_cast %519 : vector<1x8x128xf32> to vector<8x128xf32>
    %521 = vector.shape_cast %516 : vector<8x128xf32> to vector<1x8x128xf32>
    tpu.vector_store %arg13[%c4_282, %c0_283, %c0_284], %521 {strides = array<i32>} : memref<8x8x128xf32, #tpu.memory_space<vmem>>, vector<1x8x128xf32>,
    %c5_285 = arith.constant 5 : index
    %c0_286 = arith.constant 0 : index
    %c0_287 = arith.constant 0 : index
    %522 = vector.load %arg12[%c5_285, %c0_286, %c0_287] : memref<8x8x512xf32, #tpu.memory_space<vmem>>, vector<1x8x512xf32>
    %523 = vector.shape_cast %522 : vector<1x8x512xf32> to vector<8x512xf32>
    %c0_288 = arith.constant 0 : index
    %c0_289 = arith.constant 0 : index
    %524 = vector.load %arg14[%c0_288, %c0_289] : memref<8x128xf32, #tpu.memory_space<vmem>>, vector<8x128xf32>
    %525 = arith.truncf %524 : vector<8x128xf32> to vector<8x128xbf16>
    %c0_290 = arith.constant 0 : index
    %c0_291 = arith.constant 0 : index
    %526 = vector.load %arg5[%c0_290, %c0_291] : memref<128x512xbf16, #tpu.memory_space<vmem>>, vector<128x512xbf16>
    %cst_292 = arith.constant dense<0.000000e+00> : vector<8x512xf32>
    %527 = tpu.matmul %525, %526, %cst_292 {dimension_numbers = #tpu.dot_dimension_numbers<[1], [0], [0], [1], [0, 0, 1, 1], [], []>} : vector<8x128xbf16>, vector<128x512xbf16>, vector<8x512xf32> -> vector<8x512xf32>
    %528 = arith.addf %523, %527 : vector<8x512xf32>
    %529 = vector.extract_strided_slice %528 {offsets = [0, 0], sizes = [8, 128], strides = [1, 1]} : vector<8x512xf32> to vector<8x128xf32>
    %530 = arith.negf %529 : vector<8x128xf32>
    %531 = math.exp %530 : vector<8x128xf32>
    %cst_293 = arith.constant 1.000000e+00 : f32
    %532 = vector.broadcast %cst_293 : f32 to vector<8x128xf32>
    %533 = arith.addf %532, %531 : vector<8x128xf32>
    %534 = arith.divf %532, %533 : vector<8x128xf32>
    %535 = vector.extract_strided_slice %528 {offsets = [0, 128], sizes = [8, 128], strides = [1, 1]} : vector<8x512xf32> to vector<8x128xf32>
    %536 = arith.negf %535 : vector<8x128xf32>
    %537 = math.exp %536 : vector<8x128xf32>
    %cst_294 = arith.constant 1.000000e+00 : f32
    %538 = vector.broadcast %cst_294 : f32 to vector<8x128xf32>
    %539 = arith.addf %538, %537 : vector<8x128xf32>
    %540 = arith.divf %538, %539 : vector<8x128xf32>
    %541 = vector.extract_strided_slice %528 {offsets = [0, 256], sizes = [8, 128], strides = [1, 1]} : vector<8x512xf32> to vector<8x128xf32>
    %542 = math.tanh %541 : vector<8x128xf32>
    %543 = vector.extract_strided_slice %528 {offsets = [0, 384], sizes = [8, 128], strides = [1, 1]} : vector<8x512xf32> to vector<8x128xf32>
    %544 = arith.negf %543 : vector<8x128xf32>
    %545 = math.exp %544 : vector<8x128xf32>
    %cst_295 = arith.constant 1.000000e+00 : f32
    %546 = vector.broadcast %cst_295 : f32 to vector<8x128xf32>
    %547 = arith.addf %546, %545 : vector<8x128xf32>
    %548 = arith.divf %546, %547 : vector<8x128xf32>
    %c0_296 = arith.constant 0 : index
    %c0_297 = arith.constant 0 : index
    %549 = vector.load %arg15[%c0_296, %c0_297] : memref<8x128xf32, #tpu.memory_space<vmem>>, vector<8x128xf32>
    %550 = arith.mulf %540, %549 : vector<8x128xf32>
    %551 = arith.mulf %534, %542 : vector<8x128xf32>
    %552 = arith.addf %550, %551 : vector<8x128xf32>
    %553 = math.tanh %552 : vector<8x128xf32>
    %554 = arith.mulf %548, %553 : vector<8x128xf32>
    %c0_298 = arith.constant 0 : index
    %c0_299 = arith.constant 0 : index
    %555 = vector.load %arg15[%c0_298, %c0_299] : memref<8x128xf32, #tpu.memory_space<vmem>>, vector<8x128xf32>
    tpu.vector_store %arg15[%c0_298, %c0_299], %552 {strides = array<i32>} : memref<8x128xf32, #tpu.memory_space<vmem>>, vector<8x128xf32>,
    %c0_300 = arith.constant 0 : index
    %c0_301 = arith.constant 0 : index
    %556 = vector.load %arg14[%c0_300, %c0_301] : memref<8x128xf32, #tpu.memory_space<vmem>>, vector<8x128xf32>
    tpu.vector_store %arg14[%c0_300, %c0_301], %554 {strides = array<i32>} : memref<8x128xf32, #tpu.memory_space<vmem>>, vector<8x128xf32>,
    %c5_302 = arith.constant 5 : index
    %c0_303 = arith.constant 0 : index
    %c0_304 = arith.constant 0 : index
    %557 = vector.load %arg13[%c5_302, %c0_303, %c0_304] : memref<8x8x128xf32, #tpu.memory_space<vmem>>, vector<1x8x128xf32>
    %558 = vector.shape_cast %557 : vector<1x8x128xf32> to vector<8x128xf32>
    %559 = vector.shape_cast %554 : vector<8x128xf32> to vector<1x8x128xf32>
    tpu.vector_store %arg13[%c5_302, %c0_303, %c0_304], %559 {strides = array<i32>} : memref<8x8x128xf32, #tpu.memory_space<vmem>>, vector<1x8x128xf32>,
    %c6_305 = arith.constant 6 : index
    %c0_306 = arith.constant 0 : index
    %c0_307 = arith.constant 0 : index
    %560 = vector.load %arg12[%c6_305, %c0_306, %c0_307] : memref<8x8x512xf32, #tpu.memory_space<vmem>>, vector<1x8x512xf32>
    %561 = vector.shape_cast %560 : vector<1x8x512xf32> to vector<8x512xf32>
    %c0_308 = arith.constant 0 : index
    %c0_309 = arith.constant 0 : index
    %562 = vector.load %arg14[%c0_308, %c0_309] : memref<8x128xf32, #tpu.memory_space<vmem>>, vector<8x128xf32>
    %563 = arith.truncf %562 : vector<8x128xf32> to vector<8x128xbf16>
    %c0_310 = arith.constant 0 : index
    %c0_311 = arith.constant 0 : index
    %564 = vector.load %arg5[%c0_310, %c0_311] : memref<128x512xbf16, #tpu.memory_space<vmem>>, vector<128x512xbf16>
    %cst_312 = arith.constant dense<0.000000e+00> : vector<8x512xf32>
    %565 = tpu.matmul %563, %564, %cst_312 {dimension_numbers = #tpu.dot_dimension_numbers<[1], [0], [0], [1], [0, 0, 1, 1], [], []>} : vector<8x128xbf16>, vector<128x512xbf16>, vector<8x512xf32> -> vector<8x512xf32>
    %566 = arith.addf %561, %565 : vector<8x512xf32>
    %567 = vector.extract_strided_slice %566 {offsets = [0, 0], sizes = [8, 128], strides = [1, 1]} : vector<8x512xf32> to vector<8x128xf32>
    %568 = arith.negf %567 : vector<8x128xf32>
    %569 = math.exp %568 : vector<8x128xf32>
    %cst_313 = arith.constant 1.000000e+00 : f32
    %570 = vector.broadcast %cst_313 : f32 to vector<8x128xf32>
    %571 = arith.addf %570, %569 : vector<8x128xf32>
    %572 = arith.divf %570, %571 : vector<8x128xf32>
    %573 = vector.extract_strided_slice %566 {offsets = [0, 128], sizes = [8, 128], strides = [1, 1]} : vector<8x512xf32> to vector<8x128xf32>
    %574 = arith.negf %573 : vector<8x128xf32>
    %575 = math.exp %574 : vector<8x128xf32>
    %cst_314 = arith.constant 1.000000e+00 : f32
    %576 = vector.broadcast %cst_314 : f32 to vector<8x128xf32>
    %577 = arith.addf %576, %575 : vector<8x128xf32>
    %578 = arith.divf %576, %577 : vector<8x128xf32>
    %579 = vector.extract_strided_slice %566 {offsets = [0, 256], sizes = [8, 128], strides = [1, 1]} : vector<8x512xf32> to vector<8x128xf32>
    %580 = math.tanh %579 : vector<8x128xf32>
    %581 = vector.extract_strided_slice %566 {offsets = [0, 384], sizes = [8, 128], strides = [1, 1]} : vector<8x512xf32> to vector<8x128xf32>
    %582 = arith.negf %581 : vector<8x128xf32>
    %583 = math.exp %582 : vector<8x128xf32>
    %cst_315 = arith.constant 1.000000e+00 : f32
    %584 = vector.broadcast %cst_315 : f32 to vector<8x128xf32>
    %585 = arith.addf %584, %583 : vector<8x128xf32>
    %586 = arith.divf %584, %585 : vector<8x128xf32>
    %c0_316 = arith.constant 0 : index
    %c0_317 = arith.constant 0 : index
    %587 = vector.load %arg15[%c0_316, %c0_317] : memref<8x128xf32, #tpu.memory_space<vmem>>, vector<8x128xf32>
    %588 = arith.mulf %578, %587 : vector<8x128xf32>
    %589 = arith.mulf %572, %580 : vector<8x128xf32>
    %590 = arith.addf %588, %589 : vector<8x128xf32>
    %591 = math.tanh %590 : vector<8x128xf32>
    %592 = arith.mulf %586, %591 : vector<8x128xf32>
    %c0_318 = arith.constant 0 : index
    %c0_319 = arith.constant 0 : index
    %593 = vector.load %arg15[%c0_318, %c0_319] : memref<8x128xf32, #tpu.memory_space<vmem>>, vector<8x128xf32>
    tpu.vector_store %arg15[%c0_318, %c0_319], %590 {strides = array<i32>} : memref<8x128xf32, #tpu.memory_space<vmem>>, vector<8x128xf32>,
    %c0_320 = arith.constant 0 : index
    %c0_321 = arith.constant 0 : index
    %594 = vector.load %arg14[%c0_320, %c0_321] : memref<8x128xf32, #tpu.memory_space<vmem>>, vector<8x128xf32>
    tpu.vector_store %arg14[%c0_320, %c0_321], %592 {strides = array<i32>} : memref<8x128xf32, #tpu.memory_space<vmem>>, vector<8x128xf32>,
    %c6_322 = arith.constant 6 : index
    %c0_323 = arith.constant 0 : index
    %c0_324 = arith.constant 0 : index
    %595 = vector.load %arg13[%c6_322, %c0_323, %c0_324] : memref<8x8x128xf32, #tpu.memory_space<vmem>>, vector<1x8x128xf32>
    %596 = vector.shape_cast %595 : vector<1x8x128xf32> to vector<8x128xf32>
    %597 = vector.shape_cast %592 : vector<8x128xf32> to vector<1x8x128xf32>
    tpu.vector_store %arg13[%c6_322, %c0_323, %c0_324], %597 {strides = array<i32>} : memref<8x8x128xf32, #tpu.memory_space<vmem>>, vector<1x8x128xf32>,
    %c7_325 = arith.constant 7 : index
    %c0_326 = arith.constant 0 : index
    %c0_327 = arith.constant 0 : index
    %598 = vector.load %arg12[%c7_325, %c0_326, %c0_327] : memref<8x8x512xf32, #tpu.memory_space<vmem>>, vector<1x8x512xf32>
    %599 = vector.shape_cast %598 : vector<1x8x512xf32> to vector<8x512xf32>
    %c0_328 = arith.constant 0 : index
    %c0_329 = arith.constant 0 : index
    %600 = vector.load %arg14[%c0_328, %c0_329] : memref<8x128xf32, #tpu.memory_space<vmem>>, vector<8x128xf32>
    %601 = arith.truncf %600 : vector<8x128xf32> to vector<8x128xbf16>
    %c0_330 = arith.constant 0 : index
    %c0_331 = arith.constant 0 : index
    %602 = vector.load %arg5[%c0_330, %c0_331] : memref<128x512xbf16, #tpu.memory_space<vmem>>, vector<128x512xbf16>
    %cst_332 = arith.constant dense<0.000000e+00> : vector<8x512xf32>
    %603 = tpu.matmul %601, %602, %cst_332 {dimension_numbers = #tpu.dot_dimension_numbers<[1], [0], [0], [1], [0, 0, 1, 1], [], []>} : vector<8x128xbf16>, vector<128x512xbf16>, vector<8x512xf32> -> vector<8x512xf32>
    %604 = arith.addf %599, %603 : vector<8x512xf32>
    %605 = vector.extract_strided_slice %604 {offsets = [0, 0], sizes = [8, 128], strides = [1, 1]} : vector<8x512xf32> to vector<8x128xf32>
    %606 = arith.negf %605 : vector<8x128xf32>
    %607 = math.exp %606 : vector<8x128xf32>
    %cst_333 = arith.constant 1.000000e+00 : f32
    %608 = vector.broadcast %cst_333 : f32 to vector<8x128xf32>
    %609 = arith.addf %608, %607 : vector<8x128xf32>
    %610 = arith.divf %608, %609 : vector<8x128xf32>
    %611 = vector.extract_strided_slice %604 {offsets = [0, 128], sizes = [8, 128], strides = [1, 1]} : vector<8x512xf32> to vector<8x128xf32>
    %612 = arith.negf %611 : vector<8x128xf32>
    %613 = math.exp %612 : vector<8x128xf32>
    %cst_334 = arith.constant 1.000000e+00 : f32
    %614 = vector.broadcast %cst_334 : f32 to vector<8x128xf32>
    %615 = arith.addf %614, %613 : vector<8x128xf32>
    %616 = arith.divf %614, %615 : vector<8x128xf32>
    %617 = vector.extract_strided_slice %604 {offsets = [0, 256], sizes = [8, 128], strides = [1, 1]} : vector<8x512xf32> to vector<8x128xf32>
    %618 = math.tanh %617 : vector<8x128xf32>
    %619 = vector.extract_strided_slice %604 {offsets = [0, 384], sizes = [8, 128], strides = [1, 1]} : vector<8x512xf32> to vector<8x128xf32>
    %620 = arith.negf %619 : vector<8x128xf32>
    %621 = math.exp %620 : vector<8x128xf32>
    %cst_335 = arith.constant 1.000000e+00 : f32
    %622 = vector.broadcast %cst_335 : f32 to vector<8x128xf32>
    %623 = arith.addf %622, %621 : vector<8x128xf32>
    %624 = arith.divf %622, %623 : vector<8x128xf32>
    %c0_336 = arith.constant 0 : index
    %c0_337 = arith.constant 0 : index
    %625 = vector.load %arg15[%c0_336, %c0_337] : memref<8x128xf32, #tpu.memory_space<vmem>>, vector<8x128xf32>
    %626 = arith.mulf %616, %625 : vector<8x128xf32>
    %627 = arith.mulf %610, %618 : vector<8x128xf32>
    %628 = arith.addf %626, %627 : vector<8x128xf32>
    %629 = math.tanh %628 : vector<8x128xf32>
    %630 = arith.mulf %624, %629 : vector<8x128xf32>
    %c0_338 = arith.constant 0 : index
    %c0_339 = arith.constant 0 : index
    %631 = vector.load %arg15[%c0_338, %c0_339] : memref<8x128xf32, #tpu.memory_space<vmem>>, vector<8x128xf32>
    tpu.vector_store %arg15[%c0_338, %c0_339], %628 {strides = array<i32>} : memref<8x128xf32, #tpu.memory_space<vmem>>, vector<8x128xf32>,
    %c0_340 = arith.constant 0 : index
    %c0_341 = arith.constant 0 : index
    %632 = vector.load %arg14[%c0_340, %c0_341] : memref<8x128xf32, #tpu.memory_space<vmem>>, vector<8x128xf32>
    tpu.vector_store %arg14[%c0_340, %c0_341], %630 {strides = array<i32>} : memref<8x128xf32, #tpu.memory_space<vmem>>, vector<8x128xf32>,
    %c7_342 = arith.constant 7 : index
    %c0_343 = arith.constant 0 : index
    %c0_344 = arith.constant 0 : index
    %633 = vector.load %arg13[%c7_342, %c0_343, %c0_344] : memref<8x8x128xf32, #tpu.memory_space<vmem>>, vector<1x8x128xf32>
    %634 = vector.shape_cast %633 : vector<1x8x128xf32> to vector<8x128xf32>
    %635 = vector.shape_cast %630 : vector<8x128xf32> to vector<1x8x128xf32>
    tpu.vector_store %arg13[%c7_342, %c0_343, %c0_344], %635 {strides = array<i32>} : memref<8x8x128xf32, #tpu.memory_space<vmem>>, vector<1x8x128xf32>,
    %c0_345 = arith.constant 0 : index
    %c0_346 = arith.constant 0 : index
    %c0_347 = arith.constant 0 : index
    %636 = vector.load %arg13[%c0_345, %c0_346, %c0_347] : memref<8x8x128xf32, #tpu.memory_space<vmem>>, vector<8x8x128xf32>
    %637 = vector.shape_cast %636 : vector<8x8x128xf32> to vector<64x128xf32>
    %638 = arith.truncf %637 : vector<64x128xf32> to vector<64x128xbf16>
    %c0_348 = arith.constant 0 : index
    %c0_349 = arith.constant 0 : index
    %639 = vector.load %arg7[%c0_348, %c0_349] : memref<128x128xbf16, #tpu.memory_space<vmem>>, vector<128x128xbf16>
    %cst_350 = arith.constant dense<0.000000e+00> : vector<64x128xf32>
    %640 = tpu.matmul %638, %639, %cst_350 {dimension_numbers = #tpu.dot_dimension_numbers<[1], [0], [0], [1], [0, 0, 1, 1], [], []>} : vector<64x128xbf16>, vector<128x128xbf16>, vector<64x128xf32> -> vector<64x128xf32>
    %c0_351 = arith.constant 0 : index
    %c0_352 = arith.constant 0 : index
    %641 = vector.load %arg8[%c0_351, %c0_352] : memref<1x128xf32, #tpu.memory_space<vmem>>, vector<1x128xf32>
    %642 = vector.broadcast %641 : vector<1x128xf32> to vector<64x128xf32>
    %643 = arith.addf %640, %642 : vector<64x128xf32>
    %cst_353 = arith.constant 0.000000e+00 : f32
    %644 = vector.broadcast %cst_353 : f32 to vector<64x128xf32>
    %645 = arith.maximumf %643, %644 : vector<64x128xf32>
    %646 = arith.truncf %645 : vector<64x128xf32> to vector<64x128xbf16>
    %c0_354 = arith.constant 0 : index
    %c0_355 = arith.constant 0 : index
    %647 = vector.load %arg9[%c0_354, %c0_355] : memref<128x1xbf16, #tpu.memory_space<vmem>>, vector<128x1xbf16>
    %cst_356 = arith.constant dense<0.000000e+00> : vector<64x1xf32>
    %648 = tpu.matmul %646, %647, %cst_356 {dimension_numbers = #tpu.dot_dimension_numbers<[1], [0], [0], [1], [0, 0, 1, 1], [], []>} : vector<64x128xbf16>, vector<128x1xbf16>, vector<64x1xf32> -> vector<64x1xf32>
    %c0_357 = arith.constant 0 : index
    %c0_358 = arith.constant 0 : index
    %649 = vector.load %arg10[%c0_357, %c0_358] : memref<1x1xf32, #tpu.memory_space<vmem>>, vector<1x1xf32>
    %650 = vector.broadcast %649 : vector<1x1xf32> to vector<64x1xf32>
    %651 = arith.addf %648, %650 : vector<64x1xf32>
    %652 = arith.negf %651 : vector<64x1xf32>
    %653 = math.exp %652 : vector<64x1xf32>
    %cst_359 = arith.constant 1.000000e+00 : f32
    %654 = vector.broadcast %cst_359 : f32 to vector<64x1xf32>
    %655 = arith.addf %654, %653 : vector<64x1xf32>
    %656 = arith.divf %654, %655 : vector<64x1xf32>
    %c0_360 = arith.constant 0 : index
    %c0_361 = arith.constant 0 : index
    %657 = vector.load %arg11[%c0_360, %c0_361] : memref<64x1xf32, #tpu.memory_space<vmem>>, vector<64x1xf32>
    tpu.vector_store %arg11[%c0_360, %c0_361], %656 {strides = array<i32>} : memref<64x1xf32, #tpu.memory_space<vmem>>, vector<64x1xf32>,
    return
  }
}

</mosaic_0001>

<bundles_post_ra>
// kernel: generator_forward.1
= control target key start
LH: loop header
LB: loop body
LE: loop exit
PB: predicated region body
PF: predicated region fallthrough
CT: control target
= control target key end

     0   :  { %vm111_vm0 = vcmask 261120   ;;  %s13471_s1 = inlined_call_operand.vmem [shape: bf16[32,512], index: 1, kind: input, shape index: {}]   ;;  %s13472_s0 = inlined_call_operand.vmem [shape: f32[8,8,32], index: 0, kind: input, shape index: {}]   ;;  %s13473_s2 = inlined_call_operand.vmem [shape: bf16[128,512], index: 2, kind: input, shape index: {}]   ;;  %s13474_s3 = inlined_call_operand.vmem [shape: f32[1,512], index: 3, kind: input, shape index: {}]   ;;  %s13475_s4 = inlined_call_operand.vmem [shape: bf16[128,512], index: 4, kind: input, shape index: {}]   ;;  %s13476_s5 = inlined_call_operand.vmem [shape: bf16[128,512], index: 5, kind: input, shape index: {}]   ;;  %s13477_s6 = inlined_call_operand.vmem [shape: f32[1,512], index: 6, kind: input, shape index: {}]   ;;  %s13478_s7 = inlined_call_operand.vmem [shape: bf16[128,128], index: 7, kind: input, shape index: {}]   ;;  %s13479_s8 = inlined_call_operand.vmem [shape: f32[1,128], index: 8, kind: input, shape index: {}]   ;;  %s13480_s9 = inlined_call_operand.vmem [shape: bf16[128,1], index: 9, kind: input, shape index: {}]   ;;  %s13481_s10 = inlined_call_operand.<no memory space> [shape: f32[1,1], index: 10, kind: input, shape index: {}]   ;;  %s13482_s11 = inlined_call_operand.vmem [shape: f32[64,1], index: 11, kind: output, shape index: {}]  }
   0x1   :  { %v6189_v0 = vld [vmem:[%s13471_s1 + $0x20] sm:$0xf]  ;;  %v8521_v1 = vld [vmem:[%s13471_s1 + $0x2c] sm:$0xf0]  ;;  %v8519_v2 = vld [vmem:[%s13471_s1 + $0x24] sm:$0xf] }
   0x2   :  { %v6190_v3 = vor.u32 %v8521_v1, %v6189_v0  ;;  %v6191_v4 = vld [vmem:[%s13471_s1 + $0x30] sm:$0xf0]  ;;  %v6173_v5 = vld [vmem:[%s13471_s1] sm:$0xf]  ;;  %v8517_v6 = vld [vmem:[%s13471_s1 + $0xc] sm:$0xf0] }
   0x3   :  { %v6194_v7 = vor.u32 %v8519_v2, %v6191_v4  ;;  %v8515_v8 = vld [vmem:[%s13471_s1 + $0x4] sm:$0xf]  ;;  %v6175_v9 = vld [vmem:[%s13471_s1 + $0x10] sm:$0xf0]  ;;  %v6174_v11 = vor.u32 %v8517_v6, %v6173_v5  ;;  %v46_v12 = vld [vmem:[%s13472_s0 + $0x28] sm:$0xff] }
   0x4   :  { %v45_v10 = vld [vmem:[%s13472_s0 + $0x20] sm:$0xff]  ;;  %9083 = vmatpush.bf16.msra.mxu2 %v6190_v3  ;;  %v8520_v13 = vld [vmem:[%s13471_s1 + $0x2c] sm:$0xf]  ;;  %v6199_v14 = vld [vmem:[%s13471_s1 + $0x38] sm:$0xf0]  ;;  %130 = vmatpush.bf16.msra.mxu0 %v6190_v3  ;;  %v6178_v15 = vor.u32 %v8515_v8, %v6175_v9 }
   0x5   :  { %9085 = vmatpush.bf16.msra.mxu3 %v6194_v7  ;;  %159 = vmatpush.bf16.msra.mxu1 %v6194_v7  ;;  %v6197_v16 = vld [vmem:[%s13471_s1 + $0x28] sm:$0xf]  ;;  %v8522_v17 = vld [vmem:[%s13471_s1 + $0x34] sm:$0xf0]  ;;  %v41_v18 = vld [vmem:[%s13472_s0] sm:$0xff]  ;;  %v6202_v19 = vor.u32 %v8520_v13, %v6199_v14  ;;  %v9487_v22 = vpack.c.bf16 %v46_v12, %v45_v10 }
   0x6   :  { %v6198_v20 = vor.u32 %v8522_v17, %v6197_v16  ;;  %v42_v21 = vld [vmem:[%s13472_s0 + $0x8] sm:$0xff]  ;;  %v6183_v25 = vld [vmem:[%s13471_s1 + $0x18] sm:$0xf0]  ;;  %v6333_v26 = vld [vmem:[%s13473_s2 + $0xe0] sm:$0xf] }
   0x7   :  { %v9489_v23 = vpack.c.bf16 %v42_v21, %v41_v18  ;;  %v8516_v24 = vld [vmem:[%s13471_s1 + $0xc] sm:$0xf]  ;;  %v8553_v27 = vld [vmem:[%s13473_s2 + $0xec] sm:$0xf0]  ;;  %v8551_v28 = vld [vmem:[%s13473_s2 + $0xe4] sm:$0xf] }
   0x8   :  { %9084 = vmatpush.bf16.msra.mxu2 %v6174_v11  ;;  %131 = vmatpush.bf16.msra.mxu0 %v6174_v11  ;;  %v6335_v29 = vld [vmem:[%s13473_s2 + $0xf0] sm:$0xf0]  ;;  %v6334_v30 = vor.u32 %v8553_v27, %v6333_v26  ;;  %v6317_v31 = vld [vmem:[%s13473_s2 + $0xc0] sm:$0xf]  ;;  %v8549_v32 = vld [vmem:[%s13473_s2 + $0xcc] sm:$0xf0]  ;;  %v6186_v33 = vor.u32 %v8516_v24, %v6183_v25 }
   0x9   :  { %9086 = vmatpush.bf16.msra.mxu3 %v6178_v15  ;;  %160 = vmatpush.bf16.msra.mxu1 %v6178_v15  ;;  %v6338_v34 = vor.u32 %v8551_v28, %v6335_v29  ;;  %v8547_v35 = vld [vmem:[%s13473_s2 + $0xc4] sm:$0xf]  ;;  %v6319_v36 = vld [vmem:[%s13473_s2 + $0xd0] sm:$0xf0]  ;;  %v6181_v37 = vld [vmem:[%s13471_s1 + $0x8] sm:$0xf]  ;;  %v6318_v38 = vor.u32 %v8549_v32, %v6317_v31 }
   0xa   :  { %v8518_v39 = vld [vmem:[%s13471_s1 + $0x14] sm:$0xf0]  ;;  %v6301_v40 = vld [vmem:[%s13473_s2 + $0xa0] sm:$0xf]  ;;  %v8545_v41 = vld [vmem:[%s13473_s2 + $0xac] sm:$0xf0]  ;;  %v6322_v43 = vor.u32 %v8547_v35, %v6319_v36 }
   0xb   :  { %6205 = vmatmul.msk.bf16.vlgmr.msra.gmra.mxu2 %vm111_vm0, %v9487_v22  ;;  %6203 = vmatmul.msk.bf16.vlgmr.msra.gmra.mxu0 %vm111_vm0, %v9489_v23  ;;  %v6182_v42 = vor.u32 %v8518_v39, %v6181_v37  ;;  %v8552_v44 = vld [vmem:[%s13473_s2 + $0xec] sm:$0xf]  ;;  %v6343_v45 = vld [vmem:[%s13473_s2 + $0xf8] sm:$0xf0]  ;;  %v8543_v46 = vld [vmem:[%s13473_s2 + $0xa4] sm:$0xf]  ;;  %v6302_v49 = vor.u32 %v8545_v41, %v6301_v40 }
   0xc   :  { %188 = vmatpush.bf16.msrb.mxu2 %v6198_v20  ;;  %6209 = vmatmul.msk.bf16.vlgmr.msra.gmra.mxu3 %vm111_vm0, %v9487_v22  ;;  %v6303_v47 = vld [vmem:[%s13473_s2 + $0xb0] sm:$0xf0]  ;;  %v6346_v48 = vor.u32 %v8552_v44, %v6343_v45  ;;  %v6285_v50 = vld [vmem:[%s13473_s2 + $0x80] sm:$0xf]  ;;  %v8541_v51 = vld [vmem:[%s13473_s2 + $0x8c] sm:$0xf0] }
   0xd   :  { %217 = vmatpush.bf16.msrb.mxu3 %v6202_v19  ;;  %472 = vmatpush.bf16.msrb.mxu0 %v6334_v30  ;;  %v8548_v52 = vld [vmem:[%s13473_s2 + $0xcc] sm:$0xf]  ;;  %v47_v53 = vld [vmem:[%s13472_s0 + $0x30] sm:$0xff]  ;;  %v48_v54 = vld [vmem:[%s13472_s0 + $0x38] sm:$0xff]  ;;  %v6306_v55 = vor.u32 %v8543_v46, %v6303_v47  ;;  %v6286_v61 = vor.u32 %v8541_v51, %v6285_v50 }
   0xe   :  { %6207 = vmatmul.msk.bf16.vlgmr.msra.gmra.mxu1 %vm111_vm0, %v9489_v23  ;;  %v6327_v56 = vld [vmem:[%s13473_s2 + $0xd8] sm:$0xf0]  ;;  %v8539_v57 = vld [vmem:[%s13473_s2 + $0x84] sm:$0xf]  ;;  %v6287_v58 = vld [vmem:[%s13473_s2 + $0x90] sm:$0xf0]  ;;  %v9595_v5 = vpack.c.bf16 %v48_v54, %v47_v53 }
   0xf   :  { %485 = vmatpush.bf16.msrb.mxu1 %v6338_v34  ;;  %v6330_v59 = vor.u32 %v8548_v52, %v6327_v56  ;;  %v6341_v60 = vld [vmem:[%s13473_s2 + $0xe8] sm:$0xf]  ;;  %v43_v62 = vld [vmem:[%s13472_s0 + $0x10] sm:$0xff]  ;;  %v44_v63 = vld [vmem:[%s13472_s0 + $0x18] sm:$0xff]  ;;  %v6290_v4 = vor.u32 %v8539_v57, %v6287_v58 }
  0x10   :  { %189 = vmatpush.bf16.msrb.mxu2 %v6182_v42  ;;  %v8554_v0 = vld [vmem:[%s13473_s2 + $0xf4] sm:$0xf0]  ;;  %v6269_v1 = vld [vmem:[%s13473_s2 + $0x60] sm:$0xf]  ;;  %v8537_v2 = vld [vmem:[%s13473_s2 + $0x6c] sm:$0xf0]  ;;  %v9597_v6 = vpack.c.bf16 %v44_v63, %v43_v62 }
  0x11   :  { %218 = vmatpush.bf16.msrb.mxu3 %v6186_v33  ;;  %473 = vmatpush.bf16.msrb.mxu0 %v6318_v38  ;;  %v6342_v3 = vor.u32 %v8554_v0, %v6341_v60  ;;  %v8535_v7 = vld [vmem:[%s13473_s2 + $0x64] sm:$0xf]  ;;  %v6271_v8 = vld [vmem:[%s13473_s2 + $0x70] sm:$0xf0]  ;;  %v6270_v9 = vor.u32 %v8537_v2, %v6269_v1  ;;  %v6253_v10 = vld [vmem:[%s13473_s2 + $0x40] sm:$0xf] }
  0x12   :  { %v8533_v11 = vld [vmem:[%s13473_s2 + $0x4c] sm:$0xf0]  ;;  %v6274_v12 = vor.u32 %v8535_v7, %v6271_v8  ;;  %v8531_v13 = vld [vmem:[%s13473_s2 + $0x44] sm:$0xf]  ;;  %v6255_v14 = vld [vmem:[%s13473_s2 + $0x50] sm:$0xf0] }
  0x13   :  { %486 = vmatpush.bf16.msrb.mxu1 %v6322_v43  ;;  %v6237_v15 = vld [vmem:[%s13473_s2 + $0x20] sm:$0xf]  ;;  %v8529_v16 = vld [vmem:[%s13473_s2 + $0x2c] sm:$0xf0]  ;;  %v6254_v17 = vor.u32 %v8533_v11, %v6253_v10  ;;  %v8544_v18 = vld [vmem:[%s13473_s2 + $0xac] sm:$0xf]  ;;  %v6258_v27 = vor.u32 %v8531_v13, %v6255_v14 }
  0x14   :  { %498 = vmatpush.bf16.msra.mxu2 %v6342_v3  ;;  %v6311_v19 = vld [vmem:[%s13473_s2 + $0xb8] sm:$0xf0]  ;;  %v6325_v20 = vld [vmem:[%s13473_s2 + $0xc8] sm:$0xf]  ;;  %v8550_v24 = vld [vmem:[%s13473_s2 + $0xd4] sm:$0xf0]  ;;  %v6238_v34 = vor.u32 %v8529_v16, %v6237_v15 }
  0x15   :  { %511 = vmatpush.bf16.msra.mxu3 %v6346_v48  ;;  %474 = vmatpush.bf16.msrb.mxu0 %v6302_v49  ;;  %v6314_v21 = vor.u32 %v8544_v18, %v6311_v19  ;;  %v8540_v25 = vld [vmem:[%s13473_s2 + $0x8c] sm:$0xf]  ;;  %v6295_v26 = vld [vmem:[%s13473_s2 + $0x98] sm:$0xf0]  ;;  %v6326_v28 = vor.u32 %v8550_v24, %v6325_v20  ;;  %v6309_v29 = vld [vmem:[%s13473_s2 + $0xa8] sm:$0xf] }
  0x16   :  { %v8546_v30 = vld [vmem:[%s13473_s2 + $0xb4] sm:$0xf0]  ;;  %v8527_v31 = vld [vmem:[%s13473_s2 + $0x24] sm:$0xf]  ;;  %v6239_v32 = vld [vmem:[%s13473_s2 + $0x30] sm:$0xf0]  ;;  %v6298_v33 = vor.u32 %v8540_v25, %v6295_v26 }
  0x17   :  { %487 = vmatpush.bf16.msrb.mxu1 %v6306_v55  ;;  %v6310_v35 = vor.u32 %v8546_v30, %v6309_v29  ;;  %v6221_v36 = vld [vmem:[%s13473_s2] sm:$0xf]  ;;  %v8525_v37 = vld [vmem:[%s13473_s2 + $0xc] sm:$0xf0]  ;;  %v6242_v38 = vor.u32 %v8527_v31, %v6239_v32  ;;  %v8523_v39 = vld [vmem:[%s13473_s2 + $0x4] sm:$0xf] }
  0x18   :  { %499 = vmatpush.bf16.msra.mxu2 %v6326_v28  ;;  %v6223_v40 = vld [vmem:[%s13473_s2 + $0x10] sm:$0xf0]  ;;  %v6222_v41 = vor.u32 %v8525_v37, %v6221_v36  ;;  %v9378_v43 = vmov 0.0|0.0   ;;  %v8536_v44 = vld [vmem:[%s13473_s2 + $0x6c] sm:$0xf] }
  0x19   :  { %512 = vmatpush.bf16.msra.mxu3 %v6330_v59  ;;  %475 = vmatpush.bf16.msrb.mxu0 %v6286_v61  ;;  %v6226_v42 = vor.u32 %v8523_v39, %v6223_v40  ;;  %v6279_v45 = vld [vmem:[%s13473_s2 + $0x78] sm:$0xf0]  ;;  %v6293_v46 = vld [vmem:[%s13473_s2 + $0x88] sm:$0xf]  ;;  %v8542_v48 = vld [vmem:[%s13473_s2 + $0x94] sm:$0xf0] }
  0x1a   :  { %v6282_v47 = vor.u32 %v8536_v44, %v6279_v45  ;;  %v6263_v49 = vld [vmem:[%s13473_s2 + $0x58] sm:$0xf0]  ;;  %v6294_v50 = vor.u32 %v8542_v48, %v6293_v46  ;;  %v6277_v51 = vld [vmem:[%s13473_s2 + $0x68] sm:$0xf]  ;;  %v8538_v52 = vld [vmem:[%s13473_s2 + $0x74] sm:$0xf0] }
  0x1b   :  { %488 = vmatpush.bf16.msrb.mxu1 %v6290_v4  ;;  %6206 = vmatmul.msk.bf16.gmra.mxu2 %vm111_vm0, %v9595_v5  ;;  %v6278_v54 = vor.u32 %v8538_v52, %v6277_v51  ;;  %v8528_v55 = vld [vmem:[%s13473_s2 + $0x2c] sm:$0xf]  ;;  %v6247_v56 = vld [vmem:[%s13473_s2 + $0x38] sm:$0xf0]  ;;  %v6261_v57 = vld [vmem:[%s13473_s2 + $0x48] sm:$0xf] }
  0x1c   :  { %6204 = vmatmul.msk.bf16.gmra.mxu0 %vm111_vm0, %v9597_v6  ;;  %6210 = vmatmul.msk.bf16.gmra.mxu3 %vm111_vm0, %v9595_v5  ;;  %v6250_v58 = vor.u32 %v8528_v55, %v6247_v56  ;;  %v8534_v59 = vld [vmem:[%s13473_s2 + $0x54] sm:$0xf0]  ;;  %v8524_v60 = vld [vmem:[%s13473_s2 + $0xc] sm:$0xf]  ;;  %v6231_v61 = vld [vmem:[%s13473_s2 + $0x18] sm:$0xf0] }
  0x1d   :  { %476 = vmatpush.bf16.msrb.mxu0 %v6270_v9  ;;  %513 = vmatpush.bf16.msra.mxu3 %v6314_v21  ;;  %v6262_v62 = vor.u32 %v8534_v59, %v6261_v57  ;;  %v6245_v63 = vld [vmem:[%s13473_s2 + $0x28] sm:$0xf]  ;;  %v8530_v0 = vld [vmem:[%s13473_s2 + $0x34] sm:$0xf0]  ;;  %v6234_v1 = vor.u32 %v8524_v60, %v6231_v61  ;;  %v61_v8 = vld [vmem:[%s13474_s3] sm:$0xf] }
  0x1e   :  { %6208 = vmatmul.msk.bf16.gmra.mxu1 %vm111_vm0, %v9597_v6  ;;  %500 = vmatpush.bf16.msra.mxu2 %v6310_v35  ;;  %v6246_v2 = vor.u32 %v8530_v0, %v6245_v63  ;;  %v6229_v3 = vld [vmem:[%s13473_s2 + $0x8] sm:$0xf]  ;;  %v8526_v4 = vld [vmem:[%s13473_s2 + $0x14] sm:$0xf0]  ;;  %v9750_v10 = vperm.slane %v61_v8, 0  ;;  %v9752_v11 = vperm.slane %v61_v8, 1 }
  0x1f   :  { %489 = vmatpush.bf16.msrb.mxu1 %v6274_v12  ;;  %v9796_v40 = vperm.slane %v61_v8, 2  ;;  %v6464_v59 = vld [vmem:[%s13473_s2 + $0xe0] sm:$0xf]  ;;  %v8585_v60 = vld [vmem:[%s13473_s2 + $0xec] sm:$0xf0] }
  0x20   :  { %v8583_v61 = vld [vmem:[%s13473_s2 + $0xe4] sm:$0xf]  ;;  %v6466_v63 = vld [vmem:[%s13473_s2 + $0xf0] sm:$0xf0]  ;;  %v6472_v0 = vld [vmem:[%s13473_s2 + $0xe8] sm:$0xf] }
  0x21   :  { %477 = vmatpush.bf16.msrb.mxu0 %v6254_v17  ;;  %514 = vmatpush.bf16.msra.mxu3 %v6298_v33 }
  0x22   :  { %501 = vmatpush.bf16.msra.mxu2 %v6294_v50 }
  0x23   :  { %490 = vmatpush.bf16.msrb.mxu1 %v6258_v27 }
  0x25   :  { %478 = vmatpush.bf16.msrb.mxu0 %v6238_v34  ;;  %515 = vmatpush.bf16.msra.mxu3 %v6282_v47 }
  0x26   :  { %502 = vmatpush.bf16.msra.mxu2 %v6278_v54 }
  0x27   :  { %491 = vmatpush.bf16.msrb.mxu1 %v6242_v38 }
  0x29   :  { %479 = vmatpush.bf16.msrb.mxu0 %v6222_v41 }
  0x2a   :  { %503 = vmatpush.bf16.msra.mxu2 %v6262_v62  ;;  %v6465_v62 = vor.u32 %v8585_v60, %v6464_v59  ;;  %v8578_v59 = vld [vmem:[%s13473_s2 + $0xb4] sm:$0xf0] }
  0x2b   :  { %492 = vmatpush.bf16.msrb.mxu1 %v6226_v42  ;;  %6211 = vmatmul.msk.bf16.vlgmr.msrb.gmra.mxu2 %vm111_vm0, %v9489_v23  ;;  %v9799_v42 = vperm.slane %v61_v8, 3 }
  0x2c   :  { %480 = vmatmul.bf16.vlgmr.msrb.gmra.mxu0 %v9378_v43  ;;  %6215 = vmatmul.msk.bf16.vlgmr.msrb.gmra.mxu3 %vm111_vm0, %v9489_v23  ;;  %v8532_v23 = vld [vmem:[%s13473_s2 + $0x4c] sm:$0xf] }
  0x2d   :  { %v6266_v53 = vor.u32 %v8532_v23, %v6263_v49  ;;  %794 = vmatpush.bf16.msra.mxu0 %v6465_v62  ;;  %v8576_v62 = vld [vmem:[%s13473_s2 + $0xac] sm:$0xf] }
  0x2e   :  { %493 = vmatmul.bf16.vlgmr.msrb.gmra.mxu1 %v9378_v43  ;;  %504 = vmatpush.bf16.msra.mxu2 %v6246_v2  ;;  %v6469_v2 = vor.u32 %v8583_v61, %v6466_v63  ;;  %v6442_v63 = vld [vmem:[%s13473_s2 + $0xb8] sm:$0xf0] }
  0x2f   :  { %516 = vmatpush.bf16.msra.mxu3 %v6266_v53 }
  0x30   :  { %807 = vmatpush.bf16.msra.mxu1 %v6469_v2  ;;  %v8573_v2 = vld [vmem:[%s13473_s2 + $0x8c] sm:$0xf0] }
  0x33   :  { %517 = vmatpush.bf16.msra.mxu3 %v6250_v58 }
  0x37   :  { %518 = vmatpush.bf16.msra.mxu3 %v6234_v1  ;;  %v8586_v1 = vld [vmem:[%s13473_s2 + $0xf4] sm:$0xf0] }
  0x3b   :  { %6212 = vmatmul.msk.bf16.gmra.mxu2 %vm111_vm0, %v9597_v6 }
  0x3c   :  { %6216 = vmatmul.msk.bf16.gmra.mxu3 %vm111_vm0, %v9597_v6  ;;  %v6230_v6 = vor.u32 %v8526_v4, %v6229_v3  ;;  %v6473_v3 = vor.u32 %v8586_v1, %v6472_v0  ;;  %v8584_v4 = vld [vmem:[%s13473_s2 + $0xec] sm:$0xf]  ;;  %v6445_v0 = vor.u32 %v8576_v62, %v6442_v63  ;;  %v6416_v1 = vld [vmem:[%s13473_s2 + $0x80] sm:$0xf]  ;;  %v6410_v63 = vld [vmem:[%s13473_s2 + $0x78] sm:$0xf0] }
  0x3d   :  { %v8568_v62 = vld [vmem:[%s13473_s2 + $0x6c] sm:$0xf] }
  0x3e   :  { %505 = vmatpush.bf16.msra.mxu2 %v6230_v6  ;;  %v6474_v6 = vld [vmem:[%s13473_s2 + $0xf8] sm:$0xf0] }
  0x42   :  { %820 = vmatpush.bf16.msrb.mxu2 %v6473_v3  ;;  %v8571_v3 = vld [vmem:[%s13473_s2 + $0x84] sm:$0xf] }
  0x4b   :  { %6213 = vmatmul.msk.bf16.gmra.mxu2 %vm111_vm0, %v9487_v22 }
  0x4c   :  { %6217 = vmatmul.msk.bf16.gmra.mxu3 %vm111_vm0, %v9487_v22 }
  0x5b   :  { %6214 = vmatmul.msk.bf16.gmra.mxu2 %vm111_vm0, %v9595_v5 }
  0x5c   :  { %6218 = vmatmul.msk.bf16.gmra.mxu3 %vm111_vm0, %v9595_v5 }
  0x6b   :  { %506 = vmatmul.bf16.vlgmr.msra.gmra.mxu2 %v9378_v43 }
  0x6c   :  { %519 = vmatmul.bf16.vlgmr.msra.gmra.mxu3 %v9378_v43 }
  0x88   :  { %v133_v7 = vpop.f32.mrf.mxu0 }
  0x89   :  { %v134_v48 = vadd.f32 %v133_v7, %v9750_v10 }
  0x8b   :  { %v162_v9 = vpop.f32.mrf.mxu1 }
  0x8c   :  { %v163_v41 = vadd.f32 %v162_v9, %v9752_v11  ;;  %v6477_v9 = vor.u32 %v8584_v4, %v6474_v6  ;;  %v6417_v4 = vor.u32 %v8573_v2, %v6416_v1  ;;  %v6418_v6 = vld [vmem:[%s13473_s2 + $0x90] sm:$0xf0]  ;;  %v6413_v1 = vor.u32 %v8568_v62, %v6410_v63  ;;  %v6384_v2 = vld [vmem:[%s13473_s2 + $0x40] sm:$0xf] }
  0x8e   :  { %v143_v22 = vpop.f32.mrf.mxu2  ;;  %833 = vmatpush.bf16.msrb.mxu3 %v6477_v9  ;;  %v8574_v9 = vld [vmem:[%s13473_s2 + $0x94] sm:$0xf0] }
  0x8f   :  { %v9755_v12 = vadd.f32 %v143_v22, %v9750_v10  ;;  %v172_v13 = vpop.f32.mrf.mxu3  ;;  %v6448_v22 = vld [vmem:[%s13473_s2 + $0xc0] sm:$0xf] }
  0x90   :  { %v9758_v5 = vadd.f32 %v172_v13, %v9752_v11  ;;  %v9760_v14 = vpop.f32.mrf.mxu0  ;;  %v8581_v13 = vld [vmem:[%s13473_s2 + $0xcc] sm:$0xf0] }
  0x93   :  { %v9762_v15 = vpop.f32.mrf.mxu1 }
  0x96   :  { %v9764_v16 = vpop.f32.mrf.mxu2 }
  0x97   :  { %v9766_v17 = vpop.f32.mrf.mxu3 }
  0x99   :  { %v138_v18 = vpop.f32.mrf.mxu0 }
  0x9a   :  { %v9769_v19 = vadd.f32 %v138_v18, %v9750_v10  ;;  %v8579_v18 = vld [vmem:[%s13473_s2 + $0xc4] sm:$0xf] }
  0x9b   :  { %v167_v20 = vpop.f32.mrf.mxu1 }
  0x9c   :  { %v9772_v21 = vadd.f32 %v167_v20, %v9752_v11  ;;  %v6449_v20 = vor.u32 %v8581_v13, %v6448_v22  ;;  %v6421_v13 = vor.u32 %v8571_v3, %v6418_v6  ;;  %v8565_v3 = vld [vmem:[%s13473_s2 + $0x4c] sm:$0xf0] }
  0x9d   :  { %v6385_v6 = vor.u32 %v8565_v3, %v6384_v2  ;;  %v6378_v2 = vld [vmem:[%s13473_s2 + $0x38] sm:$0xf0]  ;;  %v6352_v3 = vld [vmem:[%s13473_s2] sm:$0xf] }
  0x9e   :  { %v148_v24 = vpop.f32.mrf.mxu2  ;;  %795 = vmatpush.bf16.msra.mxu0 %v6449_v20  ;;  %v8572_v20 = vld [vmem:[%s13473_s2 + $0x8c] sm:$0xf] }
  0x9f   :  { %v9775_v25 = vadd.f32 %v148_v24, %v9750_v10  ;;  %v177_v26 = vpop.f32.mrf.mxu3  ;;  %v6450_v24 = vld [vmem:[%s13473_s2 + $0xd0] sm:$0xf0] }
  0xa0   :  { %v9778_v27 = vadd.f32 %v177_v26, %v9752_v11  ;;  %v6456_v26 = vld [vmem:[%s13473_s2 + $0xc8] sm:$0xf] }
  0xa1   :  { %v9780_v28 = vpop.f32.mrf.mxu0 }
  0xa3   :  { %v9782_v29 = vpop.f32.mrf.mxu1 }
  0xa6   :  { %v9784_v30 = vpop.f32.mrf.mxu2 }
  0xa7   :  { %v9786_v31 = vpop.f32.mrf.mxu3 }
  0xa9   :  { %v481_v32 = vpop.f32.mrf.mxu0 }
  0xaa   :  { %v524_v49 = vadd.f32 %v481_v32, %v134_v48  ;;  %v8582_v32 = vld [vmem:[%s13473_s2 + $0xd4] sm:$0xf0] }
  0xab   :  { %v494_v33 = vpop.f32.mrf.mxu1 }
  0xac   :  { %v525_v23 = vadd.f32 %v494_v33, %v163_v41  ;;  %v6347_v53 = vmul.f32 -1.442695, %v524_v49  ;;  %v6457_v41 = vor.u32 %v8582_v32, %v6456_v26  ;;  %v6432_v49 = vld [vmem:[%s13473_s2 + $0xa0] sm:$0xf] }
  0xae   :  { %v9788_v34 = vpop.f32.mrf.mxu2  ;;  %v6348_v50 = vmul.f32 -1.442695, %v525_v23  ;;  %821 = vmatpush.bf16.msrb.mxu2 %v6457_v41 }
  0xaf   :  { %v9790_v35 = vpop.f32.mrf.mxu3 }
  0xb0   :  { %9090 = vpow2.f32 %v6348_v50  ;;  %v8577_v50 = vld [vmem:[%s13473_s2 + $0xac] sm:$0xf0] }
  0xb1   :  { %v483_v36 = vpop.f32.mrf.mxu0  ;;  %9092 = vpow2.f32 %v6347_v53  ;;  %v8575_v53 = vld [vmem:[%s13473_s2 + $0xa4] sm:$0xf] }
  0xb3   :  { %v496_v37 = vpop.f32.mrf.mxu1 }
  0xb4   :  { %v6453_v37 = vor.u32 %v8579_v18, %v6450_v24  ;;  %v6426_v24 = vld [vmem:[%s13473_s2 + $0x98] sm:$0xf0] }
  0xb5   :  { %v6429_v41 = vor.u32 %v8572_v20, %v6426_v24 }
  0xb6   :  { %v9792_v38 = vpop.f32.mrf.mxu2  ;;  %v9091_v57 = vpop.eup %9090  ;;  %808 = vmatpush.bf16.msra.mxu1 %v6453_v37 }
  0xb7   :  { %v9794_v39 = vpop.f32.mrf.mxu3  ;;  %v9093_v7 = vpop.eup %9092  ;;  %v9842_v8 = vadd.f32 1.0, %v9091_v57  ;;  %v6440_v57 = vld [vmem:[%s13473_s2 + $0xa8] sm:$0xf] }
  0xb8   :  { %v9862_v33 = vadd.f32 1.0, %v9093_v7  ;;  %v6441_v61 = vor.u32 %v8578_v59, %v6440_v57  ;;  %v6424_v7 = vld [vmem:[%s13473_s2 + $0x88] sm:$0xf]  ;;  %v8570_v57 = vld [vmem:[%s13473_s2 + $0x74] sm:$0xf0] }
  0xb9   :  { %9094 = vrcp.f32 %v9842_v8  ;;  %v6425_v18 = vor.u32 %v8574_v9, %v6424_v7  ;;  %v6386_v7 = vld [vmem:[%s13473_s2 + $0x50] sm:$0xf0]  ;;  %v6392_v9 = vld [vmem:[%s13473_s2 + $0x48] sm:$0xf]  ;;  %vm556_vm1 = vweird.f32 %v9842_v8 }
  0xba   :  { %9096 = vrcp.f32 %v9862_v33  ;;  %822 = vmatpush.bf16.msrb.mxu2 %v6441_v61  ;;  %vm537_vm3 = vweird.f32 %v9862_v33 }
  0xbe   :  { %v196_v44 = vpop.f32.mrf.mxu2  ;;  %823 = vmatpush.bf16.msrb.mxu2 %v6425_v18 }
  0xbf   :  { %v9802_v45 = vadd.f32 %v196_v44, %v9796_v40  ;;  %v225_v46 = vpop.f32.mrf.mxu3  ;;  %v8580_v44 = vld [vmem:[%s13473_s2 + $0xcc] sm:$0xf]  ;;  %v9924_v26 = vpop.eup %9094 }
  0xc0   :  { %v9805_v47 = vadd.f32 %v225_v46, %v9799_v42  ;;  %v6458_v46 = vld [vmem:[%s13473_s2 + $0xd8] sm:$0xf0]  ;;  %v552_v59 = vmul.f32 %v9924_v26, %v9842_v8  ;;  %vm557_vm2 = vweird.f32 %v9924_v26 }
  0xc1   :  { %v6461_v23 = vor.u32 %v8580_v44, %v6458_v46  ;;  %v9929_v44 = vpop.eup %9096  ;;  %vm10056_vm5 = vmor %vm556_vm1, %vm557_vm2 }
  0xc2   :  { %vm538_vm4 = vweird.f32 %v9929_v44 }
  0xc3   :  { %834 = vmatpush.bf16.msrb.mxu3 %v6461_v23  ;;  %v6400_v23 = vld [vmem:[%s13473_s2 + $0x60] sm:$0xf]  ;;  %vm539_vm6 = vmor %vm537_vm3, %vm538_vm4 }
  0xc6   :  { %v9808_v51 = vpop.f32.mrf.mxu2 }
  0xc7   :  { %v9810_v52 = vpop.f32.mrf.mxu3  ;;  %835 = vmatpush.bf16.msrb.mxu3 %v6445_v0  ;;  %v533_v0 = vmul.f32 %v9929_v44, %v9862_v33 }
  0xcb   :  { %836 = vmatpush.bf16.msrb.mxu3 %v6429_v41  ;;  %v6394_v41 = vld [vmem:[%s13473_s2 + $0x58] sm:$0xf0] }
  0xce   :  { %v201_v54 = vpop.f32.mrf.mxu2 }
  0xcf   :  { %v9813_v55 = vadd.f32 %v201_v54, %v9796_v40  ;;  %v230_v56 = vpop.f32.mrf.mxu3  ;;  %v6433_v54 = vor.u32 %v8577_v50, %v6432_v49  ;;  %v8569_v49 = vld [vmem:[%s13473_s2 + $0x6c] sm:$0xf0]  ;;  %v8567_v50 = vld [vmem:[%s13473_s2 + $0x64] sm:$0xf]  ;;  %837 = vmatpush.bf16.msrb.mxu3 %v6413_v1  ;;  %v8560_v1 = vld [vmem:[%s13473_s2 + $0x2c] sm:$0xf] }
  0xd0   :  { %v9816_v58 = vadd.f32 %v230_v56, %v9799_v42  ;;  %v6434_v56 = vld [vmem:[%s13473_s2 + $0xb0] sm:$0xf0] }
  0xd1   :  { %v6437_v60 = vor.u32 %v8575_v53, %v6434_v56  ;;  %796 = vmatpush.bf16.msra.mxu0 %v6433_v54  ;;  %v6401_v53 = vor.u32 %v8569_v49, %v6400_v23  ;;  %v6402_v54 = vld [vmem:[%s13473_s2 + $0x70] sm:$0xf0]  ;;  %v6408_v56 = vld [vmem:[%s13473_s2 + $0x68] sm:$0xf]  ;;  %v534_v23 = vsub.f32 1.0, %v533_v0 }
  0xd2   :  { %v6409_v61 = vor.u32 %v8570_v57, %v6408_v56  ;;  %v8559_v56 = vld [vmem:[%s13473_s2 + $0x24] sm:$0xf] }
  0xd3   :  { %809 = vmatpush.bf16.msra.mxu1 %v6437_v60  ;;  %v6405_v60 = vor.u32 %v8567_v50, %v6402_v54  ;;  %v8561_v54 = vld [vmem:[%s13473_s2 + $0x2c] sm:$0xf0] }
  0xd4   :  { %824 = vmatpush.bf16.msrb.mxu2 %v6409_v61  ;;  %v8562_v61 = vld [vmem:[%s13473_s2 + $0x34] sm:$0xf0] }
  0xd5   :  { %797 = vmatpush.bf16.msra.mxu0 %v6417_v4  ;;  %v8563_v4 = vld [vmem:[%s13473_s2 + $0x44] sm:$0xf] }
  0xd6   :  { %v9864_v36 = vpop.f32.mrf.mxu2  ;;  %v6389_v20 = vor.u32 %v8563_v4, %v6386_v7  ;;  %v192_v4 = vadd.f32 %v9788_v34, %v9796_v40  ;;  %v8557_v7 = vld [vmem:[%s13473_s2 + $0xc] sm:$0xf0] }
  0xd7   :  { %v9872_v48 = vpop.f32.mrf.mxu3  ;;  %810 = vmatpush.bf16.msra.mxu1 %v6421_v13  ;;  %v553_v13 = vsub.f32 1.0, %v552_v59  ;;  %v6370_v59 = vld [vmem:[%s13473_s2 + $0x30] sm:$0xf0]  ;;  %v6353_v34 = vor.u32 %v8557_v7, %v6352_v3 }
  0xd8   :  { %v6373_v63 = vor.u32 %v8559_v56, %v6370_v59  ;;  %v560_v59 = vand.u32 2147483647, %v9842_v8 }
  0xd9   :  { %798 = vmatpush.bf16.msra.mxu0 %v6401_v53  ;;  %v6368_v53 = vld [vmem:[%s13473_s2 + $0x20] sm:$0xf]  ;;  %v554_v62 = vmul.f32 %v9924_v26, %v553_v13  ;;  %v535_v13 = vmul.f32 %v9929_v44, %v534_v23  ;;  %v221_v23 = vadd.f32 %v9790_v35, %v9799_v42  ;;  %v543_v35 = vand.u32 2147483648, %v9862_v33 }
  0xda   :  { %v6369_v57 = vor.u32 %v8561_v54, %v6368_v53  ;;  %v6362_v54 = vld [vmem:[%s13473_s2 + $0x18] sm:$0xf0]  ;;  %vm561_vm7 = vcmp.eq.f32.partialorder %v560_v59, 8.507059e+37 }
  0xdb   :  { %811 = vmatpush.bf16.msra.mxu1 %v6405_v60  ;;  %v6376_v60 = vld [vmem:[%s13473_s2 + $0x28] sm:$0xf] }
  0xdc   :  { %v6377_v0 = vor.u32 %v8562_v61, %v6376_v60 }
  0xdd   :  { %799 = vmatpush.bf16.msra.mxu0 %v6385_v6  ;;  %v6381_v6 = vor.u32 %v8560_v1, %v6378_v2  ;;  %v536_v1 = vadd.f32 %v9929_v44, %v535_v13 }
  0xde   :  { %v206_v22 = vpop.f32.mrf.mxu2 }
  0xdf   :  { %v9927_v32 = vadd.f32 %v206_v22, %v9796_v40  ;;  %v235_v37 = vpop.f32.mrf.mxu3  ;;  %v8566_v22 = vld [vmem:[%s13473_s2 + $0x54] sm:$0xf0]  ;;  %812 = vmatpush.bf16.msra.mxu1 %v6389_v20  ;;  %v540_v7 = vsel %vm539_vm6, %v9929_v44, %v536_v1  ;;  %v6595_v1 = vld [vmem:[%s13473_s2 + $0xe0] sm:$0xf] }
  0xe0   :  { %v9932_v46 = vadd.f32 %v235_v37, %v9799_v42  ;;  %v6393_v24 = vor.u32 %v8566_v22, %v6392_v9  ;;  %v8564_v37 = vld [vmem:[%s13473_s2 + $0x4c] sm:$0xf]  ;;  %v8555_v9 = vld [vmem:[%s13473_s2 + $0x4] sm:$0xf]  ;;  %v6354_v22 = vld [vmem:[%s13473_s2 + $0x10] sm:$0xf0] }
  0xe1   :  { %v6397_v50 = vor.u32 %v8564_v37, %v6394_v41  ;;  %800 = vmatpush.bf16.msra.mxu0 %v6369_v57  ;;  %v6357_v20 = vor.u32 %v8555_v9, %v6354_v22  ;;  %v8558_v37 = vld [vmem:[%s13473_s2 + $0x14] sm:$0xf0]  ;;  %v8556_v41 = vld [vmem:[%s13473_s2 + $0xc] sm:$0xf]  ;;  %v555_v57 = vadd.f32 %v9924_v26, %v554_v62  ;;  %v541_v62 = vand.u32 2147483647, %v9862_v33 }
  0xe2   :  { %825 = vmatpush.bf16.msrb.mxu2 %v6393_v24  ;;  %v6360_v24 = vld [vmem:[%s13473_s2 + $0x8] sm:$0xf]  ;;  %v6365_v60 = vor.u32 %v8556_v41, %v6362_v54 }
  0xe3   :  { %838 = vmatpush.bf16.msrb.mxu3 %v6397_v50  ;;  %813 = vmatpush.bf16.msra.mxu1 %v6373_v63  ;;  %v562_v50 = vand.u32 2147483648, %v9842_v8  ;;  %v6361_v53 = vor.u32 %v8558_v37, %v6360_v24  ;;  %v559_v8 = vsel %vm10056_vm5, %v9924_v26, %v555_v57  ;;  %vm542_vm8 = vcmp.eq.f32.partialorder %v541_v62, 8.507059e+37  ;;  %v8617_v62 = vld [vmem:[%s13473_s2 + $0xec] sm:$0xf0] }
  0xe5   :  { %801 = vmatpush.bf16.msra.mxu0 %v6353_v34  ;;  %v563_v3 = vor.u32 1.1754944e-38, %v562_v50 }
  0xe6   :  { %v9980_v18 = vpop.f32.mrf.mxu2  ;;  %826 = vmatpush.bf16.msrb.mxu2 %v6377_v0 }
  0xe7   :  { %v9988_v49 = vpop.f32.mrf.mxu3  ;;  %839 = vmatpush.bf16.msrb.mxu3 %v6381_v6  ;;  %814 = vmatpush.bf16.msra.mxu1 %v6357_v20  ;;  %v544_v6 = vor.u32 1.1754944e-38, %v543_v35  ;;  %v564_v9 = vsel %vm561_vm7, %v563_v3, %v559_v8  ;;  %v6596_v3 = vor.u32 %v8617_v62, %v6595_v1  ;;  %v6597_v8 = vld [vmem:[%s13473_s2 + $0xf0] sm:$0xf0]  ;;  %v6571_v1 = vld [vmem:[%s13473_s2 + $0xa8] sm:$0xf] }
  0xe8   :  { %v587_v33 = vmul.f32 0.0, %v564_v9  ;;  %v8610_v62 = vld [vmem:[%s13473_s2 + $0xb4] sm:$0xf0] }
  0xe9   :  { %v545_v34 = vsel %vm542_vm8, %v544_v6, %v540_v7  ;;  %v8618_v6 = vld [vmem:[%s13473_s2 + $0xf4] sm:$0xf0]  ;;  %1117 = vmatpush.bf16.msrb.mxu0 %v6596_v3  ;;  %v6572_v3 = vor.u32 %v8610_v62, %v6571_v1  ;;  %v8600_v62 = vld [vmem:[%s13473_s2 + $0x6c] sm:$0xf] }
  0xea   :  { %827 = vmatpush.bf16.msrb.mxu2 %v6361_v53 }
  0xeb   :  { %840 = vmatpush.bf16.msrb.mxu3 %v6365_v60 }
  0xee   :  { %v507_v56 = vpop.f32.mrf.mxu2 }
  0xef   :  { %v526_v61 = vadd.f32 %v507_v56, %v192_v4  ;;  %v520_v0 = vpop.f32.mrf.mxu3 }
  0xf0   :  { %v527_v2 = vadd.f32 %v520_v0, %v221_v23 }
  0xf1   :  { %9098 = vtanh.f32 %v526_v61 }
  0xf2   :  { %v6349_v4 = vmul.f32 -1.442695, %v527_v2  ;;  %v8615_v2 = vld [vmem:[%s13473_s2 + $0xe4] sm:$0xf] }
  0xf3   :  { %v6600_v7 = vor.u32 %v8615_v2, %v6597_v8  ;;  %v8608_v8 = vld [vmem:[%s13473_s2 + $0xac] sm:$0xf] }
  0xf4   :  { %9100 = vpow2.f32 %v6349_v4  ;;  %v6603_v4 = vld [vmem:[%s13473_s2 + $0xe8] sm:$0xf] }
  0xf5   :  { %v6604_v9 = vor.u32 %v8618_v6, %v6603_v4  ;;  %1130 = vmatpush.bf16.msrb.mxu1 %v6600_v7  ;;  %v6573_v4 = vld [vmem:[%s13473_s2 + $0xb8] sm:$0xf0]  ;;  %v6547_v7 = vld [vmem:[%s13473_s2 + $0x80] sm:$0xf] }
  0xf6   :  { %v509_v22 = vpop.f32.mrf.mxu2  ;;  %v6576_v6 = vor.u32 %v8608_v8, %v6573_v4 }
  0xf7   :  { %v9099_v13 = vpop.eup %9098  ;;  %v522_v20 = vpop.f32.mrf.mxu3  ;;  %v8616_v22 = vld [vmem:[%s13473_s2 + $0xec] sm:$0xf]  ;;  %1143 = vmatpush.bf16.msra.mxu2 %v6604_v9  ;;  %v8605_v9 = vld [vmem:[%s13473_s2 + $0x8c] sm:$0xf0] }
  0xf8   :  { %v588_v24 = vmul.f32 %v9099_v13, %v545_v34  ;;  %v6605_v13 = vld [vmem:[%s13473_s2 + $0xf8] sm:$0xf0]  ;;  %v6579_v20 = vld [vmem:[%s13473_s2 + $0xc0] sm:$0xf] }
  0xf9   :  { %v6608_v34 = vor.u32 %v8616_v22, %v6605_v13  ;;  %v8603_v22 = vld [vmem:[%s13473_s2 + $0x84] sm:$0xf]  ;;  %v6548_v13 = vor.u32 %v8605_v9, %v6547_v7 }
  0xfa   :  { %v9101_v37 = vpop.eup %9100  ;;  %v10070_v41 = vadd.f32 %v588_v24, %v587_v33  ;;  %v8613_v33 = vld [vmem:[%s13473_s2 + $0xcc] sm:$0xf0]  ;;  %v8611_v24 = vld [vmem:[%s13473_s2 + $0xc4] sm:$0xf] }
  0xfb   :  { %v570_v23 = vadd.f32 1.0, %v9101_v37  ;;  %1156 = vmatpush.bf16.msra.mxu3 %v6608_v34  ;;  %v6580_v37 = vor.u32 %v8613_v33, %v6579_v20  ;;  %v6549_v34 = vld [vmem:[%s13473_s2 + $0x90] sm:$0xf0]  ;;  %v6555_v20 = vld [vmem:[%s13473_s2 + $0x88] sm:$0xf] }
  0xfc   :  { %v8606_v33 = vld [vmem:[%s13473_s2 + $0x94] sm:$0xf0]  ;;  %v8595_v9 = vld [vmem:[%s13473_s2 + $0x44] sm:$0xf] }
  0xfd   :  { %9102 = vrcp.f32 %v570_v23  ;;  %v582_v44 = vand.u32 2147483648, %v570_v23  ;;  %v580_v56 = vand.u32 2147483647, %v570_v23  ;;  %vm576_vm10 = vweird.f32 %v570_v23  ;;  %1118 = vmatpush.bf16.msrb.mxu0 %v6580_v37 }
  0xfe   :  { %9104 = vtanh.f32 %v10070_v41  ;;  %v6556_v37 = vor.u32 %v8606_v33, %v6555_v20  ;;  %v8598_v20 = vld [vmem:[%s13473_s2 + $0x54] sm:$0xf0] }
  0xff   :  { %v583_v59 = vor.u32 1.1754944e-38, %v582_v44  ;;  %vm581_vm12 = vcmp.eq.f32.partialorder %v580_v56, 8.507059e+37  ;;  %v6589_v56 = vld [vmem:[%s13473_s2 + $0xd8] sm:$0xf0] }
 0x103   :  { %v9103_v26 = vpop.eup %9102 }
 0x104   :  { %v572_v50 = vmul.f32 %v9103_v26, %v570_v23  ;;  %vm577_vm9 = vweird.f32 %v9103_v26  ;;  %v9105_v61 = vpop.eup %9104  ;;  %v6581_v23 = vld [vmem:[%s13473_s2 + $0xd0] sm:$0xf0] }
 0x105   :  { %vm578_vm11 = vmor %vm576_vm10, %vm577_vm9 }
 0x106   :  { %v573_v53 = vsub.f32 1.0, %v572_v50  ;;  %v8614_v50 = vld [vmem:[%s13473_s2 + $0xd4] sm:$0xf0] }
 0x108   :  { %v574_v54 = vmul.f32 %v9103_v26, %v573_v53  ;;  %v6584_v53 = vor.u32 %v8611_v24, %v6581_v23  ;;  %v6552_v24 = vor.u32 %v8603_v22, %v6549_v34  ;;  %v8604_v23 = vld [vmem:[%s13473_s2 + $0x8c] sm:$0xf]  ;;  %v6523_v34 = vld [vmem:[%s13473_s2 + $0x48] sm:$0xf] }
 0x10a   :  { %v575_v57 = vadd.f32 %v9103_v26, %v574_v54  ;;  %v8612_v54 = vld [vmem:[%s13473_s2 + $0xcc] sm:$0xf]  ;;  %1131 = vmatpush.bf16.msrb.mxu1 %v6584_v53  ;;  %v6531_v53 = vld [vmem:[%s13473_s2 + $0x60] sm:$0xf] }
 0x10c   :  { %v579_v60 = vsel %vm578_vm11, %v9103_v26, %v575_v57  ;;  %v6587_v26 = vld [vmem:[%s13473_s2 + $0xc8] sm:$0xf]  ;;  %v6592_v57 = vor.u32 %v8612_v54, %v6589_v56  ;;  %v8599_v54 = vld [vmem:[%s13473_s2 + $0x64] sm:$0xf] }
 0x10d   :  { %v584_v35 = vsel %vm581_vm12, %v583_v59, %v579_v60  ;;  %v6588_v44 = vor.u32 %v8614_v50, %v6587_v26  ;;  %v6563_v59 = vld [vmem:[%s13473_s2 + $0xa0] sm:$0xf]  ;;  %v8609_v60 = vld [vmem:[%s13473_s2 + $0xac] sm:$0xf0]  ;;  %v6557_v26 = vld [vmem:[%s13473_s2 + $0x98] sm:$0xf0] }
 0x10e   :  { %v10073_v63 = vmul.f32 %v9105_v61, %v584_v35  ;;  %v8607_v61 = vld [vmem:[%s13473_s2 + $0xa4] sm:$0xf]  ;;  %1157 = vmatpush.bf16.msra.mxu3 %v6592_v57  ;;  %v6564_v35 = vor.u32 %v8609_v60, %v6563_v59  ;;  %v6560_v50 = vor.u32 %v8604_v23, %v6557_v26  ;;  %v6533_v57 = vld [vmem:[%s13473_s2 + $0x70] sm:$0xf0]  ;;  %v6539_v59 = vld [vmem:[%s13473_s2 + $0x68] sm:$0xf]  ;;  %v6524_v23 = vor.u32 %v8598_v20, %v6523_v34 }
 0x10f   :  { %1144 = vmatpush.bf16.msra.mxu2 %v6588_v44  ;;  %v8601_v44 = vld [vmem:[%s13473_s2 + $0x6c] sm:$0xf0]  ;;  %v8602_v60 = vld [vmem:[%s13473_s2 + $0x74] sm:$0xf0]  ;;  %v8596_v26 = vld [vmem:[%s13473_s2 + $0x4c] sm:$0xf] }
 0x110   :  { %v601_v0 = vpack.c.bf16 %v10073_v63, %v10073_v63  ;;  %1119 = vmatpush.bf16.msrb.mxu0 %v6564_v35  ;;  %v6532_v56 = vor.u32 %v8601_v44, %v6531_v53  ;;  %v165_v35 = vadd.f32 %v9762_v15, %v9752_v11  ;;  %v6540_v1 = vor.u32 %v8602_v60, %v6539_v59  ;;  %v8597_v15 = vld [vmem:[%s13473_s2 + $0x4c] sm:$0xf0]  ;;  %v6499_v53 = vld [vmem:[%s13473_s2 + $0x20] sm:$0xf]  ;;  %v6501_v59 = vld [vmem:[%s13473_s2 + $0x30] sm:$0xf0] }
 0x111   :  { %v8593_v44 = vld [vmem:[%s13473_s2 + $0x2c] sm:$0xf0]  ;;  %v6507_v60 = vld [vmem:[%s13473_s2 + $0x28] sm:$0xf]  ;;  %v8590_v20 = vld [vmem:[%s13473_s2 + $0x14] sm:$0xf0] }
 0x112   :  { %802 = vmatmul.bf16.vlgmr.msra.gmra.mxu0 %v601_v0  ;;  %815 = vmatmul.bf16.vlgmr.msra.gmra.mxu1 %v601_v0  ;;  %v6491_v34 = vld [vmem:[%s13473_s2 + $0x8] sm:$0xf] }
 0x113   :  { %828 = vmatmul.bf16.vlgmr.msrb.gmra.mxu2 %v601_v0  ;;  %841 = vmatmul.bf16.vlgmr.msrb.gmra.mxu3 %v601_v0  ;;  %v6565_v0 = vld [vmem:[%s13473_s2 + $0xb0] sm:$0xf0] }
 0x114   :  { %v6568_v2 = vor.u32 %v8607_v61, %v6565_v0  ;;  %1145 = vmatpush.bf16.msra.mxu2 %v6572_v3  ;;  %1158 = vmatpush.bf16.msra.mxu3 %v6576_v6  ;;  %v136_v61 = vadd.f32 %v9760_v14, %v9750_v10  ;;  %v6536_v0 = vor.u32 %v8599_v54, %v6533_v57  ;;  %v6515_v14 = vld [vmem:[%s13473_s2 + $0x40] sm:$0xf]  ;;  %v8591_v57 = vld [vmem:[%s13473_s2 + $0x24] sm:$0xf] }
 0x115   :  { %1120 = vmatpush.bf16.msrb.mxu0 %v6548_v13  ;;  %v6516_v22 = vor.u32 %v8597_v15, %v6515_v14  ;;  %v6517_v13 = vld [vmem:[%s13473_s2 + $0x50] sm:$0xf0] }
 0x116   :  { %1132 = vmatpush.bf16.msrb.mxu1 %v6568_v2  ;;  %v6541_v2 = vld [vmem:[%s13473_s2 + $0x78] sm:$0xf0] }
 0x117   :  { %v6544_v4 = vor.u32 %v8600_v62, %v6541_v2  ;;  %v6509_v62 = vld [vmem:[%s13473_s2 + $0x38] sm:$0xf0] }
 0x118   :  { %1146 = vmatpush.bf16.msra.mxu2 %v6556_v37  ;;  %1159 = vmatpush.bf16.msra.mxu3 %v6560_v50  ;;  %v6520_v37 = vor.u32 %v8595_v9, %v6517_v13  ;;  %v6525_v50 = vld [vmem:[%s13473_s2 + $0x58] sm:$0xf0]  ;;  %v6485_v13 = vld [vmem:[%s13473_s2 + $0x10] sm:$0xf0] }
 0x119   :  { %1121 = vmatpush.bf16.msrb.mxu0 %v6532_v56  ;;  %v6528_v54 = vor.u32 %v8596_v26, %v6525_v50  ;;  %v6500_v56 = vor.u32 %v8593_v44, %v6499_v53 }
 0x11a   :  { %1133 = vmatpush.bf16.msrb.mxu1 %v6552_v24 }
 0x11c   :  { %1147 = vmatpush.bf16.msra.mxu2 %v6540_v1  ;;  %1160 = vmatpush.bf16.msra.mxu3 %v6544_v4  ;;  %v8592_v1 = vld [vmem:[%s13473_s2 + $0x2c] sm:$0xf] }
 0x11d   :  { %1122 = vmatpush.bf16.msrb.mxu0 %v6516_v22  ;;  %v6512_v4 = vor.u32 %v8592_v1, %v6509_v62 }
 0x11e   :  { %1134 = vmatpush.bf16.msrb.mxu1 %v6536_v0  ;;  %v8594_v0 = vld [vmem:[%s13473_s2 + $0x34] sm:$0xf0] }
 0x120   :  { %1148 = vmatpush.bf16.msra.mxu2 %v6524_v23  ;;  %1161 = vmatpush.bf16.msra.mxu3 %v6528_v54  ;;  %v6493_v23 = vld [vmem:[%s13473_s2 + $0x18] sm:$0xf0] }
 0x121   :  { %1123 = vmatpush.bf16.msrb.mxu0 %v6500_v56 }
 0x122   :  { %1135 = vmatpush.bf16.msrb.mxu1 %v6520_v37  ;;  %v8588_v37 = vld [vmem:[%s13473_s2 + $0xc] sm:$0xf] }
 0x123   :  { %v6496_v53 = vor.u32 %v8588_v37, %v6493_v23 }
 0x124   :  { %1162 = vmatpush.bf16.msra.mxu3 %v6512_v4 }
 0x128   :  { %1163 = vmatpush.bf16.msra.mxu3 %v6496_v53 }
 0x18f   :  { %v803_v3 = vpop.f32.mrf.mxu0  ;;  %v816_v8 = vpop.f32.mrf.mxu1 }
 0x190   :  { %v846_v6 = vadd.f32 %v803_v3, %v136_v61  ;;  %v847_v7 = vadd.f32 %v816_v8, %v165_v35  ;;  %v223_v61 = vadd.f32 %v9794_v39, %v9799_v42  ;;  %v6504_v35 = vor.u32 %v8591_v57, %v6501_v59  ;;  %v6483_v39 = vld [vmem:[%s13473_s2] sm:$0xf] }
 0x191   :  { %v6508_v8 = vor.u32 %v8594_v0, %v6507_v60 }
 0x192   :  { %v6478_v33 = vmul.f32 -1.442695, %v846_v6  ;;  %v6479_v24 = vmul.f32 -1.442695, %v847_v7  ;;  %v8589_v6 = vld [vmem:[%s13473_s2 + $0xc] sm:$0xf0]  ;;  %1136 = vmatpush.bf16.msrb.mxu1 %v6504_v35 }
 0x193   :  { %v8587_v7 = vld [vmem:[%s13473_s2 + $0x4] sm:$0xf]  ;;  %v6484_v22 = vor.u32 %v8589_v6, %v6483_v39  ;;  %1149 = vmatpush.bf16.msra.mxu2 %v6508_v8 }
 0x194   :  { %9106 = vpow2.f32 %v6478_v33  ;;  %v6488_v33 = vor.u32 %v8587_v7, %v6485_v13 }
 0x195   :  { %9108 = vpow2.f32 %v6479_v24  ;;  %v6492_v24 = vor.u32 %v8590_v20, %v6491_v34  ;;  %1124 = vmatpush.bf16.msrb.mxu0 %v6484_v22 }
 0x196   :  { %v829_v2 = vpop.f32.mrf.mxu2  ;;  %v842_v3 = vpop.f32.mrf.mxu3  ;;  %1137 = vmatpush.bf16.msrb.mxu1 %v6488_v33 }
 0x197   :  { %v849_v14 = vadd.f32 %v842_v3, %v223_v61  ;;  %v805_v15 = vpop.f32.mrf.mxu0  ;;  %v818_v9 = vpop.f32.mrf.mxu1  ;;  %1150 = vmatpush.bf16.msra.mxu2 %v6492_v24  ;;  %v194_v61 = vadd.f32 %v9792_v38, %v9796_v40 }
 0x199   :  { %v6480_v26 = vmul.f32 -1.442695, %v849_v14  ;;  %v848_v1 = vadd.f32 %v829_v2, %v194_v61 }
 0x19a   :  { %v9107_v50 = vpop.eup %9106 }
 0x19b   :  { %v9109_v44 = vpop.eup %9108  ;;  %v853_v54 = vadd.f32 1.0, %v9107_v50  ;;  %9110 = vpow2.f32 %v6480_v26 }
 0x19c   :  { %v872_v56 = vadd.f32 1.0, %v9109_v44 }
 0x19d   :  { %9112 = vrcp.f32 %v853_v54  ;;  %v865_v6 = vand.u32 2147483648, %v853_v54  ;;  %v863_v15 = vand.u32 2147483647, %v853_v54  ;;  %vm859_vm15 = vweird.f32 %v853_v54 }
 0x19e   :  { %9114 = vrcp.f32 %v872_v56  ;;  %v831_v57 = vpop.f32.mrf.mxu2  ;;  %v844_v59 = vpop.f32.mrf.mxu3  ;;  %v884_v7 = vand.u32 2147483648, %v872_v56  ;;  %v882_v22 = vand.u32 2147483647, %v872_v56  ;;  %vm878_vm0 = vweird.f32 %v872_v56 }
 0x19f   :  { %v866_v2 = vor.u32 1.1754944e-38, %v865_v6  ;;  %vm864_vm3 = vcmp.eq.f32.partialorder %v863_v15, 8.507059e+37  ;;  %v8650_v15 = vld [vmem:[%s13473_s2 + $0xf4] sm:$0xf0] }
 0x1a0   :  { %v885_v33 = vor.u32 1.1754944e-38, %v884_v7  ;;  %vm883_vm4 = vcmp.eq.f32.partialorder %v882_v22, 8.507059e+37  ;;  %v6728_v7 = vld [vmem:[%s13473_s2 + $0xf0] sm:$0xf0] }
 0x1a1   :  { %v9111_v60 = vpop.eup %9110 }
 0x1a2   :  { %v892_v35 = vadd.f32 1.0, %v9111_v60 }
 0x1a3   :  { %v9113_v0 = vpop.eup %9112 }
 0x1a4   :  { %v9115_v62 = vpop.eup %9114  ;;  %v855_v3 = vmul.f32 %v9113_v0, %v853_v54  ;;  %9116 = vrcp.f32 %v892_v35  ;;  %vm860_vm13 = vweird.f32 %v9113_v0  ;;  %v904_v60 = vand.u32 2147483648, %v892_v35 }
 0x1a5   :  { %v874_v8 = vmul.f32 %v9115_v62, %v872_v56  ;;  %9118 = vtanh.f32 %v848_v1  ;;  %vm879_vm14 = vweird.f32 %v9115_v62  ;;  %vm861_vm1 = vmor %vm859_vm15, %vm860_vm13  ;;  %vm898_vm6 = vweird.f32 %v892_v35 }
 0x1a6   :  { %v856_v4 = vsub.f32 1.0, %v855_v3  ;;  %vm880_vm2 = vmor %vm878_vm0, %vm879_vm14  ;;  %v902_v61 = vand.u32 2147483647, %v892_v35  ;;  %v905_v1 = vor.u32 1.1754944e-38, %v904_v60  ;;  %v8641_v60 = vld [vmem:[%s13473_s2 + $0xac] sm:$0xf0] }
 0x1a7   :  { %v875_v39 = vsub.f32 1.0, %v874_v8 }
 0x1a8   :  { %v857_v14 = vmul.f32 %v9113_v0, %v856_v4  ;;  %vm903_vm8 = vcmp.eq.f32.partialorder %v902_v61, 8.507059e+37  ;;  %v6726_v4 = vld [vmem:[%s13473_s2 + $0xe0] sm:$0xf]  ;;  %v8639_v61 = vld [vmem:[%s13473_s2 + $0xa4] sm:$0xf] }
 0x1a9   :  { %v876_v9 = vmul.f32 %v9115_v62, %v875_v39  ;;  %v8647_v39 = vld [vmem:[%s13473_s2 + $0xe4] sm:$0xf] }
 0x1aa   :  { %v9117_v13 = vpop.eup %9116  ;;  %v858_v38 = vadd.f32 %v9113_v0, %v857_v14  ;;  %v6734_v14 = vld [vmem:[%s13473_s2 + $0xe8] sm:$0xf] }
 0x1ab   :  { %v877_v34 = vadd.f32 %v9115_v62, %v876_v9  ;;  %v894_v20 = vmul.f32 %v9117_v13, %v892_v35  ;;  %v9119_v37 = vpop.eup %9118  ;;  %vm899_vm5 = vweird.f32 %v9117_v13  ;;  %v8649_v35 = vld [vmem:[%s13473_s2 + $0xec] sm:$0xf0]  ;;  %v6731_v9 = vor.u32 %v8647_v39, %v6728_v7  ;;  %v6704_v39 = vld [vmem:[%s13473_s2 + $0xb8] sm:$0xf0]  ;;  %v6678_v7 = vld [vmem:[%s13473_s2 + $0x80] sm:$0xf] }
 0x1ac   :  { %v862_v24 = vsel %vm861_vm1, %v9113_v0, %v858_v38  ;;  %vm900_vm7 = vmor %vm898_vm6, %vm899_vm5  ;;  %v6727_v6 = vor.u32 %v8649_v35, %v6726_v4  ;;  %v6735_v22 = vor.u32 %v8650_v15, %v6734_v14  ;;  %v6736_v38 = vld [vmem:[%s13473_s2 + $0xf8] sm:$0xf0]  ;;  %v8640_v35 = vld [vmem:[%s13473_s2 + $0xac] sm:$0xf] }
 0x1ad   :  { %v867_v23 = vsel %vm864_vm3, %v866_v2, %v862_v24  ;;  %v881_v26 = vsel %vm880_vm2, %v9115_v62, %v877_v34  ;;  %v895_v50 = vsub.f32 1.0, %v894_v20  ;;  %1453 = vmatpush.bf16.msra.mxu1 %v6731_v9  ;;  %v6710_v34 = vld [vmem:[%s13473_s2 + $0xc0] sm:$0xf]  ;;  %v8645_v20 = vld [vmem:[%s13473_s2 + $0xcc] sm:$0xf0] }
 0x1ae   :  { %v886_v53 = vsel %vm883_vm4, %v885_v33, %v881_v26  ;;  %v910_v44 = vmul.f32 %v9119_v37, %v867_v23  ;;  %1440 = vmatpush.bf16.msra.mxu0 %v6727_v6  ;;  %1466 = vmatpush.bf16.msrb.mxu2 %v6735_v22  ;;  %v8643_v33 = vld [vmem:[%s13473_s2 + $0xc4] sm:$0xf]  ;;  %v6711_v24 = vor.u32 %v8645_v20, %v6710_v34  ;;  %v6712_v37 = vld [vmem:[%s13473_s2 + $0xd0] sm:$0xf0]  ;;  %v6718_v23 = vld [vmem:[%s13473_s2 + $0xc8] sm:$0xf] }
 0x1af   :  { %v909_v57 = vmul.f32 %v886_v53, %v10070_v41  ;;  %v896_v59 = vmul.f32 %v9117_v13, %v895_v50  ;;  %v8646_v26 = vld [vmem:[%s13473_s2 + $0xd4] sm:$0xf0]  ;;  %v6715_v50 = vor.u32 %v8643_v33, %v6712_v37  ;;  %v6707_v6 = vor.u32 %v8640_v35, %v6704_v39  ;;  %v8637_v14 = vld [vmem:[%s13473_s2 + $0x8c] sm:$0xf0]  ;;  %v8635_v15 = vld [vmem:[%s13473_s2 + $0x84] sm:$0xf] }
 0x1b0   :  { %v6719_v53 = vor.u32 %v8646_v26, %v6718_v23  ;;  %v6679_v9 = vor.u32 %v8637_v14, %v6678_v7  ;;  %v6680_v22 = vld [vmem:[%s13473_s2 + $0x90] sm:$0xf0]  ;;  %v8636_v20 = vld [vmem:[%s13473_s2 + $0x8c] sm:$0xf]  ;;  %v6688_v33 = vld [vmem:[%s13473_s2 + $0x98] sm:$0xf0] }
 0x1b1   :  { %v10278_v54 = vadd.f32 %v910_v44, %v909_v57  ;;  %v897_v56 = vadd.f32 %v9117_v13, %v896_v59  ;;  %v8644_v44 = vld [vmem:[%s13473_s2 + $0xcc] sm:$0xf]  ;;  %v6720_v57 = vld [vmem:[%s13473_s2 + $0xd8] sm:$0xf0]  ;;  %1454 = vmatpush.bf16.msra.mxu1 %v6715_v50  ;;  %v6662_v37 = vld [vmem:[%s13473_s2 + $0x60] sm:$0xf] }
 0x1b2   :  { %1441 = vmatpush.bf16.msra.mxu0 %v6711_v24  ;;  %v6723_v59 = vor.u32 %v8644_v44, %v6720_v57  ;;  %1467 = vmatpush.bf16.msrb.mxu2 %v6719_v53  ;;  %v6691_v24 = vor.u32 %v8636_v20, %v6688_v33  ;;  %v8633_v23 = vld [vmem:[%s13473_s2 + $0x6c] sm:$0xf0]  ;;  %v8631_v26 = vld [vmem:[%s13473_s2 + $0x64] sm:$0xf]  ;;  %v6664_v53 = vld [vmem:[%s13473_s2 + $0x70] sm:$0xf0] }
 0x1b3   :  { %9120 = vtanh.f32 %v10278_v54  ;;  %v901_v0 = vsel %vm900_vm7, %v9117_v13, %v897_v56  ;;  %v8648_v13 = vld [vmem:[%s13473_s2 + $0xec] sm:$0xf]  ;;  %v6694_v56 = vld [vmem:[%s13473_s2 + $0xa0] sm:$0xf]  ;;  %v6663_v50 = vor.u32 %v8633_v23, %v6662_v37  ;;  %v6670_v44 = vld [vmem:[%s13473_s2 + $0x68] sm:$0xf] }
 0x1b4   :  { %v906_v3 = vsel %vm903_vm8, %v905_v1, %v901_v0  ;;  %v6739_v2 = vor.u32 %v8648_v13, %v6736_v38  ;;  %v6695_v0 = vor.u32 %v8641_v60, %v6694_v56  ;;  %v6696_v1 = vld [vmem:[%s13473_s2 + $0xb0] sm:$0xf0]  ;;  %v6686_v13 = vld [vmem:[%s13473_s2 + $0x88] sm:$0xf]  ;;  %v8638_v38 = vld [vmem:[%s13473_s2 + $0x94] sm:$0xf0] }
 0x1b5   :  { %v6687_v34 = vor.u32 %v8638_v38, %v6686_v13  ;;  %v8634_v57 = vld [vmem:[%s13473_s2 + $0x74] sm:$0xf0]  ;;  %v8632_v60 = vld [vmem:[%s13473_s2 + $0x6c] sm:$0xf]  ;;  %v8629_v35 = vld [vmem:[%s13473_s2 + $0x4c] sm:$0xf0] }
 0x1b6   :  { %1479 = vmatpush.bf16.msrb.mxu3 %v6739_v2  ;;  %1442 = vmatpush.bf16.msra.mxu0 %v6695_v0  ;;  %v6683_v2 = vor.u32 %v8635_v15, %v6680_v22  ;;  %v6671_v56 = vor.u32 %v8634_v57, %v6670_v44  ;;  %v8627_v39 = vld [vmem:[%s13473_s2 + $0x44] sm:$0xf]  ;;  %v8630_v7 = vld [vmem:[%s13473_s2 + $0x54] sm:$0xf0]  ;;  %v8628_v13 = vld [vmem:[%s13473_s2 + $0x4c] sm:$0xf] }
 0x1b7   :  { %v6656_v38 = vld [vmem:[%s13473_s2 + $0x58] sm:$0xf0]  ;;  %v6632_v37 = vld [vmem:[%s13473_s2 + $0x30] sm:$0xf0]  ;;  %v6638_v23 = vld [vmem:[%s13473_s2 + $0x28] sm:$0xf] }
 0x1b8   :  { %v6659_v20 = vor.u32 %v8628_v13, %v6656_v38  ;;  %v6640_v44 = vld [vmem:[%s13473_s2 + $0x38] sm:$0xf0] }
 0x1b9   :  { %v9121_v62 = vpop.eup %9120 }
 0x1ba   :  { %v10281_v8 = vmul.f32 %v9121_v62, %v906_v3  ;;  %1480 = vmatpush.bf16.msrb.mxu3 %v6723_v59  ;;  %v6702_v62 = vld [vmem:[%s13473_s2 + $0xa8] sm:$0xf]  ;;  %v8642_v3 = vld [vmem:[%s13473_s2 + $0xb4] sm:$0xf0]  ;;  %1443 = vmatpush.bf16.msra.mxu0 %v6679_v9  ;;  %v6667_v59 = vor.u32 %v8631_v26, %v6664_v53  ;;  %v8624_v53 = vld [vmem:[%s13473_s2 + $0x2c] sm:$0xf] }
 0x1bb   :  { %v6703_v4 = vor.u32 %v8642_v3, %v6702_v62 }
 0x1bc   :  { %v924_v41 = vpack.c.bf16 %v10281_v8, %v10281_v8 }
 0x1bd   :  { %1468 = vmatpush.bf16.msrb.mxu2 %v6703_v4  ;;  %v6646_v4 = vld [vmem:[%s13473_s2 + $0x40] sm:$0xf] }
 0x1be   :  { %1125 = vmatmul.bf16.vlgmr.msrb.gmra.mxu0 %v924_v41  ;;  %1138 = vmatmul.bf16.vlgmr.msrb.gmra.mxu1 %v924_v41 }
 0x1bf   :  { %1151 = vmatmul.bf16.vlgmr.msra.gmra.mxu2 %v924_v41  ;;  %1164 = vmatmul.bf16.vlgmr.msra.gmra.mxu3 %v924_v41  ;;  %v6699_v41 = vor.u32 %v8639_v61, %v6696_v1  ;;  %v6672_v61 = vld [vmem:[%s13473_s2 + $0x78] sm:$0xf0] }
 0x1c0   :  { %1481 = vmatpush.bf16.msrb.mxu3 %v6707_v6  ;;  %1444 = vmatpush.bf16.msra.mxu0 %v6663_v50  ;;  %v6675_v62 = vor.u32 %v8632_v60, %v6672_v61  ;;  %v6647_v6 = vor.u32 %v8629_v35, %v6646_v4  ;;  %v8626_v50 = vld [vmem:[%s13473_s2 + $0x34] sm:$0xf0]  ;;  %v6643_v60 = vor.u32 %v8624_v53, %v6640_v44  ;;  %v6614_v61 = vld [vmem:[%s13473_s2] sm:$0xf]  ;;  %v6616_v35 = vld [vmem:[%s13473_s2 + $0x10] sm:$0xf0] }
 0x1c1   :  { %1455 = vmatpush.bf16.msra.mxu1 %v6699_v41  ;;  %1469 = vmatpush.bf16.msrb.mxu2 %v6687_v34  ;;  %v8625_v34 = vld [vmem:[%s13473_s2 + $0x2c] sm:$0xf0] }
 0x1c4   :  { %1482 = vmatpush.bf16.msrb.mxu3 %v6691_v24  ;;  %1445 = vmatpush.bf16.msra.mxu0 %v6647_v6  ;;  %v8623_v24 = vld [vmem:[%s13473_s2 + $0x24] sm:$0xf]  ;;  %v8622_v6 = vld [vmem:[%s13473_s2 + $0x14] sm:$0xf0] }
 0x1c5   :  { %1456 = vmatpush.bf16.msra.mxu1 %v6683_v2  ;;  %1470 = vmatpush.bf16.msrb.mxu2 %v6671_v56  ;;  %v6630_v2 = vld [vmem:[%s13473_s2 + $0x20] sm:$0xf]  ;;  %v6635_v26 = vor.u32 %v8623_v24, %v6632_v37  ;;  %v6639_v56 = vor.u32 %v8626_v50, %v6638_v23 }
 0x1c6   :  { %v6631_v33 = vor.u32 %v8625_v34, %v6630_v2 }
 0x1c8   :  { %1483 = vmatpush.bf16.msrb.mxu3 %v6675_v62  ;;  %1446 = vmatpush.bf16.msra.mxu0 %v6631_v33 }
 0x1c9   :  { %1457 = vmatpush.bf16.msra.mxu1 %v6667_v59 }
 0x1cc   :  { %1484 = vmatpush.bf16.msrb.mxu3 %v6659_v20 }
 0x1d0   :  { %1485 = vmatpush.bf16.msrb.mxu3 %v6643_v60 }
 0x23b   :  { %v1126_v0 = vpop.f32.mrf.mxu0  ;;  %v1139_v1 = vpop.f32.mrf.mxu1 }
 0x23c   :  { %v1169_v3 = vadd.f32 %v1126_v0, %v9769_v19  ;;  %v1170_v41 = vadd.f32 %v1139_v1, %v9772_v21  ;;  %v6648_v19 = vld [vmem:[%s13473_s2 + $0x50] sm:$0xf0]  ;;  %v6654_v21 = vld [vmem:[%s13473_s2 + $0x48] sm:$0xf]  ;;  %v8621_v0 = vld [vmem:[%s13473_s2 + $0xc] sm:$0xf0] }
 0x23d   :  { %v6651_v9 = vor.u32 %v8627_v39, %v6648_v19  ;;  %v6655_v22 = vor.u32 %v8630_v7, %v6654_v21  ;;  %v8619_v1 = vld [vmem:[%s13473_s2 + $0x4] sm:$0xf]  ;;  %v6615_v4 = vor.u32 %v8621_v0, %v6614_v61  ;;  %v6622_v39 = vld [vmem:[%s13473_s2 + $0x8] sm:$0xf]  ;;  %v8620_v21 = vld [vmem:[%s13473_s2 + $0xc] sm:$0xf] }
 0x23e   :  { %v6609_v14 = vmul.f32 -1.442695, %v1169_v3  ;;  %v6610_v15 = vmul.f32 -1.442695, %v1170_v41  ;;  %v6619_v19 = vor.u32 %v8619_v1, %v6616_v35  ;;  %v6624_v7 = vld [vmem:[%s13473_s2 + $0x18] sm:$0xf0] }
 0x23f   :  { %1458 = vmatpush.bf16.msra.mxu1 %v6651_v9  ;;  %1471 = vmatpush.bf16.msrb.mxu2 %v6655_v22  ;;  %v6627_v9 = vor.u32 %v8620_v21, %v6624_v7 }
 0x240   :  { %9122 = vpow2.f32 %v6609_v14  ;;  %1447 = vmatpush.bf16.msra.mxu0 %v6615_v4 }
 0x241   :  { %9124 = vpow2.f32 %v6610_v15  ;;  %1486 = vmatpush.bf16.msrb.mxu3 %v6627_v9 }
 0x242   :  { %v1152_v57 = vpop.f32.mrf.mxu2  ;;  %v1165_v59 = vpop.f32.mrf.mxu3 }
 0x243   :  { %v1172_v62 = vadd.f32 %v1165_v59, %v9805_v47  ;;  %v1128_v3 = vpop.f32.mrf.mxu0  ;;  %v1141_v41 = vpop.f32.mrf.mxu1  ;;  %1459 = vmatpush.bf16.msra.mxu1 %v6635_v26  ;;  %1472 = vmatpush.bf16.msrb.mxu2 %v6639_v56  ;;  %v6623_v47 = vor.u32 %v8622_v6, %v6622_v39  ;;  %v1171_v37 = vadd.f32 %v1152_v57, %v9802_v45 }
 0x245   :  { %v6611_v14 = vmul.f32 -1.442695, %v1172_v62 }
 0x246   :  { %v9123_v15 = vpop.eup %9122 }
 0x247   :  { %v9125_v22 = vpop.eup %9124  ;;  %v1176_v13 = vadd.f32 1.0, %v9123_v15  ;;  %9126 = vpow2.f32 %v6611_v14  ;;  %1460 = vmatpush.bf16.msra.mxu1 %v6619_v19  ;;  %1473 = vmatpush.bf16.msrb.mxu2 %v6623_v47 }
 0x248   :  { %v1195_v38 = vadd.f32 1.0, %v9125_v22 }
 0x249   :  { %9128 = vrcp.f32 %v1176_v13  ;;  %v1188_v59 = vand.u32 2147483648, %v1176_v13  ;;  %v1186_v61 = vand.u32 2147483647, %v1176_v13  ;;  %vm1182_vm11 = vweird.f32 %v1176_v13 }
 0x24a   :  { %9130 = vrcp.f32 %v1195_v38  ;;  %v1154_v2 = vpop.f32.mrf.mxu2  ;;  %v1167_v34 = vpop.f32.mrf.mxu3  ;;  %v1207_v56 = vand.u32 2147483648, %v1195_v38  ;;  %v1205_v1 = vand.u32 2147483647, %v1195_v38  ;;  %vm1201_vm12 = vweird.f32 %v1195_v38 }
 0x24b   :  { %v1189_v45 = vor.u32 1.1754944e-38, %v1188_v59  ;;  %vm1187_vm15 = vcmp.eq.f32.partialorder %v1186_v61, 8.507059e+37  ;;  %v8682_v59 = vld [vmem:[%s13473_s2 + $0xf4] sm:$0xf0]  ;;  %v8680_v61 = vld [vmem:[%s13473_s2 + $0xec] sm:$0xf] }
 0x24c   :  { %v1208_v4 = vor.u32 1.1754944e-38, %v1207_v56  ;;  %vm1206_vm0 = vcmp.eq.f32.partialorder %v1205_v1, 8.507059e+37 }
 0x24d   :  { %v9127_v20 = vpop.eup %9126 }
 0x24e   :  { %v1215_v33 = vadd.f32 1.0, %v9127_v20 }
 0x24f   :  { %v9129_v24 = vpop.eup %9128 }
 0x250   :  { %v9131_v23 = vpop.eup %9130  ;;  %v1178_v26 = vmul.f32 %v9129_v24, %v1176_v13  ;;  %9132 = vrcp.f32 %v1215_v33  ;;  %vm1183_vm9 = vweird.f32 %v9129_v24  ;;  %v1227_v13 = vand.u32 2147483648, %v1215_v33 }
 0x251   :  { %v1197_v50 = vmul.f32 %v9131_v23, %v1195_v38  ;;  %9134 = vtanh.f32 %v1171_v37  ;;  %vm1202_vm10 = vweird.f32 %v9131_v23  ;;  %vm1184_vm13 = vmor %vm1182_vm11, %vm1183_vm9  ;;  %vm1221_vm2 = vweird.f32 %v1215_v33 }
 0x252   :  { %v1179_v53 = vsub.f32 1.0, %v1178_v26  ;;  %vm1203_vm14 = vmor %vm1201_vm12, %vm1202_vm10  ;;  %v1225_v38 = vand.u32 2147483647, %v1215_v33  ;;  %v1228_v34 = vor.u32 1.1754944e-38, %v1227_v13  ;;  %v8679_v26 = vld [vmem:[%s13473_s2 + $0xe4] sm:$0xf] }
 0x253   :  { %v1198_v44 = vsub.f32 1.0, %v1197_v50  ;;  %v6827_v13 = vld [vmem:[%s13473_s2 + $0xb0] sm:$0xf0] }
 0x254   :  { %v1180_v60 = vmul.f32 %v9129_v24, %v1179_v53  ;;  %vm1226_vm4 = vcmp.eq.f32.partialorder %v1225_v38, 8.507059e+37  ;;  %v6859_v53 = vld [vmem:[%s13473_s2 + $0xf0] sm:$0xf0]  ;;  %v6833_v38 = vld [vmem:[%s13473_s2 + $0xa8] sm:$0xf] }
 0x255   :  { %v1199_v0 = vmul.f32 %v9131_v23, %v1198_v44  ;;  %v6865_v44 = vld [vmem:[%s13473_s2 + $0xe8] sm:$0xf]  ;;  %v6862_v56 = vor.u32 %v8679_v26, %v6859_v53  ;;  %v8669_v26 = vld [vmem:[%s13473_s2 + $0x8c] sm:$0xf0] }
 0x256   :  { %v9133_v62 = vpop.eup %9132  ;;  %v1181_v3 = vadd.f32 %v9129_v24, %v1180_v60  ;;  %v6866_v60 = vor.u32 %v8682_v59, %v6865_v44  ;;  %v6811_v44 = vld [vmem:[%s13473_s2 + $0x90] sm:$0xf0]  ;;  %v6817_v59 = vld [vmem:[%s13473_s2 + $0x88] sm:$0xf] }
 0x257   :  { %v1200_v57 = vadd.f32 %v9131_v23, %v1199_v0  ;;  %v1217_v41 = vmul.f32 %v9133_v62, %v1215_v33  ;;  %v9135_v39 = vpop.eup %9134  ;;  %vm1222_vm1 = vweird.f32 %v9133_v62  ;;  %v8681_v33 = vld [vmem:[%s13473_s2 + $0xec] sm:$0xf0]  ;;  %v6867_v0 = vld [vmem:[%s13473_s2 + $0xf8] sm:$0xf0]  ;;  %1776 = vmatpush.bf16.msrb.mxu1 %v6862_v56  ;;  %v8670_v56 = vld [vmem:[%s13473_s2 + $0x94] sm:$0xf0] }
 0x258   :  { %v1185_v35 = vsel %vm1184_vm13, %v9129_v24, %v1181_v3  ;;  %vm1223_vm3 = vmor %vm1221_vm2, %vm1222_vm1  ;;  %v6870_v1 = vor.u32 %v8680_v61, %v6867_v0  ;;  %1789 = vmatpush.bf16.msra.mxu2 %v6866_v60  ;;  %v8677_v3 = vld [vmem:[%s13473_s2 + $0xcc] sm:$0xf0]  ;;  %v6818_v61 = vor.u32 %v8670_v56, %v6817_v59  ;;  %v8668_v0 = vld [vmem:[%s13473_s2 + $0x8c] sm:$0xf] }
 0x259   :  { %v1190_v6 = vsel %vm1187_vm15, %v1189_v45, %v1185_v35  ;;  %v1204_v19 = vsel %vm1203_vm14, %v9131_v23, %v1200_v57  ;;  %v1218_v47 = vsub.f32 1.0, %v1217_v41  ;;  %v6857_v23 = vld [vmem:[%s13473_s2 + $0xe0] sm:$0xf]  ;;  %v8675_v45 = vld [vmem:[%s13473_s2 + $0xc4] sm:$0xf] }
 0x25a   :  { %v1209_v21 = vsel %vm1206_vm0, %v1208_v4, %v1204_v19  ;;  %v1233_v7 = vmul.f32 %v9135_v39, %v1190_v6  ;;  %v6858_v50 = vor.u32 %v8681_v33, %v6857_v23  ;;  %1802 = vmatpush.bf16.msra.mxu3 %v6870_v1  ;;  %v6843_v41 = vld [vmem:[%s13473_s2 + $0xd0] sm:$0xf0]  ;;  %v6849_v4 = vld [vmem:[%s13473_s2 + $0xc8] sm:$0xf]  ;;  %v8678_v35 = vld [vmem:[%s13473_s2 + $0xd4] sm:$0xf0] }
 0x25b   :  { %v1232_v14 = vmul.f32 %v1209_v21, %v10278_v54  ;;  %v1219_v15 = vmul.f32 %v9133_v62, %v1218_v47  ;;  %v6846_v39 = vor.u32 %v8675_v45, %v6843_v41  ;;  %v6850_v6 = vor.u32 %v8678_v35, %v6849_v4  ;;  %v8676_v19 = vld [vmem:[%s13473_s2 + $0xcc] sm:$0xf]  ;;  %v6851_v47 = vld [vmem:[%s13473_s2 + $0xd8] sm:$0xf0]  ;;  %v6809_v33 = vld [vmem:[%s13473_s2 + $0x80] sm:$0xf] }
 0x25c   :  { %1763 = vmatpush.bf16.msrb.mxu0 %v6858_v50  ;;  %v6854_v21 = vor.u32 %v8676_v19, %v6851_v47  ;;  %v8667_v50 = vld [vmem:[%s13473_s2 + $0x84] sm:$0xf]  ;;  %v6810_v53 = vor.u32 %v8669_v26, %v6809_v33  ;;  %v6819_v1 = vld [vmem:[%s13473_s2 + $0x98] sm:$0xf0]  ;;  %v8665_v45 = vld [vmem:[%s13473_s2 + $0x6c] sm:$0xf0]  ;;  %v170_v19 = vadd.f32 %v9782_v29, %v9752_v11 }
 0x25d   :  { %v10482_v9 = vadd.f32 %v1233_v7, %v1232_v14  ;;  %v1220_v22 = vadd.f32 %v9133_v62, %v1219_v15  ;;  %1777 = vmatpush.bf16.msrb.mxu1 %v6846_v39  ;;  %1790 = vmatpush.bf16.msra.mxu2 %v6850_v6  ;;  %v6825_v7 = vld [vmem:[%s13473_s2 + $0xa0] sm:$0xf]  ;;  %v8673_v14 = vld [vmem:[%s13473_s2 + $0xac] sm:$0xf0]  ;;  %v8671_v15 = vld [vmem:[%s13473_s2 + $0xa4] sm:$0xf]  ;;  %v6814_v60 = vor.u32 %v8667_v50, %v6811_v44 }
 0x25e   :  { %1803 = vmatpush.bf16.msra.mxu3 %v6854_v21  ;;  %v6795_v4 = vld [vmem:[%s13473_s2 + $0x70] sm:$0xf0]  ;;  %v6801_v35 = vld [vmem:[%s13473_s2 + $0x68] sm:$0xf]  ;;  %v8666_v39 = vld [vmem:[%s13473_s2 + $0x74] sm:$0xf0]  ;;  %v141_v6 = vadd.f32 %v9780_v28, %v9750_v10 }
 0x25f   :  { %9136 = vtanh.f32 %v10482_v9  ;;  %v1224_v2 = vsel %vm1223_vm3, %v9133_v62, %v1220_v22  ;;  %v6841_v62 = vld [vmem:[%s13473_s2 + $0xc0] sm:$0xf]  ;;  %v6826_v22 = vor.u32 %v8673_v14, %v6825_v7  ;;  %v6802_v21 = vor.u32 %v8666_v39, %v6801_v35  ;;  %v8664_v7 = vld [vmem:[%s13473_s2 + $0x6c] sm:$0xf]  ;;  %v6803_v14 = vld [vmem:[%s13473_s2 + $0x78] sm:$0xf0] }
 0x260   :  { %v1229_v24 = vsel %vm1226_vm4, %v1228_v34, %v1224_v2  ;;  %v6842_v57 = vor.u32 %v8677_v3, %v6841_v62  ;;  %v8674_v2 = vld [vmem:[%s13473_s2 + $0xb4] sm:$0xf0]  ;;  %v6830_v34 = vor.u32 %v8671_v15, %v6827_v13  ;;  %v6822_v62 = vor.u32 %v8668_v0, %v6819_v1  ;;  %v6793_v3 = vld [vmem:[%s13473_s2 + $0x60] sm:$0xf]  ;;  %v8661_v29 = vld [vmem:[%s13473_s2 + $0x4c] sm:$0xf0] }
 0x261   :  { %v6794_v41 = vor.u32 %v8665_v45, %v6793_v3  ;;  %v6806_v13 = vor.u32 %v8664_v7, %v6803_v14  ;;  %v6777_v28 = vld [vmem:[%s13473_s2 + $0x40] sm:$0xf]  ;;  %v8660_v44 = vld [vmem:[%s13473_s2 + $0x4c] sm:$0xf]  ;;  %v6787_v59 = vld [vmem:[%s13473_s2 + $0x58] sm:$0xf0]  ;;  %v228_v45 = vadd.f32 %v9810_v52, %v9799_v42 }
 0x262   :  { %1764 = vmatpush.bf16.msrb.mxu0 %v6842_v57  ;;  %1778 = vmatpush.bf16.msrb.mxu1 %v6830_v34  ;;  %v8663_v57 = vld [vmem:[%s13473_s2 + $0x64] sm:$0xf]  ;;  %v6761_v56 = vld [vmem:[%s13473_s2 + $0x20] sm:$0xf]  ;;  %v6769_v3 = vld [vmem:[%s13473_s2 + $0x28] sm:$0xf] }
 0x263   :  { %v6798_v47 = vor.u32 %v8663_v57, %v6795_v4  ;;  %v8659_v34 = vld [vmem:[%s13473_s2 + $0x44] sm:$0xf]  ;;  %v8656_v4 = vld [vmem:[%s13473_s2 + $0x2c] sm:$0xf]  ;;  %v6771_v35 = vld [vmem:[%s13473_s2 + $0x38] sm:$0xf0] }
 0x264   :  { %v8655_v1 = vld [vmem:[%s13473_s2 + $0x24] sm:$0xf]  ;;  %v6745_v52 = vld [vmem:[%s13473_s2] sm:$0xf] }
 0x265   :  { %v9137_v20 = vpop.eup %9136  ;;  %v8651_v7 = vld [vmem:[%s13473_s2 + $0x4] sm:$0xf] }
 0x266   :  { %v10485_v37 = vmul.f32 %v9137_v20, %v1229_v24  ;;  %v6834_v20 = vor.u32 %v8674_v2, %v6833_v38  ;;  %v8672_v24 = vld [vmem:[%s13473_s2 + $0xac] sm:$0xf]  ;;  %1765 = vmatpush.bf16.msrb.mxu0 %v6826_v22  ;;  %1779 = vmatpush.bf16.msrb.mxu1 %v6814_v60  ;;  %v8657_v60 = vld [vmem:[%s13473_s2 + $0x2c] sm:$0xf0] }
 0x267   :  { %v6762_v0 = vor.u32 %v8657_v60, %v6761_v56  ;;  %v199_v60 = vadd.f32 %v9808_v51, %v9796_v40 }
 0x268   :  { %v1247_v54 = vpack.c.bf16 %v10485_v37, %v10485_v37  ;;  %1791 = vmatpush.bf16.msra.mxu2 %v6834_v20  ;;  %v6778_v20 = vor.u32 %v8661_v29, %v6777_v28  ;;  %v8654_v28 = vld [vmem:[%s13473_s2 + $0x14] sm:$0xf0] }
 0x26a   :  { %1448 = vmatmul.bf16.vlgmr.msra.gmra.mxu0 %v1247_v54  ;;  %1461 = vmatmul.bf16.vlgmr.msra.gmra.mxu1 %v1247_v54 }
 0x26b   :  { %1474 = vmatmul.bf16.vlgmr.msrb.gmra.mxu2 %v1247_v54  ;;  %1487 = vmatmul.bf16.vlgmr.msrb.gmra.mxu3 %v1247_v54  ;;  %v6835_v54 = vld [vmem:[%s13473_s2 + $0xb8] sm:$0xf0] }
 0x26c   :  { %v6838_v23 = vor.u32 %v8672_v24, %v6835_v54  ;;  %1766 = vmatpush.bf16.msrb.mxu0 %v6810_v53  ;;  %1792 = vmatpush.bf16.msra.mxu2 %v6818_v61  ;;  %v6779_v24 = vld [vmem:[%s13473_s2 + $0x50] sm:$0xf0]  ;;  %v6785_v54 = vld [vmem:[%s13473_s2 + $0x48] sm:$0xf]  ;;  %v6790_v61 = vor.u32 %v8660_v44, %v6787_v59 }
 0x26d   :  { %1780 = vmatpush.bf16.msrb.mxu1 %v6798_v47  ;;  %v6782_v50 = vor.u32 %v8659_v34, %v6779_v24  ;;  %v6774_v47 = vor.u32 %v8656_v4, %v6771_v35  ;;  %v6755_v24 = vld [vmem:[%s13473_s2 + $0x18] sm:$0xf0] }
 0x26e   :  { %1804 = vmatpush.bf16.msra.mxu3 %v6838_v23  ;;  %v8662_v23 = vld [vmem:[%s13473_s2 + $0x54] sm:$0xf0] }
 0x26f   :  { %v6786_v53 = vor.u32 %v8662_v23, %v6785_v54 }
 0x270   :  { %1767 = vmatpush.bf16.msrb.mxu0 %v6794_v41  ;;  %1793 = vmatpush.bf16.msra.mxu2 %v6802_v21  ;;  %v8658_v41 = vld [vmem:[%s13473_s2 + $0x34] sm:$0xf0]  ;;  %v8653_v21 = vld [vmem:[%s13473_s2 + $0xc] sm:$0xf0] }
 0x271   :  { %1781 = vmatpush.bf16.msrb.mxu1 %v6782_v50 }
 0x272   :  { %1805 = vmatpush.bf16.msra.mxu3 %v6822_v62  ;;  %v6763_v62 = vld [vmem:[%s13473_s2 + $0x30] sm:$0xf0] }
 0x273   :  { %v6766_v57 = vor.u32 %v8655_v1, %v6763_v62 }
 0x274   :  { %1768 = vmatpush.bf16.msrb.mxu0 %v6778_v20  ;;  %1794 = vmatpush.bf16.msra.mxu2 %v6786_v53  ;;  %v8652_v20 = vld [vmem:[%s13473_s2 + $0xc] sm:$0xf] }
 0x275   :  { %1782 = vmatpush.bf16.msrb.mxu1 %v6766_v57 }
 0x276   :  { %1806 = vmatpush.bf16.msra.mxu3 %v6806_v13  ;;  %v6746_v13 = vor.u32 %v8653_v21, %v6745_v52 }
 0x278   :  { %1769 = vmatpush.bf16.msrb.mxu0 %v6762_v0 }
 0x27a   :  { %1807 = vmatpush.bf16.msra.mxu3 %v6790_v61 }
 0x27c   :  { %1770 = vmatpush.bf16.msrb.mxu0 %v6746_v13 }
 0x27e   :  { %1808 = vmatpush.bf16.msra.mxu3 %v6774_v47 }
 0x2e7   :  { %v1449_v15 = vpop.f32.mrf.mxu0  ;;  %v1462_v22 = vpop.f32.mrf.mxu1 }
 0x2e8   :  { %v1492_v38 = vadd.f32 %v1449_v15, %v141_v6  ;;  %v1493_v2 = vadd.f32 %v1462_v22, %v170_v19  ;;  %v6770_v19 = vor.u32 %v8658_v41, %v6769_v3 }
 0x2ea   :  { %v6740_v33 = vmul.f32 -1.442695, %v1492_v38  ;;  %v6741_v26 = vmul.f32 -1.442695, %v1493_v2  ;;  %v6747_v38 = vld [vmem:[%s13473_s2 + $0x10] sm:$0xf0]  ;;  %1795 = vmatpush.bf16.msra.mxu2 %v6770_v19 }
 0x2eb   :  { %v6753_v2 = vld [vmem:[%s13473_s2 + $0x8] sm:$0xf]  ;;  %v6750_v29 = vor.u32 %v8651_v7, %v6747_v38 }
 0x2ec   :  { %9138 = vpow2.f32 %v6740_v33  ;;  %v6754_v34 = vor.u32 %v8654_v28, %v6753_v2  ;;  %v6758_v33 = vor.u32 %v8652_v20, %v6755_v24 }
 0x2ed   :  { %9140 = vpow2.f32 %v6741_v26  ;;  %1783 = vmatpush.bf16.msrb.mxu1 %v6750_v29 }
 0x2ee   :  { %v1475_v39 = vpop.f32.mrf.mxu2  ;;  %v1488_v6 = vpop.f32.mrf.mxu3  ;;  %1796 = vmatpush.bf16.msra.mxu2 %v6754_v34  ;;  %1809 = vmatpush.bf16.msra.mxu3 %v6758_v33 }
 0x2ef   :  { %v1495_v14 = vadd.f32 %v1488_v6, %v228_v45  ;;  %v1451_v15 = vpop.f32.mrf.mxu0  ;;  %v1464_v22 = vpop.f32.mrf.mxu1  ;;  %v1494_v1 = vadd.f32 %v1475_v39, %v199_v60  ;;  %v6988_v60 = vld [vmem:[%s13473_s2 + $0xe0] sm:$0xf] }
 0x2f1   :  { %v6742_v54 = vmul.f32 -1.442695, %v1495_v14 }
 0x2f2   :  { %v9139_v23 = vpop.eup %9138 }
 0x2f3   :  { %v9141_v26 = vpop.eup %9140  ;;  %v1499_v50 = vadd.f32 1.0, %v9139_v23  ;;  %9142 = vpow2.f32 %v6742_v54 }
 0x2f4   :  { %v1518_v53 = vadd.f32 1.0, %v9141_v26 }
 0x2f5   :  { %9144 = vrcp.f32 %v1499_v50  ;;  %v1511_v4 = vand.u32 2147483648, %v1499_v50  ;;  %v1509_v19 = vand.u32 2147483647, %v1499_v50  ;;  %vm1505_vm7 = vweird.f32 %v1499_v50 }
 0x2f6   :  { %9146 = vrcp.f32 %v1518_v53  ;;  %v1477_v44 = vpop.f32.mrf.mxu2  ;;  %v1490_v59 = vpop.f32.mrf.mxu3  ;;  %v1530_v35 = vand.u32 2147483648, %v1518_v53  ;;  %v1528_v52 = vand.u32 2147483647, %v1518_v53  ;;  %vm1524_vm8 = vweird.f32 %v1518_v53 }
 0x2f7   :  { %v1512_v39 = vor.u32 1.1754944e-38, %v1511_v4  ;;  %vm1510_vm11 = vcmp.eq.f32.partialorder %v1509_v19, 8.507059e+37  ;;  %v8712_v4 = vld [vmem:[%s13473_s2 + $0xec] sm:$0xf]  ;;  %v6972_v19 = vld [vmem:[%s13473_s2 + $0xc0] sm:$0xf] }
 0x2f8   :  { %v1531_v15 = vor.u32 1.1754944e-38, %v1530_v35  ;;  %vm1529_vm12 = vcmp.eq.f32.partialorder %v1528_v52, 8.507059e+37  ;;  %v6998_v35 = vld [vmem:[%s13473_s2 + $0xf8] sm:$0xf0]  ;;  %v8707_v52 = vld [vmem:[%s13473_s2 + $0xc4] sm:$0xf] }
 0x2f9   :  { %v9143_v56 = vpop.eup %9142 }
 0x2fa   :  { %v1538_v61 = vadd.f32 1.0, %v9143_v56 }
 0x2fb   :  { %v9145_v0 = vpop.eup %9144 }
 0x2fc   :  { %v9147_v62 = vpop.eup %9146  ;;  %v1501_v3 = vmul.f32 %v9145_v0, %v1499_v50  ;;  %9148 = vrcp.f32 %v1538_v61  ;;  %vm1506_vm5 = vweird.f32 %v9145_v0  ;;  %v1550_v33 = vand.u32 2147483648, %v1538_v61 }
 0x2fd   :  { %v1520_v45 = vmul.f32 %v9147_v62, %v1518_v53  ;;  %9150 = vtanh.f32 %v1494_v1  ;;  %vm1525_vm6 = vweird.f32 %v9147_v62  ;;  %vm1507_vm9 = vmor %vm1505_vm7, %vm1506_vm5  ;;  %vm1544_vm14 = vweird.f32 %v1538_v61 }
 0x2fe   :  { %v1502_v57 = vsub.f32 1.0, %v1501_v3  ;;  %vm1526_vm10 = vmor %vm1524_vm8, %vm1525_vm6  ;;  %v1548_v26 = vand.u32 2147483647, %v1538_v61  ;;  %v1551_v53 = vor.u32 1.1754944e-38, %v1550_v33  ;;  %v6996_v3 = vld [vmem:[%s13473_s2 + $0xe8] sm:$0xf] }
 0x2ff   :  { %v1521_v41 = vsub.f32 1.0, %v1520_v45  ;;  %v8714_v45 = vld [vmem:[%s13473_s2 + $0xf4] sm:$0xf0] }
 0x300   :  { %v1503_v6 = vmul.f32 %v9145_v0, %v1502_v57  ;;  %vm1549_vm0 = vcmp.eq.f32.partialorder %v1548_v26, 8.507059e+37 }
 0x301   :  { %v1522_v47 = vmul.f32 %v9147_v62, %v1521_v41  ;;  %v6997_v41 = vor.u32 %v8714_v45, %v6996_v3 }
 0x302   :  { %v9149_v21 = vpop.eup %9148  ;;  %v1504_v51 = vadd.f32 %v9145_v0, %v1503_v6  ;;  %v7001_v6 = vor.u32 %v8712_v4, %v6998_v35  ;;  %v6924_v35 = vld [vmem:[%s13473_s2 + $0x60] sm:$0xf] }
 0x303   :  { %v1523_v7 = vadd.f32 %v9147_v62, %v1522_v47  ;;  %v1540_v14 = vmul.f32 %v9149_v21, %v1538_v61  ;;  %v9151_v13 = vpop.eup %9150  ;;  %vm1545_vm13 = vweird.f32 %v9149_v21  ;;  %v8713_v61 = vld [vmem:[%s13473_s2 + $0xec] sm:$0xf0]  ;;  %2112 = vmatpush.bf16.msrb.mxu2 %v6997_v41  ;;  %v6950_v41 = vld [vmem:[%s13473_s2 + $0x98] sm:$0xf0] }
 0x304   :  { %v1508_v22 = vsel %vm1507_vm9, %v9145_v0, %v1504_v51  ;;  %vm1546_vm15 = vmor %vm1544_vm14, %vm1545_vm13  ;;  %v8711_v0 = vld [vmem:[%s13473_s2 + $0xe4] sm:$0xf]  ;;  %v6989_v1 = vor.u32 %v8713_v61, %v6988_v60  ;;  %v8709_v47 = vld [vmem:[%s13473_s2 + $0xcc] sm:$0xf0]  ;;  %2125 = vmatpush.bf16.msrb.mxu3 %v7001_v6 }
 0x305   :  { %v1513_v38 = vsel %vm1510_vm11, %v1512_v39, %v1508_v22  ;;  %v1527_v2 = vsel %vm1526_vm10, %v9147_v62, %v1523_v7  ;;  %v1541_v28 = vsub.f32 1.0, %v1540_v14  ;;  %v6990_v62 = vld [vmem:[%s13473_s2 + $0xf0] sm:$0xf0]  ;;  %v6980_v39 = vld [vmem:[%s13473_s2 + $0xc8] sm:$0xf] }
 0x306   :  { %v1532_v29 = vsel %vm1529_vm12, %v1531_v15, %v1527_v2  ;;  %v1556_v34 = vmul.f32 %v9151_v13, %v1513_v38  ;;  %v6993_v57 = vor.u32 %v8711_v0, %v6990_v62  ;;  %2086 = vmatpush.bf16.msra.mxu0 %v6989_v1  ;;  %v6974_v51 = vld [vmem:[%s13473_s2 + $0xd0] sm:$0xf0]  ;;  %v8710_v7 = vld [vmem:[%s13473_s2 + $0xd4] sm:$0xf0]  ;;  %v8708_v22 = vld [vmem:[%s13473_s2 + $0xcc] sm:$0xf] }
 0x307   :  { %v1555_v20 = vmul.f32 %v1532_v29, %v10482_v9  ;;  %v1542_v24 = vmul.f32 %v9149_v21, %v1541_v28  ;;  %v6977_v14 = vor.u32 %v8707_v52, %v6974_v51  ;;  %v6981_v15 = vor.u32 %v8710_v7, %v6980_v39  ;;  %v6982_v13 = vld [vmem:[%s13473_s2 + $0xd8] sm:$0xf0]  ;;  %v6956_v2 = vld [vmem:[%s13473_s2 + $0xa0] sm:$0xf]  ;;  %v8705_v28 = vld [vmem:[%s13473_s2 + $0xac] sm:$0xf0] }
 0x308   :  { %2099 = vmatpush.bf16.msra.mxu1 %v6993_v57  ;;  %v6985_v38 = vor.u32 %v8708_v22, %v6982_v13  ;;  %v8703_v29 = vld [vmem:[%s13473_s2 + $0xa4] sm:$0xf]  ;;  %v6942_v0 = vld [vmem:[%s13473_s2 + $0x90] sm:$0xf0]  ;;  %v6948_v1 = vld [vmem:[%s13473_s2 + $0x88] sm:$0xf] }
 0x309   :  { %v10690_v54 = vadd.f32 %v1556_v34, %v1555_v20  ;;  %v1543_v23 = vadd.f32 %v9149_v21, %v1542_v24  ;;  %2113 = vmatpush.bf16.msrb.mxu2 %v6981_v15  ;;  %v6957_v34 = vor.u32 %v8705_v28, %v6956_v2  ;;  %v6958_v20 = vld [vmem:[%s13473_s2 + $0xb0] sm:$0xf0]  ;;  %v6964_v24 = vld [vmem:[%s13473_s2 + $0xa8] sm:$0xf]  ;;  %v8699_v60 = vld [vmem:[%s13473_s2 + $0x84] sm:$0xf] }
 0x30a   :  { %2126 = vmatpush.bf16.msrb.mxu3 %v6985_v38  ;;  %v6961_v33 = vor.u32 %v8703_v29, %v6958_v20  ;;  %v8702_v62 = vld [vmem:[%s13473_s2 + $0x94] sm:$0xf0]  ;;  %v6945_v3 = vor.u32 %v8699_v60, %v6942_v0  ;;  %v8700_v57 = vld [vmem:[%s13473_s2 + $0x8c] sm:$0xf]  ;;  %v8697_v6 = vld [vmem:[%s13473_s2 + $0x6c] sm:$0xf0] }
 0x30b   :  { %9152 = vtanh.f32 %v10690_v54  ;;  %v1547_v50 = vsel %vm1546_vm15, %v9149_v21, %v1543_v23  ;;  %v6973_v21 = vor.u32 %v8709_v47, %v6972_v19  ;;  %v8706_v23 = vld [vmem:[%s13473_s2 + $0xb4] sm:$0xf0]  ;;  %v6949_v45 = vor.u32 %v8702_v62, %v6948_v1  ;;  %v8695_v19 = vld [vmem:[%s13473_s2 + $0x64] sm:$0xf]  ;;  %v6926_v52 = vld [vmem:[%s13473_s2 + $0x70] sm:$0xf0] }
 0x30c   :  { %v1552_v59 = vsel %vm1549_vm0, %v1551_v53, %v1547_v50  ;;  %2100 = vmatpush.bf16.msra.mxu1 %v6977_v14  ;;  %v6965_v26 = vor.u32 %v8706_v23, %v6964_v24  ;;  %v8704_v50 = vld [vmem:[%s13473_s2 + $0xac] sm:$0xf]  ;;  %v6966_v53 = vld [vmem:[%s13473_s2 + $0xb8] sm:$0xf0]  ;;  %v6953_v4 = vor.u32 %v8700_v57, %v6950_v41  ;;  %v6925_v47 = vor.u32 %v8697_v6, %v6924_v35  ;;  %v8698_v51 = vld [vmem:[%s13473_s2 + $0x74] sm:$0xf0] }
 0x30d   :  { %2087 = vmatpush.bf16.msra.mxu0 %v6973_v21  ;;  %v6932_v21 = vld [vmem:[%s13473_s2 + $0x68] sm:$0xf]  ;;  %v6929_v39 = vor.u32 %v8695_v19, %v6926_v52  ;;  %v8696_v14 = vld [vmem:[%s13473_s2 + $0x6c] sm:$0xf]  ;;  %v6934_v15 = vld [vmem:[%s13473_s2 + $0x78] sm:$0xf0] }
 0x30e   :  { %2114 = vmatpush.bf16.msrb.mxu2 %v6965_v26  ;;  %v6933_v7 = vor.u32 %v8698_v51, %v6932_v21  ;;  %v6937_v38 = vor.u32 %v8696_v14, %v6934_v15  ;;  %v6908_v29 = vld [vmem:[%s13473_s2 + $0x40] sm:$0xf]  ;;  %v8691_v20 = vld [vmem:[%s13473_s2 + $0x44] sm:$0xf]  ;;  %v8694_v23 = vld [vmem:[%s13473_s2 + $0x54] sm:$0xf0] }
 0x30f   :  { %v8689_v60 = vld [vmem:[%s13473_s2 + $0x2c] sm:$0xf0]  ;;  %v8687_v1 = vld [vmem:[%s13473_s2 + $0x24] sm:$0xf]  ;;  %v6894_v62 = vld [vmem:[%s13473_s2 + $0x30] sm:$0xf0] }
 0x310   :  { %2101 = vmatpush.bf16.msra.mxu1 %v6961_v33  ;;  %v8690_v57 = vld [vmem:[%s13473_s2 + $0x34] sm:$0xf0]  ;;  %v8688_v41 = vld [vmem:[%s13473_s2 + $0x2c] sm:$0xf]  ;;  %v6876_v52 = vld [vmem:[%s13473_s2] sm:$0xf] }
 0x311   :  { %v9153_v44 = vpop.eup %9152  ;;  %2088 = vmatpush.bf16.msra.mxu0 %v6957_v34  ;;  %v8693_v34 = vld [vmem:[%s13473_s2 + $0x4c] sm:$0xf0]  ;;  %v8683_v51 = vld [vmem:[%s13473_s2 + $0x4] sm:$0xf] }
 0x312   :  { %v10693_v56 = vmul.f32 %v9153_v44, %v1552_v59  ;;  %v6969_v44 = vor.u32 %v8704_v50, %v6966_v53  ;;  %v6940_v59 = vld [vmem:[%s13473_s2 + $0x80] sm:$0xf]  ;;  %2115 = vmatpush.bf16.msrb.mxu2 %v6949_v45  ;;  %v6909_v24 = vor.u32 %v8693_v34, %v6908_v29  ;;  %v6897_v45 = vor.u32 %v8687_v1, %v6894_v62  ;;  %v8685_v21 = vld [vmem:[%s13473_s2 + $0xc] sm:$0xf0]  ;;  %v6886_v29 = vld [vmem:[%s13473_s2 + $0x18] sm:$0xf0] }
 0x313   :  { %v6877_v15 = vor.u32 %v8685_v21, %v6876_v52 }
 0x314   :  { %v1570_v9 = vpack.c.bf16 %v10693_v56, %v10693_v56  ;;  %2127 = vmatpush.bf16.msrb.mxu3 %v6969_v44  ;;  %2102 = vmatpush.bf16.msra.mxu1 %v6945_v3  ;;  %v8692_v44 = vld [vmem:[%s13473_s2 + $0x4c] sm:$0xf]  ;;  %v6900_v3 = vld [vmem:[%s13473_s2 + $0x28] sm:$0xf] }
 0x315   :  { %v6901_v19 = vor.u32 %v8690_v57, %v6900_v3 }
 0x316   :  { %1771 = vmatmul.bf16.vlgmr.msrb.gmra.mxu0 %v1570_v9  ;;  %1784 = vmatmul.bf16.vlgmr.msrb.gmra.mxu1 %v1570_v9 }
 0x317   :  { %1797 = vmatmul.bf16.vlgmr.msra.gmra.mxu2 %v1570_v9  ;;  %1810 = vmatmul.bf16.vlgmr.msra.gmra.mxu3 %v1570_v9  ;;  %v8701_v9 = vld [vmem:[%s13473_s2 + $0x8c] sm:$0xf0] }
 0x318   :  { %v6941_v61 = vor.u32 %v8701_v9, %v6940_v59  ;;  %2128 = vmatpush.bf16.msrb.mxu3 %v6953_v4  ;;  %2103 = vmatpush.bf16.msra.mxu1 %v6929_v39  ;;  %v6918_v59 = vld [vmem:[%s13473_s2 + $0x58] sm:$0xf0]  ;;  %v6892_v9 = vld [vmem:[%s13473_s2 + $0x20] sm:$0xf] }
 0x319   :  { %2116 = vmatpush.bf16.msrb.mxu2 %v6933_v7  ;;  %v6893_v0 = vor.u32 %v8689_v60, %v6892_v9  ;;  %v6902_v4 = vld [vmem:[%s13473_s2 + $0x38] sm:$0xf0] }
 0x31a   :  { %2089 = vmatpush.bf16.msra.mxu0 %v6941_v61  ;;  %v6921_v61 = vor.u32 %v8692_v44, %v6918_v59 }
 0x31c   :  { %2129 = vmatpush.bf16.msrb.mxu3 %v6937_v38  ;;  %v8686_v38 = vld [vmem:[%s13473_s2 + $0x14] sm:$0xf0] }
 0x31e   :  { %2090 = vmatpush.bf16.msra.mxu0 %v6925_v47  ;;  %v6905_v47 = vor.u32 %v8688_v41, %v6902_v4 }
 0x320   :  { %2130 = vmatpush.bf16.msrb.mxu3 %v6921_v61 }
 0x322   :  { %2091 = vmatpush.bf16.msra.mxu0 %v6909_v24 }
 0x324   :  { %2131 = vmatpush.bf16.msrb.mxu3 %v6905_v47 }
 0x326   :  { %2092 = vmatpush.bf16.msra.mxu0 %v6893_v0 }
 0x32a   :  { %2093 = vmatpush.bf16.msra.mxu0 %v6877_v15 }
 0x393   :  { %v1772_v22 = vpop.f32.mrf.mxu0  ;;  %v1785_v13 = vpop.f32.mrf.mxu1 }
 0x394   :  { %v1815_v2 = vadd.f32 %v1772_v22, %v9755_v12  ;;  %v1816_v28 = vadd.f32 %v1785_v13, %v9758_v5  ;;  %v6910_v12 = vld [vmem:[%s13473_s2 + $0x50] sm:$0xf0]  ;;  %v6916_v5 = vld [vmem:[%s13473_s2 + $0x48] sm:$0xf] }
 0x395   :  { %v6913_v50 = vor.u32 %v8691_v20, %v6910_v12  ;;  %v6917_v53 = vor.u32 %v8694_v23, %v6916_v5  ;;  %v6878_v22 = vld [vmem:[%s13473_s2 + $0x10] sm:$0xf0]  ;;  %v6884_v13 = vld [vmem:[%s13473_s2 + $0x8] sm:$0xf] }
 0x396   :  { %v6871_v33 = vmul.f32 -1.442695, %v1815_v2  ;;  %v6872_v26 = vmul.f32 -1.442695, %v1816_v28  ;;  %v6881_v2 = vor.u32 %v8683_v51, %v6878_v22  ;;  %v8684_v28 = vld [vmem:[%s13473_s2 + $0xc] sm:$0xf] }
 0x397   :  { %2104 = vmatpush.bf16.msra.mxu1 %v6913_v50  ;;  %2117 = vmatpush.bf16.msrb.mxu2 %v6917_v53  ;;  %v6889_v24 = vor.u32 %v8684_v28, %v6886_v29 }
 0x398   :  { %9154 = vpow2.f32 %v6871_v33 }
 0x399   :  { %9156 = vpow2.f32 %v6872_v26  ;;  %2132 = vmatpush.bf16.msrb.mxu3 %v6889_v24 }
 0x39a   :  { %v1798_v35 = vpop.f32.mrf.mxu2  ;;  %v1811_v6 = vpop.f32.mrf.mxu3 }
 0x39b   :  { %v1818_v39 = vadd.f32 %v1811_v6, %v9816_v58  ;;  %v1774_v7 = vpop.f32.mrf.mxu0  ;;  %v1787_v14 = vpop.f32.mrf.mxu1  ;;  %2105 = vmatpush.bf16.msra.mxu1 %v6897_v45  ;;  %2118 = vmatpush.bf16.msrb.mxu2 %v6901_v19  ;;  %v6885_v58 = vor.u32 %v8686_v38, %v6884_v13  ;;  %v1817_v59 = vadd.f32 %v1798_v35, %v9813_v55 }
 0x39d   :  { %v6873_v34 = vmul.f32 -1.442695, %v1818_v39 }
 0x39e   :  { %v9155_v20 = vpop.eup %9154 }
 0x39f   :  { %v9157_v12 = vpop.eup %9156  ;;  %v1822_v5 = vadd.f32 1.0, %v9155_v20  ;;  %9158 = vpow2.f32 %v6873_v34  ;;  %2106 = vmatpush.bf16.msra.mxu1 %v6881_v2  ;;  %2119 = vmatpush.bf16.msrb.mxu2 %v6885_v58 }
 0x3a0   :  { %v1841_v23 = vadd.f32 1.0, %v9157_v12 }
 0x3a1   :  { %9160 = vrcp.f32 %v1822_v5  ;;  %v1834_v62 = vand.u32 2147483648, %v1822_v5  ;;  %v1832_v57 = vand.u32 2147483647, %v1822_v5  ;;  %vm1828_vm3 = vweird.f32 %v1822_v5 }
 0x3a2   :  { %9162 = vrcp.f32 %v1841_v23  ;;  %v1800_v33 = vpop.f32.mrf.mxu2  ;;  %v1813_v26 = vpop.f32.mrf.mxu3  ;;  %v1853_v3 = vand.u32 2147483648, %v1841_v23  ;;  %v1851_v4 = vand.u32 2147483647, %v1841_v23  ;;  %vm1847_vm4 = vweird.f32 %v1841_v23 }
 0x3a3   :  { %v1835_v55 = vor.u32 1.1754944e-38, %v1834_v62  ;;  %vm1833_vm7 = vcmp.eq.f32.partialorder %v1832_v57, 8.507059e+37  ;;  %v8745_v33 = vld [vmem:[%s13473_s2 + $0xec] sm:$0xf0]  ;;  %v8743_v26 = vld [vmem:[%s13473_s2 + $0xe4] sm:$0xf] }
 0x3a4   :  { %v1854_v52 = vor.u32 1.1754944e-38, %v1853_v3  ;;  %vm1852_vm8 = vcmp.eq.f32.partialorder %v1851_v4, 8.507059e+37  ;;  %v7103_v62 = vld [vmem:[%s13473_s2 + $0xc0] sm:$0xf]  ;;  %v8741_v3 = vld [vmem:[%s13473_s2 + $0xcc] sm:$0xf0] }
 0x3a5   :  { %v9159_v50 = vpop.eup %9158  ;;  %v7104_v57 = vor.u32 %v8741_v3, %v7103_v62  ;;  %v7111_v4 = vld [vmem:[%s13473_s2 + $0xc8] sm:$0xf]  ;;  %v8730_v3 = vld [vmem:[%s13473_s2 + $0x74] sm:$0xf0] }
 0x3a6   :  { %v1861_v53 = vadd.f32 1.0, %v9159_v50  ;;  %v7063_v62 = vld [vmem:[%s13473_s2 + $0x68] sm:$0xf] }
 0x3a7   :  { %v9161_v44 = vpop.eup %9160 }
 0x3a8   :  { %v9163_v9 = vpop.eup %9162  ;;  %v1824_v60 = vmul.f32 %v9161_v44, %v1822_v5  ;;  %9164 = vrcp.f32 %v1861_v53  ;;  %vm1829_vm1 = vweird.f32 %v9161_v44  ;;  %v1873_v28 = vand.u32 2147483648, %v1861_v53 }
 0x3a9   :  { %v1843_v61 = vmul.f32 %v9163_v9, %v1841_v23  ;;  %9166 = vtanh.f32 %v1817_v59  ;;  %vm1848_vm2 = vweird.f32 %v9163_v9  ;;  %vm1830_vm5 = vmor %vm1828_vm3, %vm1829_vm1  ;;  %vm1867_vm10 = vweird.f32 %v1861_v53  ;;  %v7119_v23 = vld [vmem:[%s13473_s2 + $0xe0] sm:$0xf]  ;;  %v8746_v59 = vld [vmem:[%s13473_s2 + $0xf4] sm:$0xf0] }
 0x3aa   :  { %v1825_v0 = vsub.f32 1.0, %v1824_v60  ;;  %vm1849_vm6 = vmor %vm1847_vm4, %vm1848_vm2  ;;  %v1871_v29 = vand.u32 2147483647, %v1861_v53  ;;  %v1874_v20 = vor.u32 1.1754944e-38, %v1873_v28  ;;  %v7120_v50 = vor.u32 %v8745_v33, %v7119_v23  ;;  %v7097_v28 = vld [vmem:[%s13473_s2 + $0xb8] sm:$0xf0] }
 0x3ab   :  { %v1844_v1 = vsub.f32 1.0, %v1843_v61  ;;  %v8744_v61 = vld [vmem:[%s13473_s2 + $0xec] sm:$0xf]  ;;  %v7079_v23 = vld [vmem:[%s13473_s2 + $0x88] sm:$0xf] }
 0x3ac   :  { %v1826_v45 = vmul.f32 %v9161_v44, %v1825_v0  ;;  %vm1872_vm12 = vcmp.eq.f32.partialorder %v1871_v29, 8.507059e+37  ;;  %v7129_v0 = vld [vmem:[%s13473_s2 + $0xf8] sm:$0xf0]  ;;  %2409 = vmatpush.bf16.msrb.mxu0 %v7120_v50  ;;  %v8734_v33 = vld [vmem:[%s13473_s2 + $0x94] sm:$0xf0] }
 0x3ad   :  { %v1845_v41 = vmul.f32 %v9163_v9, %v1844_v1  ;;  %v7132_v1 = vor.u32 %v8744_v61, %v7129_v0  ;;  %v7080_v50 = vor.u32 %v8734_v33, %v7079_v23  ;;  %v8727_v61 = vld [vmem:[%s13473_s2 + $0x64] sm:$0xf]  ;;  %v7025_v23 = vld [vmem:[%s13473_s2 + $0x30] sm:$0xf0]  ;;  %v7031_v33 = vld [vmem:[%s13473_s2 + $0x28] sm:$0xf] }
 0x3ae   :  { %v9165_v6 = vpop.eup %9164  ;;  %v1827_v19 = vadd.f32 %v9161_v44, %v1826_v45  ;;  %v8739_v45 = vld [vmem:[%s13473_s2 + $0xc4] sm:$0xf] }
 0x3af   :  { %v1846_v35 = vadd.f32 %v9163_v9, %v1845_v41  ;;  %v1863_v47 = vmul.f32 %v9165_v6, %v1861_v53  ;;  %v9167_v51 = vpop.eup %9166  ;;  %vm1868_vm9 = vweird.f32 %v9165_v6  ;;  %v7121_v53 = vld [vmem:[%s13473_s2 + $0xf0] sm:$0xf0]  ;;  %2448 = vmatpush.bf16.msra.mxu3 %v7132_v1 }
 0x3b0   :  { %v1831_v21 = vsel %vm1830_vm5, %v9161_v44, %v1827_v19  ;;  %vm1869_vm11 = vmor %vm1867_vm10, %vm1868_vm9  ;;  %v7127_v44 = vld [vmem:[%s13473_s2 + $0xe8] sm:$0xf]  ;;  %v7105_v41 = vld [vmem:[%s13473_s2 + $0xd0] sm:$0xf0]  ;;  %2410 = vmatpush.bf16.msrb.mxu0 %v7104_v57  ;;  %v175_v57 = vadd.f32 %v9766_v17, %v9752_v11 }
 0x3b1   :  { %v1836_v39 = vsel %vm1833_vm7, %v1835_v55, %v1831_v21  ;;  %v1850_v7 = vsel %vm1849_vm6, %v9163_v9, %v1846_v35  ;;  %v1864_v14 = vsub.f32 1.0, %v1863_v47  ;;  %v7124_v9 = vor.u32 %v8743_v26, %v7121_v53  ;;  %v8740_v35 = vld [vmem:[%s13473_s2 + $0xcc] sm:$0xf]  ;;  %v7113_v47 = vld [vmem:[%s13473_s2 + $0xd8] sm:$0xf0] }
 0x3b2   :  { %v1855_v15 = vsel %vm1852_vm8, %v1854_v52, %v1850_v7  ;;  %v1879_v22 = vmul.f32 %v9167_v51, %v1836_v39  ;;  %v7128_v60 = vor.u32 %v8746_v59, %v7127_v44  ;;  %v7108_v19 = vor.u32 %v8739_v45, %v7105_v41  ;;  %v7087_v21 = vld [vmem:[%s13473_s2 + $0xa0] sm:$0xf]  ;;  %v8737_v51 = vld [vmem:[%s13473_s2 + $0xac] sm:$0xf0]  ;;  %v8735_v39 = vld [vmem:[%s13473_s2 + $0xa4] sm:$0xf] }
 0x3b3   :  { %v1878_v13 = vmul.f32 %v1855_v15, %v10690_v54  ;;  %v1865_v38 = vmul.f32 %v9165_v6, %v1864_v14  ;;  %2422 = vmatpush.bf16.msrb.mxu1 %v7124_v9  ;;  %v7116_v52 = vor.u32 %v8740_v35, %v7113_v47  ;;  %v7088_v7 = vor.u32 %v8737_v51, %v7087_v21  ;;  %v7089_v14 = vld [vmem:[%s13473_s2 + $0xb0] sm:$0xf0]  ;;  %v7095_v15 = vld [vmem:[%s13473_s2 + $0xa8] sm:$0xf]  ;;  %v8732_v53 = vld [vmem:[%s13473_s2 + $0x8c] sm:$0xf] }
 0x3b4   :  { %2435 = vmatpush.bf16.msra.mxu2 %v7128_v60  ;;  %v7081_v44 = vld [vmem:[%s13473_s2 + $0x98] sm:$0xf0]  ;;  %v7055_v9 = vld [vmem:[%s13473_s2 + $0x60] sm:$0xf]  ;;  %v8729_v60 = vld [vmem:[%s13473_s2 + $0x6c] sm:$0xf0]  ;;  %v146_v45 = vadd.f32 %v9764_v16, %v9750_v10 }
 0x3b5   :  { %v10894_v2 = vadd.f32 %v1879_v22, %v1878_v13  ;;  %v1866_v58 = vadd.f32 %v9165_v6, %v1865_v38  ;;  %2449 = vmatpush.bf16.msra.mxu3 %v7116_v52  ;;  %v8738_v22 = vld [vmem:[%s13473_s2 + $0xb4] sm:$0xf0]  ;;  %v7092_v13 = vor.u32 %v8735_v39, %v7089_v14  ;;  %2411 = vmatpush.bf16.msrb.mxu0 %v7088_v7  ;;  %v7057_v1 = vld [vmem:[%s13473_s2 + $0x70] sm:$0xf0]  ;;  %v7039_v16 = vld [vmem:[%s13473_s2 + $0x40] sm:$0xf] }
 0x3b6   :  { %v7096_v38 = vor.u32 %v8738_v22, %v7095_v15  ;;  %v7084_v59 = vor.u32 %v8732_v53, %v7081_v44  ;;  %v7056_v0 = vor.u32 %v8729_v60, %v7055_v9  ;;  %v7060_v41 = vor.u32 %v8727_v61, %v7057_v1  ;;  %v8725_v17 = vld [vmem:[%s13473_s2 + $0x4c] sm:$0xf0]  ;;  %v8723_v51 = vld [vmem:[%s13473_s2 + $0x44] sm:$0xf]  ;;  %v7041_v7 = vld [vmem:[%s13473_s2 + $0x50] sm:$0xf0] }
 0x3b7   :  { %9168 = vtanh.f32 %v10894_v2  ;;  %v1870_v34 = vsel %vm1869_vm11, %v9165_v6, %v1866_v58  ;;  %v8742_v6 = vld [vmem:[%s13473_s2 + $0xd4] sm:$0xf0]  ;;  %2423 = vmatpush.bf16.msrb.mxu1 %v7108_v19  ;;  %v8736_v58 = vld [vmem:[%s13473_s2 + $0xac] sm:$0xf]  ;;  %v7065_v19 = vld [vmem:[%s13473_s2 + $0x78] sm:$0xf0]  ;;  %v7040_v39 = vor.u32 %v8725_v17, %v7039_v16 }
 0x3b8   :  { %v1875_v12 = vsel %vm1872_vm12, %v1874_v20, %v1870_v34  ;;  %v7112_v55 = vor.u32 %v8742_v6, %v7111_v4  ;;  %v7100_v29 = vor.u32 %v8736_v58, %v7097_v28  ;;  %v7071_v34 = vld [vmem:[%s13473_s2 + $0x80] sm:$0xf]  ;;  %v8733_v20 = vld [vmem:[%s13473_s2 + $0x8c] sm:$0xf0]  ;;  %v7064_v4 = vor.u32 %v8730_v3, %v7063_v62  ;;  %v8728_v6 = vld [vmem:[%s13473_s2 + $0x6c] sm:$0xf] }
 0x3b9   :  { %v7068_v47 = vor.u32 %v8728_v6, %v7065_v19  ;;  %v7047_v14 = vld [vmem:[%s13473_s2 + $0x48] sm:$0xf]  ;;  %v8726_v15 = vld [vmem:[%s13473_s2 + $0x54] sm:$0xf0]  ;;  %v8724_v28 = vld [vmem:[%s13473_s2 + $0x4c] sm:$0xf] }
 0x3ba   :  { %2436 = vmatpush.bf16.msra.mxu2 %v7112_v55  ;;  %2450 = vmatpush.bf16.msra.mxu3 %v7100_v29  ;;  %v7048_v58 = vor.u32 %v8726_v15, %v7047_v14  ;;  %v7049_v29 = vld [vmem:[%s13473_s2 + $0x58] sm:$0xf0]  ;;  %v8722_v53 = vld [vmem:[%s13473_s2 + $0x34] sm:$0xf0]  ;;  %v8720_v44 = vld [vmem:[%s13473_s2 + $0x2c] sm:$0xf] }
 0x3bb   :  { %2424 = vmatpush.bf16.msrb.mxu1 %v7092_v13  ;;  %v7032_v61 = vor.u32 %v8722_v53, %v7031_v33  ;;  %v8717_v1 = vld [vmem:[%s13473_s2 + $0xc] sm:$0xf0]  ;;  %v8715_v62 = vld [vmem:[%s13473_s2 + $0x4] sm:$0xf]  ;;  %v7015_v6 = vld [vmem:[%s13473_s2 + $0x8] sm:$0xf] }
 0x3bc   :  { %v8718_v19 = vld [vmem:[%s13473_s2 + $0x14] sm:$0xf0] }
 0x3bd   :  { %v9169_v24 = vpop.eup %9168 }
 0x3be   :  { %v10897_v5 = vmul.f32 %v9169_v24, %v1875_v12  ;;  %2437 = vmatpush.bf16.msra.mxu2 %v7096_v38  ;;  %v8731_v24 = vld [vmem:[%s13473_s2 + $0x84] sm:$0xf]  ;;  %v7072_v12 = vor.u32 %v8733_v20, %v7071_v34  ;;  %2451 = vmatpush.bf16.msra.mxu3 %v7084_v59  ;;  %v7044_v38 = vor.u32 %v8723_v51, %v7041_v7  ;;  %v7023_v34 = vld [vmem:[%s13473_s2 + $0x20] sm:$0xf]  ;;  %v8721_v20 = vld [vmem:[%s13473_s2 + $0x2c] sm:$0xf0] }
 0x3bf   :  { %v7033_v59 = vld [vmem:[%s13473_s2 + $0x38] sm:$0xf0] }
 0x3c0   :  { %v1893_v54 = vpack.c.bf16 %v10897_v5, %v10897_v5  ;;  %2412 = vmatpush.bf16.msrb.mxu0 %v7072_v12  ;;  %v7024_v12 = vor.u32 %v8721_v20, %v7023_v34 }
 0x3c2   :  { %2094 = vmatmul.bf16.vlgmr.msra.gmra.mxu0 %v1893_v54  ;;  %2107 = vmatmul.bf16.vlgmr.msra.gmra.mxu1 %v1893_v54 }
 0x3c3   :  { %2120 = vmatmul.bf16.vlgmr.msrb.gmra.mxu2 %v1893_v54  ;;  %2133 = vmatmul.bf16.vlgmr.msrb.gmra.mxu3 %v1893_v54  ;;  %v7073_v54 = vld [vmem:[%s13473_s2 + $0x90] sm:$0xf0] }
 0x3c4   :  { %v7076_v26 = vor.u32 %v8731_v24, %v7073_v54  ;;  %2438 = vmatpush.bf16.msra.mxu2 %v7080_v50  ;;  %2413 = vmatpush.bf16.msrb.mxu0 %v7056_v0  ;;  %v7052_v24 = vor.u32 %v8724_v28, %v7049_v29  ;;  %v8719_v54 = vld [vmem:[%s13473_s2 + $0x24] sm:$0xf]  ;;  %v7036_v0 = vor.u32 %v8720_v44, %v7033_v59 }
 0x3c5   :  { %2452 = vmatpush.bf16.msra.mxu3 %v7068_v47  ;;  %v7028_v50 = vor.u32 %v8719_v54, %v7025_v23  ;;  %v8716_v47 = vld [vmem:[%s13473_s2 + $0xc] sm:$0xf] }
 0x3c6   :  { %2425 = vmatpush.bf16.msrb.mxu1 %v7076_v26  ;;  %v233_v26 = vadd.f32 %v9872_v48, %v9799_v42  ;;  %v7007_v48 = vld [vmem:[%s13473_s2] sm:$0xf] }
 0x3c8   :  { %2439 = vmatpush.bf16.msra.mxu2 %v7064_v4  ;;  %2414 = vmatpush.bf16.msrb.mxu0 %v7040_v39  ;;  %v7009_v4 = vld [vmem:[%s13473_s2 + $0x10] sm:$0xf0] }
 0x3c9   :  { %2453 = vmatpush.bf16.msra.mxu3 %v7052_v24 }
 0x3ca   :  { %2426 = vmatpush.bf16.msrb.mxu1 %v7060_v41  ;;  %v7008_v41 = vor.u32 %v8717_v1, %v7007_v48 }
 0x3cc   :  { %2440 = vmatpush.bf16.msra.mxu2 %v7048_v58  ;;  %2415 = vmatpush.bf16.msrb.mxu0 %v7024_v12 }
 0x3cd   :  { %2454 = vmatpush.bf16.msra.mxu3 %v7036_v0 }
 0x3ce   :  { %2427 = vmatpush.bf16.msrb.mxu1 %v7044_v38 }
 0x3d0   :  { %2441 = vmatpush.bf16.msra.mxu2 %v7032_v61  ;;  %2416 = vmatpush.bf16.msrb.mxu0 %v7008_v41 }
 0x3d2   :  { %2428 = vmatpush.bf16.msrb.mxu1 %v7028_v50 }
 0x43f   :  { %v2095_v55 = vpop.f32.mrf.mxu0  ;;  %v2108_v35 = vpop.f32.mrf.mxu1 }
 0x440   :  { %v2138_v52 = vadd.f32 %v2095_v55, %v146_v45  ;;  %v2139_v21 = vadd.f32 %v2108_v35, %v175_v57  ;;  %v7012_v55 = vor.u32 %v8715_v62, %v7009_v4  ;;  %v7016_v35 = vor.u32 %v8718_v19, %v7015_v6 }
 0x442   :  { %v7002_v22 = vmul.f32 -1.442695, %v2138_v52  ;;  %v7003_v13 = vmul.f32 -1.442695, %v2139_v21  ;;  %v7017_v52 = vld [vmem:[%s13473_s2 + $0x18] sm:$0xf0]  ;;  %2429 = vmatpush.bf16.msrb.mxu1 %v7012_v55  ;;  %2442 = vmatpush.bf16.msra.mxu2 %v7016_v35 }
 0x443   :  { %v7020_v17 = vor.u32 %v8716_v47, %v7017_v52 }
 0x444   :  { %9170 = vpow2.f32 %v7002_v22 }
 0x445   :  { %9172 = vpow2.f32 %v7003_v13  ;;  %2455 = vmatpush.bf16.msra.mxu3 %v7020_v17  ;;  %v204_v13 = vadd.f32 %v9864_v36, %v9796_v40 }
 0x446   :  { %v2121_v9 = vpop.f32.mrf.mxu2  ;;  %v2134_v60 = vpop.f32.mrf.mxu3 }
 0x447   :  { %v2141_v3 = vadd.f32 %v2134_v60, %v233_v26  ;;  %v2097_v45 = vpop.f32.mrf.mxu0  ;;  %v2110_v57 = vpop.f32.mrf.mxu1  ;;  %v2140_v28 = vadd.f32 %v2121_v9, %v204_v13  ;;  %v8778_v13 = vld [vmem:[%s13473_s2 + $0xf4] sm:$0xf0] }
 0x449   :  { %v7004_v21 = vmul.f32 -1.442695, %v2141_v3 }
 0x44a   :  { %v9171_v16 = vpop.eup %9170 }
 0x44b   :  { %v9173_v51 = vpop.eup %9172  ;;  %v2145_v39 = vadd.f32 1.0, %v9171_v16  ;;  %9174 = vpow2.f32 %v7004_v21 }
 0x44c   :  { %v2164_v7 = vadd.f32 1.0, %v9173_v51  ;;  %v7250_v51 = vld [vmem:[%s13473_s2 + $0xe0] sm:$0xf] }
 0x44d   :  { %9176 = vrcp.f32 %v2145_v39  ;;  %v2157_v54 = vand.u32 2147483648, %v2145_v39  ;;  %v2155_v26 = vand.u32 2147483647, %v2145_v39  ;;  %vm2151_vm15 = vweird.f32 %v2145_v39 }
 0x44e   :  { %9178 = vrcp.f32 %v2164_v7  ;;  %v2123_v14 = vpop.f32.mrf.mxu2  ;;  %v2136_v15 = vpop.f32.mrf.mxu3  ;;  %v2176_v23 = vand.u32 2147483648, %v2164_v7  ;;  %v2174_v53 = vand.u32 2147483647, %v2164_v7  ;;  %vm2170_vm0 = vweird.f32 %v2164_v7 }
 0x44f   :  { %v2158_v59 = vor.u32 1.1754944e-38, %v2157_v54  ;;  %vm2156_vm3 = vcmp.eq.f32.partialorder %v2155_v26, 8.507059e+37  ;;  %v7252_v15 = vld [vmem:[%s13473_s2 + $0xf0] sm:$0xf0]  ;;  %v8774_v26 = vld [vmem:[%s13473_s2 + $0xd4] sm:$0xf0] }
 0x450   :  { %v2177_v61 = vor.u32 1.1754944e-38, %v2176_v23  ;;  %vm2175_vm4 = vcmp.eq.f32.partialorder %v2174_v53, 8.507059e+37  ;;  %v7236_v23 = vld [vmem:[%s13473_s2 + $0xd0] sm:$0xf0] }
 0x451   :  { %v9175_v22 = vpop.eup %9174 }
 0x452   :  { %v2184_v38 = vadd.f32 1.0, %v9175_v22  ;;  %v7258_v22 = vld [vmem:[%s13473_s2 + $0xe8] sm:$0xf] }
 0x453   :  { %v9177_v58 = vpop.eup %9176 }
 0x454   :  { %v9179_v29 = vpop.eup %9178  ;;  %v2147_v34 = vmul.f32 %v9177_v58, %v2145_v39  ;;  %9180 = vrcp.f32 %v2184_v38  ;;  %vm2152_vm13 = vweird.f32 %v9177_v58  ;;  %v2196_v55 = vand.u32 2147483648, %v2184_v38  ;;  %v8777_v39 = vld [vmem:[%s13473_s2 + $0xec] sm:$0xf0] }
 0x455   :  { %v2166_v20 = vmul.f32 %v9179_v29, %v2164_v7  ;;  %9182 = vtanh.f32 %v2140_v28  ;;  %vm2171_vm14 = vweird.f32 %v9179_v29  ;;  %vm2153_vm1 = vmor %vm2151_vm15, %vm2152_vm13  ;;  %vm2190_vm6 = vweird.f32 %v2184_v38  ;;  %v8775_v7 = vld [vmem:[%s13473_s2 + $0xe4] sm:$0xf]  ;;  %v8776_v28 = vld [vmem:[%s13473_s2 + $0xec] sm:$0xf] }
 0x456   :  { %v2148_v24 = vsub.f32 1.0, %v2147_v34  ;;  %vm2172_vm2 = vmor %vm2170_vm0, %vm2171_vm14  ;;  %v2194_v35 = vand.u32 2147483647, %v2184_v38  ;;  %v2197_v52 = vor.u32 1.1754944e-38, %v2196_v55  ;;  %v7251_v14 = vor.u32 %v8777_v39, %v7250_v51  ;;  %v8765_v55 = vld [vmem:[%s13473_s2 + $0x8c] sm:$0xf0] }
 0x457   :  { %v2167_v12 = vsub.f32 1.0, %v2166_v20  ;;  %v7234_v20 = vld [vmem:[%s13473_s2 + $0xc0] sm:$0xf]  ;;  %v8764_v39 = vld [vmem:[%s13473_s2 + $0x8c] sm:$0xf] }
 0x458   :  { %v2149_v33 = vmul.f32 %v9177_v58, %v2148_v24  ;;  %vm2195_vm8 = vcmp.eq.f32.partialorder %v2194_v35, 8.507059e+37  ;;  %2732 = vmatpush.bf16.msra.mxu0 %v7251_v14  ;;  %v8773_v24 = vld [vmem:[%s13473_s2 + $0xcc] sm:$0xf0]  ;;  %v8763_v35 = vld [vmem:[%s13473_s2 + $0x84] sm:$0xf] }
 0x459   :  { %v2168_v50 = vmul.f32 %v9179_v29, %v2167_v12  ;;  %v8771_v12 = vld [vmem:[%s13473_s2 + $0xc4] sm:$0xf]  ;;  %v7235_v54 = vor.u32 %v8773_v24, %v7234_v20  ;;  %v8760_v24 = vld [vmem:[%s13473_s2 + $0x6c] sm:$0xf] }
 0x45a   :  { %v9181_v44 = vpop.eup %9180  ;;  %v2150_v36 = vadd.f32 %v9177_v58, %v2149_v33  ;;  %v7242_v33 = vld [vmem:[%s13473_s2 + $0xc8] sm:$0xf] }
 0x45b   :  { %v2169_v9 = vadd.f32 %v9179_v29, %v2168_v50  ;;  %v2186_v60 = vmul.f32 %v9181_v44, %v2184_v38  ;;  %v9183_v48 = vpop.eup %9182  ;;  %vm2191_vm5 = vweird.f32 %v9181_v44  ;;  %v7255_v38 = vor.u32 %v8775_v7, %v7252_v15  ;;  %v7212_v7 = vld [vmem:[%s13473_s2 + $0x98] sm:$0xf0]  ;;  %v7186_v15 = vld [vmem:[%s13473_s2 + $0x60] sm:$0xf] }
 0x45c   :  { %v2154_v0 = vsel %vm2153_vm1, %v9177_v58, %v2150_v36  ;;  %vm2192_vm7 = vmor %vm2190_vm6, %vm2191_vm5  ;;  %v7259_v58 = vor.u32 %v8778_v13, %v7258_v22  ;;  %v7239_v50 = vor.u32 %v8771_v12, %v7236_v23  ;;  %v7243_v53 = vor.u32 %v8774_v26, %v7242_v33  ;;  %v7244_v36 = vld [vmem:[%s13473_s2 + $0xd8] sm:$0xf0]  ;;  %2733 = vmatpush.bf16.msra.mxu0 %v7235_v54  ;;  %v8761_v22 = vld [vmem:[%s13473_s2 + $0x6c] sm:$0xf0] }
 0x45d   :  { %v2159_v1 = vsel %vm2156_vm3, %v2158_v59, %v2154_v0  ;;  %v2173_v62 = vsel %vm2172_vm2, %v9179_v29, %v2169_v9  ;;  %v2187_v3 = vsub.f32 1.0, %v2186_v60  ;;  %v7260_v29 = vld [vmem:[%s13473_s2 + $0xf8] sm:$0xf0]  ;;  %2745 = vmatpush.bf16.msra.mxu1 %v7255_v38  ;;  %v7218_v9 = vld [vmem:[%s13473_s2 + $0xa0] sm:$0xf]  ;;  %v7215_v14 = vor.u32 %v8764_v39, %v7212_v7 }
 0x45e   :  { %v2178_v45 = vsel %vm2175_vm4, %v2177_v61, %v2173_v62  ;;  %v2202_v57 = vmul.f32 %v9183_v48, %v2159_v1  ;;  %v7263_v34 = vor.u32 %v8776_v28, %v7260_v29  ;;  %2758 = vmatpush.bf16.msrb.mxu2 %v7259_v58  ;;  %v8769_v60 = vld [vmem:[%s13473_s2 + $0xac] sm:$0xf0]  ;;  %v8767_v61 = vld [vmem:[%s13473_s2 + $0xa4] sm:$0xf]  ;;  %v7220_v48 = vld [vmem:[%s13473_s2 + $0xb0] sm:$0xf0]  ;;  %v7187_v38 = vor.u32 %v8761_v22, %v7186_v15 }
 0x45f   :  { %v2201_v41 = vmul.f32 %v2178_v45, %v10894_v2  ;;  %v2188_v4 = vmul.f32 %v9181_v44, %v2187_v3  ;;  %v7219_v0 = vor.u32 %v8769_v60, %v7218_v9  ;;  %v7226_v1 = vld [vmem:[%s13473_s2 + $0xa8] sm:$0xf]  ;;  %v8770_v62 = vld [vmem:[%s13473_s2 + $0xb4] sm:$0xf0]  ;;  %v7223_v3 = vor.u32 %v8767_v61, %v7220_v48  ;;  %v8759_v13 = vld [vmem:[%s13473_s2 + $0x64] sm:$0xf] }
 0x460   :  { %2771 = vmatpush.bf16.msrb.mxu3 %v7263_v34  ;;  %v7227_v45 = vor.u32 %v8770_v62, %v7226_v1  ;;  %v7188_v58 = vld [vmem:[%s13473_s2 + $0x70] sm:$0xf0]  ;;  %v7194_v28 = vld [vmem:[%s13473_s2 + $0x68] sm:$0xf]  ;;  %v8762_v29 = vld [vmem:[%s13473_s2 + $0x74] sm:$0xf0] }
 0x461   :  { %v11102_v6 = vadd.f32 %v2202_v57, %v2201_v41  ;;  %v2189_v19 = vadd.f32 %v9181_v44, %v2188_v4  ;;  %2746 = vmatpush.bf16.msra.mxu1 %v7239_v50  ;;  %v8768_v57 = vld [vmem:[%s13473_s2 + $0xac] sm:$0xf]  ;;  %v7228_v41 = vld [vmem:[%s13473_s2 + $0xb8] sm:$0xf0]  ;;  %2734 = vmatpush.bf16.msra.mxu0 %v7219_v0  ;;  %v7191_v34 = vor.u32 %v8759_v13, %v7188_v58  ;;  %v7170_v23 = vld [vmem:[%s13473_s2 + $0x40] sm:$0xf] }
 0x462   :  { %2759 = vmatpush.bf16.msrb.mxu2 %v7243_v53  ;;  %v7231_v4 = vor.u32 %v8768_v57, %v7228_v41  ;;  %v7195_v20 = vor.u32 %v8762_v29, %v7194_v28  ;;  %v7196_v12 = vld [vmem:[%s13473_s2 + $0x78] sm:$0xf0]  ;;  %v8757_v33 = vld [vmem:[%s13473_s2 + $0x4c] sm:$0xf0]  ;;  %v8755_v26 = vld [vmem:[%s13473_s2 + $0x44] sm:$0xf] }
 0x463   :  { %9184 = vtanh.f32 %v11102_v6  ;;  %v2193_v47 = vsel %vm2192_vm7, %v9181_v44, %v2189_v19  ;;  %v8772_v44 = vld [vmem:[%s13473_s2 + $0xcc] sm:$0xf]  ;;  %v7202_v19 = vld [vmem:[%s13473_s2 + $0x80] sm:$0xf]  ;;  %v7199_v54 = vor.u32 %v8760_v24, %v7196_v12  ;;  %v7171_v50 = vor.u32 %v8757_v33, %v7170_v23  ;;  %v7172_v53 = vld [vmem:[%s13473_s2 + $0x50] sm:$0xf0] }
 0x464   :  { %v2198_v16 = vsel %vm2195_vm8, %v2197_v52, %v2193_v47  ;;  %v7247_v59 = vor.u32 %v8772_v44, %v7244_v36  ;;  %v7203_v47 = vor.u32 %v8765_v55, %v7202_v19  ;;  %v7204_v52 = vld [vmem:[%s13473_s2 + $0x90] sm:$0xf0]  ;;  %v7178_v44 = vld [vmem:[%s13473_s2 + $0x48] sm:$0xf]  ;;  %v8758_v36 = vld [vmem:[%s13473_s2 + $0x54] sm:$0xf0] }
 0x465   :  { %2747 = vmatpush.bf16.msra.mxu1 %v7223_v3  ;;  %v7179_v9 = vor.u32 %v8758_v36, %v7178_v44  ;;  %v8756_v60 = vld [vmem:[%s13473_s2 + $0x4c] sm:$0xf]  ;;  %v7180_v61 = vld [vmem:[%s13473_s2 + $0x58] sm:$0xf0]  ;;  %v7154_v48 = vld [vmem:[%s13473_s2 + $0x20] sm:$0xf] }
 0x466   :  { %2772 = vmatpush.bf16.msrb.mxu3 %v7247_v59  ;;  %2760 = vmatpush.bf16.msrb.mxu2 %v7227_v45  ;;  %v7175_v59 = vor.u32 %v8755_v26, %v7172_v53  ;;  %v7183_v0 = vor.u32 %v8756_v60, %v7180_v61  ;;  %v8753_v1 = vld [vmem:[%s13473_s2 + $0x2c] sm:$0xf0]  ;;  %v8751_v62 = vld [vmem:[%s13473_s2 + $0x24] sm:$0xf]  ;;  %v7156_v45 = vld [vmem:[%s13473_s2 + $0x30] sm:$0xf0] }
 0x467   :  { %2735 = vmatpush.bf16.msra.mxu0 %v7203_v47  ;;  %v7155_v3 = vor.u32 %v8753_v1, %v7154_v48  ;;  %v7162_v57 = vld [vmem:[%s13473_s2 + $0x28] sm:$0xf]  ;;  %v8754_v41 = vld [vmem:[%s13473_s2 + $0x34] sm:$0xf0]  ;;  %v8752_v55 = vld [vmem:[%s13473_s2 + $0x2c] sm:$0xf] }
 0x468   :  { %v7163_v19 = vor.u32 %v8754_v41, %v7162_v57  ;;  %v7146_v39 = vld [vmem:[%s13473_s2 + $0x8] sm:$0xf]  ;;  %v8750_v7 = vld [vmem:[%s13473_s2 + $0x14] sm:$0xf0]  ;;  %v8748_v22 = vld [vmem:[%s13473_s2 + $0xc] sm:$0xf] }
 0x469   :  { %v9185_v21 = vpop.eup %9184  ;;  %v7147_v15 = vor.u32 %v8750_v7, %v7146_v39  ;;  %v7148_v13 = vld [vmem:[%s13473_s2 + $0x18] sm:$0xf0]  ;;  %v8809_v28 = vld [vmem:[%s13475_s4 + $0xec] sm:$0xf0]  ;;  %v8807_v29 = vld [vmem:[%s13475_s4 + $0xe4] sm:$0xf] }
 0x46a   :  { %v11105_v17 = vmul.f32 %v9185_v21, %v2198_v16  ;;  %2773 = vmatpush.bf16.msrb.mxu3 %v7231_v4  ;;  %v7210_v21 = vld [vmem:[%s13473_s2 + $0x88] sm:$0xf]  ;;  %v8766_v16 = vld [vmem:[%s13473_s2 + $0x94] sm:$0xf0]  ;;  %v7159_v4 = vor.u32 %v8751_v62, %v7156_v45  ;;  %v7151_v58 = vor.u32 %v8748_v22, %v7148_v13  ;;  %v8808_v26 = vld [vmem:[%s13475_s4 + $0xec] sm:$0xf] }
 0x46b   :  { %v7211_v51 = vor.u32 %v8766_v16, %v7210_v21  ;;  %2736 = vmatpush.bf16.msra.mxu0 %v7187_v38  ;;  %v8749_v21 = vld [vmem:[%s13473_s2 + $0xc] sm:$0xf0]  ;;  %v8747_v16 = vld [vmem:[%s13473_s2 + $0x4] sm:$0xf]  ;;  %v7381_v38 = vld [vmem:[%s13475_s4 + $0xe0] sm:$0xf] }
 0x46c   :  { %v2216_v2 = vpack.c.bf16 %v11105_v17, %v11105_v17  ;;  %v7382_v12 = vor.u32 %v8809_v28, %v7381_v38  ;;  %v7389_v23 = vld [vmem:[%s13475_s4 + $0xe8] sm:$0xf]  ;;  %v8810_v33 = vld [vmem:[%s13475_s4 + $0xf4] sm:$0xf0]  ;;  %v7391_v36 = vld [vmem:[%s13475_s4 + $0xf8] sm:$0xf0] }
 0x46d   :  { %2761 = vmatpush.bf16.msrb.mxu2 %v7211_v51  ;;  %v7140_v51 = vld [vmem:[%s13473_s2 + $0x10] sm:$0xf0]  ;;  %v7390_v44 = vor.u32 %v8810_v33, %v7389_v23  ;;  %v7394_v60 = vor.u32 %v8808_v26, %v7391_v36  ;;  %v8804_v57 = vld [vmem:[%s13475_s4 + $0xcc] sm:$0xf]  ;;  %v7375_v41 = vld [vmem:[%s13475_s4 + $0xd8] sm:$0xf0] }
 0x46e   :  { %2417 = vmatmul.bf16.vlgmr.msrb.gmra.mxu0 %v2216_v2  ;;  %2430 = vmatmul.bf16.vlgmr.msrb.gmra.mxu1 %v2216_v2  ;;  %v7367_v61 = vld [vmem:[%s13475_s4 + $0xd0] sm:$0xf0]  ;;  %v7333_v22 = vld [vmem:[%s13475_s4 + $0x80] sm:$0xf]  ;;  %v8797_v13 = vld [vmem:[%s13475_s4 + $0x8c] sm:$0xf0] }
 0x46f   :  { %2443 = vmatmul.bf16.vlgmr.msra.gmra.mxu2 %v2216_v2  ;;  %2456 = vmatmul.bf16.vlgmr.msra.gmra.mxu3 %v2216_v2  ;;  %v7207_v2 = vor.u32 %v8763_v35, %v7204_v52  ;;  %v7164_v35 = vld [vmem:[%s13473_s2 + $0x38] sm:$0xf0]  ;;  %v7138_v52 = vld [vmem:[%s13473_s2] sm:$0xf]  ;;  %v7334_v33 = vor.u32 %v8797_v13, %v7333_v22  ;;  %v8788_v13 = vld [vmem:[%s13475_s4 + $0x4c] sm:$0xf] }
 0x470   :  { %2774 = vmatpush.bf16.msrb.mxu3 %v7215_v14  ;;  %2737 = vmatpush.bf16.msra.mxu0 %v7171_v50  ;;  %v7167_v47 = vor.u32 %v8752_v55, %v7164_v35  ;;  %v7143_v14 = vor.u32 %v8747_v16, %v7140_v51  ;;  %v8801_v55 = vld [vmem:[%s13475_s4 + $0xac] sm:$0xf0]  ;;  %v8799_v35 = vld [vmem:[%s13475_s4 + $0xa4] sm:$0xf]  ;;  %v7357_v16 = vld [vmem:[%s13475_s4 + $0xa8] sm:$0xf] }
 0x471   :  { %2748 = vmatpush.bf16.msra.mxu1 %v7207_v2  ;;  %2762 = vmatpush.bf16.msrb.mxu2 %v7195_v20  ;;  %v7139_v2 = vor.u32 %v8749_v21, %v7138_v52  ;;  %v8800_v51 = vld [vmem:[%s13475_s4 + $0xac] sm:$0xf] }
 0x474   :  { %2775 = vmatpush.bf16.msrb.mxu3 %v7199_v54  ;;  %2738 = vmatpush.bf16.msra.mxu0 %v7155_v3  ;;  %v8806_v3 = vld [vmem:[%s13475_s4 + $0xd4] sm:$0xf0] }
 0x475   :  { %2749 = vmatpush.bf16.msra.mxu1 %v7191_v34  ;;  %2763 = vmatpush.bf16.msrb.mxu2 %v7179_v9  ;;  %v7383_v34 = vld [vmem:[%s13475_s4 + $0xf0] sm:$0xf0]  ;;  %v8805_v9 = vld [vmem:[%s13475_s4 + $0xcc] sm:$0xf0] }
 0x476   :  { %v7386_v54 = vor.u32 %v8807_v29, %v7383_v34  ;;  %v8795_v34 = vld [vmem:[%s13475_s4 + $0x84] sm:$0xf] }
 0x478   :  { %2776 = vmatpush.bf16.msrb.mxu3 %v7183_v0  ;;  %2739 = vmatpush.bf16.msra.mxu0 %v7139_v2  ;;  %v7373_v0 = vld [vmem:[%s13475_s4 + $0xc8] sm:$0xf]  ;;  %v8802_v2 = vld [vmem:[%s13475_s4 + $0xb4] sm:$0xf0] }
 0x479   :  { %2750 = vmatpush.bf16.msra.mxu1 %v7175_v59  ;;  %2764 = vmatpush.bf16.msrb.mxu2 %v7163_v19  ;;  %v7365_v59 = vld [vmem:[%s13475_s4 + $0xc0] sm:$0xf]  ;;  %v7374_v45 = vor.u32 %v8806_v3, %v7373_v0  ;;  %v7378_v19 = vor.u32 %v8804_v57, %v7375_v41  ;;  %v8794_v57 = vld [vmem:[%s13475_s4 + $0x74] sm:$0xf0] }
 0x47c   :  { %2777 = vmatpush.bf16.msrb.mxu3 %v7167_v47  ;;  %3070 = vmatpush.bf16.msrb.mxu0 %v7382_v12  ;;  %v7351_v47 = vld [vmem:[%s13475_s4 + $0xb0] sm:$0xf0]  ;;  %v8796_v12 = vld [vmem:[%s13475_s4 + $0x8c] sm:$0xf] }
 0x47d   :  { %2751 = vmatpush.bf16.msra.mxu1 %v7159_v4  ;;  %2765 = vmatpush.bf16.msrb.mxu2 %v7147_v15  ;;  %v7349_v4 = vld [vmem:[%s13475_s4 + $0xa0] sm:$0xf]  ;;  %v7354_v21 = vor.u32 %v8799_v35, %v7351_v47  ;;  %v7359_v15 = vld [vmem:[%s13475_s4 + $0xb8] sm:$0xf0] }
 0x47e   :  { %v7350_v52 = vor.u32 %v8801_v55, %v7349_v4  ;;  %v7362_v29 = vor.u32 %v8800_v51, %v7359_v15  ;;  %v8792_v55 = vld [vmem:[%s13475_s4 + $0x6c] sm:$0xf]  ;;  %v7327_v35 = vld [vmem:[%s13475_s4 + $0x78] sm:$0xf0]  ;;  %v7301_v47 = vld [vmem:[%s13475_s4 + $0x40] sm:$0xf] }
 0x480   :  { %2778 = vmatpush.bf16.msrb.mxu3 %v7151_v58 }
 0x481   :  { %2752 = vmatpush.bf16.msra.mxu1 %v7143_v14  ;;  %3128 = vmatpush.bf16.msra.mxu2 %v7390_v44  ;;  %v7358_v14 = vor.u32 %v8802_v2, %v7357_v16  ;;  %v8787_v16 = vld [vmem:[%s13475_s4 + $0x44] sm:$0xf] }
 0x484   :  { %3157 = vmatpush.bf16.msra.mxu3 %v7394_v60  ;;  %v7317_v60 = vld [vmem:[%s13475_s4 + $0x60] sm:$0xf] }
 0x485   :  { %3099 = vmatpush.bf16.msrb.mxu1 %v7386_v54  ;;  %3129 = vmatpush.bf16.msra.mxu2 %v7374_v45  ;;  %v7343_v54 = vld [vmem:[%s13475_s4 + $0x98] sm:$0xf0]  ;;  %v7325_v45 = vld [vmem:[%s13475_s4 + $0x68] sm:$0xf] }
 0x488   :  { %3158 = vmatpush.bf16.msra.mxu3 %v7378_v19  ;;  %v7326_v19 = vor.u32 %v8794_v57, %v7325_v45  ;;  %v8781_v45 = vld [vmem:[%s13475_s4 + $0xc] sm:$0xf0]  ;;  %v8779_v57 = vld [vmem:[%s13475_s4 + $0x4] sm:$0xf] }
 0x489   :  { %3130 = vmatpush.bf16.msra.mxu2 %v7358_v14  ;;  %v8790_v14 = vld [vmem:[%s13475_s4 + $0x54] sm:$0xf0] }
 0x48c   :  { %3159 = vmatpush.bf16.msra.mxu3 %v7362_v29 }
 0x4eb   :  { %v2418_v20 = vpop.f32.mrf.mxu0  ;;  %v2431_v24 = vpop.f32.mrf.mxu1 }
 0x4ec   :  { %v2461_v50 = vadd.f32 %v2418_v20, %v9775_v25  ;;  %v2462_v53 = vadd.f32 %v2431_v24, %v9778_v27  ;;  %v7366_v25 = vor.u32 %v8805_v9, %v7365_v59  ;;  %v8803_v27 = vld [vmem:[%s13475_s4 + $0xc4] sm:$0xf]  ;;  %v7335_v20 = vld [vmem:[%s13475_s4 + $0x90] sm:$0xf0]  ;;  %v7341_v24 = vld [vmem:[%s13475_s4 + $0x88] sm:$0xf]  ;;  %v7346_v59 = vor.u32 %v8796_v12, %v7343_v54 }
 0x4ed   :  { %v7370_v62 = vor.u32 %v8803_v27, %v7367_v61  ;;  %v7338_v26 = vor.u32 %v8795_v34, %v7335_v20  ;;  %v8793_v61 = vld [vmem:[%s13475_s4 + $0x6c] sm:$0xf0] }
 0x4ee   :  { %v7133_v48 = vmul.f32 -1.442695, %v2461_v50  ;;  %v7134_v1 = vmul.f32 -1.442695, %v2462_v53  ;;  %3071 = vmatpush.bf16.msrb.mxu0 %v7366_v25  ;;  %3160 = vmatpush.bf16.msra.mxu3 %v7346_v59  ;;  %v7318_v0 = vor.u32 %v8793_v61, %v7317_v60  ;;  %v8785_v20 = vld [vmem:[%s13475_s4 + $0x2c] sm:$0xf0] }
 0x4ef   :  { %3100 = vmatpush.bf16.msrb.mxu1 %v7370_v62  ;;  %v7293_v59 = vld [vmem:[%s13475_s4 + $0x28] sm:$0xf]  ;;  %v8784_v61 = vld [vmem:[%s13475_s4 + $0x2c] sm:$0xf] }
 0x4f0   :  { %9186 = vpow2.f32 %v7133_v48  ;;  %v8791_v48 = vld [vmem:[%s13475_s4 + $0x64] sm:$0xf] }
 0x4f1   :  { %9188 = vpow2.f32 %v7134_v1  ;;  %v7319_v1 = vld [vmem:[%s13475_s4 + $0x70] sm:$0xf0] }
 0x4f2   :  { %v2444_v39 = vpop.f32.mrf.mxu2  ;;  %v2457_v7 = vpop.f32.mrf.mxu3  ;;  %3072 = vmatpush.bf16.msrb.mxu0 %v7350_v52  ;;  %v7322_v3 = vor.u32 %v8791_v48, %v7319_v1 }
 0x4f3   :  { %v2464_v38 = vadd.f32 %v2457_v7, %v9932_v46  ;;  %v2420_v58 = vpop.f32.mrf.mxu0  ;;  %v2433_v28 = vpop.f32.mrf.mxu1  ;;  %v8798_v46 = vld [vmem:[%s13475_s4 + $0x94] sm:$0xf0]  ;;  %3101 = vmatpush.bf16.msrb.mxu1 %v7354_v21  ;;  %v2463_v4 = vadd.f32 %v2444_v39, %v9927_v32  ;;  %v7330_v21 = vor.u32 %v8792_v55, %v7327_v35  ;;  %v8789_v32 = vld [vmem:[%s13475_s4 + $0x4c] sm:$0xf0]  ;;  %v7303_v39 = vld [vmem:[%s13475_s4 + $0x50] sm:$0xf0] }
 0x4f4   :  { %v7342_v53 = vor.u32 %v8798_v46, %v7341_v24  ;;  %v7302_v51 = vor.u32 %v8789_v32, %v7301_v47  ;;  %v7309_v7 = vld [vmem:[%s13475_s4 + $0x48] sm:$0xf]  ;;  %v7285_v58 = vld [vmem:[%s13475_s4 + $0x20] sm:$0xf]  ;;  %v7306_v46 = vor.u32 %v8787_v16, %v7303_v39  ;;  %v7271_v55 = vld [vmem:[%s13475_s4 + $0x10] sm:$0xf0] }
 0x4f5   :  { %v7135_v23 = vmul.f32 -1.442695, %v2464_v38  ;;  %3161 = vmatpush.bf16.msra.mxu3 %v7330_v21  ;;  %v7311_v38 = vld [vmem:[%s13475_s4 + $0x58] sm:$0xf0]  ;;  %v7310_v12 = vor.u32 %v8790_v14, %v7309_v7  ;;  %v7277_v35 = vld [vmem:[%s13475_s4 + $0x8] sm:$0xf] }
 0x4f6   :  { %v9187_v50 = vpop.eup %9186  ;;  %3073 = vmatpush.bf16.msrb.mxu0 %v7334_v33  ;;  %3131 = vmatpush.bf16.msra.mxu2 %v7342_v53  ;;  %v7314_v54 = vor.u32 %v8788_v13, %v7311_v38  ;;  %v7287_v33 = vld [vmem:[%s13475_s4 + $0x30] sm:$0xf0]  ;;  %v8782_v47 = vld [vmem:[%s13475_s4 + $0x14] sm:$0xf0]  ;;  %v8780_v39 = vld [vmem:[%s13475_s4 + $0xc] sm:$0xf] }
 0x4f7   :  { %v9189_v44 = vpop.eup %9188  ;;  %v11400_v36 = vadd.f32 1.0, %v9187_v50  ;;  %9190 = vpow2.f32 %v7135_v23  ;;  %3102 = vmatpush.bf16.msrb.mxu1 %v7338_v26  ;;  %v8783_v23 = vld [vmem:[%s13475_s4 + $0x24] sm:$0xf]  ;;  %v7279_v7 = vld [vmem:[%s13475_s4 + $0x18] sm:$0xf0]  ;;  %v7278_v13 = vor.u32 %v8782_v47, %v7277_v35 }
 0x4f8   :  { %v11402_v9 = vadd.f32 1.0, %v9189_v44  ;;  %v7286_v44 = vor.u32 %v8785_v20, %v7285_v58 }
 0x4f9   :  { %9192 = vrcp.f32 %v11400_v36  ;;  %v2478_v62 = vand.u32 2147483647, %v11400_v36  ;;  %v2480_v34 = vand.u32 2147483648, %v11400_v36  ;;  %3162 = vmatpush.bf16.msra.mxu3 %v7314_v54  ;;  %vm2474_vm13 = vweird.f32 %v11400_v36 }
 0x4fa   :  { %9194 = vrcp.f32 %v11402_v9  ;;  %v2446_v25 = vpop.f32.mrf.mxu2  ;;  %v2459_v27 = vpop.f32.mrf.mxu3  ;;  %3074 = vmatpush.bf16.msrb.mxu0 %v7318_v0  ;;  %3132 = vmatpush.bf16.msra.mxu2 %v7326_v19  ;;  %v2499_v29 = vand.u32 2147483648, %v11402_v9  ;;  %v2497_v53 = vand.u32 2147483647, %v11402_v9  ;;  %v7295_v0 = vld [vmem:[%s13475_s4 + $0x38] sm:$0xf0]  ;;  %vm2493_vm12 = vweird.f32 %v11402_v9 }
 0x4fb   :  { %3103 = vmatpush.bf16.msrb.mxu1 %v7322_v3  ;;  %vm11481_vm9 = vcmp.eq.f32.partialorder %v2478_v62, 8.507059e+37  ;;  %v7290_v25 = vor.u32 %v8783_v23, %v7287_v33  ;;  %v8786_v27 = vld [vmem:[%s13475_s4 + $0x34] sm:$0xf0]  ;;  %v7298_v62 = vor.u32 %v8784_v61, %v7295_v0  ;;  %v7269_v3 = vld [vmem:[%s13475_s4] sm:$0xf]  ;;  %v2481_v16 = vor.u32 1.1754944e-38, %v2480_v34 }
 0x4fc   :  { %v7294_v1 = vor.u32 %v8786_v27, %v7293_v59  ;;  %v7270_v19 = vor.u32 %v8781_v45, %v7269_v3  ;;  %v2500_v32 = vor.u32 1.1754944e-38, %v2499_v29  ;;  %vm2498_vm0 = vcmp.eq.f32.partialorder %v2497_v53, 8.507059e+37  ;;  %v8839_v59 = vld [vmem:[%s13476_s5 + $0xe4] sm:$0xf]  ;;  %v8840_v61 = vld [vmem:[%s13476_s5 + $0xec] sm:$0xf] }
 0x4fd   :  { %v9191_v41 = vpop.eup %9190  ;;  %3163 = vmatpush.bf16.msra.mxu3 %v7298_v62  ;;  %v7282_v29 = vor.u32 %v8780_v39, %v7279_v7  ;;  %v2864_v53 = vpack.c.bf16 %v10281_v8, %v10073_v63  ;;  %v7511_v63 = vld [vmem:[%s13476_s5 + $0xf0] sm:$0xf0]  ;;  %v2866_v27 = vpack.c.bf16 %v11105_v17, %v10897_v5  ;;  %v7519_v0 = vld [vmem:[%s13476_s5 + $0xf8] sm:$0xf0]  ;;  %v8842_v5 = vld [vmem:[%s13476_s5 + $0xf4] sm:$0xf0] }
 0x4fe   :  { %v11435_v52 = vadd.f32 1.0, %v9191_v41  ;;  %3075 = vmatpush.bf16.msrb.mxu0 %v7302_v51  ;;  %3133 = vmatpush.bf16.msra.mxu2 %v7310_v12  ;;  %v7514_v8 = vor.u32 %v8839_v59, %v7511_v63  ;;  %v7479_v7 = vld [vmem:[%s13476_s5 + $0xb0] sm:$0xf0]  ;;  %v8825_v59 = vld [vmem:[%s13476_s5 + $0x6c] sm:$0xf0] }
 0x4ff   :  { %v11443_v2 = vpop.eup %9192  ;;  %3104 = vmatpush.bf16.msrb.mxu1 %v7306_v46 }
 0x500   :  { %v11454_v15 = vpop.eup %9194  ;;  %v2470_v22 = vmul.f32 %v11443_v2, %v11400_v36  ;;  %9196 = vrcp.f32 %v11435_v52  ;;  %vm2475_vm10 = vweird.f32 %v11443_v2  ;;  %vm2513_vm2 = vweird.f32 %v11435_v52 }
 0x501   :  { %v2489_v28 = vmul.f32 %v11454_v15, %v11402_v9  ;;  %9198 = vtanh.f32 %v2463_v4  ;;  %vm2494_vm11 = vweird.f32 %v11454_v15  ;;  %vm2476_vm14 = vmor %vm2474_vm13, %vm2475_vm10  ;;  %3164 = vmatpush.bf16.msra.mxu3 %v7282_v29  ;;  %v2517_v12 = vand.u32 2147483647, %v11435_v52  ;;  %v7461_v29 = vld [vmem:[%s13476_s5 + $0x80] sm:$0xf] }
 0x502   :  { %v2471_v24 = vsub.f32 1.0, %v2470_v22  ;;  %3076 = vmatpush.bf16.msrb.mxu0 %v7286_v44  ;;  %vm2495_vm15 = vmor %vm2493_vm12, %vm2494_vm11  ;;  %3134 = vmatpush.bf16.msra.mxu2 %v7294_v1  ;;  %v7274_v22 = vor.u32 %v8779_v57, %v7271_v55  ;;  %v8841_v44 = vld [vmem:[%s13476_s5 + $0xec] sm:$0xf0]  ;;  %v180_v1 = vadd.f32 %v9786_v31, %v9752_v11  ;;  %v7495_v11 = vld [vmem:[%s13476_s5 + $0xd0] sm:$0xf0] }
 0x503   :  { %v2490_v26 = vsub.f32 1.0, %v2489_v28  ;;  %3105 = vmatpush.bf16.msrb.mxu1 %v7290_v25  ;;  %vm2518_vm4 = vcmp.eq.f32.partialorder %v2517_v12, 8.507059e+37  ;;  %v2865_v25 = vpack.c.bf16 %v10693_v56, %v10485_v37  ;;  %v7522_v37 = vor.u32 %v8840_v61, %v7519_v0  ;;  %v7517_v56 = vld [vmem:[%s13476_s5 + $0xe8] sm:$0xf]  ;;  %v8836_v31 = vld [vmem:[%s13476_s5 + $0xcc] sm:$0xf] }
 0x504   :  { %v2472_v60 = vmul.f32 %v11443_v2, %v2471_v24  ;;  %v7518_v17 = vor.u32 %v8842_v5, %v7517_v56  ;;  %v7455_v0 = vld [vmem:[%s13476_s5 + $0x78] sm:$0xf0]  ;;  %v8830_v56 = vld [vmem:[%s13476_s5 + $0x94] sm:$0xf0] }
 0x505   :  { %v2491_v48 = vmul.f32 %v11454_v15, %v2490_v26 }
 0x506   :  { %v9197_v41 = vpop.eup %9196  ;;  %v2473_v4 = vadd.f32 %v11443_v2, %v2472_v60  ;;  %3077 = vmatpush.bf16.msrb.mxu0 %v7270_v19  ;;  %3135 = vmatpush.bf16.msra.mxu2 %v7278_v13  ;;  %v7503_v19 = vld [vmem:[%s13476_s5 + $0xd8] sm:$0xf0]  ;;  %v238_v13 = vadd.f32 %v9988_v49, %v9799_v42  ;;  %v8827_v42 = vld [vmem:[%s13476_s5 + $0x84] sm:$0xf]  ;;  %v7463_v49 = vld [vmem:[%s13476_s5 + $0x90] sm:$0xf0] }
 0x507   :  { %v9199_v21 = vpop.eup %9198  ;;  %v2492_v36 = vadd.f32 %v11454_v15, %v2491_v48  ;;  %v2509_v51 = vmul.f32 %v9197_v41, %v11435_v52  ;;  %3106 = vmatpush.bf16.msrb.mxu1 %v7274_v22  ;;  %vm2514_vm1 = vweird.f32 %v9197_v41  ;;  %v151_v48 = vadd.f32 %v9784_v30, %v9750_v10  ;;  %v8835_v10 = vld [vmem:[%s13476_s5 + $0xc4] sm:$0xf]  ;;  %v7487_v22 = vld [vmem:[%s13476_s5 + $0xb8] sm:$0xf0] }
 0x508   :  { %v2477_v14 = vsel %vm2476_vm14, %v11443_v2, %v2473_v4  ;;  %vm2515_vm3 = vmor %vm2513_vm2, %vm2514_vm1  ;;  %v8837_v4 = vld [vmem:[%s13476_s5 + $0xcc] sm:$0xf0]  ;;  %v7498_v47 = vor.u32 %v8835_v10, %v7495_v11  ;;  %v7431_v10 = vld [vmem:[%s13476_s5 + $0x50] sm:$0xf0] }
 0x509   :  { %v2482_v38 = vsel %vm11481_vm9, %v2481_v16, %v2477_v14  ;;  %v2496_v58 = vsel %vm2495_vm15, %v11454_v15, %v2492_v36  ;;  %v2510_v28 = vsub.f32 1.0, %v2509_v51  ;;  %v2519_v15 = vand.u32 2147483648, %v11435_v52  ;;  %v7509_v52 = vld [vmem:[%s13476_s5 + $0xe0] sm:$0xf]  ;;  %v8833_v36 = vld [vmem:[%s13476_s5 + $0xac] sm:$0xf0] }
 0x50a   :  { %v2501_v34 = vsel %vm2498_vm0, %v2500_v32, %v2496_v58  ;;  %v2525_v20 = vmul.f32 %v9199_v21, %v2482_v38  ;;  %v7510_v60 = vor.u32 %v8841_v44, %v7509_v52  ;;  %v7506_v21 = vor.u32 %v8836_v31, %v7503_v19  ;;  %v7501_v32 = vld [vmem:[%s13476_s5 + $0xc8] sm:$0xf]  ;;  %v7477_v16 = vld [vmem:[%s13476_s5 + $0xa0] sm:$0xf]  ;;  %v8831_v51 = vld [vmem:[%s13476_s5 + $0xa4] sm:$0xf] }
 0x50b   :  { %v2524_v9 = vmul.f32 %v2501_v34, %v11102_v6  ;;  %v2511_v24 = vmul.f32 %v9197_v41, %v2510_v28  ;;  %v2520_v23 = vor.u32 1.1754944e-38, %v2519_v15  ;;  %v7478_v39 = vor.u32 %v8833_v36, %v7477_v16  ;;  %v8832_v14 = vld [vmem:[%s13476_s5 + $0xac] sm:$0xf]  ;;  %v8838_v28 = vld [vmem:[%s13476_s5 + $0xd4] sm:$0xf0] }
 0x50c   :  { %v7482_v38 = vor.u32 %v8831_v51, %v7479_v7  ;;  %v7490_v58 = vor.u32 %v8832_v14, %v7487_v22  ;;  %v8829_v34 = vld [vmem:[%s13476_s5 + $0x8c] sm:$0xf0]  ;;  %v7445_v44 = vld [vmem:[%s13476_s5 + $0x60] sm:$0xf]  ;;  %v7439_v19 = vld [vmem:[%s13476_s5 + $0x58] sm:$0xf0] }
 0x50d   :  { %v11542_v2 = vadd.f32 %v2525_v20, %v2524_v9  ;;  %v2512_v46 = vadd.f32 %v9197_v41, %v2511_v24  ;;  %v7502_v24 = vor.u32 %v8838_v28, %v7501_v32  ;;  %v7413_v16 = vld [vmem:[%s13476_s5 + $0x20] sm:$0xf]  ;;  %v8817_v36 = vld [vmem:[%s13476_s5 + $0x2c] sm:$0xf0]  ;;  %v8815_v14 = vld [vmem:[%s13476_s5 + $0x24] sm:$0xf] }
 0x50e   :  { %v7415_v22 = vld [vmem:[%s13476_s5 + $0x30] sm:$0xf0]  ;;  %v7414_v28 = vor.u32 %v8817_v36, %v7413_v16 }
 0x50f   :  { %9200 = vtanh.f32 %v11542_v2  ;;  %v2516_v54 = vsel %vm2515_vm3, %v9197_v41, %v2512_v46  ;;  %v7493_v41 = vld [vmem:[%s13476_s5 + $0xc0] sm:$0xf]  ;;  %v8828_v46 = vld [vmem:[%s13476_s5 + $0x8c] sm:$0xf] }
 0x510   :  { %v2521_v33 = vsel %vm2518_vm4, %v2520_v23, %v2516_v54  ;;  %v7494_v30 = vor.u32 %v8837_v4, %v7493_v41  ;;  %v7462_v23 = vor.u32 %v8829_v34, %v7461_v29  ;;  %v8819_v4 = vld [vmem:[%s13476_s5 + $0x44] sm:$0xf]  ;;  %v8816_v29 = vld [vmem:[%s13476_s5 + $0x2c] sm:$0xf]  ;;  %v7423_v34 = vld [vmem:[%s13476_s5 + $0x38] sm:$0xf0] }
 0x515   :  { %v9201_v6 = vpop.eup %9200 }
 0x516   :  { %v11548_v26 = vmul.f32 %v9201_v6, %v2521_v33  ;;  %v7471_v6 = vld [vmem:[%s13476_s5 + $0x98] sm:$0xf0]  ;;  %v7485_v33 = vld [vmem:[%s13476_s5 + $0xa8] sm:$0xf] }
 0x517   :  { %v7474_v52 = vor.u32 %v8828_v46, %v7471_v6  ;;  %v8818_v6 = vld [vmem:[%s13476_s5 + $0x34] sm:$0xf0] }
 0x518   :  { %v2539_v50 = vpack.c.bf16 %v11548_v26, %v11548_v26 }
 0x51a   :  { %2740 = vmatmul.bf16.vlgmr.msra.gmra.mxu0 %v2539_v50  ;;  %2753 = vmatmul.bf16.vlgmr.msra.gmra.mxu1 %v2539_v50 }
 0x51b   :  { %2766 = vmatmul.bf16.vlgmr.msrb.gmra.mxu2 %v2539_v50  ;;  %2779 = vmatmul.bf16.vlgmr.msrb.gmra.mxu3 %v2539_v50  ;;  %v8834_v50 = vld [vmem:[%s13476_s5 + $0xb4] sm:$0xf0] }
 0x51c   :  { %3418 = vmatpush.bf16.msra.mxu0 %v7510_v60  ;;  %3431 = vmatpush.bf16.msra.mxu1 %v7514_v8  ;;  %v8823_v60 = vld [vmem:[%s13476_s5 + $0x64] sm:$0xf]  ;;  %v7486_v8 = vor.u32 %v8834_v50, %v7485_v33 }
 0x51d   :  { %3457 = vmatpush.bf16.msrb.mxu3 %v7522_v37  ;;  %3444 = vmatpush.bf16.msrb.mxu2 %v7518_v17  ;;  %v7469_v37 = vld [vmem:[%s13476_s5 + $0x88] sm:$0xf] }
 0x51e   :  { %v7470_v41 = vor.u32 %v8830_v56, %v7469_v37 }
 0x520   :  { %3419 = vmatpush.bf16.msra.mxu0 %v7494_v30  ;;  %3432 = vmatpush.bf16.msra.mxu1 %v7498_v47  ;;  %v8820_v30 = vld [vmem:[%s13476_s5 + $0x4c] sm:$0xf]  ;;  %v8826_v47 = vld [vmem:[%s13476_s5 + $0x74] sm:$0xf0] }
 0x521   :  { %3458 = vmatpush.bf16.msrb.mxu3 %v7506_v21  ;;  %3445 = vmatpush.bf16.msrb.mxu2 %v7502_v24  ;;  %v7434_v21 = vor.u32 %v8819_v4, %v7431_v10  ;;  %v7442_v32 = vor.u32 %v8820_v30, %v7439_v19 }
 0x524   :  { %3420 = vmatpush.bf16.msra.mxu0 %v7478_v39  ;;  %3433 = vmatpush.bf16.msra.mxu1 %v7482_v38  ;;  %v209_v39 = vadd.f32 %v9980_v18, %v9796_v40  ;;  %v7437_v38 = vld [vmem:[%s13476_s5 + $0x48] sm:$0xf]  ;;  %v8822_v40 = vld [vmem:[%s13476_s5 + $0x54] sm:$0xf0] }
 0x525   :  { %3459 = vmatpush.bf16.msrb.mxu3 %v7490_v58  ;;  %3446 = vmatpush.bf16.msrb.mxu2 %v7486_v8  ;;  %v7438_v46 = vor.u32 %v8822_v40, %v7437_v38 }
 0x528   :  { %3421 = vmatpush.bf16.msra.mxu0 %v7462_v23  ;;  %v7421_v23 = vld [vmem:[%s13476_s5 + $0x28] sm:$0xf] }
 0x529   :  { %3460 = vmatpush.bf16.msrb.mxu3 %v7474_v52  ;;  %3447 = vmatpush.bf16.msrb.mxu2 %v7470_v41  ;;  %v8813_v52 = vld [vmem:[%s13476_s5 + $0xc] sm:$0xf0] }
 0x52a   :  { %3078 = vmatmul.bf16.vlgmr.msrb.gmra.mxu0 %v2864_v53  ;;  %3107 = vmatmul.bf16.vlgmr.msrb.gmra.mxu1 %v2864_v53 }
 0x52b   :  { %3136 = vmatmul.bf16.vlgmr.msra.gmra.mxu2 %v2864_v53  ;;  %3165 = vmatmul.bf16.vlgmr.msra.gmra.mxu3 %v2864_v53  ;;  %v7466_v53 = vor.u32 %v8827_v42, %v7463_v49 }
 0x52d   :  { %3434 = vmatpush.bf16.msra.mxu1 %v7466_v53  ;;  %v7397_v53 = vld [vmem:[%s13476_s5] sm:$0xf] }
 0x53a   :  { %3083 = vmatmul.bf16.gmra.mxu0 %v2865_v25  ;;  %3112 = vmatmul.bf16.gmra.mxu1 %v2865_v25 }
 0x53b   :  { %3141 = vmatmul.bf16.gmra.mxu2 %v2865_v25  ;;  %3170 = vmatmul.bf16.gmra.mxu3 %v2865_v25  ;;  %v7447_v25 = vld [vmem:[%s13476_s5 + $0x70] sm:$0xf0] }
 0x54a   :  { %3088 = vmatmul.bf16.gmra.mxu0 %v2866_v27  ;;  %3117 = vmatmul.bf16.gmra.mxu1 %v2866_v27 }
 0x54b   :  { %3146 = vmatmul.bf16.gmra.mxu2 %v2866_v27  ;;  %3175 = vmatmul.bf16.gmra.mxu3 %v2866_v27  ;;  %v8824_v27 = vld [vmem:[%s13476_s5 + $0x6c] sm:$0xf] }
 0x597   :  { %v2741_v62 = vpop.f32.mrf.mxu0  ;;  %v2754_v3 = vpop.f32.mrf.mxu1 }
 0x598   :  { %v2784_v45 = vadd.f32 %v2741_v62, %v151_v48  ;;  %v2785_v57 = vadd.f32 %v2754_v3, %v180_v1  ;;  %v7446_v48 = vor.u32 %v8825_v59, %v7445_v44  ;;  %v7450_v62 = vor.u32 %v8823_v60, %v7447_v25  ;;  %v8811_v60 = vld [vmem:[%s13476_s5 + $0x4] sm:$0xf] }
 0x599   :  { %v7458_v3 = vor.u32 %v8824_v27, %v7455_v0  ;;  %v7398_v25 = vor.u32 %v8813_v52, %v7397_v53  ;;  %v8812_v0 = vld [vmem:[%s13476_s5 + $0xc] sm:$0xf]  ;;  %v8873_v53 = vld [vmem:[%s13476_s5 + $0xec] sm:$0xf0]  ;;  %v8871_v52 = vld [vmem:[%s13476_s5 + $0xe4] sm:$0xf] }
 0x59a   :  { %v7264_v55 = vmul.f32 -1.442695, %v2784_v45  ;;  %v7265_v35 = vmul.f32 -1.442695, %v2785_v57  ;;  %v7429_v45 = vld [vmem:[%s13476_s5 + $0x40] sm:$0xf]  ;;  %3422 = vmatpush.bf16.msra.mxu0 %v7446_v48  ;;  %3435 = vmatpush.bf16.msra.mxu1 %v7450_v62 }
 0x59b   :  { %v8821_v57 = vld [vmem:[%s13476_s5 + $0x4c] sm:$0xf0]  ;;  %3461 = vmatpush.bf16.msrb.mxu3 %v7458_v3  ;;  %v8814_v48 = vld [vmem:[%s13476_s5 + $0x14] sm:$0xf0]  ;;  %v7407_v62 = vld [vmem:[%s13476_s5 + $0x18] sm:$0xf0] }
 0x59c   :  { %9202 = vpow2.f32 %v7264_v55  ;;  %v7430_v55 = vor.u32 %v8821_v57, %v7429_v45  ;;  %v7410_v45 = vor.u32 %v8812_v0, %v7407_v62  ;;  %v7624_v62 = vld [vmem:[%s13476_s5 + $0xc0] sm:$0xf] }
 0x59d   :  { %9204 = vpow2.f32 %v7265_v35  ;;  %v7453_v35 = vld [vmem:[%s13476_s5 + $0x68] sm:$0xf] }
 0x59e   :  { %v11636_v20 = vpop.f32.mrf.mxu2  ;;  %v2780_v9 = vpop.f32.mrf.mxu3  ;;  %v7454_v7 = vor.u32 %v8826_v47, %v7453_v35  ;;  %3423 = vmatpush.bf16.msra.mxu0 %v7430_v55  ;;  %3436 = vmatpush.bf16.msra.mxu1 %v7434_v21 }
 0x59f   :  { %v2787_v15 = vadd.f32 %v2780_v9, %v238_v13  ;;  %v2743_v12 = vpop.f32.mrf.mxu0  ;;  %v2756_v54 = vpop.f32.mrf.mxu1  ;;  %v2786_v58 = vadd.f32 %v11636_v20, %v209_v39  ;;  %3462 = vmatpush.bf16.msrb.mxu3 %v7442_v32  ;;  %v7418_v20 = vor.u32 %v8815_v14, %v7415_v22 }
 0x5a0   :  { %3448 = vmatpush.bf16.msrb.mxu2 %v7454_v7  ;;  %v7426_v54 = vor.u32 %v8816_v29, %v7423_v34 }
 0x5a1   :  { %v7266_v63 = vmul.f32 -1.442695, %v2787_v15 }
 0x5a2   :  { %v9203_v61 = vpop.eup %9202  ;;  %3424 = vmatpush.bf16.msra.mxu0 %v7414_v28  ;;  %3437 = vmatpush.bf16.msra.mxu1 %v7418_v20 }
 0x5a3   :  { %v9205_v5 = vpop.eup %9204  ;;  %v11680_v17 = vadd.f32 1.0, %v9203_v61  ;;  %9206 = vpow2.f32 %v7266_v63  ;;  %3463 = vmatpush.bf16.msrb.mxu3 %v7426_v54  ;;  %v7399_v63 = vld [vmem:[%s13476_s5 + $0x10] sm:$0xf0]  ;;  %v7422_v61 = vor.u32 %v8818_v6, %v7421_v23 }
 0x5a4   :  { %v11682_v1 = vadd.f32 1.0, %v9205_v5  ;;  %3449 = vmatpush.bf16.msrb.mxu2 %v7438_v46  ;;  %v7402_v27 = vor.u32 %v8811_v60, %v7399_v63  ;;  %v7405_v5 = vld [vmem:[%s13476_s5 + $0x8] sm:$0xf]  ;;  %v7642_v63 = vld [vmem:[%s13476_s5 + $0xf0] sm:$0xf0] }
 0x5a5   :  { %9208 = vrcp.f32 %v11680_v17  ;;  %v2801_v49 = vand.u32 2147483647, %v11680_v17  ;;  %v2803_v12 = vand.u32 2147483648, %v11680_v17  ;;  %vm2797_vm8 = vweird.f32 %v11680_v17 }
 0x5a6   :  { %9210 = vrcp.f32 %v11682_v1  ;;  %v2769_v11 = vpop.f32.mrf.mxu2  ;;  %v2782_v31 = vpop.f32.mrf.mxu3  ;;  %v2822_v50 = vand.u32 2147483648, %v11682_v1  ;;  %v2820_v59 = vand.u32 2147483647, %v11682_v1  ;;  %vm2816_vm7 = vweird.f32 %v11682_v1  ;;  %3425 = vmatpush.bf16.msra.mxu0 %v7398_v25  ;;  %3438 = vmatpush.bf16.msra.mxu1 %v7402_v27  ;;  %v8874_v25 = vld [vmem:[%s13476_s5 + $0xf4] sm:$0xf0] }
 0x5a7   :  { %vm2802_vm11 = vcmp.eq.f32.partialorder %v2801_v49, 8.507059e+37  ;;  %v7406_v31 = vor.u32 %v8814_v48, %v7405_v5  ;;  %3464 = vmatpush.bf16.msrb.mxu3 %v7410_v45  ;;  %v11808_v38 = vpop.f32.mrf.mxu1  ;;  %v7645_v0 = vor.u32 %v8871_v52, %v7642_v63  ;;  %v7650_v5 = vld [vmem:[%s13476_s5 + $0xf8] sm:$0xf0]  ;;  %v7626_v45 = vld [vmem:[%s13476_s5 + $0xd0] sm:$0xf0] }
 0x5a8   :  { %v2823_v57 = vor.u32 1.1754944e-38, %v2822_v50  ;;  %vm2821_vm12 = vcmp.eq.f32.partialorder %v2820_v59, 8.507059e+37  ;;  %3450 = vmatpush.bf16.msrb.mxu2 %v7422_v61  ;;  %v7640_v50 = vld [vmem:[%s13476_s5 + $0xe0] sm:$0xf] }
 0x5a9   :  { %v9207_v51 = vpop.eup %9206  ;;  %v7641_v60 = vor.u32 %v8873_v53, %v7640_v50  ;;  %v8864_v50 = vld [vmem:[%s13476_s5 + $0xac] sm:$0xf]  ;;  %v7618_v53 = vld [vmem:[%s13476_s5 + $0xb8] sm:$0xf0] }
 0x5aa   :  { %v11724_v13 = vadd.f32 1.0, %v9207_v51  ;;  %3752 = vmatpush.bf16.msrb.mxu1 %v7645_v0  ;;  %v7621_v63 = vor.u32 %v8864_v50, %v7618_v53  ;;  %v8859_v0 = vld [vmem:[%s13476_s5 + $0x84] sm:$0xf] }
 0x5ab   :  { %v11732_v18 = vpop.eup %9208  ;;  %3739 = vmatpush.bf16.msrb.mxu0 %v7641_v60 }
 0x5ac   :  { %v11741_v9 = vpop.eup %9210  ;;  %v2793_v24 = vmul.f32 %v11732_v18, %v11680_v17  ;;  %9212 = vrcp.f32 %v11724_v13  ;;  %vm2798_vm6 = vweird.f32 %v11732_v18  ;;  %3451 = vmatpush.bf16.msrb.mxu2 %v7406_v31  ;;  %v2842_v16 = vand.u32 2147483648, %v11724_v13  ;;  %v11909_v31 = vld [vmem:[%s13477_s6] sm:$0xf] }
 0x5ad   :  { %v2812_v42 = vmul.f32 %v11741_v9, %v11682_v1  ;;  %9214 = vtanh.f32 %v2786_v58  ;;  %vm2817_vm5 = vweird.f32 %v11741_v9  ;;  %vm2799_vm9 = vmor %vm2797_vm8, %vm2798_vm6  ;;  %v2804_v1 = vor.u32 1.1754944e-38, %v2803_v12 }
 0x5ae   :  { %v2794_v15 = vsub.f32 1.0, %v2793_v24  ;;  %vm2818_vm10 = vmor %vm2816_vm7, %vm2817_vm5  ;;  %vm2836_vm14 = vweird.f32 %v11724_v13  ;;  %v2840_v36 = vand.u32 2147483647, %v11724_v13  ;;  %v2843_v39 = vor.u32 1.1754944e-38, %v2842_v16  ;;  %v11810_v40 = vpop.f32.mrf.mxu2 }
 0x5af   :  { %v2813_v33 = vsub.f32 1.0, %v2812_v42  ;;  %v11816_v58 = vpop.f32.mrf.mxu1  ;;  %v11944_v52 = vperm.slane %v11909_v31, 0  ;;  %v11947_v60 = vperm.slane %v11909_v31, 1 }
 0x5b0   :  { %v2795_v44 = vmul.f32 %v11732_v18, %v2794_v15  ;;  %vm2841_vm0 = vcmp.eq.f32.partialorder %v2840_v36, 8.507059e+37  ;;  %v7610_v36 = vld [vmem:[%s13476_s5 + $0xb0] sm:$0xf0] }
 0x5b1   :  { %v2814_v8 = vmul.f32 %v11741_v9, %v2813_v33 }
 0x5b2   :  { %v9213_v37 = vpop.eup %9212  ;;  %v2796_v56 = vadd.f32 %v11732_v18, %v2795_v44 }
 0x5b3   :  { %v2815_v3 = vadd.f32 %v11741_v9, %v2814_v8  ;;  %v2832_v17 = vmul.f32 %v9213_v37, %v11724_v13  ;;  %v9215_v4 = vpop.eup %9214  ;;  %vm2837_vm13 = vweird.f32 %v9213_v37  ;;  %v11806_v13 = vpop.f32.mrf.mxu0  ;;  %v7648_v8 = vld [vmem:[%s13476_s5 + $0xe8] sm:$0xf] }
 0x5b4   :  { %v2800_v41 = vsel %vm2799_vm9, %v11732_v18, %v2796_v56  ;;  %vm2838_vm15 = vmor %vm2836_vm14, %vm2837_vm13  ;;  %v11812_v18 = vpop.f32.mrf.mxu3  ;;  %v8872_v56 = vld [vmem:[%s13476_s5 + $0xec] sm:$0xf] }
 0x5b5   :  { %v2805_v10 = vsel %vm2802_vm11, %v2804_v1, %v2800_v41  ;;  %v2819_v30 = vsel %vm2818_vm10, %v11741_v9, %v2815_v3  ;;  %v2833_v11 = vsub.f32 1.0, %v2832_v17  ;;  %v7653_v48 = vor.u32 %v8872_v56, %v7650_v5  ;;  %v8869_v1 = vld [vmem:[%s13476_s5 + $0xcc] sm:$0xf0]  ;;  %v8867_v3 = vld [vmem:[%s13476_s5 + $0xc4] sm:$0xf] }
 0x5b6   :  { %v2824_v19 = vsel %vm2821_vm12, %v2823_v57, %v2819_v30  ;;  %v2848_v55 = vmul.f32 %v9215_v4, %v2805_v10  ;;  %v11818_v28 = vpop.f32.mrf.mxu2  ;;  %v7625_v17 = vor.u32 %v8869_v1, %v7624_v62  ;;  %v7632_v57 = vld [vmem:[%s13476_s5 + $0xc8] sm:$0xf]  ;;  %v8870_v41 = vld [vmem:[%s13476_s5 + $0xd4] sm:$0xf0]  ;;  %v7629_v4 = vor.u32 %v8867_v3, %v7626_v45  ;;  %v8868_v30 = vld [vmem:[%s13476_s5 + $0xcc] sm:$0xf] }
 0x5b7   :  { %v2847_v35 = vmul.f32 %v2824_v19, %v11542_v2  ;;  %v2834_v47 = vmul.f32 %v9213_v37, %v2833_v11  ;;  %v11824_v9 = vpop.f32.mrf.mxu1  ;;  %3778 = vmatpush.bf16.msra.mxu3 %v7653_v48  ;;  %v7633_v10 = vor.u32 %v8870_v41, %v7632_v57  ;;  %v7634_v11 = vld [vmem:[%s13476_s5 + $0xd8] sm:$0xf0]  ;;  %v7594_v56 = vld [vmem:[%s13476_s5 + $0x90] sm:$0xf0]  ;;  %v7600_v5 = vld [vmem:[%s13476_s5 + $0x88] sm:$0xf] }
 0x5b8   :  { %3740 = vmatpush.bf16.msrb.mxu0 %v7625_v17  ;;  %v7637_v19 = vor.u32 %v8868_v30, %v7634_v11  ;;  %3753 = vmatpush.bf16.msrb.mxu1 %v7629_v4  ;;  %v8862_v48 = vld [vmem:[%s13476_s5 + $0x94] sm:$0xf0]  ;;  %v7597_v62 = vor.u32 %v8859_v0, %v7594_v56  ;;  %v8860_v3 = vld [vmem:[%s13476_s5 + $0x8c] sm:$0xf]  ;;  %v7602_v17 = vld [vmem:[%s13476_s5 + $0x98] sm:$0xf0]  ;;  %v3109_v30 = vadd.f32 %v11808_v38, %v11947_v60 }
 0x5b9   :  { %v2849_v21 = vadd.f32 %v2848_v55, %v2847_v35  ;;  %v2835_v32 = vadd.f32 %v9213_v37, %v2834_v47  ;;  %v7608_v55 = vld [vmem:[%s13476_s5 + $0xa0] sm:$0xf]  ;;  %v8865_v35 = vld [vmem:[%s13476_s5 + $0xac] sm:$0xf0]  ;;  %v8863_v47 = vld [vmem:[%s13476_s5 + $0xa4] sm:$0xf]  ;;  %v7601_v1 = vor.u32 %v8862_v48, %v7600_v5  ;;  %v7605_v45 = vor.u32 %v8860_v3, %v7602_v17 }
 0x5ba   :  { %v7609_v16 = vor.u32 %v8865_v35, %v7608_v55  ;;  %v7576_v57 = vld [vmem:[%s13476_s5 + $0x60] sm:$0xf]  ;;  %v8857_v41 = vld [vmem:[%s13476_s5 + $0x6c] sm:$0xf0]  ;;  %v8855_v4 = vld [vmem:[%s13476_s5 + $0x64] sm:$0xf] }
 0x5bb   :  { %9216 = vtanh.f32 %v2849_v21  ;;  %v2839_v51 = vsel %vm2838_vm15, %v9213_v37, %v2835_v32  ;;  %v7649_v37 = vor.u32 %v8874_v25, %v7648_v8  ;;  %3779 = vmatpush.bf16.msra.mxu3 %v7637_v19  ;;  %v7592_v8 = vld [vmem:[%s13476_s5 + $0x80] sm:$0xf]  ;;  %v8861_v25 = vld [vmem:[%s13476_s5 + $0x8c] sm:$0xf0]  ;;  %v7577_v55 = vor.u32 %v8857_v41, %v7576_v57  ;;  %v7578_v35 = vld [vmem:[%s13476_s5 + $0x70] sm:$0xf0] }
 0x5bc   :  { %v2844_v14 = vsel %vm2841_vm0, %v2843_v39, %v2839_v51  ;;  %v11820_v29 = vpop.f32.mrf.mxu3  ;;  %v7616_v51 = vld [vmem:[%s13476_s5 + $0xa8] sm:$0xf]  ;;  %v8866_v39 = vld [vmem:[%s13476_s5 + $0xb4] sm:$0xf0]  ;;  %3741 = vmatpush.bf16.msrb.mxu0 %v7609_v16  ;;  %v8851_v0 = vld [vmem:[%s13476_s5 + $0x44] sm:$0xf] }
 0x5bd   :  { %3765 = vmatpush.bf16.msra.mxu2 %v7649_v37  ;;  %v7593_v37 = vor.u32 %v8861_v25, %v7592_v8  ;;  %v7560_v8 = vld [vmem:[%s13476_s5 + $0x40] sm:$0xf]  ;;  %v8853_v25 = vld [vmem:[%s13476_s5 + $0x4c] sm:$0xf0]  ;;  %v7562_v48 = vld [vmem:[%s13476_s5 + $0x50] sm:$0xf0] }
 0x5be   :  { %v7561_v5 = vor.u32 %v8853_v25, %v7560_v8  ;;  %v8854_v3 = vld [vmem:[%s13476_s5 + $0x54] sm:$0xf0]  ;;  %v8852_v17 = vld [vmem:[%s13476_s5 + $0x4c] sm:$0xf]  ;;  %v7570_v57 = vld [vmem:[%s13476_s5 + $0x58] sm:$0xf0] }
 0x5bf   :  { %v11832_v42 = vpop.f32.mrf.mxu1  ;;  %3780 = vmatpush.bf16.msra.mxu3 %v7621_v63  ;;  %v7544_v41 = vld [vmem:[%s13476_s5 + $0x20] sm:$0xf] }
 0x5c0   :  { %3742 = vmatpush.bf16.msrb.mxu0 %v7593_v37  ;;  %v7528_v25 = vld [vmem:[%s13476_s5] sm:$0xf] }
 0x5c1   :  { %v9217_v7 = vpop.eup %9216  ;;  %3766 = vmatpush.bf16.msra.mxu2 %v7633_v10  ;;  %v3080_v10 = vadd.f32 %v11806_v13, %v11944_v52  ;;  %v8858_v13 = vld [vmem:[%s13476_s5 + $0x74] sm:$0xf0] }
 0x5c2   :  { %v2851_v22 = vmul.f32 %v9217_v7, %v2844_v14 }
 0x5c3   :  { %3781 = vmatpush.bf16.msra.mxu3 %v7605_v45 }
 0x5c4   :  { %v2867_v2 = vpack.c.bf16 %v2851_v22, %v11548_v26  ;;  %v11814_v26 = vpop.f32.mrf.mxu0  ;;  %v11828_v24 = vpop.f32.mrf.mxu3  ;;  %v7613_v22 = vor.u32 %v8863_v47, %v7610_v36  ;;  %v7584_v47 = vld [vmem:[%s13476_s5 + $0x68] sm:$0xf]  ;;  %v7581_v36 = vor.u32 %v8855_v4, %v7578_v35  ;;  %3743 = vmatpush.bf16.msrb.mxu0 %v7577_v55  ;;  %v8849_v4 = vld [vmem:[%s13476_s5 + $0x2c] sm:$0xf0]  ;;  %v8847_v35 = vld [vmem:[%s13476_s5 + $0x24] sm:$0xf] }
 0x5c5   :  { %v7545_v55 = vor.u32 %v8849_v4, %v7544_v41 }
 0x5c6   :  { %3093 = vmatmul.bf16.gmra.mxu0 %v2867_v2  ;;  %3122 = vmatmul.bf16.gmra.mxu1 %v2867_v2 }
 0x5c7   :  { %3151 = vmatmul.bf16.gmra.mxu2 %v2867_v2  ;;  %3180 = vmatmul.bf16.gmra.mxu3 %v2867_v2  ;;  %v11840_v12 = vpop.f32.mrf.mxu1  ;;  %v7617_v2 = vor.u32 %v8866_v39, %v7616_v51  ;;  %v7585_v51 = vor.u32 %v8858_v13, %v7584_v47  ;;  %v8856_v39 = vld [vmem:[%s13476_s5 + $0x6c] sm:$0xf]  ;;  %v7546_v47 = vld [vmem:[%s13476_s5 + $0x30] sm:$0xf0]  ;;  %v7552_v13 = vld [vmem:[%s13476_s5 + $0x28] sm:$0xf] }
 0x5c8   :  { %3754 = vmatpush.bf16.msrb.mxu1 %v7613_v22  ;;  %v7586_v22 = vld [vmem:[%s13476_s5 + $0x78] sm:$0xf0]  ;;  %3744 = vmatpush.bf16.msrb.mxu0 %v7561_v5  ;;  %v7530_v5 = vld [vmem:[%s13476_s5 + $0x10] sm:$0xf0] }
 0x5c9   :  { %3767 = vmatpush.bf16.msra.mxu2 %v7617_v2  ;;  %v12006_v2 = vperm.slane %v11909_v31, 3  ;;  %v7589_v63 = vor.u32 %v8856_v39, %v7586_v22  ;;  %v7554_v39 = vld [vmem:[%s13476_s5 + $0x38] sm:$0xf0] }
 0x5cb   :  { %3782 = vmatpush.bf16.msra.mxu3 %v7589_v63 }
 0x5cc   :  { %v11822_v34 = vpop.f32.mrf.mxu0  ;;  %v11836_v46 = vpop.f32.mrf.mxu3  ;;  %3755 = vmatpush.bf16.msrb.mxu1 %v7597_v62  ;;  %v7565_v62 = vor.u32 %v8851_v0, %v7562_v48  ;;  %v8845_v0 = vld [vmem:[%s13476_s5 + $0xc] sm:$0xf0]  ;;  %3745 = vmatpush.bf16.msrb.mxu0 %v7545_v55  ;;  %v7536_v48 = vld [vmem:[%s13476_s5 + $0x8] sm:$0xf] }
 0x5cd   :  { %3768 = vmatpush.bf16.msra.mxu2 %v7601_v1  ;;  %v7568_v1 = vld [vmem:[%s13476_s5 + $0x48] sm:$0xf] }
 0x5ce   :  { %v7569_v45 = vor.u32 %v8854_v3, %v7568_v1 }
 0x5cf   :  { %v11848_v33 = vpop.f32.mrf.mxu1 }
 0x5d0   :  { %3756 = vmatpush.bf16.msrb.mxu1 %v7581_v36  ;;  %v8850_v36 = vld [vmem:[%s13476_s5 + $0x34] sm:$0xf0] }
 0x5d1   :  { %3769 = vmatpush.bf16.msra.mxu2 %v7585_v51  ;;  %v8848_v51 = vld [vmem:[%s13476_s5 + $0x2c] sm:$0xf]  ;;  %v7553_v63 = vor.u32 %v8850_v36, %v7552_v13 }
 0x5d2   :  { %v7557_v8 = vor.u32 %v8848_v51, %v7554_v39 }
 0x5d4   :  { %v11830_v20 = vpop.f32.mrf.mxu0  ;;  %v11844_v23 = vpop.f32.mrf.mxu3  ;;  %3757 = vmatpush.bf16.msrb.mxu1 %v7565_v62  ;;  %v8846_v62 = vld [vmem:[%s13476_s5 + $0x14] sm:$0xf0] }
 0x5d5   :  { %3770 = vmatpush.bf16.msra.mxu2 %v7569_v45  ;;  %v7538_v45 = vld [vmem:[%s13476_s5 + $0x18] sm:$0xf0]  ;;  %v7537_v41 = vor.u32 %v8846_v62, %v7536_v48 }
 0x5d6   :  { %3426 = vmatmul.bf16.vlgmr.msra.gmra.mxu0 %v9378_v43  ;;  %3439 = vmatmul.bf16.vlgmr.msra.gmra.mxu1 %v9378_v43 }
 0x5d7   :  { %3452 = vmatmul.bf16.vlgmr.msrb.gmra.mxu2 %v9378_v43  ;;  %3465 = vmatmul.bf16.vlgmr.msrb.gmra.mxu3 %v9378_v43  ;;  %v11826_v43 = vpop.f32.mrf.mxu2 }
 0x5d9   :  { %3771 = vmatpush.bf16.msra.mxu2 %v7553_v63 }
 0x5dc   :  { %v11838_v15 = vpop.f32.mrf.mxu0  ;;  %v11861_v59 = vpop.f32.mrf.mxu3 }
 0x5dd   :  { %3772 = vmatpush.bf16.msra.mxu2 %v7537_v41 }
 0x5df   :  { %v11834_v49 = vpop.f32.mrf.mxu2 }
 0x5e4   :  { %v11846_v6 = vpop.f32.mrf.mxu0 }
 0x5e7   :  { %v11842_v54 = vpop.f32.mrf.mxu2 }
 0x5ef   :  { %v11859_v44 = vpop.f32.mrf.mxu2 }
 0x643   :  { %v11872_v27 = vpop.f32.mrf.mxu0  ;;  %v11874_v61 = vpop.f32.mrf.mxu1 }
 0x64a   :  { %v11920_v21 = vpop.f32.mrf.mxu2  ;;  %v11922_v32 = vpop.f32.mrf.mxu3 }
 0x64b   :  { %v11933_v7 = vpop.f32.mrf.mxu0  ;;  %v11935_v14 = vpop.f32.mrf.mxu1 }
 0x652   :  { %v11986_v11 = vpop.f32.mrf.mxu2  ;;  %v11988_v19 = vpop.f32.mrf.mxu3 }
 0x653   :  { %v3427_v16 = vpop.f32.mrf.mxu0  ;;  %v3440_v38 = vpop.f32.mrf.mxu1 }
 0x654   :  { %v3470_v50 = vadd.f32 %v3427_v16, %v3080_v10  ;;  %v3471_v53 = vadd.f32 %v3440_v38, %v3109_v30  ;;  %v3167_v10 = vadd.f32 %v11812_v18, %v12006_v2  ;;  %v7573_v30 = vor.u32 %v8852_v17, %v7570_v57  ;;  %v8844_v17 = vld [vmem:[%s13476_s5 + $0xc] sm:$0xf] }
 0x655   :  { %v7549_v18 = vor.u32 %v8847_v35, %v7546_v47  ;;  %v12083_v35 = vperm.slane %v11909_v31, 2 }
 0x656   :  { %v7523_v37 = vmul.f32 -1.442695, %v3470_v50  ;;  %v7524_v56 = vmul.f32 -1.442695, %v3471_v53  ;;  %3783 = vmatpush.bf16.msra.mxu3 %v7573_v30  ;;  %v7541_v30 = vor.u32 %v8844_v17, %v7538_v45 }
 0x657   :  { %3758 = vmatpush.bf16.msrb.mxu1 %v7549_v18  ;;  %v3138_v18 = vadd.f32 %v11810_v40, %v12083_v35 }
 0x658   :  { %9218 = vpow2.f32 %v7523_v37  ;;  %v8843_v37 = vld [vmem:[%s13476_s5 + $0x4] sm:$0xf] }
 0x659   :  { %9220 = vpow2.f32 %v7524_v56  ;;  %v7529_v56 = vor.u32 %v8845_v0, %v7528_v25  ;;  %v7533_v3 = vor.u32 %v8843_v37, %v7530_v5 }
 0x65a   :  { %v3453_v16 = vpop.f32.mrf.mxu2  ;;  %v3466_v38 = vpop.f32.mrf.mxu3  ;;  %3784 = vmatpush.bf16.msra.mxu3 %v7557_v8 }
 0x65b   :  { %v3473_v22 = vadd.f32 %v3466_v38, %v3167_v10  ;;  %v3429_v50 = vpop.f32.mrf.mxu0  ;;  %v3442_v53 = vpop.f32.mrf.mxu1  ;;  %3746 = vmatpush.bf16.msrb.mxu0 %v7529_v56  ;;  %3759 = vmatpush.bf16.msrb.mxu1 %v7533_v3  ;;  %v3472_v39 = vadd.f32 %v3453_v16, %v3138_v18 }
 0x65d   :  { %v7525_v1 = vmul.f32 -1.442695, %v3473_v22 }
 0x65e   :  { %v9219_v57 = vpop.eup %9218  ;;  %3785 = vmatpush.bf16.msra.mxu3 %v7541_v30 }
 0x65f   :  { %v9221_v4 = vpop.eup %9220  ;;  %v3477_v10 = vadd.f32 1.0, %v9219_v57  ;;  %9222 = vpow2.f32 %v7525_v1 }
 0x660   :  { %v3496_v55 = vadd.f32 1.0, %v9221_v4 }
 0x661   :  { %9224 = vrcp.f32 %v3477_v10  ;;  %v3489_v8 = vand.u32 2147483648, %v3477_v10  ;;  %v3487_v37 = vand.u32 2147483647, %v3477_v10  ;;  %vm3483_vm3 = vweird.f32 %v3477_v10 }
 0x662   :  { %9226 = vrcp.f32 %v3496_v55  ;;  %v3468_v47 = vpop.f32.mrf.mxu3  ;;  %v3455_v13 = vpop.f32.mrf.mxu2  ;;  %v3508_v25 = vand.u32 2147483648, %v3496_v55  ;;  %v3506_v5 = vand.u32 2147483647, %v3496_v55  ;;  %vm3502_vm4 = vweird.f32 %v3496_v55 }
 0x663   :  { %v3490_v16 = vor.u32 1.1754944e-38, %v3489_v8  ;;  %vm3488_vm6 = vcmp.eq.f32.partialorder %v3487_v37, 8.507059e+37  ;;  %v7771_v8 = vld [vmem:[%s13476_s5 + $0xe0] sm:$0xf]  ;;  %v7773_v37 = vld [vmem:[%s13476_s5 + $0xf0] sm:$0xf0] }
 0x664   :  { %v3509_v3 = vor.u32 1.1754944e-38, %v3508_v25  ;;  %vm3507_vm8 = vcmp.eq.f32.partialorder %v3506_v5, 8.507059e+37  ;;  %v8903_v25 = vld [vmem:[%s13476_s5 + $0xe4] sm:$0xf]  ;;  %v8906_v5 = vld [vmem:[%s13476_s5 + $0xf4] sm:$0xf0] }
 0x665   :  { %v9223_v38 = vpop.eup %9222 }
 0x666   :  { %v3516_v36 = vadd.f32 1.0, %v9223_v38 }
 0x667   :  { %v9225_v51 = vpop.eup %9224 }
 0x668   :  { %v9227_v22 = vpop.eup %9226  ;;  %v3479_v50 = vmul.f32 %v9225_v51, %v3477_v10  ;;  %9228 = vrcp.f32 %v3516_v36  ;;  %vm3484_vm1 = vweird.f32 %v9225_v51  ;;  %vm3522_vm10 = vweird.f32 %v3516_v36 }
 0x669   :  { %v3498_v53 = vmul.f32 %v9227_v22, %v3496_v55  ;;  %9230 = vtanh.f32 %v3472_v39  ;;  %vm3503_vm2 = vweird.f32 %v9227_v22  ;;  %vm3485_vm5 = vmor %vm3483_vm3, %vm3484_vm1  ;;  %v3528_v55 = vand.u32 2147483648, %v3516_v36 }
 0x66a   :  { %v3480_v31 = vsub.f32 1.0, %v3479_v50  ;;  %vm3504_vm7 = vmor %vm3502_vm4, %vm3503_vm2 }
 0x66b   :  { %v3499_v63 = vsub.f32 1.0, %v3498_v53  ;;  %v3529_v50 = vor.u32 1.1754944e-38, %v3528_v55 }
 0x66c   :  { %v3481_v0 = vmul.f32 %v9225_v51, %v3480_v31 }
 0x66d   :  { %v3500_v56 = vmul.f32 %v9227_v22, %v3499_v63 }
 0x66e   :  { %v9229_v48 = vpop.eup %9228  ;;  %v3482_v40 = vadd.f32 %v9225_v51, %v3481_v0 }
 0x66f   :  { %v3501_v62 = vadd.f32 %v9227_v22, %v3500_v56  ;;  %v3518_v1 = vmul.f32 %v9229_v48, %v3516_v36  ;;  %v9231_v45 = vpop.eup %9230  ;;  %vm3523_vm9 = vweird.f32 %v9229_v48  ;;  %v7779_v56 = vld [vmem:[%s13476_s5 + $0xe8] sm:$0xf] }
 0x670   :  { %v3486_v17 = vsel %vm3485_vm5, %v9225_v51, %v3482_v40  ;;  %v3526_v51 = vand.u32 2147483647, %v3516_v36  ;;  %vm3524_vm11 = vmor %vm3522_vm10, %vm3523_vm9  ;;  %v8905_v36 = vld [vmem:[%s13476_s5 + $0xec] sm:$0xf0]  ;;  %v7780_v40 = vor.u32 %v8906_v5, %v7779_v56  ;;  %v7723_v5 = vld [vmem:[%s13476_s5 + $0x80] sm:$0xf] }
 0x671   :  { %v3491_v57 = vsel %vm3488_vm6, %v3490_v16, %v3486_v17  ;;  %v3505_v41 = vsel %vm3504_vm7, %v9227_v22, %v3501_v62  ;;  %v3519_v4 = vsub.f32 1.0, %v3518_v1  ;;  %v7772_v0 = vor.u32 %v8905_v36, %v7771_v8  ;;  %v8904_v16 = vld [vmem:[%s13476_s5 + $0xec] sm:$0xf]  ;;  %v7781_v62 = vld [vmem:[%s13476_s5 + $0xf8] sm:$0xf0] }
 0x672   :  { %v3510_v30 = vsel %vm3507_vm8, %v3509_v3, %v3505_v41  ;;  %v3534_v47 = vmul.f32 %v9231_v45, %v3491_v57  ;;  %vm3527_vm12 = vcmp.eq.f32.partialorder %v3526_v51, 8.507059e+37  ;;  %v7784_v1 = vor.u32 %v8904_v16, %v7781_v62  ;;  %4086 = vmatpush.bf16.msrb.mxu2 %v7780_v40  ;;  %v7755_v3 = vld [vmem:[%s13476_s5 + $0xc0] sm:$0xf]  ;;  %v8901_v17 = vld [vmem:[%s13476_s5 + $0xcc] sm:$0xf0] }
 0x673   :  { %v3533_v13 = vmul.f32 0.0, %v3510_v30  ;;  %v3520_v38 = vmul.f32 %v9229_v48, %v3519_v4  ;;  %4060 = vmatpush.bf16.msra.mxu0 %v7772_v0  ;;  %v8899_v45 = vld [vmem:[%s13476_s5 + $0xc4] sm:$0xf]  ;;  %v7756_v57 = vor.u32 %v8901_v17, %v7755_v3  ;;  %v7757_v41 = vld [vmem:[%s13476_s5 + $0xd0] sm:$0xf0] }
 0x674   :  { %4099 = vmatpush.bf16.msrb.mxu3 %v7784_v1  ;;  %v7763_v4 = vld [vmem:[%s13476_s5 + $0xc8] sm:$0xf]  ;;  %v8902_v30 = vld [vmem:[%s13476_s5 + $0xd4] sm:$0xf0]  ;;  %v7739_v51 = vld [vmem:[%s13476_s5 + $0xa0] sm:$0xf] }
 0x675   :  { %v12087_v18 = vadd.f32 %v3534_v47, %v3533_v13  ;;  %v3521_v10 = vadd.f32 %v9229_v48, %v3520_v38  ;;  %v7760_v47 = vor.u32 %v8899_v45, %v7757_v41  ;;  %v7764_v13 = vor.u32 %v8902_v30, %v7763_v4  ;;  %v8900_v38 = vld [vmem:[%s13476_s5 + $0xcc] sm:$0xf]  ;;  %v8898_v8 = vld [vmem:[%s13476_s5 + $0xb4] sm:$0xf0]  ;;  %v8891_v40 = vld [vmem:[%s13476_s5 + $0x84] sm:$0xf] }
 0x676   :  { %v8896_v0 = vld [vmem:[%s13476_s5 + $0xac] sm:$0xf]  ;;  %v7725_v62 = vld [vmem:[%s13476_s5 + $0x90] sm:$0xf0]  ;;  %v7731_v1 = vld [vmem:[%s13476_s5 + $0x88] sm:$0xf] }
 0x677   :  { %9232 = vtanh.f32 %v12087_v18  ;;  %v3525_v39 = vsel %vm3524_vm11, %v9229_v48, %v3521_v10  ;;  %v7776_v48 = vor.u32 %v8903_v25, %v7773_v37  ;;  %v7765_v10 = vld [vmem:[%s13476_s5 + $0xd8] sm:$0xf0]  ;;  %4061 = vmatpush.bf16.msra.mxu0 %v7756_v57  ;;  %4087 = vmatpush.bf16.msrb.mxu2 %v7764_v13  ;;  %v8894_v3 = vld [vmem:[%s13476_s5 + $0x94] sm:$0xf0]  ;;  %v7728_v17 = vor.u32 %v8891_v40, %v7725_v62  ;;  %v8892_v57 = vld [vmem:[%s13476_s5 + $0x8c] sm:$0xf] }
 0x678   :  { %v3530_v53 = vsel %vm3527_vm12, %v3529_v50, %v3525_v39  ;;  %v7768_v55 = vor.u32 %v8900_v38, %v7765_v10  ;;  %v8897_v39 = vld [vmem:[%s13476_s5 + $0xac] sm:$0xf0]  ;;  %v8895_v50 = vld [vmem:[%s13476_s5 + $0xa4] sm:$0xf]  ;;  %v7749_v37 = vld [vmem:[%s13476_s5 + $0xb8] sm:$0xf0]  ;;  %v7732_v45 = vor.u32 %v8894_v3, %v7731_v1  ;;  %v3082_v38 = vadd.f32 %v11814_v26, %v11944_v52 }
 0x679   :  { %4073 = vmatpush.bf16.msra.mxu1 %v7776_v48  ;;  %v7752_v56 = vor.u32 %v8896_v0, %v7749_v37  ;;  %v8893_v48 = vld [vmem:[%s13476_s5 + $0x8c] sm:$0xf0]  ;;  %v7733_v41 = vld [vmem:[%s13476_s5 + $0x98] sm:$0xf0]  ;;  %v7707_v30 = vld [vmem:[%s13476_s5 + $0x60] sm:$0xf]  ;;  %v3111_v10 = vadd.f32 %v11816_v58, %v11947_v60 }
 0x67a   :  { %4100 = vmatpush.bf16.msrb.mxu3 %v7768_v55  ;;  %v7724_v16 = vor.u32 %v8893_v48, %v7723_v5  ;;  %v7736_v4 = vor.u32 %v8892_v57, %v7733_v41  ;;  %v8887_v13 = vld [vmem:[%s13476_s5 + $0x64] sm:$0xf]  ;;  %v8888_v58 = vld [vmem:[%s13476_s5 + $0x6c] sm:$0xf]  ;;  %v7691_v37 = vld [vmem:[%s13476_s5 + $0x40] sm:$0xf] }
 0x67b   :  { %v8883_v5 = vld [vmem:[%s13476_s5 + $0x44] sm:$0xf]  ;;  %v7693_v62 = vld [vmem:[%s13476_s5 + $0x50] sm:$0xf0]  ;;  %v7699_v3 = vld [vmem:[%s13476_s5 + $0x48] sm:$0xf] }
 0x67c   :  { %v7696_v1 = vor.u32 %v8883_v5, %v7693_v62  ;;  %v7701_v41 = vld [vmem:[%s13476_s5 + $0x58] sm:$0xf0] }
 0x67d   :  { %v9233_v22 = vpop.eup %9232  ;;  %4074 = vmatpush.bf16.msra.mxu1 %v7760_v47  ;;  %v8889_v47 = vld [vmem:[%s13476_s5 + $0x6c] sm:$0xf0] }
 0x67e   :  { %v12090_v31 = vmul.f32 %v9233_v22, %v3530_v53  ;;  %v7740_v22 = vor.u32 %v8897_v39, %v7739_v51  ;;  %v7741_v53 = vld [vmem:[%s13476_s5 + $0xb0] sm:$0xf0]  ;;  %4101 = vmatpush.bf16.msrb.mxu3 %v7752_v56  ;;  %v7708_v55 = vor.u32 %v8889_v47, %v7707_v30  ;;  %v7715_v39 = vld [vmem:[%s13476_s5 + $0x68] sm:$0xf]  ;;  %v8885_v56 = vld [vmem:[%s13476_s5 + $0x4c] sm:$0xf0]  ;;  %v3169_v47 = vadd.f32 %v11820_v29, %v12006_v2 }
 0x67f   :  { %v7744_v36 = vor.u32 %v8895_v50, %v7741_v53  ;;  %v7709_v51 = vld [vmem:[%s13476_s5 + $0x70] sm:$0xf0]  ;;  %v8890_v50 = vld [vmem:[%s13476_s5 + $0x74] sm:$0xf0]  ;;  %v8881_v30 = vld [vmem:[%s13476_s5 + $0x2c] sm:$0xf0] }
 0x680   :  { %v3546_v63 = vpack.c.bf16 %v12090_v31, %v12090_v31  ;;  %4062 = vmatpush.bf16.msra.mxu0 %v7740_v22  ;;  %v7712_v26 = vor.u32 %v8887_v13, %v7709_v51  ;;  %v7683_v51 = vld [vmem:[%s13476_s5 + $0x28] sm:$0xf] }
 0x681   :  { %4075 = vmatpush.bf16.msra.mxu1 %v7744_v36 }
 0x682   :  { %3747 = vmatmul.bf16.vlgmr.msrb.gmra.mxu0 %v3546_v63  ;;  %3760 = vmatmul.bf16.vlgmr.msrb.gmra.mxu1 %v3546_v63 }
 0x683   :  { %3773 = vmatmul.bf16.vlgmr.msra.gmra.mxu2 %v3546_v63  ;;  %3786 = vmatmul.bf16.vlgmr.msra.gmra.mxu3 %v3546_v63  ;;  %v7747_v63 = vld [vmem:[%s13476_s5 + $0xa8] sm:$0xf] }
 0x684   :  { %v7748_v25 = vor.u32 %v8898_v8, %v7747_v63  ;;  %4063 = vmatpush.bf16.msra.mxu0 %v7724_v16  ;;  %4102 = vmatpush.bf16.msrb.mxu3 %v7736_v4  ;;  %v7716_v63 = vor.u32 %v8890_v50, %v7715_v39  ;;  %v7717_v8 = vld [vmem:[%s13476_s5 + $0x78] sm:$0xf0]  ;;  %v7692_v16 = vor.u32 %v8885_v56, %v7691_v37  ;;  %v7675_v4 = vld [vmem:[%s13476_s5 + $0x20] sm:$0xf]  ;;  %v8877_v37 = vld [vmem:[%s13476_s5 + $0xc] sm:$0xf0] }
 0x685   :  { %4076 = vmatpush.bf16.msra.mxu1 %v7728_v17  ;;  %v7720_v0 = vor.u32 %v8888_v58, %v7717_v8  ;;  %v8886_v17 = vld [vmem:[%s13476_s5 + $0x54] sm:$0xf0]  ;;  %v8875_v56 = vld [vmem:[%s13476_s5 + $0x4] sm:$0xf] }
 0x686   :  { %4088 = vmatpush.bf16.msrb.mxu2 %v7748_v25  ;;  %v7700_v57 = vor.u32 %v8886_v17, %v7699_v3  ;;  %v8876_v3 = vld [vmem:[%s13476_s5 + $0xc] sm:$0xf]  ;;  %v7669_v17 = vld [vmem:[%s13476_s5 + $0x18] sm:$0xf0] }
 0x688   :  { %4064 = vmatpush.bf16.msra.mxu0 %v7708_v55  ;;  %4103 = vmatpush.bf16.msrb.mxu3 %v7720_v0  ;;  %v7677_v55 = vld [vmem:[%s13476_s5 + $0x30] sm:$0xf0]  ;;  %v7659_v0 = vld [vmem:[%s13476_s5] sm:$0xf] }
 0x689   :  { %4077 = vmatpush.bf16.msra.mxu1 %v7712_v26  ;;  %v7685_v26 = vld [vmem:[%s13476_s5 + $0x38] sm:$0xf0]  ;;  %v7660_v5 = vor.u32 %v8877_v37, %v7659_v0 }
 0x68a   :  { %4089 = vmatpush.bf16.msrb.mxu2 %v7732_v45  ;;  %v8884_v45 = vld [vmem:[%s13476_s5 + $0x4c] sm:$0xf] }
 0x68b   :  { %v7704_v13 = vor.u32 %v8884_v45, %v7701_v41 }
 0x68c   :  { %4065 = vmatpush.bf16.msra.mxu0 %v7692_v16  ;;  %v8878_v16 = vld [vmem:[%s13476_s5 + $0x14] sm:$0xf0] }
 0x68d   :  { %4078 = vmatpush.bf16.msra.mxu1 %v7696_v1  ;;  %4104 = vmatpush.bf16.msrb.mxu3 %v7704_v13 }
 0x68e   :  { %4090 = vmatpush.bf16.msrb.mxu2 %v7716_v63 }
 0x692   :  { %4091 = vmatpush.bf16.msrb.mxu2 %v7700_v57 }
 0x6ff   :  { %v3748_v22 = vpop.f32.mrf.mxu0  ;;  %v3761_v53 = vpop.f32.mrf.mxu1 }
 0x700   :  { %v3791_v36 = vadd.f32 %v3748_v22, %v3082_v38  ;;  %v3792_v25 = vadd.f32 %v3761_v53, %v3111_v10  ;;  %v7676_v38 = vor.u32 %v8881_v30, %v7675_v4  ;;  %v8879_v10 = vld [vmem:[%s13476_s5 + $0x24] sm:$0xf]  ;;  %v8882_v22 = vld [vmem:[%s13476_s5 + $0x34] sm:$0xf0]  ;;  %v8880_v53 = vld [vmem:[%s13476_s5 + $0x2c] sm:$0xf]  ;;  %v7672_v30 = vor.u32 %v8876_v3, %v7669_v17 }
 0x701   :  { %v7680_v29 = vor.u32 %v8879_v10, %v7677_v55  ;;  %v3140_v55 = vadd.f32 %v11818_v28, %v12083_v35 }
 0x702   :  { %v7654_v48 = vmul.f32 -1.442695, %v3791_v36  ;;  %v7655_v40 = vmul.f32 -1.442695, %v3792_v25  ;;  %v7684_v36 = vor.u32 %v8882_v22, %v7683_v51  ;;  %v7688_v25 = vor.u32 %v8880_v53, %v7685_v26  ;;  %4066 = vmatpush.bf16.msra.mxu0 %v7676_v38 }
 0x703   :  { %4079 = vmatpush.bf16.msra.mxu1 %v7680_v29 }
 0x704   :  { %9234 = vpow2.f32 %v7654_v48  ;;  %v7661_v48 = vld [vmem:[%s13476_s5 + $0x10] sm:$0xf0]  ;;  %4092 = vmatpush.bf16.msrb.mxu2 %v7684_v36  ;;  %4105 = vmatpush.bf16.msrb.mxu3 %v7688_v25 }
 0x705   :  { %9236 = vpow2.f32 %v7655_v40  ;;  %v7667_v40 = vld [vmem:[%s13476_s5 + $0x8] sm:$0xf]  ;;  %v7664_v1 = vor.u32 %v8875_v56, %v7661_v48 }
 0x706   :  { %v3774_v39 = vpop.f32.mrf.mxu2  ;;  %v3787_v50 = vpop.f32.mrf.mxu3  ;;  %v7668_v57 = vor.u32 %v8878_v16, %v7667_v40  ;;  %4067 = vmatpush.bf16.msra.mxu0 %v7660_v5 }
 0x707   :  { %v3794_v63 = vadd.f32 %v3787_v50, %v3169_v47  ;;  %v3750_v58 = vpop.f32.mrf.mxu0  ;;  %v3763_v8 = vpop.f32.mrf.mxu1  ;;  %4080 = vmatpush.bf16.msra.mxu1 %v7664_v1  ;;  %v3793_v29 = vadd.f32 %v3774_v39, %v3140_v55 }
 0x708   :  { %4093 = vmatpush.bf16.msrb.mxu2 %v7668_v57  ;;  %4106 = vmatpush.bf16.msrb.mxu3 %v7672_v30 }
 0x709   :  { %v7656_v62 = vmul.f32 -1.442695, %v3794_v63 }
 0x70a   :  { %v9235_v45 = vpop.eup %9234 }
 0x70b   :  { %v9237_v41 = vpop.eup %9236  ;;  %v3798_v4 = vadd.f32 1.0, %v9235_v45  ;;  %9238 = vpow2.f32 %v7656_v62 }
 0x70c   :  { %v3817_v47 = vadd.f32 1.0, %v9237_v41 }
 0x70d   :  { %9240 = vrcp.f32 %v3798_v4  ;;  %v3810_v8 = vand.u32 2147483648, %v3798_v4  ;;  %v3808_v0 = vand.u32 2147483647, %v3798_v4  ;;  %vm3804_vm15 = vweird.f32 %v3798_v4 }
 0x70e   :  { %9242 = vrcp.f32 %v3817_v47  ;;  %v3776_v13 = vpop.f32.mrf.mxu2  ;;  %v3789_v38 = vpop.f32.mrf.mxu3  ;;  %v3829_v36 = vand.u32 2147483648, %v3817_v47  ;;  %v3827_v56 = vand.u32 2147483647, %v3817_v47  ;;  %vm3823_vm0 = vweird.f32 %v3817_v47 }
 0x70f   :  { %v3811_v39 = vor.u32 1.1754944e-38, %v3810_v8  ;;  %vm3809_vm3 = vcmp.eq.f32.partialorder %v3808_v0, 8.507059e+37  ;;  %v7904_v8 = vld [vmem:[%s13476_s5 + $0xf0] sm:$0xf0] }
 0x710   :  { %v3830_v16 = vor.u32 1.1754944e-38, %v3829_v36  ;;  %vm3828_vm4 = vcmp.eq.f32.partialorder %v3827_v56, 8.507059e+37  ;;  %v7910_v36 = vld [vmem:[%s13476_s5 + $0xe8] sm:$0xf]  ;;  %v8936_v56 = vld [vmem:[%s13476_s5 + $0xec] sm:$0xf] }
 0x711   :  { %v9239_v10 = vpop.eup %9238 }
 0x712   :  { %v3837_v51 = vadd.f32 1.0, %v9239_v10 }
 0x713   :  { %v9241_v50 = vpop.eup %9240 }
 0x714   :  { %v9243_v22 = vpop.eup %9242  ;;  %v3800_v53 = vmul.f32 %v9241_v50, %v3798_v4  ;;  %9244 = vrcp.f32 %v3837_v51  ;;  %vm3805_vm13 = vweird.f32 %v9241_v50  ;;  %v3849_v38 = vand.u32 2147483648, %v3837_v51 }
 0x715   :  { %v3819_v26 = vmul.f32 %v9243_v22, %v3817_v47  ;;  %9246 = vtanh.f32 %v3793_v29  ;;  %vm3824_vm14 = vweird.f32 %v9243_v22  ;;  %vm3806_vm1 = vmor %vm3804_vm15, %vm3805_vm13  ;;  %vm3843_vm6 = vweird.f32 %v3837_v51 }
 0x716   :  { %v3801_v63 = vsub.f32 1.0, %v3800_v53  ;;  %vm3825_vm2 = vmor %vm3823_vm0, %vm3824_vm14  ;;  %v3847_v10 = vand.u32 2147483647, %v3837_v51 }
 0x717   :  { %v3820_v58 = vsub.f32 1.0, %v3819_v26  ;;  %v7902_v26 = vld [vmem:[%s13476_s5 + $0xe0] sm:$0xf] }
 0x718   :  { %v3802_v25 = vmul.f32 %v9241_v50, %v3801_v63  ;;  %vm3848_vm8 = vcmp.eq.f32.partialorder %v3847_v10, 8.507059e+37  ;;  %v8935_v63 = vld [vmem:[%s13476_s5 + $0xe4] sm:$0xf] }
 0x719   :  { %v3821_v37 = vmul.f32 %v9243_v22, %v3820_v58  ;;  %v7907_v0 = vor.u32 %v8935_v63, %v7904_v8  ;;  %v8925_v8 = vld [vmem:[%s13476_s5 + $0x8c] sm:$0xf0] }
 0x71a   :  { %v9245_v5 = vpop.eup %9244  ;;  %v3803_v28 = vadd.f32 %v9241_v50, %v3802_v25  ;;  %v8938_v25 = vld [vmem:[%s13476_s5 + $0xf4] sm:$0xf0] }
 0x71b   :  { %v3822_v48 = vadd.f32 %v9243_v22, %v3821_v37  ;;  %v3839_v40 = vmul.f32 %v9245_v5, %v3837_v51  ;;  %v9247_v1 = vpop.eup %9246  ;;  %vm3844_vm5 = vweird.f32 %v9245_v5  ;;  %v8937_v51 = vld [vmem:[%s13476_s5 + $0xec] sm:$0xf0]  ;;  %v7911_v37 = vor.u32 %v8938_v25, %v7910_v36  ;;  %4394 = vmatpush.bf16.msrb.mxu1 %v7907_v0  ;;  %v8923_v36 = vld [vmem:[%s13476_s5 + $0x84] sm:$0xf]  ;;  %v7856_v0 = vld [vmem:[%s13476_s5 + $0x90] sm:$0xf0] }
 0x71c   :  { %v3807_v62 = vsel %vm3806_vm1, %v9241_v50, %v3803_v28  ;;  %vm3845_vm7 = vmor %vm3843_vm6, %vm3844_vm5  ;;  %v3850_v50 = vor.u32 1.1754944e-38, %v3849_v38  ;;  %v7903_v58 = vor.u32 %v8937_v51, %v7902_v26  ;;  %v8927_v38 = vld [vmem:[%s13476_s5 + $0xa4] sm:$0xf]  ;;  %v8928_v26 = vld [vmem:[%s13476_s5 + $0xac] sm:$0xf] }
 0x71d   :  { %v3812_v3 = vsel %vm3809_vm3, %v3811_v39, %v3807_v62  ;;  %v3826_v17 = vsel %vm3825_vm2, %v9243_v22, %v3822_v48  ;;  %v3840_v45 = vsub.f32 1.0, %v3839_v40  ;;  %4407 = vmatpush.bf16.msra.mxu2 %v7911_v37  ;;  %v7886_v39 = vld [vmem:[%s13476_s5 + $0xc0] sm:$0xf]  ;;  %v8933_v48 = vld [vmem:[%s13476_s5 + $0xcc] sm:$0xf0] }
 0x71e   :  { %v3831_v57 = vsel %vm3828_vm4, %v3830_v16, %v3826_v17  ;;  %v3855_v41 = vmul.f32 %v9247_v1, %v3812_v3  ;;  %4381 = vmatpush.bf16.msrb.mxu0 %v7903_v58  ;;  %v8931_v40 = vld [vmem:[%s13476_s5 + $0xc4] sm:$0xf]  ;;  %v7887_v16 = vor.u32 %v8933_v48, %v7886_v39  ;;  %v7888_v62 = vld [vmem:[%s13476_s5 + $0xd0] sm:$0xf0]  ;;  %v7894_v1 = vld [vmem:[%s13476_s5 + $0xc8] sm:$0xf] }
 0x71f   :  { %v3854_v30 = vmul.f32 %v3831_v57, %v12087_v18  ;;  %v3841_v13 = vmul.f32 %v9245_v5, %v3840_v45  ;;  %v8934_v3 = vld [vmem:[%s13476_s5 + $0xd4] sm:$0xf0]  ;;  %v7891_v17 = vor.u32 %v8931_v40, %v7888_v62  ;;  %v8932_v57 = vld [vmem:[%s13476_s5 + $0xcc] sm:$0xf]  ;;  %v7880_v51 = vld [vmem:[%s13476_s5 + $0xb8] sm:$0xf0] }
 0x720   :  { %v7895_v45 = vor.u32 %v8934_v3, %v7894_v1  ;;  %v7883_v63 = vor.u32 %v8928_v26, %v7880_v51  ;;  %v7854_v58 = vld [vmem:[%s13476_s5 + $0x80] sm:$0xf]  ;;  %v7862_v37 = vld [vmem:[%s13476_s5 + $0x88] sm:$0xf]  ;;  %v8924_v39 = vld [vmem:[%s13476_s5 + $0x8c] sm:$0xf]  ;;  %v3085_v3 = vadd.f32 %v11822_v34, %v11944_v52 }
 0x721   :  { %v12295_v4 = vadd.f32 %v3855_v41, %v3854_v30  ;;  %v3842_v47 = vadd.f32 %v9245_v5, %v3841_v13  ;;  %v7896_v41 = vld [vmem:[%s13476_s5 + $0xd8] sm:$0xf0]  ;;  %4395 = vmatpush.bf16.msrb.mxu1 %v7891_v17  ;;  %v7870_v13 = vld [vmem:[%s13476_s5 + $0xa0] sm:$0xf]  ;;  %v7855_v25 = vor.u32 %v8925_v8, %v7854_v58  ;;  %v8921_v62 = vld [vmem:[%s13476_s5 + $0x6c] sm:$0xf0]  ;;  %v3114_v17 = vadd.f32 %v11824_v9, %v11947_v60 }
 0x722   :  { %4382 = vmatpush.bf16.msrb.mxu0 %v7887_v16  ;;  %v7899_v30 = vor.u32 %v8932_v57, %v7896_v41  ;;  %4408 = vmatpush.bf16.msra.mxu2 %v7895_v45  ;;  %v7864_v48 = vld [vmem:[%s13476_s5 + $0x98] sm:$0xf0]  ;;  %v7838_v16 = vld [vmem:[%s13476_s5 + $0x60] sm:$0xf]  ;;  %v8919_v1 = vld [vmem:[%s13476_s5 + $0x64] sm:$0xf] }
 0x723   :  { %9248 = vtanh.f32 %v12295_v4  ;;  %v3846_v55 = vsel %vm3845_vm7, %v9245_v5, %v3842_v47  ;;  %v7912_v5 = vld [vmem:[%s13476_s5 + $0xf8] sm:$0xf0]  ;;  %v8929_v47 = vld [vmem:[%s13476_s5 + $0xac] sm:$0xf0]  ;;  %v7867_v40 = vor.u32 %v8924_v39, %v7864_v48  ;;  %v7839_v45 = vor.u32 %v8921_v62, %v7838_v16  ;;  %v7840_v57 = vld [vmem:[%s13476_s5 + $0x70] sm:$0xf0] }
 0x724   :  { %v3851_v22 = vsel %vm3848_vm8, %v3850_v50, %v3846_v55  ;;  %v7915_v28 = vor.u32 %v8936_v56, %v7912_v5  ;;  %v7871_v10 = vor.u32 %v8929_v47, %v7870_v13  ;;  %v7872_v55 = vld [vmem:[%s13476_s5 + $0xb0] sm:$0xf0]  ;;  %v7878_v50 = vld [vmem:[%s13476_s5 + $0xa8] sm:$0xf]  ;;  %v8926_v56 = vld [vmem:[%s13476_s5 + $0x94] sm:$0xf0]  ;;  %v7859_v5 = vor.u32 %v8923_v36, %v7856_v0 }
 0x725   :  { %v7846_v41 = vld [vmem:[%s13476_s5 + $0x68] sm:$0xf]  ;;  %v7843_v34 = vor.u32 %v8919_v1, %v7840_v57  ;;  %v8920_v9 = vld [vmem:[%s13476_s5 + $0x6c] sm:$0xf]  ;;  %v8915_v26 = vld [vmem:[%s13476_s5 + $0x44] sm:$0xf]  ;;  %v3172_v48 = vadd.f32 %v11828_v24, %v12006_v2 }
 0x726   :  { %4420 = vmatpush.bf16.msra.mxu3 %v7915_v28  ;;  %4383 = vmatpush.bf16.msrb.mxu0 %v7871_v10  ;;  %v7863_v28 = vor.u32 %v8926_v56, %v7862_v37  ;;  %v7848_v10 = vld [vmem:[%s13476_s5 + $0x78] sm:$0xf0]  ;;  %v7824_v8 = vld [vmem:[%s13476_s5 + $0x50] sm:$0xf0]  ;;  %v8918_v0 = vld [vmem:[%s13476_s5 + $0x54] sm:$0xf0] }
 0x727   :  { %v7827_v36 = vor.u32 %v8915_v26, %v7824_v8  ;;  %v8916_v37 = vld [vmem:[%s13476_s5 + $0x4c] sm:$0xf]  ;;  %v8913_v39 = vld [vmem:[%s13476_s5 + $0x2c] sm:$0xf0]  ;;  %v8911_v62 = vld [vmem:[%s13476_s5 + $0x24] sm:$0xf] }
 0x728   :  { %v7808_v1 = vld [vmem:[%s13476_s5 + $0x30] sm:$0xf0]  ;;  %v8914_v57 = vld [vmem:[%s13476_s5 + $0x34] sm:$0xf0]  ;;  %v7800_v8 = vld [vmem:[%s13476_s5 + $0x18] sm:$0xf0] }
 0x729   :  { %v9249_v29 = vpop.eup %9248  ;;  %v7811_v24 = vor.u32 %v8911_v62, %v7808_v1  ;;  %v8910_v26 = vld [vmem:[%s13476_s5 + $0x14] sm:$0xf0] }
 0x72a   :  { %v12298_v53 = vmul.f32 %v9249_v29, %v3851_v22  ;;  %4421 = vmatpush.bf16.msra.mxu3 %v7899_v30  ;;  %v8930_v29 = vld [vmem:[%s13476_s5 + $0xb4] sm:$0xf0]  ;;  %v7875_v22 = vor.u32 %v8927_v38, %v7872_v55  ;;  %4384 = vmatpush.bf16.msrb.mxu0 %v7855_v25  ;;  %v7830_v25 = vld [vmem:[%s13476_s5 + $0x48] sm:$0xf] }
 0x72b   :  { %v8922_v30 = vld [vmem:[%s13476_s5 + $0x74] sm:$0xf0]  ;;  %v7831_v56 = vor.u32 %v8918_v0, %v7830_v25 }
 0x72c   :  { %v3867_v18 = vpack.c.bf16 %v12298_v53, %v12298_v53  ;;  %4396 = vmatpush.bf16.msrb.mxu1 %v7875_v22  ;;  %v7847_v38 = vor.u32 %v8922_v30, %v7846_v41  ;;  %v7822_v22 = vld [vmem:[%s13476_s5 + $0x40] sm:$0xf]  ;;  %v8912_v41 = vld [vmem:[%s13476_s5 + $0x2c] sm:$0xf]  ;;  %v7816_v30 = vld [vmem:[%s13476_s5 + $0x38] sm:$0xf0] }
 0x72e   :  { %4068 = vmatmul.bf16.vlgmr.msra.gmra.mxu0 %v3867_v18  ;;  %4081 = vmatmul.bf16.vlgmr.msra.gmra.mxu1 %v3867_v18 }
 0x72f   :  { %4094 = vmatmul.bf16.vlgmr.msrb.gmra.mxu2 %v3867_v18  ;;  %4107 = vmatmul.bf16.vlgmr.msrb.gmra.mxu3 %v3867_v18  ;;  %v7879_v18 = vor.u32 %v8930_v29, %v7878_v50  ;;  %v7851_v29 = vor.u32 %v8920_v9, %v7848_v10  ;;  %v7819_v9 = vor.u32 %v8912_v41, %v7816_v30  ;;  %v7790_v10 = vld [vmem:[%s13476_s5] sm:$0xf] }
 0x730   :  { %4422 = vmatpush.bf16.msra.mxu3 %v7883_v63  ;;  %4397 = vmatpush.bf16.msrb.mxu1 %v7859_v5  ;;  %v7832_v5 = vld [vmem:[%s13476_s5 + $0x58] sm:$0xf0] }
 0x731   :  { %4409 = vmatpush.bf16.msra.mxu2 %v7879_v18  ;;  %4385 = vmatpush.bf16.msrb.mxu0 %v7839_v45  ;;  %v8917_v18 = vld [vmem:[%s13476_s5 + $0x4c] sm:$0xf0] }
 0x732   :  { %v7823_v58 = vor.u32 %v8917_v18, %v7822_v22  ;;  %v7792_v22 = vld [vmem:[%s13476_s5 + $0x10] sm:$0xf0]  ;;  %v7798_v18 = vld [vmem:[%s13476_s5 + $0x8] sm:$0xf] }
 0x733   :  { %v7799_v25 = vor.u32 %v8910_v26, %v7798_v18 }
 0x734   :  { %4423 = vmatpush.bf16.msra.mxu3 %v7867_v40  ;;  %4398 = vmatpush.bf16.msrb.mxu1 %v7843_v34  ;;  %v7835_v40 = vor.u32 %v8916_v37, %v7832_v5 }
 0x735   :  { %4410 = vmatpush.bf16.msra.mxu2 %v7863_v28  ;;  %4386 = vmatpush.bf16.msrb.mxu0 %v7823_v58  ;;  %v7806_v28 = vld [vmem:[%s13476_s5 + $0x20] sm:$0xf]  ;;  %v8908_v58 = vld [vmem:[%s13476_s5 + $0xc] sm:$0xf] }
 0x736   :  { %v7807_v16 = vor.u32 %v8913_v39, %v7806_v28 }
 0x738   :  { %4424 = vmatpush.bf16.msra.mxu3 %v7851_v29  ;;  %4399 = vmatpush.bf16.msrb.mxu1 %v7827_v36 }
 0x739   :  { %4411 = vmatpush.bf16.msra.mxu2 %v7847_v38  ;;  %4387 = vmatpush.bf16.msrb.mxu0 %v7807_v16 }
 0x73c   :  { %4425 = vmatpush.bf16.msra.mxu3 %v7835_v40  ;;  %4400 = vmatpush.bf16.msrb.mxu1 %v7811_v24  ;;  %v3143_v40 = vadd.f32 %v11826_v43, %v12083_v35 }
 0x73d   :  { %4412 = vmatpush.bf16.msra.mxu2 %v7831_v56  ;;  %v7803_v56 = vor.u32 %v8908_v58, %v7800_v8 }
 0x740   :  { %4426 = vmatpush.bf16.msra.mxu3 %v7819_v9 }
 0x744   :  { %4427 = vmatpush.bf16.msra.mxu3 %v7803_v56 }
 0x7ab   :  { %v4069_v13 = vpop.f32.mrf.mxu0  ;;  %v4082_v47 = vpop.f32.mrf.mxu1 }
 0x7ac   :  { %v4112_v55 = vadd.f32 %v4069_v13, %v3085_v3  ;;  %v4113_v50 = vadd.f32 %v4082_v47, %v3114_v17  ;;  %v7814_v3 = vld [vmem:[%s13476_s5 + $0x28] sm:$0xf] }
 0x7ad   :  { %v7815_v38 = vor.u32 %v8914_v57, %v7814_v3 }
 0x7ae   :  { %v7785_v51 = vmul.f32 -1.442695, %v4112_v55  ;;  %v7786_v63 = vmul.f32 -1.442695, %v4113_v50  ;;  %v8909_v55 = vld [vmem:[%s13476_s5 + $0xc] sm:$0xf0] }
 0x7af   :  { %v8907_v50 = vld [vmem:[%s13476_s5 + $0x4] sm:$0xf]  ;;  %v7791_v29 = vor.u32 %v8909_v55, %v7790_v10  ;;  %4413 = vmatpush.bf16.msra.mxu2 %v7815_v38 }
 0x7b0   :  { %9250 = vpow2.f32 %v7785_v51 }
 0x7b1   :  { %9252 = vpow2.f32 %v7786_v63  ;;  %v7795_v63 = vor.u32 %v8907_v50, %v7792_v22  ;;  %4388 = vmatpush.bf16.msrb.mxu0 %v7791_v29 }
 0x7b2   :  { %v4095_v17 = vpop.f32.mrf.mxu2  ;;  %v4108_v45 = vpop.f32.mrf.mxu3 }
 0x7b3   :  { %v4115_v13 = vadd.f32 %v4108_v45, %v3172_v48  ;;  %v4071_v47 = vpop.f32.mrf.mxu0  ;;  %v4084_v34 = vpop.f32.mrf.mxu1  ;;  %4401 = vmatpush.bf16.msrb.mxu1 %v7795_v63  ;;  %4414 = vmatpush.bf16.msra.mxu2 %v7799_v25  ;;  %v4114_v1 = vadd.f32 %v4095_v17, %v3143_v40 }
 0x7b5   :  { %v7787_v51 = vmul.f32 -1.442695, %v4115_v13 }
 0x7b6   :  { %v9251_v36 = vpop.eup %9250 }
 0x7b7   :  { %v9253_v0 = vpop.eup %9252  ;;  %v4119_v37 = vadd.f32 1.0, %v9251_v36  ;;  %9254 = vpow2.f32 %v7787_v51 }
 0x7b8   :  { %v4138_v5 = vadd.f32 1.0, %v9253_v0 }
 0x7b9   :  { %9256 = vrcp.f32 %v4119_v37  ;;  %v4131_v30 = vand.u32 2147483648, %v4119_v37  ;;  %v4129_v34 = vand.u32 2147483647, %v4119_v37  ;;  %vm4125_vm11 = vweird.f32 %v4119_v37 }
 0x7ba   :  { %9258 = vrcp.f32 %v4138_v5  ;;  %v4097_v28 = vpop.f32.mrf.mxu2  ;;  %v4110_v39 = vpop.f32.mrf.mxu3  ;;  %v4150_v13 = vand.u32 2147483648, %v4138_v5  ;;  %v4148_v9 = vand.u32 2147483647, %v4138_v5  ;;  %vm4144_vm12 = vweird.f32 %v4138_v5 }
 0x7bb   :  { %v4132_v17 = vor.u32 1.1754944e-38, %v4131_v30  ;;  %vm4130_vm15 = vcmp.eq.f32.partialorder %v4129_v34, 8.507059e+37  ;;  %v8043_v34 = vld [vmem:[%s13476_s5 + $0xf8] sm:$0xf0] }
 0x7bc   :  { %v4151_v29 = vor.u32 1.1754944e-38, %v4150_v13  ;;  %vm4149_vm0 = vcmp.eq.f32.partialorder %v4148_v9, 8.507059e+37  ;;  %v8017_v9 = vld [vmem:[%s13476_s5 + $0xc0] sm:$0xf] }
 0x7bd   :  { %v9255_v48 = vpop.eup %9254 }
 0x7be   :  { %v4158_v16 = vadd.f32 1.0, %v9255_v48 }
 0x7bf   :  { %v9257_v62 = vpop.eup %9256 }
 0x7c0   :  { %v9259_v3 = vpop.eup %9258  ;;  %v4121_v45 = vmul.f32 %v9257_v62, %v4119_v37  ;;  %9260 = vrcp.f32 %v4158_v16  ;;  %vm4126_vm9 = vweird.f32 %v9257_v62  ;;  %v4170_v56 = vand.u32 2147483648, %v4158_v16 }
 0x7c1   :  { %v4140_v24 = vmul.f32 %v9259_v3, %v4138_v5  ;;  %9262 = vtanh.f32 %v4114_v1  ;;  %vm4145_vm10 = vweird.f32 %v9259_v3  ;;  %vm4127_vm13 = vmor %vm4125_vm11, %vm4126_vm9  ;;  %vm4164_vm2 = vweird.f32 %v4158_v16  ;;  %v8033_v1 = vld [vmem:[%s13476_s5 + $0xe0] sm:$0xf] }
 0x7c2   :  { %v4122_v57 = vsub.f32 1.0, %v4121_v45  ;;  %vm4146_vm14 = vmor %vm4144_vm12, %vm4145_vm10  ;;  %v4168_v5 = vand.u32 2147483647, %v4158_v16  ;;  %v4171_v39 = vor.u32 1.1754944e-38, %v4170_v56  ;;  %v8009_v56 = vld [vmem:[%s13476_s5 + $0xa8] sm:$0xf] }
 0x7c3   :  { %v4141_v41 = vsub.f32 1.0, %v4140_v24  ;;  %v8035_v24 = vld [vmem:[%s13476_s5 + $0xf0] sm:$0xf0] }
 0x7c4   :  { %v4123_v47 = vmul.f32 %v9257_v62, %v4122_v57  ;;  %vm4169_vm4 = vcmp.eq.f32.partialorder %v4168_v5, 8.507059e+37  ;;  %v8041_v57 = vld [vmem:[%s13476_s5 + $0xe8] sm:$0xf]  ;;  %v8962_v5 = vld [vmem:[%s13476_s5 + $0xb4] sm:$0xf0] }
 0x7c5   :  { %v4142_v38 = vmul.f32 %v9259_v3, %v4141_v41  ;;  %v8970_v41 = vld [vmem:[%s13476_s5 + $0xf4] sm:$0xf0] }
 0x7c6   :  { %v9261_v10 = vpop.eup %9260  ;;  %v4124_v43 = vadd.f32 %v9257_v62, %v4123_v47  ;;  %v8042_v13 = vor.u32 %v8970_v41, %v8041_v57  ;;  %v8968_v47 = vld [vmem:[%s13476_s5 + $0xec] sm:$0xf]  ;;  %v7993_v57 = vld [vmem:[%s13476_s5 + $0x88] sm:$0xf]  ;;  %v8958_v41 = vld [vmem:[%s13476_s5 + $0x94] sm:$0xf0] }
 0x7c7   :  { %v4143_v55 = vadd.f32 %v9259_v3, %v4142_v38  ;;  %v4160_v50 = vmul.f32 %v9261_v10, %v4158_v16  ;;  %v9263_v18 = vpop.eup %9262  ;;  %vm4165_vm1 = vweird.f32 %v9261_v10  ;;  %v8969_v16 = vld [vmem:[%s13476_s5 + $0xec] sm:$0xf0]  ;;  %v8046_v38 = vor.u32 %v8968_v47, %v8043_v34  ;;  %v8956_v47 = vld [vmem:[%s13476_s5 + $0x8c] sm:$0xf]  ;;  %v7995_v34 = vld [vmem:[%s13476_s5 + $0x98] sm:$0xf0] }
 0x7c8   :  { %v4128_v22 = vsel %vm4127_vm13, %v9257_v62, %v4124_v43  ;;  %vm4166_vm3 = vmor %vm4164_vm2, %vm4165_vm1  ;;  %v8034_v45 = vor.u32 %v8969_v16, %v8033_v1  ;;  %4728 = vmatpush.bf16.msrb.mxu2 %v8042_v13  ;;  %v8963_v43 = vld [vmem:[%s13476_s5 + $0xc4] sm:$0xf]  ;;  %v7985_v1 = vld [vmem:[%s13476_s5 + $0x80] sm:$0xf]  ;;  %v7994_v13 = vor.u32 %v8958_v41, %v7993_v57 }
 0x7c9   :  { %v4133_v26 = vsel %vm4130_vm15, %v4132_v17, %v4128_v22  ;;  %v4147_v51 = vsel %vm4146_vm14, %v9259_v3, %v4143_v55  ;;  %v4161_v63 = vsub.f32 1.0, %v4160_v50  ;;  %v8967_v3 = vld [vmem:[%s13476_s5 + $0xe4] sm:$0xf]  ;;  %4741 = vmatpush.bf16.msrb.mxu3 %v8046_v38  ;;  %v8019_v55 = vld [vmem:[%s13476_s5 + $0xd0] sm:$0xf0]  ;;  %v7998_v38 = vor.u32 %v8956_v47, %v7995_v34 }
 0x7ca   :  { %v4152_v58 = vsel %vm4149_vm0, %v4151_v29, %v4147_v51  ;;  %v4176_v8 = vmul.f32 %v9263_v18, %v4133_v26  ;;  %v8038_v30 = vor.u32 %v8967_v3, %v8035_v24  ;;  %4702 = vmatpush.bf16.msra.mxu0 %v8034_v45  ;;  %v8025_v50 = vld [vmem:[%s13476_s5 + $0xc8] sm:$0xf]  ;;  %v8966_v29 = vld [vmem:[%s13476_s5 + $0xd4] sm:$0xf0]  ;;  %v8022_v22 = vor.u32 %v8963_v43, %v8019_v55  ;;  %v8964_v26 = vld [vmem:[%s13476_s5 + $0xcc] sm:$0xf] }
 0x7cb   :  { %v4175_v36 = vmul.f32 %v4152_v58, %v12295_v4  ;;  %v4162_v25 = vmul.f32 %v9261_v10, %v4161_v63  ;;  %v8026_v18 = vor.u32 %v8966_v29, %v8025_v50  ;;  %v8027_v51 = vld [vmem:[%s13476_s5 + $0xd8] sm:$0xf0]  ;;  %v8001_v58 = vld [vmem:[%s13476_s5 + $0xa0] sm:$0xf]  ;;  %v8957_v16 = vld [vmem:[%s13476_s5 + $0x8c] sm:$0xf0]  ;;  %v3116_v55 = vadd.f32 %v11832_v42, %v11947_v60 }
 0x7cc   :  { %4715 = vmatpush.bf16.msra.mxu1 %v8038_v30  ;;  %v8030_v63 = vor.u32 %v8964_v26, %v8027_v51  ;;  %v8955_v3 = vld [vmem:[%s13476_s5 + $0x84] sm:$0xf]  ;;  %v7986_v45 = vor.u32 %v8957_v16, %v7985_v1  ;;  %v7987_v24 = vld [vmem:[%s13476_s5 + $0x90] sm:$0xf0]  ;;  %v8952_v42 = vld [vmem:[%s13476_s5 + $0x6c] sm:$0xf] }
 0x7cd   :  { %v12503_v0 = vadd.f32 %v4176_v8, %v4175_v36  ;;  %v4163_v37 = vadd.f32 %v9261_v10, %v4162_v25  ;;  %4729 = vmatpush.bf16.msrb.mxu2 %v8026_v18  ;;  %v8961_v8 = vld [vmem:[%s13476_s5 + $0xac] sm:$0xf0]  ;;  %v8959_v36 = vld [vmem:[%s13476_s5 + $0xa4] sm:$0xf]  ;;  %v7990_v30 = vor.u32 %v8955_v3, %v7987_v24  ;;  %v7971_v29 = vld [vmem:[%s13476_s5 + $0x70] sm:$0xf0] }
 0x7ce   :  { %4742 = vmatpush.bf16.msrb.mxu3 %v8030_v63  ;;  %v8002_v25 = vor.u32 %v8961_v8, %v8001_v58  ;;  %v8951_v43 = vld [vmem:[%s13476_s5 + $0x64] sm:$0xf]  ;;  %v8954_v18 = vld [vmem:[%s13476_s5 + $0x74] sm:$0xf0]  ;;  %v7979_v58 = vld [vmem:[%s13476_s5 + $0x78] sm:$0xf0] }
 0x7cf   :  { %9264 = vtanh.f32 %v12503_v0  ;;  %v4167_v28 = vsel %vm4166_vm3, %v9261_v10, %v4163_v37  ;;  %v8965_v10 = vld [vmem:[%s13476_s5 + $0xcc] sm:$0xf0]  ;;  %v8003_v37 = vld [vmem:[%s13476_s5 + $0xb0] sm:$0xf0]  ;;  %v7961_v1 = vld [vmem:[%s13476_s5 + $0x48] sm:$0xf] }
 0x7d0   :  { %v4172_v40 = vsel %vm4169_vm4, %v4171_v39, %v4167_v28  ;;  %v8018_v17 = vor.u32 %v8965_v10, %v8017_v9  ;;  %4716 = vmatpush.bf16.msra.mxu1 %v8022_v22  ;;  %v8006_v28 = vor.u32 %v8959_v36, %v8003_v37  ;;  %v8010_v39 = vor.u32 %v8962_v5, %v8009_v56  ;;  %v7969_v9 = vld [vmem:[%s13476_s5 + $0x60] sm:$0xf]  ;;  %v8953_v10 = vld [vmem:[%s13476_s5 + $0x6c] sm:$0xf0]  ;;  %v7977_v22 = vld [vmem:[%s13476_s5 + $0x68] sm:$0xf] }
 0x7d1   :  { %v7970_v50 = vor.u32 %v8953_v10, %v7969_v9  ;;  %v7978_v63 = vor.u32 %v8954_v18, %v7977_v22  ;;  %v7953_v37 = vld [vmem:[%s13476_s5 + $0x40] sm:$0xf]  ;;  %v8949_v56 = vld [vmem:[%s13476_s5 + $0x4c] sm:$0xf0]  ;;  %v8947_v5 = vld [vmem:[%s13476_s5 + $0x44] sm:$0xf] }
 0x7d2   :  { %4703 = vmatpush.bf16.msra.mxu0 %v8018_v17  ;;  %4730 = vmatpush.bf16.msrb.mxu2 %v8010_v39  ;;  %v3087_v17 = vadd.f32 %v11830_v20, %v11944_v52  ;;  %v7974_v20 = vor.u32 %v8951_v43, %v7971_v29  ;;  %v8950_v16 = vld [vmem:[%s13476_s5 + $0x54] sm:$0xf0]  ;;  %v8948_v3 = vld [vmem:[%s13476_s5 + $0x4c] sm:$0xf]  ;;  %v7963_v24 = vld [vmem:[%s13476_s5 + $0x58] sm:$0xf0] }
 0x7d3   :  { %v7937_v57 = vld [vmem:[%s13476_s5 + $0x20] sm:$0xf]  ;;  %v8945_v41 = vld [vmem:[%s13476_s5 + $0x2c] sm:$0xf0]  ;;  %v8943_v34 = vld [vmem:[%s13476_s5 + $0x24] sm:$0xf] }
 0x7d4   :  { %4717 = vmatpush.bf16.msra.mxu1 %v8006_v28  ;;  %v7938_v47 = vor.u32 %v8945_v41, %v7937_v57  ;;  %v7945_v9 = vld [vmem:[%s13476_s5 + $0x28] sm:$0xf]  ;;  %v3145_v57 = vadd.f32 %v11834_v49, %v12083_v35 }
 0x7d5   :  { %v9265_v48 = vpop.eup %9264 }
 0x7d6   :  { %v12506_v62 = vmul.f32 %v9265_v48, %v4172_v40  ;;  %v8960_v48 = vld [vmem:[%s13476_s5 + $0xac] sm:$0xf]  ;;  %v8011_v40 = vld [vmem:[%s13476_s5 + $0xb8] sm:$0xf0]  ;;  %4704 = vmatpush.bf16.msra.mxu0 %v8002_v25  ;;  %4731 = vmatpush.bf16.msrb.mxu2 %v7994_v13  ;;  %v7982_v25 = vor.u32 %v8952_v42, %v7979_v58  ;;  %v7966_v13 = vor.u32 %v8948_v3, %v7963_v24  ;;  %v8939_v42 = vld [vmem:[%s13476_s5 + $0x4] sm:$0xf] }
 0x7d8   :  { %v4188_v4 = vpack.c.bf16 %v12506_v62, %v12506_v62  ;;  %4718 = vmatpush.bf16.msra.mxu1 %v7990_v30  ;;  %v3174_v30 = vadd.f32 %v11836_v46, %v12006_v2 }
 0x7da   :  { %4389 = vmatmul.bf16.vlgmr.msrb.gmra.mxu0 %v4188_v4  ;;  %4402 = vmatmul.bf16.vlgmr.msrb.gmra.mxu1 %v4188_v4 }
 0x7db   :  { %4415 = vmatmul.bf16.vlgmr.msra.gmra.mxu2 %v4188_v4  ;;  %4428 = vmatmul.bf16.vlgmr.msra.gmra.mxu3 %v4188_v4  ;;  %v8014_v4 = vor.u32 %v8960_v48, %v8011_v40  ;;  %v7954_v48 = vor.u32 %v8949_v56, %v7953_v37  ;;  %v7955_v40 = vld [vmem:[%s13476_s5 + $0x50] sm:$0xf0] }
 0x7dc   :  { %4705 = vmatpush.bf16.msra.mxu0 %v7986_v45  ;;  %4719 = vmatpush.bf16.msra.mxu1 %v7974_v20  ;;  %v7962_v45 = vor.u32 %v8950_v16, %v7961_v1  ;;  %v7921_v20 = vld [vmem:[%s13476_s5] sm:$0xf] }
 0x7dd   :  { %4743 = vmatpush.bf16.msrb.mxu3 %v8014_v4  ;;  %4732 = vmatpush.bf16.msrb.mxu2 %v7978_v63  ;;  %v7958_v4 = vor.u32 %v8947_v5, %v7955_v40  ;;  %v8941_v63 = vld [vmem:[%s13476_s5 + $0xc] sm:$0xf0]  ;;  %v8940_v5 = vld [vmem:[%s13476_s5 + $0xc] sm:$0xf] }
 0x7de   :  { %v7922_v58 = vor.u32 %v8941_v63, %v7921_v20 }
 0x7e0   :  { %4706 = vmatpush.bf16.msra.mxu0 %v7970_v50  ;;  %4720 = vmatpush.bf16.msra.mxu1 %v7958_v4  ;;  %v7947_v50 = vld [vmem:[%s13476_s5 + $0x38] sm:$0xf0] }
 0x7e1   :  { %4744 = vmatpush.bf16.msrb.mxu3 %v7998_v38  ;;  %v7939_v38 = vld [vmem:[%s13476_s5 + $0x30] sm:$0xf0]  ;;  %4733 = vmatpush.bf16.msrb.mxu2 %v7962_v45 }
 0x7e2   :  { %v7942_v46 = vor.u32 %v8943_v34, %v7939_v38 }
 0x7e4   :  { %4707 = vmatpush.bf16.msra.mxu0 %v7954_v48  ;;  %4721 = vmatpush.bf16.msra.mxu1 %v7942_v46 }
 0x7e5   :  { %4745 = vmatpush.bf16.msrb.mxu3 %v7982_v25  ;;  %v8942_v25 = vld [vmem:[%s13476_s5 + $0x14] sm:$0xf0] }
 0x7e8   :  { %4708 = vmatpush.bf16.msra.mxu0 %v7938_v47 }
 0x7e9   :  { %4746 = vmatpush.bf16.msrb.mxu3 %v7966_v13 }
 0x7ec   :  { %4709 = vmatpush.bf16.msra.mxu0 %v7922_v58 }
 0x857   :  { %v4390_v26 = vpop.f32.mrf.mxu0  ;;  %v4403_v51 = vpop.f32.mrf.mxu1 }
 0x858   :  { %v4433_v8 = vadd.f32 %v4390_v26, %v3087_v17  ;;  %v4434_v36 = vadd.f32 %v4403_v51, %v3116_v55  ;;  %v8946_v17 = vld [vmem:[%s13476_s5 + $0x34] sm:$0xf0]  ;;  %v8944_v55 = vld [vmem:[%s13476_s5 + $0x2c] sm:$0xf] }
 0x859   :  { %v7946_v26 = vor.u32 %v8946_v17, %v7945_v9  ;;  %v7950_v51 = vor.u32 %v8944_v55, %v7947_v50 }
 0x85a   :  { %v7916_v28 = vmul.f32 -1.442695, %v4433_v8  ;;  %v7917_v39 = vmul.f32 -1.442695, %v4434_v36  ;;  %v7923_v8 = vld [vmem:[%s13476_s5 + $0x10] sm:$0xf0] }
 0x85b   :  { %v7929_v36 = vld [vmem:[%s13476_s5 + $0x8] sm:$0xf]  ;;  %v7926_v56 = vor.u32 %v8939_v42, %v7923_v8  ;;  %4734 = vmatpush.bf16.msrb.mxu2 %v7946_v26  ;;  %4747 = vmatpush.bf16.msrb.mxu3 %v7950_v51 }
 0x85c   :  { %9266 = vpow2.f32 %v7916_v28  ;;  %v7931_v28 = vld [vmem:[%s13476_s5 + $0x18] sm:$0xf0]  ;;  %v7930_v48 = vor.u32 %v8942_v25, %v7929_v36 }
 0x85d   :  { %9268 = vpow2.f32 %v7917_v39  ;;  %v7934_v1 = vor.u32 %v8940_v5, %v7931_v28  ;;  %4722 = vmatpush.bf16.msra.mxu1 %v7926_v56 }
 0x85e   :  { %v4416_v10 = vpop.f32.mrf.mxu2  ;;  %v4429_v43 = vpop.f32.mrf.mxu3 }
 0x85f   :  { %v4436_v29 = vadd.f32 %v4429_v43, %v3174_v30  ;;  %v4392_v22 = vpop.f32.mrf.mxu0  ;;  %v4405_v18 = vpop.f32.mrf.mxu1  ;;  %4735 = vmatpush.bf16.msrb.mxu2 %v7930_v48  ;;  %4748 = vmatpush.bf16.msrb.mxu3 %v7934_v1  ;;  %v4435_v13 = vadd.f32 %v4416_v10, %v3145_v57  ;;  %v9001_v57 = vld [vmem:[%s13476_s5 + $0xec] sm:$0xf0] }
 0x861   :  { %v7918_v37 = vmul.f32 -1.442695, %v4436_v29 }
 0x862   :  { %v9267_v39 = vpop.eup %9266 }
 0x863   :  { %v9269_v40 = vpop.eup %9268  ;;  %v4440_v4 = vadd.f32 1.0, %v9267_v39  ;;  %9270 = vpow2.f32 %v7918_v37 }
 0x864   :  { %v4459_v16 = vadd.f32 1.0, %v9269_v40 }
 0x865   :  { %9272 = vrcp.f32 %v4440_v4  ;;  %v4452_v46 = vand.u32 2147483648, %v4440_v4  ;;  %v4450_v50 = vand.u32 2147483647, %v4440_v4  ;;  %vm4446_vm7 = vweird.f32 %v4440_v4 }
 0x866   :  { %9274 = vrcp.f32 %v4459_v16  ;;  %v4418_v3 = vpop.f32.mrf.mxu2  ;;  %v4431_v45 = vpop.f32.mrf.mxu3  ;;  %v4471_v17 = vand.u32 2147483648, %v4459_v16  ;;  %v4469_v22 = vand.u32 2147483647, %v4459_v16  ;;  %vm4465_vm8 = vweird.f32 %v4459_v16 }
 0x867   :  { %v4453_v10 = vor.u32 1.1754944e-38, %v4452_v46  ;;  %vm4451_vm11 = vcmp.eq.f32.partialorder %v4450_v50, 8.507059e+37  ;;  %v8174_v46 = vld [vmem:[%s13476_s5 + $0xf8] sm:$0xf0]  ;;  %v8997_v50 = vld [vmem:[%s13476_s5 + $0xcc] sm:$0xf0] }
 0x868   :  { %v4472_v20 = vor.u32 1.1754944e-38, %v4471_v17  ;;  %vm4470_vm12 = vcmp.eq.f32.partialorder %v4469_v22, 8.507059e+37 }
 0x869   :  { %v9271_v24 = vpop.eup %9270 }
 0x86a   :  { %v4479_v41 = vadd.f32 1.0, %v9271_v24  ;;  %v8164_v24 = vld [vmem:[%s13476_s5 + $0xe0] sm:$0xf] }
 0x86b   :  { %v9273_v30 = vpop.eup %9272 }
 0x86c   :  { %v9275_v47 = vpop.eup %9274  ;;  %v4442_v34 = vmul.f32 %v9273_v30, %v4440_v4  ;;  %9276 = vrcp.f32 %v4479_v41  ;;  %vm4447_vm5 = vweird.f32 %v9273_v30  ;;  %v4491_v48 = vand.u32 2147483648, %v4479_v41 }
 0x86d   :  { %v4461_v38 = vmul.f32 %v9275_v47, %v4459_v16  ;;  %9278 = vtanh.f32 %v4435_v13  ;;  %vm4466_vm6 = vweird.f32 %v9275_v47  ;;  %vm4448_vm9 = vmor %vm4446_vm7, %vm4447_vm5  ;;  %vm4485_vm14 = vweird.f32 %v4479_v41  ;;  %v8166_v13 = vld [vmem:[%s13476_s5 + $0xf0] sm:$0xf0] }
 0x86e   :  { %v4443_v9 = vsub.f32 1.0, %v4442_v34  ;;  %vm4467_vm10 = vmor %vm4465_vm8, %vm4466_vm6  ;;  %v4489_v40 = vand.u32 2147483647, %v4479_v41  ;;  %v4492_v1 = vor.u32 1.1754944e-38, %v4491_v48  ;;  %v9002_v34 = vld [vmem:[%s13476_s5 + $0xf4] sm:$0xf0] }
 0x86f   :  { %v4462_v43 = vsub.f32 1.0, %v4461_v38 }
 0x870   :  { %v4444_v55 = vmul.f32 %v9273_v30, %v4443_v9  ;;  %vm4490_vm0 = vcmp.eq.f32.partialorder %v4489_v40, 8.507059e+37  ;;  %v8992_v40 = vld [vmem:[%s13476_s5 + $0xac] sm:$0xf] }
 0x871   :  { %v4463_v29 = vmul.f32 %v9275_v47, %v4462_v43  ;;  %v9000_v43 = vld [vmem:[%s13476_s5 + $0xec] sm:$0xf] }
 0x872   :  { %v9277_v18 = vpop.eup %9276  ;;  %v4445_v49 = vadd.f32 %v9273_v30, %v4444_v55  ;;  %v8177_v17 = vor.u32 %v9000_v43, %v8174_v46  ;;  %v8148_v55 = vld [vmem:[%s13476_s5 + $0xc0] sm:$0xf]  ;;  %v8985_v46 = vld [vmem:[%s13476_s5 + $0x6c] sm:$0xf0] }
 0x873   :  { %v4464_v26 = vadd.f32 %v9275_v47, %v4463_v29  ;;  %v4481_v51 = vmul.f32 %v9277_v18, %v4479_v41  ;;  %v9279_v42 = vpop.eup %9278  ;;  %vm4486_vm13 = vweird.f32 %v9277_v18  ;;  %v8999_v41 = vld [vmem:[%s13476_s5 + $0xe4] sm:$0xf]  ;;  %v8149_v22 = vor.u32 %v8997_v50, %v8148_v55  ;;  %v8100_v43 = vld [vmem:[%s13476_s5 + $0x60] sm:$0xf] }
 0x874   :  { %v4449_v63 = vsel %vm4448_vm9, %v9273_v30, %v4445_v49  ;;  %vm4487_vm15 = vmor %vm4485_vm14, %vm4486_vm13  ;;  %v8165_v30 = vor.u32 %v9001_v57, %v8164_v24  ;;  %v8169_v38 = vor.u32 %v8999_v41, %v8166_v13  ;;  %v8995_v29 = vld [vmem:[%s13476_s5 + $0xc4] sm:$0xf]  ;;  %5062 = vmatpush.bf16.msra.mxu3 %v8177_v17  ;;  %v8156_v49 = vld [vmem:[%s13476_s5 + $0xc8] sm:$0xf]  ;;  %v3090_v55 = vadd.f32 %v11838_v15, %v11944_v52 }
 0x875   :  { %v4454_v58 = vsel %vm4451_vm11, %v4453_v10, %v4449_v63  ;;  %v4468_v8 = vsel %vm4467_vm10, %v9275_v47, %v4464_v26  ;;  %v4482_v36 = vsub.f32 1.0, %v4481_v51  ;;  %v8172_v47 = vld [vmem:[%s13476_s5 + $0xe8] sm:$0xf]  ;;  %v8998_v10 = vld [vmem:[%s13476_s5 + $0xd4] sm:$0xf0]  ;;  %v3119_v50 = vadd.f32 %v11840_v12, %v11947_v60 }
 0x876   :  { %v4473_v25 = vsel %vm4470_vm12, %v4472_v20, %v4468_v8  ;;  %v4497_v37 = vmul.f32 %v9279_v42, %v4454_v58  ;;  %v8173_v9 = vor.u32 %v9002_v34, %v8172_v47  ;;  %5023 = vmatpush.bf16.msrb.mxu0 %v8165_v30  ;;  %5036 = vmatpush.bf16.msrb.mxu1 %v8169_v38  ;;  %v8996_v20 = vld [vmem:[%s13476_s5 + $0xcc] sm:$0xf]  ;;  %v8158_v63 = vld [vmem:[%s13476_s5 + $0xd8] sm:$0xf0]  ;;  %v8132_v58 = vld [vmem:[%s13476_s5 + $0xa0] sm:$0xf] }
 0x877   :  { %v4496_v56 = vmul.f32 %v4473_v25, %v12503_v0  ;;  %v4483_v5 = vmul.f32 %v9277_v18, %v4482_v36  ;;  %v8157_v51 = vor.u32 %v8998_v10, %v8156_v49  ;;  %v8161_v42 = vor.u32 %v8996_v20, %v8158_v63  ;;  %v8993_v8 = vld [vmem:[%s13476_s5 + $0xac] sm:$0xf0]  ;;  %v8991_v36 = vld [vmem:[%s13476_s5 + $0xa4] sm:$0xf]  ;;  %v8118_v57 = vld [vmem:[%s13476_s5 + $0x90] sm:$0xf0] }
 0x878   :  { %5049 = vmatpush.bf16.msra.mxu2 %v8173_v9  ;;  %v8133_v25 = vor.u32 %v8993_v8, %v8132_v58  ;;  %v8124_v41 = vld [vmem:[%s13476_s5 + $0x88] sm:$0xf]  ;;  %v8990_v30 = vld [vmem:[%s13476_s5 + $0x94] sm:$0xf0]  ;;  %v8988_v34 = vld [vmem:[%s13476_s5 + $0x8c] sm:$0xf] }
 0x879   :  { %v12711_v28 = vadd.f32 %v4497_v37, %v4496_v56  ;;  %v4484_v39 = vadd.f32 %v9277_v18, %v4483_v5  ;;  %5063 = vmatpush.bf16.msra.mxu3 %v8161_v42  ;;  %v8134_v37 = vld [vmem:[%s13476_s5 + $0xb0] sm:$0xf0]  ;;  %v8140_v56 = vld [vmem:[%s13476_s5 + $0xa8] sm:$0xf]  ;;  %v8994_v5 = vld [vmem:[%s13476_s5 + $0xb4] sm:$0xf0]  ;;  %v8125_v47 = vor.u32 %v8990_v30, %v8124_v41 }
 0x87a   :  { %5024 = vmatpush.bf16.msrb.mxu0 %v8149_v22  ;;  %v8141_v48 = vor.u32 %v8994_v5, %v8140_v56  ;;  %v8126_v38 = vld [vmem:[%s13476_s5 + $0x98] sm:$0xf0]  ;;  %v8983_v17 = vld [vmem:[%s13476_s5 + $0x64] sm:$0xf]  ;;  %v8102_v22 = vld [vmem:[%s13476_s5 + $0x70] sm:$0xf0] }
 0x87b   :  { %9280 = vtanh.f32 %v12711_v28  ;;  %v4488_v4 = vsel %vm4487_vm15, %v9277_v18, %v4484_v39  ;;  %v8150_v18 = vld [vmem:[%s13476_s5 + $0xd0] sm:$0xf0]  ;;  %v8137_v39 = vor.u32 %v8991_v36, %v8134_v37  ;;  %v8129_v9 = vor.u32 %v8988_v34, %v8126_v38  ;;  %v8986_v49 = vld [vmem:[%s13476_s5 + $0x74] sm:$0xf0]  ;;  %v8984_v12 = vld [vmem:[%s13476_s5 + $0x6c] sm:$0xf] }
 0x87c   :  { %v4493_v3 = vsel %vm4490_vm0, %v4492_v1, %v4488_v4  ;;  %v8153_v26 = vor.u32 %v8995_v29, %v8150_v18  ;;  %5050 = vmatpush.bf16.msra.mxu2 %v8157_v51  ;;  %v8142_v4 = vld [vmem:[%s13476_s5 + $0xb8] sm:$0xf0]  ;;  %v8101_v29 = vor.u32 %v8985_v46, %v8100_v43  ;;  %v8108_v18 = vld [vmem:[%s13476_s5 + $0x68] sm:$0xf]  ;;  %v8105_v15 = vor.u32 %v8983_v17, %v8102_v22  ;;  %v8084_v8 = vld [vmem:[%s13476_s5 + $0x40] sm:$0xf] }
 0x87d   :  { %v8145_v1 = vor.u32 %v8992_v40, %v8142_v4  ;;  %v8109_v51 = vor.u32 %v8986_v49, %v8108_v18  ;;  %v8110_v20 = vld [vmem:[%s13476_s5 + $0x78] sm:$0xf0]  ;;  %v8981_v36 = vld [vmem:[%s13476_s5 + $0x4c] sm:$0xf0]  ;;  %v8092_v40 = vld [vmem:[%s13476_s5 + $0x48] sm:$0xf] }
 0x87e   :  { %5037 = vmatpush.bf16.msrb.mxu1 %v8153_v26  ;;  %5025 = vmatpush.bf16.msrb.mxu0 %v8133_v25  ;;  %v8113_v58 = vor.u32 %v8984_v12, %v8110_v20  ;;  %v8979_v25 = vld [vmem:[%s13476_s5 + $0x44] sm:$0xf]  ;;  %v8085_v5 = vor.u32 %v8981_v36, %v8084_v8  ;;  %v8982_v4 = vld [vmem:[%s13476_s5 + $0x54] sm:$0xf0]  ;;  %v8076_v34 = vld [vmem:[%s13476_s5 + $0x28] sm:$0xf] }
 0x87f   :  { %5064 = vmatpush.bf16.msra.mxu3 %v8145_v1  ;;  %v8980_v1 = vld [vmem:[%s13476_s5 + $0x4c] sm:$0xf]  ;;  %v8978_v43 = vld [vmem:[%s13476_s5 + $0x34] sm:$0xf0]  ;;  %v8078_v17 = vld [vmem:[%s13476_s5 + $0x38] sm:$0xf0] }
 0x880   :  { %5051 = vmatpush.bf16.msra.mxu2 %v8141_v48  ;;  %v8976_v46 = vld [vmem:[%s13476_s5 + $0x2c] sm:$0xf]  ;;  %v8077_v22 = vor.u32 %v8978_v43, %v8076_v34  ;;  %v8052_v49 = vld [vmem:[%s13476_s5] sm:$0xf]  ;;  %v8060_v12 = vld [vmem:[%s13476_s5 + $0x8] sm:$0xf] }
 0x881   :  { %v9281_v16 = vpop.eup %9280  ;;  %v8081_v18 = vor.u32 %v8976_v46, %v8078_v17  ;;  %v8974_v20 = vld [vmem:[%s13476_s5 + $0x14] sm:$0xf0]  ;;  %v8062_v8 = vld [vmem:[%s13476_s5 + $0x18] sm:$0xf0] }
 0x882   :  { %v12714_v45 = vmul.f32 %v9281_v16, %v4493_v3  ;;  %5038 = vmatpush.bf16.msrb.mxu1 %v8137_v39  ;;  %v8116_v16 = vld [vmem:[%s13476_s5 + $0x80] sm:$0xf]  ;;  %v8989_v3 = vld [vmem:[%s13476_s5 + $0x8c] sm:$0xf0]  ;;  %v8086_v39 = vld [vmem:[%s13476_s5 + $0x50] sm:$0xf0] }
 0x883   :  { %v8117_v24 = vor.u32 %v8989_v3, %v8116_v16  ;;  %5065 = vmatpush.bf16.msra.mxu3 %v8129_v9  ;;  %v8089_v48 = vor.u32 %v8979_v25, %v8086_v39  ;;  %v8093_v16 = vor.u32 %v8982_v4, %v8092_v40  ;;  %v8094_v3 = vld [vmem:[%s13476_s5 + $0x58] sm:$0xf0]  ;;  %v8061_v25 = vor.u32 %v8974_v20, %v8060_v12 }
 0x884   :  { %v4509_v0 = vpack.c.bf16 %v12714_v45, %v12714_v45  ;;  %5052 = vmatpush.bf16.msra.mxu2 %v8125_v47  ;;  %v8097_v41 = vor.u32 %v8980_v1, %v8094_v3  ;;  %v8070_v47 = vld [vmem:[%s13476_s5 + $0x30] sm:$0xf0]  ;;  %v3148_v1 = vadd.f32 %v11842_v54, %v12083_v35 }
 0x885   :  { %5026 = vmatpush.bf16.msrb.mxu0 %v8117_v24  ;;  %v8977_v24 = vld [vmem:[%s13476_s5 + $0x2c] sm:$0xf0] }
 0x886   :  { %4710 = vmatmul.bf16.vlgmr.msra.gmra.mxu0 %v4509_v0  ;;  %4723 = vmatmul.bf16.vlgmr.msra.gmra.mxu1 %v4509_v0 }
 0x887   :  { %4736 = vmatmul.bf16.vlgmr.msrb.gmra.mxu2 %v4509_v0  ;;  %4749 = vmatmul.bf16.vlgmr.msrb.gmra.mxu3 %v4509_v0  ;;  %v8987_v0 = vld [vmem:[%s13476_s5 + $0x84] sm:$0xf] }
 0x888   :  { %v8121_v13 = vor.u32 %v8987_v0, %v8118_v57  ;;  %5053 = vmatpush.bf16.msra.mxu2 %v8109_v51  ;;  %5066 = vmatpush.bf16.msra.mxu3 %v8113_v58  ;;  %v8068_v0 = vld [vmem:[%s13476_s5 + $0x20] sm:$0xf]  ;;  %v3177_v57 = vadd.f32 %v11844_v23, %v12006_v2  ;;  %v8054_v51 = vld [vmem:[%s13476_s5 + $0x10] sm:$0xf0]  ;;  %v8972_v58 = vld [vmem:[%s13476_s5 + $0xc] sm:$0xf] }
 0x889   :  { %5027 = vmatpush.bf16.msrb.mxu0 %v8101_v29  ;;  %v8069_v30 = vor.u32 %v8977_v24, %v8068_v0 }
 0x88a   :  { %5039 = vmatpush.bf16.msrb.mxu1 %v8121_v13  ;;  %v8975_v13 = vld [vmem:[%s13476_s5 + $0x24] sm:$0xf] }
 0x88b   :  { %v8073_v23 = vor.u32 %v8975_v13, %v8070_v47 }
 0x88c   :  { %5054 = vmatpush.bf16.msra.mxu2 %v8093_v16  ;;  %5067 = vmatpush.bf16.msra.mxu3 %v8097_v41 }
 0x88d   :  { %5028 = vmatpush.bf16.msrb.mxu0 %v8085_v5  ;;  %v8065_v5 = vor.u32 %v8972_v58, %v8062_v8 }
 0x88e   :  { %5040 = vmatpush.bf16.msrb.mxu1 %v8105_v15 }
 0x890   :  { %5055 = vmatpush.bf16.msra.mxu2 %v8077_v22  ;;  %5068 = vmatpush.bf16.msra.mxu3 %v8081_v18 }
 0x891   :  { %5029 = vmatpush.bf16.msrb.mxu0 %v8069_v30 }
 0x892   :  { %5041 = vmatpush.bf16.msrb.mxu1 %v8089_v48 }
 0x894   :  { %5056 = vmatpush.bf16.msra.mxu2 %v8061_v25  ;;  %5069 = vmatpush.bf16.msra.mxu3 %v8065_v5 }
 0x896   :  { %5042 = vmatpush.bf16.msrb.mxu1 %v8073_v23 }
 0x903   :  { %v4711_v10 = vpop.f32.mrf.mxu0  ;;  %v4724_v26 = vpop.f32.mrf.mxu1 }
 0x904   :  { %v4754_v63 = vadd.f32 %v4711_v10, %v3090_v55  ;;  %v4755_v42 = vadd.f32 %v4724_v26, %v3119_v50  ;;  %v8973_v10 = vld [vmem:[%s13476_s5 + $0xc] sm:$0xf0]  ;;  %v8971_v26 = vld [vmem:[%s13476_s5 + $0x4] sm:$0xf] }
 0x905   :  { %v8053_v15 = vor.u32 %v8973_v10, %v8052_v49 }
 0x906   :  { %v8047_v37 = vmul.f32 -1.442695, %v4754_v63  ;;  %v8048_v56 = vmul.f32 -1.442695, %v4755_v42  ;;  %v8057_v42 = vor.u32 %v8971_v26, %v8054_v51 }
 0x907   :  { %5030 = vmatpush.bf16.msrb.mxu0 %v8053_v15 }
 0x908   :  { %9282 = vpow2.f32 %v8047_v37  ;;  %5043 = vmatpush.bf16.msrb.mxu1 %v8057_v42 }
 0x909   :  { %9284 = vpow2.f32 %v8048_v56 }
 0x90a   :  { %v4737_v38 = vpop.f32.mrf.mxu2  ;;  %v4750_v9 = vpop.f32.mrf.mxu3 }
 0x90b   :  { %v4757_v55 = vadd.f32 %v4750_v9, %v3177_v57  ;;  %v4713_v50 = vpop.f32.mrf.mxu0  ;;  %v4726_v29 = vpop.f32.mrf.mxu1  ;;  %v4756_v0 = vadd.f32 %v4737_v38, %v3148_v1  ;;  %v8297_v1 = vld [vmem:[%s13476_s5 + $0xf0] sm:$0xf0] }
 0x90d   :  { %v8049_v63 = vmul.f32 -1.442695, %v4757_v55 }
 0x90e   :  { %v9283_v36 = vpop.eup %9282 }
 0x90f   :  { %v9285_v37 = vpop.eup %9284  ;;  %v4761_v56 = vadd.f32 1.0, %v9283_v36  ;;  %9286 = vpow2.f32 %v8049_v63 }
 0x910   :  { %v4780_v39 = vadd.f32 1.0, %v9285_v37 }
 0x911   :  { %9288 = vrcp.f32 %v4761_v56  ;;  %v4773_v47 = vand.u32 2147483648, %v4761_v56  ;;  %v4771_v23 = vand.u32 2147483647, %v4761_v56  ;;  %vm4767_vm3 = vweird.f32 %v4761_v56 }
 0x912   :  { %9290 = vrcp.f32 %v4780_v39  ;;  %v4739_v48 = vpop.f32.mrf.mxu2  ;;  %v4752_v40 = vpop.f32.mrf.mxu3  ;;  %v4792_v34 = vand.u32 2147483648, %v4780_v39  ;;  %v4790_v46 = vand.u32 2147483647, %v4780_v39  ;;  %vm4786_vm4 = vweird.f32 %v4780_v39 }
 0x913   :  { %v4774_v38 = vor.u32 1.1754944e-38, %v4773_v47  ;;  %vm4772_vm7 = vcmp.eq.f32.partialorder %v4771_v23, 8.507059e+37  ;;  %v9033_v48 = vld [vmem:[%s13476_s5 + $0xec] sm:$0xf0]  ;;  %v9031_v40 = vld [vmem:[%s13476_s5 + $0xe4] sm:$0xf] }
 0x914   :  { %v4793_v29 = vor.u32 1.1754944e-38, %v4792_v34  ;;  %vm4791_vm8 = vcmp.eq.f32.partialorder %v4790_v46, 8.507059e+37  ;;  %v9029_v47 = vld [vmem:[%s13476_s5 + $0xcc] sm:$0xf0]  ;;  %v9027_v34 = vld [vmem:[%s13476_s5 + $0xc4] sm:$0xf] }
 0x915   :  { %v9287_v4 = vpop.eup %9286  ;;  %v8281_v23 = vld [vmem:[%s13476_s5 + $0xd0] sm:$0xf0]  ;;  %v9030_v46 = vld [vmem:[%s13476_s5 + $0xd4] sm:$0xf0] }
 0x916   :  { %v4800_v16 = vadd.f32 1.0, %v9287_v4 }
 0x917   :  { %v9289_v3 = vpop.eup %9288 }
 0x918   :  { %v9291_v24 = vpop.eup %9290  ;;  %v4763_v57 = vmul.f32 %v9289_v3, %v4761_v56  ;;  %9292 = vrcp.f32 %v4800_v16  ;;  %vm4768_vm1 = vweird.f32 %v9289_v3  ;;  %v4812_v58 = vand.u32 2147483648, %v4800_v16 }
 0x919   :  { %v4782_v41 = vmul.f32 %v9291_v24, %v4780_v39  ;;  %9294 = vtanh.f32 %v4756_v0  ;;  %vm4787_vm2 = vweird.f32 %v9291_v24  ;;  %vm4769_vm5 = vmor %vm4767_vm3, %vm4768_vm1  ;;  %vm4806_vm10 = vweird.f32 %v4800_v16  ;;  %v8295_v39 = vld [vmem:[%s13476_s5 + $0xe0] sm:$0xf] }
 0x91a   :  { %v4764_v30 = vsub.f32 1.0, %v4763_v57  ;;  %vm4788_vm6 = vmor %vm4786_vm4, %vm4787_vm2  ;;  %v4810_v8 = vand.u32 2147483647, %v4800_v16  ;;  %v4813_v25 = vor.u32 1.1754944e-38, %v4812_v58  ;;  %v8296_v4 = vor.u32 %v9033_v48, %v8295_v39  ;;  %v9032_v57 = vld [vmem:[%s13476_s5 + $0xec] sm:$0xf] }
 0x91b   :  { %v4783_v13 = vsub.f32 1.0, %v4782_v41  ;;  %v8300_v0 = vor.u32 %v9031_v40, %v8297_v1  ;;  %v8305_v41 = vld [vmem:[%s13476_s5 + $0xf8] sm:$0xf0]  ;;  %v9022_v39 = vld [vmem:[%s13476_s5 + $0x94] sm:$0xf0] }
 0x91c   :  { %v4765_v9 = vmul.f32 %v9289_v3, %v4764_v30  ;;  %vm4811_vm12 = vcmp.eq.f32.partialorder %v4810_v8, 8.507059e+37  ;;  %5344 = vmatpush.bf16.msra.mxu0 %v8296_v4  ;;  %v8308_v30 = vor.u32 %v9032_v57, %v8305_v41  ;;  %v8247_v8 = vld [vmem:[%s13476_s5 + $0x80] sm:$0xf]  ;;  %v9020_v4 = vld [vmem:[%s13476_s5 + $0x8c] sm:$0xf]  ;;  %v3092_v57 = vadd.f32 %v11846_v6, %v11944_v52 }
 0x91d   :  { %v4784_v43 = vmul.f32 %v9291_v24, %v4783_v13  ;;  %5357 = vmatpush.bf16.msra.mxu1 %v8300_v0  ;;  %v8279_v13 = vld [vmem:[%s13476_s5 + $0xc0] sm:$0xf]  ;;  %v8257_v1 = vld [vmem:[%s13476_s5 + $0x98] sm:$0xf0]  ;;  %v9017_v0 = vld [vmem:[%s13476_s5 + $0x6c] sm:$0xf0]  ;;  %v3121_v41 = vadd.f32 %v11848_v33, %v11947_v60 }
 0x91e   :  { %v9293_v17 = vpop.eup %9292  ;;  %v4766_v54 = vadd.f32 %v9289_v3, %v4765_v9  ;;  %5383 = vmatpush.bf16.msrb.mxu3 %v8308_v30  ;;  %v8280_v9 = vor.u32 %v9029_v47, %v8279_v13  ;;  %v8233_v13 = vld [vmem:[%s13476_s5 + $0x70] sm:$0xf0]  ;;  %v8239_v47 = vld [vmem:[%s13476_s5 + $0x68] sm:$0xf]  ;;  %v9016_v33 = vld [vmem:[%s13476_s5 + $0x6c] sm:$0xf] }
 0x91f   :  { %v4785_v55 = vadd.f32 %v9291_v24, %v4784_v43  ;;  %v4802_v50 = vmul.f32 %v9293_v17, %v4800_v16  ;;  %v9295_v18 = vpop.eup %9294  ;;  %vm4807_vm9 = vweird.f32 %v9293_v17  ;;  %v8303_v16 = vld [vmem:[%s13476_s5 + $0xe8] sm:$0xf] }
 0x920   :  { %v4770_v22 = vsel %vm4769_vm5, %v9289_v3, %v4766_v54  ;;  %vm4808_vm11 = vmor %vm4806_vm10, %vm4807_vm9  ;;  %v9034_v3 = vld [vmem:[%s13476_s5 + $0xf4] sm:$0xf0]  ;;  %v8287_v43 = vld [vmem:[%s13476_s5 + $0xc8] sm:$0xf]  ;;  %5345 = vmatpush.bf16.msra.mxu0 %v8280_v9 }
 0x921   :  { %v4775_v49 = vsel %vm4772_vm7, %v4774_v38, %v4770_v22  ;;  %v4789_v10 = vsel %vm4788_vm6, %v9291_v24, %v4785_v55  ;;  %v4803_v26 = vsub.f32 1.0, %v4802_v50  ;;  %v8304_v24 = vor.u32 %v9034_v3, %v8303_v16  ;;  %v9028_v38 = vld [vmem:[%s13476_s5 + $0xcc] sm:$0xf]  ;;  %v8289_v55 = vld [vmem:[%s13476_s5 + $0xd8] sm:$0xf0] }
 0x922   :  { %v4794_v15 = vsel %vm4791_vm8, %v4793_v29, %v4789_v10  ;;  %v4818_v51 = vmul.f32 %v9295_v18, %v4775_v49  ;;  %v8288_v54 = vor.u32 %v9030_v46, %v8287_v43  ;;  %v8292_v50 = vor.u32 %v9028_v38, %v8289_v55  ;;  %v8263_v29 = vld [vmem:[%s13476_s5 + $0xa0] sm:$0xf]  ;;  %v9025_v22 = vld [vmem:[%s13476_s5 + $0xac] sm:$0xf0]  ;;  %v9023_v18 = vld [vmem:[%s13476_s5 + $0xa4] sm:$0xf] }
 0x923   :  { %v4817_v12 = vmul.f32 %v4794_v15, %v12711_v28  ;;  %v4804_v20 = vmul.f32 %v9293_v17, %v4803_v26  ;;  %5370 = vmatpush.bf16.msrb.mxu2 %v8304_v24  ;;  %v8264_v49 = vor.u32 %v9025_v22, %v8263_v29  ;;  %v8265_v10 = vld [vmem:[%s13476_s5 + $0xb0] sm:$0xf0]  ;;  %v8271_v26 = vld [vmem:[%s13476_s5 + $0xa8] sm:$0xf]  ;;  %v9026_v15 = vld [vmem:[%s13476_s5 + $0xb4] sm:$0xf0]  ;;  %v8260_v16 = vor.u32 %v9020_v4, %v8257_v1 }
 0x924   :  { %5384 = vmatpush.bf16.msrb.mxu3 %v8292_v50  ;;  %v8231_v3 = vld [vmem:[%s13476_s5 + $0x60] sm:$0xf]  ;;  %v9015_v24 = vld [vmem:[%s13476_s5 + $0x64] sm:$0xf]  ;;  %v8241_v46 = vld [vmem:[%s13476_s5 + $0x78] sm:$0xf0] }
 0x925   :  { %v12919_v63 = vadd.f32 %v4818_v51, %v4817_v12  ;;  %v4805_v42 = vadd.f32 %v9293_v17, %v4804_v20  ;;  %v8268_v51 = vor.u32 %v9023_v18, %v8265_v10  ;;  %v8272_v12 = vor.u32 %v9026_v15, %v8271_v26  ;;  %v9024_v20 = vld [vmem:[%s13476_s5 + $0xac] sm:$0xf]  ;;  %5346 = vmatpush.bf16.msra.mxu0 %v8264_v49  ;;  %v8215_v55 = vld [vmem:[%s13476_s5 + $0x40] sm:$0xf]  ;;  %v9013_v50 = vld [vmem:[%s13476_s5 + $0x4c] sm:$0xf0] }
 0x926   :  { %v8232_v30 = vor.u32 %v9017_v0, %v8231_v3  ;;  %v8236_v6 = vor.u32 %v9015_v24, %v8233_v13  ;;  %v8244_v38 = vor.u32 %v9016_v33, %v8241_v46  ;;  %v9011_v29 = vld [vmem:[%s13476_s5 + $0x44] sm:$0xf]  ;;  %v8216_v49 = vor.u32 %v9013_v50, %v8215_v55  ;;  %v8217_v10 = vld [vmem:[%s13476_s5 + $0x50] sm:$0xf0]  ;;  %v8223_v15 = vld [vmem:[%s13476_s5 + $0x48] sm:$0xf] }
 0x927   :  { %9296 = vtanh.f32 %v12919_v63  ;;  %v4809_v36 = vsel %vm4808_vm11, %v9293_v17, %v4805_v42  ;;  %v8284_v17 = vor.u32 %v9027_v34, %v8281_v23  ;;  %5371 = vmatpush.bf16.msrb.mxu2 %v8288_v54  ;;  %v8273_v42 = vld [vmem:[%s13476_s5 + $0xb8] sm:$0xf0]  ;;  %v9018_v34 = vld [vmem:[%s13476_s5 + $0x74] sm:$0xf0]  ;;  %v8220_v26 = vor.u32 %v9011_v29, %v8217_v10  ;;  %v9008_v1 = vld [vmem:[%s13476_s5 + $0x2c] sm:$0xf] }
 0x928   :  { %v4814_v56 = vsel %vm4811_vm12, %v4813_v25, %v4809_v36  ;;  %v8276_v58 = vor.u32 %v9024_v20, %v8273_v42  ;;  %v9021_v36 = vld [vmem:[%s13476_s5 + $0x8c] sm:$0xf0]  ;;  %v9019_v25 = vld [vmem:[%s13476_s5 + $0x84] sm:$0xf]  ;;  %v8240_v43 = vor.u32 %v9018_v34, %v8239_v47  ;;  %v8225_v42 = vld [vmem:[%s13476_s5 + $0x58] sm:$0xf0] }
 0x929   :  { %5358 = vmatpush.bf16.msra.mxu1 %v8284_v17  ;;  %v9010_v4 = vld [vmem:[%s13476_s5 + $0x34] sm:$0xf0]  ;;  %v9005_v13 = vld [vmem:[%s13476_s5 + $0xc] sm:$0xf0]  ;;  %v9003_v47 = vld [vmem:[%s13476_s5 + $0x4] sm:$0xf] }
 0x92a   :  { %5385 = vmatpush.bf16.msrb.mxu3 %v8276_v58  ;;  %v8199_v58 = vld [vmem:[%s13476_s5 + $0x20] sm:$0xf]  ;;  %v9004_v46 = vld [vmem:[%s13476_s5 + $0xc] sm:$0xf] }
 0x92b   :  { %5372 = vmatpush.bf16.msrb.mxu2 %v8272_v12  ;;  %v9012_v12 = vld [vmem:[%s13476_s5 + $0x4c] sm:$0xf] }
 0x92d   :  { %v9297_v37 = vpop.eup %9296  ;;  %5359 = vmatpush.bf16.msra.mxu1 %v8268_v51  ;;  %v9014_v51 = vld [vmem:[%s13476_s5 + $0x54] sm:$0xf0] }
 0x92e   :  { %v12922_v5 = vmul.f32 %v9297_v37, %v4814_v56  ;;  %v8248_v37 = vor.u32 %v9021_v36, %v8247_v8  ;;  %v8249_v56 = vld [vmem:[%s13476_s5 + $0x90] sm:$0xf0]  ;;  %5386 = vmatpush.bf16.msrb.mxu3 %v8260_v16  ;;  %v8224_v20 = vor.u32 %v9014_v51, %v8223_v15  ;;  %v9009_v8 = vld [vmem:[%s13476_s5 + $0x2c] sm:$0xf0]  ;;  %v3179_v36 = vadd.f32 %v11861_v59, %v12006_v2  ;;  %v8209_v16 = vld [vmem:[%s13476_s5 + $0x38] sm:$0xf0] }
 0x92f   :  { %v8252_v48 = vor.u32 %v9019_v25, %v8249_v56  ;;  %v8228_v25 = vor.u32 %v9012_v12, %v8225_v42  ;;  %v9007_v56 = vld [vmem:[%s13476_s5 + $0x24] sm:$0xf] }
 0x930   :  { %v4830_v28 = vpack.c.bf16 %v12922_v5, %v12922_v5  ;;  %5347 = vmatpush.bf16.msra.mxu0 %v8248_v37  ;;  %v8200_v37 = vor.u32 %v9009_v8, %v8199_v58 }
 0x931   :  { %5360 = vmatpush.bf16.msra.mxu1 %v8252_v48 }
 0x932   :  { %5031 = vmatmul.bf16.vlgmr.msrb.gmra.mxu0 %v4830_v28  ;;  %5044 = vmatmul.bf16.vlgmr.msrb.gmra.mxu1 %v4830_v28 }
 0x933   :  { %5057 = vmatmul.bf16.vlgmr.msra.gmra.mxu2 %v4830_v28  ;;  %5070 = vmatmul.bf16.vlgmr.msra.gmra.mxu3 %v4830_v28  ;;  %v8255_v28 = vld [vmem:[%s13476_s5 + $0x88] sm:$0xf] }
 0x934   :  { %v8256_v40 = vor.u32 %v9022_v39, %v8255_v28  ;;  %5348 = vmatpush.bf16.msra.mxu0 %v8232_v30  ;;  %5387 = vmatpush.bf16.msrb.mxu3 %v8244_v38  ;;  %v8201_v28 = vld [vmem:[%s13476_s5 + $0x30] sm:$0xf0]  ;;  %v8207_v39 = vld [vmem:[%s13476_s5 + $0x28] sm:$0xf]  ;;  %v8183_v30 = vld [vmem:[%s13476_s5] sm:$0xf] }
 0x935   :  { %5361 = vmatpush.bf16.msra.mxu1 %v8236_v6  ;;  %v8204_v59 = vor.u32 %v9007_v56, %v8201_v28  ;;  %v8184_v34 = vor.u32 %v9005_v13, %v8183_v30  ;;  %v9006_v6 = vld [vmem:[%s13476_s5 + $0x14] sm:$0xf0] }
 0x936   :  { %5373 = vmatpush.bf16.msrb.mxu2 %v8256_v40 }
 0x938   :  { %5349 = vmatpush.bf16.msra.mxu0 %v8216_v49  ;;  %5388 = vmatpush.bf16.msrb.mxu3 %v8228_v25 }
 0x939   :  { %5362 = vmatpush.bf16.msra.mxu1 %v8220_v26  ;;  %v3150_v26 = vadd.f32 %v11859_v44, %v12083_v35 }
 0x93a   :  { %5374 = vmatpush.bf16.msrb.mxu2 %v8240_v43 }
 0x93c   :  { %5350 = vmatpush.bf16.msra.mxu0 %v8200_v37 }
 0x93d   :  { %5363 = vmatpush.bf16.msra.mxu1 %v8204_v59 }
 0x93e   :  { %5375 = vmatpush.bf16.msrb.mxu2 %v8224_v20 }
 0x940   :  { %5351 = vmatpush.bf16.msra.mxu0 %v8184_v34 }
 0x9af   :  { %v5032_v9 = vpop.f32.mrf.mxu0  ;;  %v5045_v23 = vpop.f32.mrf.mxu1 }
 0x9b0   :  { %v5075_v17 = vadd.f32 %v5032_v9, %v3092_v57  ;;  %v5076_v54 = vadd.f32 %v5045_v23, %v3121_v41  ;;  %v8208_v57 = vor.u32 %v9010_v4, %v8207_v39  ;;  %v8212_v41 = vor.u32 %v9008_v1, %v8209_v16  ;;  %v8185_v9 = vld [vmem:[%s13476_s5 + $0x10] sm:$0xf0]  ;;  %v8191_v23 = vld [vmem:[%s13476_s5 + $0x8] sm:$0xf] }
 0x9b1   :  { %v8188_v33 = vor.u32 %v9003_v47, %v8185_v9  ;;  %v8192_v38 = vor.u32 %v9006_v6, %v8191_v23 }
 0x9b2   :  { %v8178_v22 = vmul.f32 -1.442695, %v5075_v17  ;;  %v8179_v18 = vmul.f32 -1.442695, %v5076_v54  ;;  %v8193_v17 = vld [vmem:[%s13476_s5 + $0x18] sm:$0xf0]  ;;  %5376 = vmatpush.bf16.msrb.mxu2 %v8208_v57  ;;  %5389 = vmatpush.bf16.msrb.mxu3 %v8212_v41 }
 0x9b3   :  { %v8196_v29 = vor.u32 %v9004_v46, %v8193_v17  ;;  %5364 = vmatpush.bf16.msra.mxu1 %v8188_v33 }
 0x9b4   :  { %9298 = vpow2.f32 %v8178_v22 }
 0x9b5   :  { %9300 = vpow2.f32 %v8179_v18 }
 0x9b6   :  { %v5058_v48 = vpop.f32.mrf.mxu2  ;;  %v5071_v40 = vpop.f32.mrf.mxu3  ;;  %5377 = vmatpush.bf16.msrb.mxu2 %v8192_v38  ;;  %5390 = vmatpush.bf16.msrb.mxu3 %v8196_v29 }
 0x9b7   :  { %v5078_v3 = vadd.f32 %v5071_v40, %v3179_v36  ;;  %v5034_v0 = vpop.f32.mrf.mxu0  ;;  %v5047_v24 = vpop.f32.mrf.mxu1  ;;  %v5077_v12 = vadd.f32 %v5058_v48, %v3150_v26  ;;  %v9057_v26 = vld [vmem:[%s13476_s5 + $0xac] sm:$0xf0] }
 0x9b9   :  { %v8180_v43 = vmul.f32 -1.442695, %v5078_v3 }
 0x9ba   :  { %v9299_v54 = vpop.eup %9298 }
 0x9bb   :  { %v9301_v55 = vpop.eup %9300  ;;  %v5082_v50 = vadd.f32 1.0, %v9299_v54  ;;  %9302 = vpow2.f32 %v8180_v43 }
 0x9bc   :  { %v5101_v22 = vadd.f32 1.0, %v9301_v55  ;;  %v8426_v55 = vld [vmem:[%s13476_s5 + $0xe0] sm:$0xf] }
 0x9bd   :  { %9304 = vrcp.f32 %v5082_v50  ;;  %v5094_v25 = vand.u32 2147483648, %v5082_v50  ;;  %v5092_v28 = vand.u32 2147483647, %v5082_v50  ;;  %vm5088_vm15 = vweird.f32 %v5082_v50 }
 0x9be   :  { %9306 = vrcp.f32 %v5101_v22  ;;  %v5060_v18 = vpop.f32.mrf.mxu2  ;;  %v5073_v49 = vpop.f32.mrf.mxu3  ;;  %v5113_v37 = vand.u32 2147483648, %v5101_v22  ;;  %v5111_v40 = vand.u32 2147483647, %v5101_v22  ;;  %vm5107_vm0 = vweird.f32 %v5101_v22 }
 0x9bf   :  { %v5095_v48 = vor.u32 1.1754944e-38, %v5094_v25  ;;  %vm5093_vm3 = vcmp.eq.f32.partialorder %v5092_v28, 8.507059e+37  ;;  %v9061_v18 = vld [vmem:[%s13476_s5 + $0xcc] sm:$0xf0]  ;;  %v9066_v25 = vld [vmem:[%s13476_s5 + $0xf4] sm:$0xf0] }
 0x9c0   :  { %v5114_v16 = vor.u32 1.1754944e-38, %v5113_v37  ;;  %vm5112_vm4 = vcmp.eq.f32.partialorder %v5111_v40, 8.507059e+37  ;;  %v9064_v37 = vld [vmem:[%s13476_s5 + $0xec] sm:$0xf]  ;;  %v8362_v40 = vld [vmem:[%s13476_s5 + $0x60] sm:$0xf] }
 0x9c1   :  { %v9303_v10 = vpop.eup %9302 }
 0x9c2   :  { %v5121_v15 = vadd.f32 1.0, %v9303_v10  ;;  %v8394_v10 = vld [vmem:[%s13476_s5 + $0xa0] sm:$0xf] }
 0x9c3   :  { %v9305_v51 = vpop.eup %9304 }
 0x9c4   :  { %v9307_v20 = vpop.eup %9306  ;;  %v5084_v42 = vmul.f32 %v9305_v51, %v5082_v50  ;;  %9308 = vrcp.f32 %v5121_v15  ;;  %vm5089_vm13 = vweird.f32 %v9305_v51  ;;  %v5133_v6 = vand.u32 2147483648, %v5121_v15  ;;  %v9065_v50 = vld [vmem:[%s13476_s5 + $0xec] sm:$0xf0] }
 0x9c5   :  { %v5103_v58 = vmul.f32 %v9307_v20, %v5101_v22  ;;  %9310 = vtanh.f32 %v5077_v12  ;;  %vm5108_vm14 = vweird.f32 %v9307_v20  ;;  %vm5090_vm1 = vmor %vm5088_vm15, %vm5089_vm13  ;;  %vm5127_vm6 = vweird.f32 %v5121_v15  ;;  %v8410_v22 = vld [vmem:[%s13476_s5 + $0xc0] sm:$0xf]  ;;  %v9053_v12 = vld [vmem:[%s13476_s5 + $0x8c] sm:$0xf0] }
 0x9c6   :  { %v5085_v8 = vsub.f32 1.0, %v5084_v42  ;;  %vm5109_vm2 = vmor %vm5107_vm0, %vm5108_vm14  ;;  %v5131_v43 = vand.u32 2147483647, %v5121_v15  ;;  %v5134_v46 = vor.u32 1.1754944e-38, %v5133_v6  ;;  %v8427_v29 = vor.u32 %v9065_v50, %v8426_v55  ;;  %v9063_v42 = vld [vmem:[%s13476_s5 + $0xe4] sm:$0xf] }
 0x9c7   :  { %v5104_v36 = vsub.f32 1.0, %v5103_v58  ;;  %v8411_v49 = vor.u32 %v9061_v18, %v8410_v22  ;;  %v8428_v58 = vld [vmem:[%s13476_s5 + $0xf0] sm:$0xf0]  ;;  %v8402_v6 = vld [vmem:[%s13476_s5 + $0xa8] sm:$0xf] }
 0x9c8   :  { %v5086_v56 = vmul.f32 %v9305_v51, %v5085_v8  ;;  %vm5132_vm8 = vcmp.eq.f32.partialorder %v5131_v43, 8.507059e+37  ;;  %5665 = vmatpush.bf16.msrb.mxu0 %v8427_v29  ;;  %v8434_v8 = vld [vmem:[%s13476_s5 + $0xe8] sm:$0xf]  ;;  %v8330_v55 = vld [vmem:[%s13476_s5 + $0x20] sm:$0xf] }
 0x9c9   :  { %v5105_v39 = vmul.f32 %v9307_v20, %v5104_v36  ;;  %v8431_v36 = vor.u32 %v9063_v42, %v8428_v58  ;;  %v8435_v28 = vor.u32 %v9066_v25, %v8434_v8  ;;  %v9041_v50 = vld [vmem:[%s13476_s5 + $0x2c] sm:$0xf0]  ;;  %v9051_v22 = vld [vmem:[%s13476_s5 + $0x84] sm:$0xf]  ;;  %v8380_v18 = vld [vmem:[%s13476_s5 + $0x90] sm:$0xf0] }
 0x9ca   :  { %v9309_v59 = vpop.eup %9308  ;;  %v5087_v44 = vadd.f32 %v9305_v51, %v5086_v56  ;;  %v8436_v56 = vld [vmem:[%s13476_s5 + $0xf8] sm:$0xf0]  ;;  %v8331_v29 = vor.u32 %v9041_v50, %v8330_v55  ;;  %v8314_v42 = vld [vmem:[%s13476_s5] sm:$0xf]  ;;  %v9037_v58 = vld [vmem:[%s13476_s5 + $0xc] sm:$0xf0] }
 0x9cb   :  { %v5106_v4 = vadd.f32 %v9307_v20, %v5105_v39  ;;  %v5123_v1 = vmul.f32 %v9309_v59, %v5121_v15  ;;  %v9311_v0 = vpop.eup %9310  ;;  %vm5128_vm5 = vweird.f32 %v9309_v59  ;;  %v8395_v15 = vor.u32 %v9057_v26, %v8394_v10  ;;  %5678 = vmatpush.bf16.msrb.mxu1 %v8431_v36  ;;  %5691 = vmatpush.bf16.msra.mxu2 %v8435_v28  ;;  %v9054_v26 = vld [vmem:[%s13476_s5 + $0x94] sm:$0xf0]  ;;  %v9047_v36 = vld [vmem:[%s13476_s5 + $0x64] sm:$0xf]  ;;  %v8364_v25 = vld [vmem:[%s13476_s5 + $0x70] sm:$0xf0] }
 0x9cc   :  { %v5091_v3 = vsel %vm5090_vm1, %v9305_v51, %v5087_v44  ;;  %vm5129_vm7 = vmor %vm5127_vm6, %vm5128_vm5  ;;  %5666 = vmatpush.bf16.msrb.mxu0 %v8411_v49  ;;  %v8378_v51 = vld [vmem:[%s13476_s5 + $0x80] sm:$0xf]  ;;  %v8439_v39 = vor.u32 %v9064_v37, %v8436_v56  ;;  %v8386_v49 = vld [vmem:[%s13476_s5 + $0x88] sm:$0xf]  ;;  %v8383_v10 = vor.u32 %v9051_v22, %v8380_v18  ;;  %v8315_v8 = vor.u32 %v9037_v58, %v8314_v42 }
 0x9cd   :  { %v5096_v24 = vsel %vm5093_vm3, %v5095_v48, %v5091_v3  ;;  %v5110_v57 = vsel %vm5109_vm2, %v9307_v20, %v5106_v4  ;;  %v5124_v41 = vsub.f32 1.0, %v5123_v1  ;;  %v8379_v20 = vor.u32 %v9053_v12, %v8378_v51  ;;  %v9059_v48 = vld [vmem:[%s13476_s5 + $0xc4] sm:$0xf]  ;;  %v8412_v4 = vld [vmem:[%s13476_s5 + $0xd0] sm:$0xf0] }
 0x9ce   :  { %v5115_v30 = vsel %vm5112_vm4, %v5114_v16, %v5110_v57  ;;  %v5139_v13 = vmul.f32 %v9311_v0, %v5096_v24  ;;  %5704 = vmatpush.bf16.msra.mxu3 %v8439_v39  ;;  %v8418_v1 = vld [vmem:[%s13476_s5 + $0xc8] sm:$0xf]  ;;  %v8415_v16 = vor.u32 %v9059_v48, %v8412_v4  ;;  %v9062_v3 = vld [vmem:[%s13476_s5 + $0xd4] sm:$0xf0]  ;;  %v9060_v0 = vld [vmem:[%s13476_s5 + $0xcc] sm:$0xf]  ;;  %v8387_v12 = vor.u32 %v9054_v26, %v8386_v49 }
 0x9cf   :  { %v5138_v47 = vmul.f32 %v5115_v30, %v12919_v63  ;;  %v5125_v34 = vmul.f32 %v9309_v59, %v5124_v41  ;;  %v8420_v24 = vld [vmem:[%s13476_s5 + $0xd8] sm:$0xf0]  ;;  %v8419_v57 = vor.u32 %v9062_v3, %v8418_v1  ;;  %v8346_v30 = vld [vmem:[%s13476_s5 + $0x40] sm:$0xf]  ;;  %v8370_v37 = vld [vmem:[%s13476_s5 + $0x68] sm:$0xf]  ;;  %v3095_v56 = vadd.f32 %v11872_v27, %v11944_v52 }
 0x9d0   :  { %5667 = vmatpush.bf16.msrb.mxu0 %v8395_v15  ;;  %v8423_v41 = vor.u32 %v9060_v0, %v8420_v24  ;;  %5679 = vmatpush.bf16.msrb.mxu1 %v8415_v16  ;;  %v9052_v15 = vld [vmem:[%s13476_s5 + $0x8c] sm:$0xf]  ;;  %v8388_v51 = vld [vmem:[%s13476_s5 + $0x98] sm:$0xf0]  ;;  %v3124_v28 = vadd.f32 %v11874_v61, %v11947_v60  ;;  %v8367_v39 = vor.u32 %v9047_v36, %v8364_v25  ;;  %v9043_v0 = vld [vmem:[%s13476_s5 + $0x44] sm:$0xf] }
 0x9d1   :  { %v13127_v9 = vadd.f32 %v5139_v13, %v5138_v47  ;;  %v5126_v23 = vadd.f32 %v9309_v59, %v5125_v34  ;;  %v9045_v13 = vld [vmem:[%s13476_s5 + $0x4c] sm:$0xf0]  ;;  %5692 = vmatpush.bf16.msra.mxu2 %v8419_v57  ;;  %v9055_v34 = vld [vmem:[%s13476_s5 + $0xa4] sm:$0xf]  ;;  %v9074_v61 = vld [vmem:[%s13478_s7 + $0x38] sm:$0xff] }
 0x9d2   :  { %5705 = vmatpush.bf16.msra.mxu3 %v8423_v41  ;;  %v8347_v47 = vor.u32 %v9045_v13, %v8346_v30  ;;  %v8348_v24 = vld [vmem:[%s13476_s5 + $0x50] sm:$0xf0]  ;;  %v8354_v57 = vld [vmem:[%s13476_s5 + $0x48] sm:$0xf]  ;;  %v9042_v50 = vld [vmem:[%s13476_s5 + $0x34] sm:$0xf0] }
 0x9d3   :  { %9312 = vtanh.f32 %v13127_v9  ;;  %v5130_v33 = vsel %vm5129_vm7, %v9309_v59, %v5126_v23  ;;  %v9049_v59 = vld [vmem:[%s13476_s5 + $0x6c] sm:$0xf0]  ;;  %v8396_v23 = vld [vmem:[%s13476_s5 + $0xb0] sm:$0xf0]  ;;  %v8351_v13 = vor.u32 %v9043_v0, %v8348_v24  ;;  %v8340_v22 = vld [vmem:[%s13476_s5 + $0x38] sm:$0xf0] }
 0x9d4   :  { %v5135_v54 = vsel %vm5132_vm8, %v5134_v46, %v5130_v33  ;;  %5668 = vmatpush.bf16.msrb.mxu0 %v8379_v20  ;;  %v8363_v44 = vor.u32 %v9049_v59, %v8362_v40  ;;  %v8399_v43 = vor.u32 %v9055_v34, %v8396_v23  ;;  %v9058_v33 = vld [vmem:[%s13476_s5 + $0xb4] sm:$0xf0]  ;;  %v9056_v46 = vld [vmem:[%s13476_s5 + $0xac] sm:$0xf]  ;;  %v8391_v20 = vor.u32 %v9052_v15, %v8388_v51  ;;  %v9035_v15 = vld [vmem:[%s13476_s5 + $0x4] sm:$0xf] }
 0x9d5   :  { %v9050_v40 = vld [vmem:[%s13476_s5 + $0x74] sm:$0xf0]  ;;  %v9048_v59 = vld [vmem:[%s13476_s5 + $0x6c] sm:$0xf]  ;;  %v8316_v51 = vld [vmem:[%s13476_s5 + $0x10] sm:$0xf0] }
 0x9d6   :  { %5680 = vmatpush.bf16.msrb.mxu1 %v8399_v43  ;;  %v8371_v27 = vor.u32 %v9050_v40, %v8370_v37  ;;  %v9044_v23 = vld [vmem:[%s13476_s5 + $0x4c] sm:$0xf]  ;;  %v9073_v43 = vld [vmem:[%s13478_s7 + $0x30] sm:$0xff]  ;;  %v8322_v58 = vld [vmem:[%s13476_s5 + $0x8] sm:$0xf]  ;;  %v8319_v25 = vor.u32 %v9035_v15, %v8316_v51 }
 0x9d7   :  { %v9072_v26 = vld [vmem:[%s13478_s7 + $0x28] sm:$0xff]  ;;  %v8324_v37 = vld [vmem:[%s13476_s5 + $0x18] sm:$0xf0]  ;;  %v9069_v24 = vld [vmem:[%s13478_s7 + $0x10] sm:$0xff] }
 0x9d8   :  { %5669 = vmatpush.bf16.msrb.mxu0 %v8363_v44  ;;  %v8372_v44 = vld [vmem:[%s13476_s5 + $0x78] sm:$0xf0]  ;;  %v9036_v36 = vld [vmem:[%s13476_s5 + $0xc] sm:$0xf] }
 0x9d9   :  { %v9313_v17 = vpop.eup %9312  ;;  %v8375_v1 = vor.u32 %v9048_v59, %v8372_v44  ;;  %v8327_v40 = vor.u32 %v9036_v36, %v8324_v37  ;;  %v9071_v59 = vld [vmem:[%s13478_s7 + $0x20] sm:$0xff] }
 0x9da   :  { %v13130_v38 = vmul.f32 %v9313_v17, %v5135_v54  ;;  %v8404_v17 = vld [vmem:[%s13476_s5 + $0xb8] sm:$0xf0]  ;;  %v8403_v54 = vor.u32 %v9058_v33, %v8402_v6  ;;  %5681 = vmatpush.bf16.msrb.mxu1 %v8383_v10 }
 0x9db   :  { %v8356_v6 = vld [vmem:[%s13476_s5 + $0x58] sm:$0xf0] }
 0x9dc   :  { %v5151_v63 = vpack.c.bf16 %v13130_v38, %v13130_v38  ;;  %5670 = vmatpush.bf16.msrb.mxu0 %v8347_v47  ;;  %5693 = vmatpush.bf16.msra.mxu2 %v8403_v54  ;;  %v9046_v47 = vld [vmem:[%s13476_s5 + $0x54] sm:$0xf0]  ;;  %v8359_v33 = vor.u32 %v9044_v23, %v8356_v6  ;;  %v8338_v54 = vld [vmem:[%s13476_s5 + $0x28] sm:$0xf] }
 0x9dd   :  { %v8355_v34 = vor.u32 %v9046_v47, %v8354_v57  ;;  %v9068_v23 = vld [vmem:[%s13478_s7 + $0x8] sm:$0xff] }
 0x9de   :  { %5352 = vmatmul.bf16.vlgmr.msra.gmra.mxu0 %v5151_v63  ;;  %5365 = vmatmul.bf16.vlgmr.msra.gmra.mxu1 %v5151_v63 }
 0x9df   :  { %5378 = vmatmul.bf16.vlgmr.msrb.gmra.mxu2 %v5151_v63  ;;  %5391 = vmatmul.bf16.vlgmr.msrb.gmra.mxu3 %v5151_v63  ;;  %v8407_v63 = vor.u32 %v9056_v46, %v8404_v17  ;;  %v9039_v46 = vld [vmem:[%s13476_s5 + $0x24] sm:$0xf]  ;;  %v8332_v17 = vld [vmem:[%s13476_s5 + $0x30] sm:$0xf0] }
 0x9e0   :  { %5671 = vmatpush.bf16.msrb.mxu0 %v8331_v29  ;;  %5694 = vmatpush.bf16.msra.mxu2 %v8387_v12  ;;  %v8335_v55 = vor.u32 %v9039_v46, %v8332_v17  ;;  %v9040_v29 = vld [vmem:[%s13476_s5 + $0x2c] sm:$0xf] }
 0x9e1   :  { %5706 = vmatpush.bf16.msra.mxu3 %v8407_v63  ;;  %5682 = vmatpush.bf16.msrb.mxu1 %v8367_v39  ;;  %v3182_v63 = vadd.f32 %v11922_v32, %v12006_v2  ;;  %v8339_v32 = vor.u32 %v9042_v50, %v8338_v54  ;;  %v8343_v10 = vor.u32 %v9040_v29, %v8340_v22  ;;  %v9067_v50 = vld [vmem:[%s13478_s7] sm:$0xff] }
 0x9e4   :  { %5672 = vmatpush.bf16.msrb.mxu0 %v8315_v8  ;;  %5695 = vmatpush.bf16.msra.mxu2 %v8371_v27  ;;  %v9038_v8 = vld [vmem:[%s13476_s5 + $0x14] sm:$0xf0] }
 0x9e5   :  { %5707 = vmatpush.bf16.msra.mxu3 %v8391_v20  ;;  %5683 = vmatpush.bf16.msrb.mxu1 %v8351_v13 }
 0x9e8   :  { %5868 = vmatpush.bf16.msra.mxu0 %v9074_v61  ;;  %5696 = vmatpush.bf16.msra.mxu2 %v8355_v34  ;;  %v9070_v61 = vld [vmem:[%s13478_s7 + $0x18] sm:$0xff] }
 0x9e9   :  { %5708 = vmatpush.bf16.msra.mxu3 %v8375_v1  ;;  %5684 = vmatpush.bf16.msrb.mxu1 %v8335_v55 }
 0x9ec   :  { %5869 = vmatpush.bf16.msra.mxu0 %v9073_v43  ;;  %5697 = vmatpush.bf16.msra.mxu2 %v8339_v32 }
 0x9ed   :  { %5709 = vmatpush.bf16.msra.mxu3 %v8359_v33  ;;  %5685 = vmatpush.bf16.msrb.mxu1 %v8319_v25 }
 0x9f0   :  { %5870 = vmatpush.bf16.msra.mxu0 %v9072_v26 }
 0x9f1   :  { %5710 = vmatpush.bf16.msra.mxu3 %v8343_v10 }
 0x9f4   :  { %5871 = vmatpush.bf16.msra.mxu0 %v9071_v59 }
 0x9f5   :  { %5711 = vmatpush.bf16.msra.mxu3 %v8327_v40 }
 0x9f8   :  { %5872 = vmatpush.bf16.msra.mxu0 %v9070_v61  ;;  %v3097_v61 = vadd.f32 %v11933_v7, %v11944_v52 }
 0x9fc   :  { %5873 = vmatpush.bf16.msra.mxu0 %v9069_v24 }
 0xa00   :  { %5874 = vmatpush.bf16.msra.mxu0 %v9068_v23 }
 0xa04   :  { %5875 = vmatpush.bf16.msra.mxu0 %v9067_v50 }
 0xa5b   :  { %v5353_v48 = vpop.f32.mrf.mxu0  ;;  %v5366_v4 = vpop.f32.mrf.mxu1 }
 0xa5c   :  { %v5396_v16 = vadd.f32 %v5353_v48, %v3095_v56  ;;  %v5397_v3 = vadd.f32 %v5366_v4, %v3124_v28  ;;  %v8323_v28 = vor.u32 %v9038_v8, %v8322_v58 }
 0xa5e   :  { %v8309_v41 = vmul.f32 -1.442695, %v5396_v16  ;;  %v8310_v30 = vmul.f32 -1.442695, %v5397_v3  ;;  %5698 = vmatpush.bf16.msra.mxu2 %v8323_v28  ;;  %v3153_v3 = vadd.f32 %v11920_v21, %v12083_v35 }
 0xa60   :  { %9314 = vpow2.f32 %v8309_v41 }
 0xa61   :  { %9316 = vpow2.f32 %v8310_v30 }
 0xa62   :  { %v5379_v18 = vpop.f32.mrf.mxu2  ;;  %v5392_v49 = vpop.f32.mrf.mxu3 }
 0xa63   :  { %v5399_v12 = vadd.f32 %v5392_v49, %v3182_v63  ;;  %v5355_v20 = vpop.f32.mrf.mxu0  ;;  %v5368_v42 = vpop.f32.mrf.mxu1  ;;  %v5398_v41 = vadd.f32 %v5379_v18, %v3153_v3 }
 0xa65   :  { %v8311_v56 = vmul.f32 -1.442695, %v5399_v12 }
 0xa66   :  { %v9315_v39 = vpop.eup %9314 }
 0xa67   :  { %v9317_v44 = vpop.eup %9316  ;;  %v5403_v48 = vadd.f32 1.0, %v9315_v39  ;;  %9318 = vpow2.f32 %v8311_v56 }
 0xa68   :  { %v5422_v4 = vadd.f32 1.0, %v9317_v44  ;;  %v5796_v44 = vpack.c.bf16 %v12298_v53, %v12090_v31  ;;  %v9080_v31 = vld [vmem:[%s13480_s9 + $0x28] sm:$0xff]  ;;  %v9079_v53 = vld [vmem:[%s13480_s9 + $0x20] sm:$0xff] }
 0xa69   :  { %9320 = vrcp.f32 %v5403_v48  ;;  %v5415_v21 = vand.u32 2147483648, %v5403_v48  ;;  %v5413_v46 = vand.u32 2147483647, %v5403_v48  ;;  %vm5409_vm11 = vweird.f32 %v5403_v48 }
 0xa6a   :  { %9322 = vrcp.f32 %v5422_v4  ;;  %v5381_v27 = vpop.f32.mrf.mxu2  ;;  %v5394_v1 = vpop.f32.mrf.mxu3  ;;  %v5434_v43 = vand.u32 2147483648, %v5422_v4  ;;  %v5432_v54 = vand.u32 2147483647, %v5422_v4  ;;  %vm5428_vm12 = vweird.f32 %v5422_v4 }
 0xa6b   :  { %v5416_v29 = vor.u32 1.1754944e-38, %v5415_v21  ;;  %vm5414_vm15 = vcmp.eq.f32.partialorder %v5413_v46, 8.507059e+37  ;;  %v9082_v27 = vld [vmem:[%s13480_s9 + $0x38] sm:$0xff]  ;;  %v9081_v1 = vld [vmem:[%s13480_s9 + $0x30] sm:$0xff] }
 0xa6c   :  { %v5435_v49 = vor.u32 1.1754944e-38, %v5434_v43  ;;  %vm5433_vm0 = vcmp.eq.f32.partialorder %v5432_v54, 8.507059e+37  ;;  %5977 = vmatpush.bf16.msra.mxu1 %v9082_v27 }
 0xa6d   :  { %v9319_v16 = vpop.eup %9318 }
 0xa6e   :  { %v5442_v0 = vadd.f32 1.0, %v9319_v16  ;;  %v3126_v16 = vadd.f32 %v11935_v14, %v11947_v60 }
 0xa6f   :  { %v9321_v57 = vpop.eup %9320 }
 0xa70   :  { %v9323_v30 = vpop.eup %9322  ;;  %v5405_v13 = vmul.f32 %v9321_v57, %v5403_v48  ;;  %9324 = vrcp.f32 %v5442_v0  ;;  %vm5410_vm9 = vweird.f32 %v9321_v57  ;;  %v5454_v25 = vand.u32 2147483648, %v5442_v0  ;;  %5978 = vmatpush.bf16.msra.mxu1 %v9081_v1 }
 0xa71   :  { %v5424_v47 = vmul.f32 %v9323_v30, %v5422_v4  ;;  %9326 = vtanh.f32 %v5398_v41  ;;  %vm5429_vm10 = vweird.f32 %v9323_v30  ;;  %vm5411_vm13 = vmor %vm5409_vm11, %vm5410_vm9  ;;  %vm5448_vm2 = vweird.f32 %v5442_v0 }
 0xa72   :  { %v5406_v34 = vsub.f32 1.0, %v5405_v13  ;;  %vm5430_vm14 = vmor %vm5428_vm12, %vm5429_vm10  ;;  %v5452_v37 = vand.u32 2147483647, %v5442_v0  ;;  %v5455_v28 = vor.u32 1.1754944e-38, %v5454_v25  ;;  %v5797_v48 = vpack.c.bf16 %v12714_v45, %v12506_v62  ;;  %v9078_v62 = vld [vmem:[%s13480_s9 + $0x18] sm:$0xff]  ;;  %v9077_v45 = vld [vmem:[%s13480_s9 + $0x10] sm:$0xff] }
 0xa73   :  { %v5425_v6 = vsub.f32 1.0, %v5424_v47  ;;  %v5798_v4 = vpack.c.bf16 %v13130_v38, %v12922_v5  ;;  %v9076_v5 = vld [vmem:[%s13480_s9 + $0x8] sm:$0xff]  ;;  %v9075_v38 = vld [vmem:[%s13480_s9] sm:$0xff]  ;;  %v3184_v13 = vadd.f32 %v11988_v19, %v12006_v2  ;;  %v3155_v19 = vadd.f32 %v11986_v11, %v12083_v35 }
 0xa74   :  { %v5407_v33 = vmul.f32 %v9321_v57, %v5406_v34  ;;  %vm5453_vm4 = vcmp.eq.f32.partialorder %v5452_v37, 8.507059e+37  ;;  %5979 = vmatpush.bf16.msra.mxu1 %v9080_v31 }
 0xa75   :  { %v5426_v17 = vmul.f32 %v9323_v30, %v5425_v6 }
 0xa76   :  { %v9325_v63 = vpop.eup %9324  ;;  %v5408_v55 = vadd.f32 %v9321_v57, %v5407_v33 }
 0xa77   :  { %v5427_v22 = vadd.f32 %v9323_v30, %v5426_v17  ;;  %v5444_v18 = vmul.f32 %v9325_v63, %v5442_v0  ;;  %v9327_v10 = vpop.eup %9326  ;;  %vm5449_vm1 = vweird.f32 %v9325_v63 }
 0xa78   :  { %v5412_v32 = vsel %vm5411_vm13, %v9321_v57, %v5408_v55  ;;  %vm5450_vm3 = vmor %vm5448_vm2, %vm5449_vm1  ;;  %5980 = vmatpush.bf16.msra.mxu1 %v9079_v53 }
 0xa79   :  { %v5417_v26 = vsel %vm5414_vm15, %v5416_v29, %v5412_v32  ;;  %v5431_v15 = vsel %vm5430_vm14, %v9323_v30, %v5427_v22  ;;  %v5445_v51 = vsub.f32 1.0, %v5444_v18 }
 0xa7a   :  { %v5436_v12 = vsel %vm5433_vm0, %v5435_v49, %v5431_v15  ;;  %v5460_v20 = vmul.f32 %v9327_v10, %v5417_v26 }
 0xa7b   :  { %v5459_v42 = vmul.f32 %v5436_v12, %v13127_v9  ;;  %v5446_v58 = vmul.f32 %v9325_v63, %v5445_v51 }
 0xa7c   :  { %5981 = vmatpush.bf16.msra.mxu1 %v9078_v62  ;;  %v16_v62 = vstv %s13481_s10 }
 0xa7d   :  { %v13359_v8 = vadd.f32 %v5460_v20, %v5459_v42  ;;  %v5447_v36 = vadd.f32 %v9325_v63, %v5446_v58  ;;  %17 = vst [vmem:[#allocation6] sm:$0x1] %v16_v62 }
 0xa7f   :  { %9328 = vtanh.f32 %v13359_v8  ;;  %v5451_v56 = vsel %vm5450_vm3, %v9325_v63, %v5447_v36  ;;  %v13409_v63 = vld [vmem:[%s13479_s8] ss:$0 sm:$0xff] }
 0xa80   :  { %v5456_v40 = vsel %vm5453_vm4, %v5455_v28, %v5451_v56  ;;  %5982 = vmatpush.bf16.msra.mxu1 %v9077_v45  ;;  %vm6158_vm4 = vcmask 7168  }
 0xa84   :  { %5983 = vmatpush.bf16.msra.mxu1 %v9076_v5 }
 0xa85   :  { %v9329_v39 = vpop.eup %9328 }
 0xa86   :  { %v13362_v59 = vmul.f32 %v9329_v39, %v5456_v40 }
 0xa88   :  { %v5472_v9 = vpack.c.bf16 %v13362_v59, %v13362_v59  ;;  %5984 = vmatpush.bf16.msra.mxu1 %v9075_v38 }
 0xa8a   :  { %5673 = vmatmul.bf16.vlgmr.msrb.gmra.mxu0 %v5472_v9  ;;  %5686 = vmatmul.bf16.vlgmr.msrb.gmra.mxu1 %v5472_v9 }
 0xa8b   :  { %5699 = vmatmul.bf16.vlgmr.msra.gmra.mxu2 %v5472_v9  ;;  %5712 = vmatmul.bf16.vlgmr.msra.gmra.mxu3 %v5472_v9 }
 0xa9a   :  { %5876 = vmatmul.bf16.vlgmr.msra.gmra.mxu0 %v5796_v44 }
 0xaaa   :  { %5881 = vmatmul.bf16.gmra.mxu0 %v5797_v48 }
 0xaba   :  { %5886 = vmatmul.bf16.gmra.mxu0 %v5798_v4 }
 0xb07   :  { %v5674_v3 = vpop.f32.mrf.mxu0  ;;  %v5687_v0 = vpop.f32.mrf.mxu1 }
 0xb08   :  { %v5717_v24 = vadd.f32 %v5674_v3, %v3097_v61  ;;  %v5718_v57 = vadd.f32 %v5687_v0, %v3126_v16 }
 0xb0a   :  { %v8440_v41 = vmul.f32 -1.442695, %v5717_v24  ;;  %v8441_v30 = vmul.f32 -1.442695, %v5718_v57 }
 0xb0c   :  { %9330 = vpow2.f32 %v8440_v41 }
 0xb0d   :  { %9332 = vpow2.f32 %v8441_v30 }
 0xb0e   :  { %v5700_v47 = vpop.f32.mrf.mxu2  ;;  %v5713_v34 = vpop.f32.mrf.mxu3 }
 0xb0f   :  { %v5720_v23 = vadd.f32 %v5713_v34, %v3184_v13  ;;  %v5676_v6 = vpop.f32.mrf.mxu0  ;;  %v5689_v21 = vpop.f32.mrf.mxu1  ;;  %v5719_v50 = vadd.f32 %v5700_v47, %v3155_v19 }
 0xb11   :  { %v8442_v7 = vmul.f32 -1.442695, %v5720_v23 }
 0xb12   :  { %v9331_v52 = vpop.eup %9330 }
 0xb13   :  { %v9333_v43 = vpop.eup %9332  ;;  %v5724_v14 = vadd.f32 1.0, %v9331_v52  ;;  %9334 = vpow2.f32 %v8442_v7 }
 0xb14   :  { %v5743_v60 = vadd.f32 1.0, %v9333_v43 }
 0xb15   :  { %9336 = vrcp.f32 %v5724_v14  ;;  %v5734_v26 = vand.u32 2147483647, %v5724_v14  ;;  %v5736_v11 = vand.u32 2147483648, %v5724_v14  ;;  %vm5730_vm7 = vweird.f32 %v5724_v14 }
 0xb16   :  { %9338 = vrcp.f32 %v5743_v60  ;;  %v5702_v33 = vpop.f32.mrf.mxu2  ;;  %v5715_v46 = vpop.f32.mrf.mxu3  ;;  %v5755_v15 = vand.u32 2147483648, %v5743_v60  ;;  %v5753_v42 = vand.u32 2147483647, %v5743_v60  ;;  %vm5749_vm8 = vweird.f32 %v5743_v60 }
 0xb17   :  { %v5877_v17 = vpop.f32.mrf.mxu0  ;;  %v5737_v56 = vor.u32 1.1754944e-38, %v5736_v11  ;;  %vm5735_vm11 = vcmp.eq.f32.partialorder %v5734_v26, 8.507059e+37 }
 0xb18   :  { %v5878_v32 = vadd.f32 %v13409_v63, %v5877_v17  ;;  %v5756_v40 = vor.u32 1.1754944e-38, %v5755_v15  ;;  %vm5754_vm12 = vcmp.eq.f32.partialorder %v5753_v42, 8.507059e+37 }
 0xb19   :  { %v9335_v54 = vpop.eup %9334 }
 0xb1a   :  { %v13404_v2 = vadd.f32 1.0, %v9335_v54  ;;  %v5897_v25 = vmax.f32 %v5878_v32, 0.0  ;;  %v13427_v54 = vld [vmem:[#allocation6] ss:$0 sm:$0xff] }
 0xb1b   :  { %v9337_v55 = vpop.eup %9336 }
 0xb1c   :  { %v9339_v29 = vpop.eup %9338  ;;  %v5726_v22 = vmul.f32 %v9337_v55, %v5724_v14  ;;  %9340 = vrcp.f32 %v13404_v2  ;;  %vm5731_vm5 = vweird.f32 %v9337_v55  ;;  %v5775_v3 = vand.u32 2147483648, %v13404_v2 }
 0xb1d   :  { %v5745_v18 = vmul.f32 %v9339_v29, %v5743_v60  ;;  %9342 = vtanh.f32 %v5719_v50  ;;  %vm5750_vm6 = vweird.f32 %v9339_v29  ;;  %vm5732_vm9 = vmor %vm5730_vm7, %vm5731_vm5  ;;  %vm5769_vm14 = vweird.f32 %v13404_v2 }
 0xb1e   :  { %v5727_v49 = vsub.f32 1.0, %v5726_v22  ;;  %vm5751_vm10 = vmor %vm5749_vm8, %vm5750_vm6  ;;  %v5773_v0 = vand.u32 2147483647, %v13404_v2  ;;  %v5776_v30 = vor.u32 1.1754944e-38, %v5775_v3 }
 0xb1f   :  { %v5746_v10 = vsub.f32 1.0, %v5745_v18  ;;  %v5879_v35 = vpop.f32.mrf.mxu0 }
 0xb20   :  { %v5728_v51 = vmul.f32 %v9337_v55, %v5727_v49  ;;  %v5880_v12 = vadd.f32 %v13409_v63, %v5879_v35  ;;  %vm5774_vm0 = vcmp.eq.f32.partialorder %v5773_v0, 8.507059e+37 }
 0xb21   :  { %v5747_v20 = vmul.f32 %v9339_v29, %v5746_v10 }
 0xb22   :  { %v9341_v58 = vpop.eup %9340  ;;  %v5729_v36 = vadd.f32 %v9337_v55, %v5728_v51  ;;  %v5898_v37 = vmax.f32 %v5880_v12, 0.0 }
 0xb23   :  { %v5748_v28 = vadd.f32 %v9339_v29, %v5747_v20  ;;  %v5765_v39 = vmul.f32 %v9341_v58, %v13404_v2  ;;  %v9343_v48 = vpop.eup %9342  ;;  %vm5770_vm13 = vweird.f32 %v9341_v58 }
 0xb24   :  { %v5733_v9 = vsel %vm5732_vm9, %v9337_v55, %v5729_v36  ;;  %v5905_v44 = vpack.c.bf16 %v5898_v37, %v5897_v25  ;;  %vm5771_vm15 = vmor %vm5769_vm14, %vm5770_vm13 }
 0xb25   :  { %v5738_v4 = vsel %vm5735_vm11, %v5737_v56, %v5733_v9  ;;  %v5752_v27 = vsel %vm5751_vm10, %v9339_v29, %v5748_v28  ;;  %v5766_v1 = vsub.f32 1.0, %v5765_v39 }
 0xb26   :  { %v5757_v31 = vsel %vm5754_vm12, %v5756_v40, %v5752_v27  ;;  %v5781_v53 = vmul.f32 %v9343_v48, %v5738_v4  ;;  %5985 = vmatmul.bf16.vlgmr.msra.gmra.mxu1 %v5905_v44 }
 0xb27   :  { %v5780_v45 = vmul.f32 %v5757_v31, %v13359_v8  ;;  %v5882_v5 = vpop.f32.mrf.mxu0  ;;  %v5767_v38 = vmul.f32 %v9341_v58, %v5766_v1 }
 0xb28   :  { %v5883_v24 = vadd.f32 %v13409_v63, %v5882_v5 }
 0xb29   :  { %v5782_v61 = vadd.f32 %v5781_v53, %v5780_v45  ;;  %v5768_v16 = vadd.f32 %v9341_v58, %v5767_v38 }
 0xb2a   :  { %v5899_v34 = vmax.f32 %v5883_v24, 0.0 }
 0xb2b   :  { %9344 = vtanh.f32 %v5782_v61  ;;  %v5772_v57 = vsel %vm5771_vm15, %v9341_v58, %v5768_v16 }
 0xb2c   :  { %v5777_v47 = vsel %vm5774_vm0, %v5776_v30, %v5772_v57 }
 0xb2f   :  { %v5884_v41 = vpop.f32.mrf.mxu0 }
 0xb30   :  { %v5885_v8 = vadd.f32 %v13409_v63, %v5884_v41 }
 0xb31   :  { %v9345_v13 = vpop.eup %9344 }
 0xb32   :  { %v5900_v23 = vmax.f32 %v5885_v8, 0.0  ;;  %v5784_v6 = vmul.f32 %v9345_v13, %v5777_v47 }
 0xb34   :  { %v5906_v21 = vpack.c.bf16 %v5900_v23, %v5899_v34  ;;  %v5799_v7 = vpack.c.bf16 %v5784_v6, %v13362_v59 }
 0xb36   :  { %5891 = vmatmul.bf16.gmra.mxu0 %v5799_v7  ;;  %5990 = vmatmul.bf16.gmra.mxu1 %v5906_v21 }
 0xb37   :  { %v5887_v52 = vpop.f32.mrf.mxu0 }
 0xb38   :  { %v5888_v43 = vadd.f32 %v13409_v63, %v5887_v52 }
 0xb3a   :  { %v5901_v33 = vmax.f32 %v5888_v43, 0.0 }
 0xb3f   :  { %v5889_v14 = vpop.f32.mrf.mxu0 }
 0xb40   :  { %v5890_v60 = vadd.f32 %v13409_v63, %v5889_v14 }
 0xb42   :  { %v5902_v46 = vmax.f32 %v5890_v60, 0.0 }
 0xb44   :  { %v5907_v17 = vpack.c.bf16 %v5902_v46, %v5901_v33 }
 0xb46   :  { %5995 = vmatmul.bf16.gmra.mxu1 %v5907_v17 }
 0xba3   :  { %v5986_v19 = vpop.f32.mrf.mxu1 }
 0xba4   :  { %v5987_v2 = vadd.f32 %v13427_v54, %v5986_v19 }
 0xba6   :  { %v8507_v55 = vmul.f32 -1.442695, %v5987_v2 }
 0xba8   :  { %9346 = vpow2.f32 %v8507_v55 }
 0xbab   :  { %v5988_v59 = vpop.f32.mrf.mxu1 }
 0xbac   :  { %v5989_v50 = vadd.f32 %v13427_v54, %v5988_v59 }
 0xbae   :  { %v9347_v29 = vpop.eup %9346  ;;  %v8508_v22 = vmul.f32 -1.442695, %v5989_v50 }
 0xbaf   :  { %v6030_v18 = vadd.f32 1.0, %v9347_v29 }
 0xbb0   :  { %9348 = vpow2.f32 %v8508_v22 }
 0xbb1   :  { %9350 = vrcp.f32 %v6030_v18  ;;  %v6047_v42 = vand.u32 2147483647, %v6030_v18  ;;  %v6049_v58 = vand.u32 2147483648, %v6030_v18  ;;  %vm6043_vm2 = vweird.f32 %v6030_v18 }
 0xbb3   :  { %v5892_v49 = vpop.f32.mrf.mxu0  ;;  %v5991_v32 = vpop.f32.mrf.mxu1  ;;  %v6050_v27 = vor.u32 1.1754944e-38, %v6049_v58  ;;  %vm6048_vm5 = vcmp.eq.f32.partialorder %v6047_v42, 8.507059e+37 }
 0xbb4   :  { %v5992_v10 = vadd.f32 %v13427_v54, %v5991_v32  ;;  %v5893_v20 = vadd.f32 %v13409_v63, %v5892_v49 }
 0xbb6   :  { %v9349_v26 = vpop.eup %9348  ;;  %v8509_v11 = vmul.f32 -1.442695, %v5992_v10  ;;  %v5903_v9 = vmax.f32 %v5893_v20, 0.0 }
 0xbb7   :  { %v9351_v35 = vpop.eup %9350  ;;  %v6031_v15 = vadd.f32 1.0, %v9349_v26 }
 0xbb8   :  { %v6039_v51 = vmul.f32 %v9351_v35, %v6030_v18  ;;  %9352 = vpow2.f32 %v8509_v11  ;;  %vm6044_vm1 = vweird.f32 %v9351_v35 }
 0xbb9   :  { %9354 = vrcp.f32 %v6031_v15  ;;  %vm6045_vm3 = vmor %vm6043_vm2, %vm6044_vm1  ;;  %v6064_v5 = vand.u32 2147483648, %v6031_v15  ;;  %v6062_v16 = vand.u32 2147483647, %v6031_v15  ;;  %vm6058_vm7 = vweird.f32 %v6031_v15 }
 0xbba   :  { %v6040_v12 = vsub.f32 1.0, %v6039_v51 }
 0xbbb   :  { %v5894_v36 = vpop.f32.mrf.mxu0  ;;  %v5993_v25 = vpop.f32.mrf.mxu1  ;;  %v6065_v41 = vor.u32 1.1754944e-38, %v6064_v5  ;;  %vm6063_vm9 = vcmp.eq.f32.partialorder %v6062_v16, 8.507059e+37 }
 0xbbc   :  { %v6041_v37 = vmul.f32 %v9351_v35, %v6040_v12  ;;  %v5895_v56 = vadd.f32 %v13409_v63, %v5894_v36  ;;  %v5994_v28 = vadd.f32 %v13427_v54, %v5993_v25 }
 0xbbe   :  { %v9353_v39 = vpop.eup %9352  ;;  %v6042_v40 = vadd.f32 %v9351_v35, %v6041_v37  ;;  %v5904_v44 = vmax.f32 %v5895_v56, 0.0  ;;  %v8510_v48 = vmul.f32 -1.442695, %v5994_v28 }
 0xbbf   :  { %v9355_v4 = vpop.eup %9354  ;;  %v6032_v1 = vadd.f32 1.0, %v9353_v39 }
 0xbc0   :  { %v6046_v31 = vsel %vm6045_vm3, %v9351_v35, %v6042_v40  ;;  %v6054_v53 = vmul.f32 %v9355_v4, %v6031_v15  ;;  %v5908_v62 = vpack.c.bf16 %v5904_v44, %v5903_v9  ;;  %vm6059_vm6 = vweird.f32 %v9355_v4 }
 0xbc1   :  { %v6051_v45 = vsel %vm6048_vm5, %v6050_v27, %v6046_v31  ;;  %9356 = vrcp.f32 %v6032_v1  ;;  %vm6060_vm8 = vmor %vm6058_vm7, %vm6059_vm6  ;;  %v6079_v6 = vand.u32 2147483648, %v6032_v1  ;;  %v6077_v52 = vand.u32 2147483647, %v6032_v1 }
 0xbc2   :  { %6159 = vst.msk [vmem:[%s13482_s11] sm:$0xff] %vm6158_vm4, %v6051_v45  ;;  %v6055_v63 = vsub.f32 1.0, %v6054_v53  ;;  %9358 = vpow2.f32 %v8510_v48  ;;  %6000 = vmatmul.bf16.gmra.mxu1 %v5908_v62  ;;  %vm6073_vm11 = vweird.f32 %v6032_v1 }
 0xbc3   :  { %v5996_v38 = vpop.f32.mrf.mxu1  ;;  %v6080_v46 = vor.u32 1.1754944e-38, %v6079_v6  ;;  %vm6078_vm13 = vcmp.eq.f32.partialorder %v6077_v52, 8.507059e+37 }
 0xbc4   :  { %v6056_v61 = vmul.f32 %v9355_v4, %v6055_v63  ;;  %v5997_v3 = vadd.f32 %v13427_v54, %v5996_v38 }
 0xbc6   :  { %v6057_v0 = vadd.f32 %v9355_v4, %v6056_v61  ;;  %v8511_v24 = vmul.f32 -1.442695, %v5997_v3 }
 0xbc7   :  { %v9357_v57 = vpop.eup %9356 }
 0xbc8   :  { %v9359_v30 = vpop.eup %9358  ;;  %v6061_v8 = vsel %vm6060_vm8, %v9355_v4, %v6057_v0  ;;  %v6069_v13 = vmul.f32 %v9357_v57, %v6032_v1  ;;  %9360 = vpow2.f32 %v8511_v24  ;;  %vm6074_vm10 = vweird.f32 %v9357_v57 }
 0xbc9   :  { %v6066_v47 = vsel %vm6063_vm9, %v6065_v41, %v6061_v8  ;;  %v6033_v34 = vadd.f32 1.0, %v9359_v30  ;;  %vm6075_vm12 = vmor %vm6073_vm11, %vm6074_vm10 }
 0xbca   :  { %6160 = vst.msk [vmem:[%s13482_s11 + $0x8] sm:$0xff] %vm6158_vm4, %v6066_v47  ;;  %v6070_v23 = vsub.f32 1.0, %v6069_v13 }
 0xbcb   :  { %9362 = vrcp.f32 %v6033_v34  ;;  %v5998_v21 = vpop.f32.mrf.mxu1  ;;  %v6094_v29 = vand.u32 2147483648, %v6033_v34  ;;  %v6092_v49 = vand.u32 2147483647, %v6033_v34  ;;  %vm6088_vm15 = vweird.f32 %v6033_v34 }
 0xbcc   :  { %v6071_v7 = vmul.f32 %v9357_v57, %v6070_v23  ;;  %v5999_v43 = vadd.f32 %v13427_v54, %v5998_v21 }
 0xbcd   :  { %v6095_v35 = vor.u32 1.1754944e-38, %v6094_v29  ;;  %vm6093_vm1 = vcmp.eq.f32.partialorder %v6092_v49, 8.507059e+37 }
 0xbce   :  { %v9361_v14 = vpop.eup %9360  ;;  %v6072_v60 = vadd.f32 %v9357_v57, %v6071_v7  ;;  %v8512_v33 = vmul.f32 -1.442695, %v5999_v43 }
 0xbcf   :  { %v6034_v17 = vadd.f32 1.0, %v9361_v14 }
 0xbd0   :  { %v6076_v19 = vsel %vm6075_vm12, %v9357_v57, %v6072_v60  ;;  %9364 = vpow2.f32 %v8512_v33 }
 0xbd1   :  { %v9363_v2 = vpop.eup %9362  ;;  %v6081_v55 = vsel %vm6078_vm13, %v6080_v46, %v6076_v19  ;;  %9366 = vrcp.f32 %v6034_v17  ;;  %v6109_v20 = vand.u32 2147483648, %v6034_v17  ;;  %v6107_v58 = vand.u32 2147483647, %v6034_v17 }
 0xbd2   :  { %6161 = vst.msk [vmem:[%s13482_s11 + $0x10] sm:$0xff] %vm6158_vm4, %v6081_v55  ;;  %v6084_v59 = vmul.f32 %v9363_v2, %v6033_v34  ;;  %vm6089_vm14 = vweird.f32 %v9363_v2  ;;  %vm6103_vm3 = vweird.f32 %v6034_v17 }
 0xbd3   :  { %vm6090_vm0 = vmor %vm6088_vm15, %vm6089_vm14  ;;  %v6110_v37 = vor.u32 1.1754944e-38, %v6109_v20  ;;  %vm6108_vm6 = vcmp.eq.f32.partialorder %v6107_v58, 8.507059e+37 }
 0xbd4   :  { %v6085_v50 = vsub.f32 1.0, %v6084_v59 }
 0xbd6   :  { %v9365_v22 = vpop.eup %9364  ;;  %v6086_v18 = vmul.f32 %v9363_v2, %v6085_v50 }
 0xbd7   :  { %v9367_v32 = vpop.eup %9366  ;;  %v6035_v10 = vadd.f32 1.0, %v9365_v22 }
 0xbd8   :  { %v6087_v26 = vadd.f32 %v9363_v2, %v6086_v18  ;;  %v6099_v11 = vmul.f32 %v9367_v32, %v6034_v17  ;;  %vm6104_vm2 = vweird.f32 %v9367_v32 }
 0xbd9   :  { %9368 = vrcp.f32 %v6035_v10  ;;  %vm6105_vm5 = vmor %vm6103_vm3, %vm6104_vm2  ;;  %v6124_v9 = vand.u32 2147483648, %v6035_v10  ;;  %v6122_v48 = vand.u32 2147483647, %v6035_v10  ;;  %vm6118_vm8 = vweird.f32 %v6035_v10 }
 0xbda   :  { %v6091_v15 = vsel %vm6090_vm0, %v9363_v2, %v6087_v26  ;;  %v6100_v51 = vsub.f32 1.0, %v6099_v11 }
 0xbdb   :  { %v6096_v12 = vsel %vm6093_vm1, %v6095_v35, %v6091_v15  ;;  %v6125_v27 = vor.u32 1.1754944e-38, %v6124_v9  ;;  %vm6123_vm10 = vcmp.eq.f32.partialorder %v6122_v48, 8.507059e+37 }
 0xbdc   :  { %6162 = vst.msk [vmem:[%s13482_s11 + $0x18] sm:$0xff] %vm6158_vm4, %v6096_v12  ;;  %v6101_v42 = vmul.f32 %v9367_v32, %v6100_v51 }
 0xbde   :  { %v6102_v36 = vadd.f32 %v9367_v32, %v6101_v42 }
 0xbdf   :  { %v9369_v25 = vpop.eup %9368 }
 0xbe0   :  { %v6106_v56 = vsel %vm6105_vm5, %v9367_v32, %v6102_v36  ;;  %v6114_v28 = vmul.f32 %v9369_v25, %v6035_v10  ;;  %vm6119_vm7 = vweird.f32 %v9369_v25 }
 0xbe1   :  { %v6111_v39 = vsel %vm6108_vm6, %v6110_v37, %v6106_v56  ;;  %vm6120_vm9 = vmor %vm6118_vm8, %vm6119_vm7 }
 0xbe2   :  { %6163 = vst.msk [vmem:[%s13482_s11 + $0x20] sm:$0xff] %vm6158_vm4, %v6111_v39  ;;  %v6115_v40 = vsub.f32 1.0, %v6114_v28 }
 0xbe4   :  { %v6116_v44 = vmul.f32 %v9369_v25, %v6115_v40 }
 0xbe6   :  { %v6117_v4 = vadd.f32 %v9369_v25, %v6116_v44 }
 0xbe8   :  { %v6121_v1 = vsel %vm6120_vm9, %v9369_v25, %v6117_v4 }
 0xbe9   :  { %v6126_v31 = vsel %vm6123_vm10, %v6125_v27, %v6121_v1 }
 0xbea   :  { %6164 = vst.msk [vmem:[%s13482_s11 + $0x28] sm:$0xff] %vm6158_vm4, %v6126_v31 }
 0xc3f   :  { %v6001_v53 = vpop.f32.mrf.mxu1 }
 0xc40   :  { %v6002_v62 = vadd.f32 %v13427_v54, %v6001_v53 }
 0xc42   :  { %v8513_v45 = vmul.f32 -1.442695, %v6002_v62 }
 0xc44   :  { %9370 = vpow2.f32 %v8513_v45 }
 0xc47   :  { %v6003_v63 = vpop.f32.mrf.mxu1 }
 0xc48   :  { %v6004_v5 = vadd.f32 %v13427_v54, %v6003_v63 }
 0xc4a   :  { %v9371_v38 = vpop.eup %9370  ;;  %v8514_v61 = vmul.f32 -1.442695, %v6004_v5 }
 0xc4b   :  { %v6036_v16 = vadd.f32 1.0, %v9371_v38 }
 0xc4c   :  { %9372 = vpow2.f32 %v8514_v61 }
 0xc4d   :  { %9374 = vrcp.f32 %v6036_v16  ;;  %v6139_v30 = vand.u32 2147483648, %v6036_v16  ;;  %v6137_v13 = vand.u32 2147483647, %v6036_v16  ;;  %vm6133_vm12 = vweird.f32 %v6036_v16 }
 0xc4f   :  { %v6140_v54 = vor.u32 1.1754944e-38, %v6139_v30  ;;  %vm6138_vm14 = vcmp.eq.f32.partialorder %v6137_v13, 8.507059e+37 }
 0xc52   :  { %v9373_v3 = vpop.eup %9372 }
 0xc53   :  { %v9375_v0 = vpop.eup %9374  ;;  %v6037_v24 = vadd.f32 1.0, %v9373_v3 }
 0xc54   :  { %v6129_v57 = vmul.f32 %v9375_v0, %v6036_v16  ;;  %vm6134_vm11 = vweird.f32 %v9375_v0 }
 0xc55   :  { %9376 = vrcp.f32 %v6037_v24  ;;  %vm6135_vm13 = vmor %vm6133_vm12, %vm6134_vm11  ;;  %v6154_v52 = vand.u32 2147483648, %v6037_v24  ;;  %v6152_v14 = vand.u32 2147483647, %v6037_v24  ;;  %vm6148_vm0 = vweird.f32 %v6037_v24 }
 0xc56   :  { %v6130_v41 = vsub.f32 1.0, %v6129_v57 }
 0xc57   :  { %v6155_v33 = vor.u32 1.1754944e-38, %v6154_v52  ;;  %vm6153_vm2 = vcmp.eq.f32.partialorder %v6152_v14, 8.507059e+37 }
 0xc58   :  { %v6131_v8 = vmul.f32 %v9375_v0, %v6130_v41 }
 0xc5a   :  { %v6132_v47 = vadd.f32 %v9375_v0, %v6131_v8 }
 0xc5b   :  { %v9377_v34 = vpop.eup %9376 }
 0xc5c   :  { %v6136_v23 = vsel %vm6135_vm13, %v9375_v0, %v6132_v47  ;;  %v6144_v6 = vmul.f32 %v9377_v34, %v6037_v24  ;;  %vm6149_vm15 = vweird.f32 %v9377_v34 }
 0xc5d   :  { %v6141_v21 = vsel %vm6138_vm14, %v6140_v54, %v6136_v23  ;;  %vm6150_vm1 = vmor %vm6148_vm0, %vm6149_vm15 }
 0xc5e   :  { %6165 = vst.msk [vmem:[%s13482_s11 + $0x30] sm:$0xff] %vm6158_vm4, %v6141_v21  ;;  %v6145_v7 = vsub.f32 1.0, %v6144_v6 }
 0xc60   :  { %v6146_v43 = vmul.f32 %v9377_v34, %v6145_v7 }
 0xc62   :  { %v6147_v60 = vadd.f32 %v9377_v34, %v6146_v43 }
 0xc64   :  { %v6151_v46 = vsel %vm6150_vm1, %v9377_v34, %v6147_v60 }
 0xc65   :  { %v6156_v17 = vsel %vm6153_vm2, %v6155_v33, %v6151_v46 }
 0xc66   :  { %6166 = vst.msk [vmem:[%s13482_s11 + $0x38] sm:$0xff] %vm6158_vm4, %v6156_v17 }

</bundles_post_ra>
